<compile_context>
chip_gen: v5e
topology: v5e:2x2
jax: 0.10.0
libtpu: 0.0.40
codegen_flags: <defaults>
</compile_context>

<pallas_src>
import functools

import jax
import jax.numpy as jnp
from jax.experimental import pallas as pl
from jax.experimental.pallas import tpu as pltpu

# MXU operand / intermediate-activation dtype (f32 accumulation is always kept).
MXU_DTYPE = jnp.bfloat16


# ----------------------------------------------------------------------------
# Small helpers
# ----------------------------------------------------------------------------
def _round_up(x, m):
    return (x + m - 1) // m * m


def _largest_divisor_leq(n, cap):
    for c in range(min(n, cap), 0, -1):
        if n % c == 0:
            return c
    return 1


def _pick_tile(dim, cap):
    """(tile, padded_dim).  Full-dim block (no padding) when the dim fits the cap;
    otherwise a cap-sized tile with the dim rounded up to a multiple of it."""
    if dim <= cap:
        return dim, dim
    return cap, _round_up(dim, cap)


def _pick_time_chunk(T):
    """Time-chunk size for the GRU scan.  Prefer a divisor of T (no padding); fall back
    to a regular 32-step chunk with padding (padded steps are masked in-kernel)."""
    Tc = _largest_divisor_leq(T, 32)
    if Tc >= 8 or Tc == T:
        return Tc, T
    Tc = min(32, _round_up(T, 8))
    return Tc, _round_up(T, Tc)


def _erf(x):
    # Abramowitz & Stegun 7.1.26 (max abs err ~1.5e-7); exp/mul/add only.
    p = 0.3275911
    a1, a2, a3, a4, a5 = 0.254829592, -0.284496736, 1.421413741, -1.453152027, 1.061405429
    s = jnp.where(x >= 0.0, 1.0, -1.0)
    z = jnp.abs(x)
    t = 1.0 / (1.0 + p * z)
    poly = ((((a5 * t + a4) * t + a3) * t + a2) * t + a1) * t
    return s * (1.0 - poly * jnp.exp(-z * z))


def _gelu(x):
    return 0.5 * x * (1.0 + _erf(x * 0.7071067811865476))


# ----------------------------------------------------------------------------
# Tiled matmul kernel: out = act( x @ w + b ) [+ residual]
# ----------------------------------------------------------------------------
def _mm_kernel(x_ref, w_ref, b_ref, *rest, apply_gelu, has_residual):
    if has_residual:
        r_ref, o_ref, acc_ref = rest
    else:
        r_ref = None
        o_ref, acc_ref = rest

    k = pl.program_id(2)

    @pl.when(k == 0)
    def _():
        acc_ref[...] = jnp.zeros_like(acc_ref)

    acc_ref[...] += jnp.dot(x_ref[...], w_ref[...],
                            preferred_element_type=jnp.float32)

    @pl.when(k == pl.num_programs(2) - 1)
    def _():
        y = acc_ref[...] + b_ref[...]
        if apply_gelu:
            y = _gelu(y)
        if has_residual:
            y = y + r_ref[...].astype(jnp.float32)
        o_ref[...] = y.astype(o_ref.dtype)


def pallas_matmul(x, w, b, apply_gelu=False, residual=None, out_dtype=jnp.float32):
    """x:(M,K) @ w:(K,N) + b:(N,)   [-> GELU] [+ residual]  ->  (M,N) out_dtype.
    Full-dim blocks for small dims (no pad copies); bf16 MXU operands, f32 accum."""
    M, K = x.shape
    N = w.shape[1]
    tm, Mp = _pick_tile(M, 256)
    tn, Np = _pick_tile(N, 512)   # v5e/v6e can afford 512; keep <=256 tm for v7x VMEM
    tk, Kp = _pick_tile(K, 512)

    xp = x.astype(MXU_DTYPE)
    if (Mp, Kp) != (M, K):
        xp = jnp.pad(xp, ((0, Mp - M), (0, Kp - K)))
    wp = w.astype(MXU_DTYPE)
    if (Kp, Np) != (K, N):
        wp = jnp.pad(wp, ((0, Kp - K), (0, Np - N)))
    bp = b.astype(jnp.float32).reshape(1, N)
    if Np != N:
        bp = jnp.pad(bp, ((0, 0), (0, Np - N)))

    ins = [xp, wp, bp]
    in_specs = [
        pl.BlockSpec((tm, tk), lambda i, j, k: (i, k)),
        pl.BlockSpec((tk, tn), lambda i, j, k: (k, j)),
        pl.BlockSpec((1, tn), lambda i, j, k: (0, j)),
    ]
    has_res = residual is not None
    if has_res:
        rp = residual
        if (Mp, Np) != (M, N):
            rp = jnp.pad(rp, ((0, Mp - M), (0, Np - N)))
        ins.append(rp)
        in_specs.append(pl.BlockSpec((tm, tn), lambda i, j, k: (i, j)))

    out = pl.pallas_call(
        functools.partial(_mm_kernel, apply_gelu=apply_gelu, has_residual=has_res),
        out_shape=jax.ShapeDtypeStruct((Mp, Np), out_dtype),
        grid=(Mp // tm, Np // tn, Kp // tk),
        in_specs=in_specs,
        out_specs=pl.BlockSpec((tm, tn), lambda i, j, k: (i, j)),
        scratch_shapes=[pltpu.VMEM((tm, tn), jnp.float32)],
        compiler_params=pltpu.CompilerParams(
            dimension_semantics=("parallel", "parallel", "arbitrary")),
    )(*ins)
    if (Mp, Np) != (M, N):
        out = out[:M, :N]
    return out


# ----------------------------------------------------------------------------
# Fused LayerNorm + GELU + matmul (full-K block): out = GELU(LN(x)) @ w + b
# ----------------------------------------------------------------------------
def _ln_mm_kernel(x_ref, g_ref, b_ref, w_ref, bias_ref, o_ref, *, eps):
    x = x_ref[...].astype(jnp.float32)                       # (tm, K)
    mu = jnp.mean(x, axis=-1, keepdims=True)
    xc = x - mu
    var = jnp.mean(xc * xc, axis=-1, keepdims=True)
    y = xc * jax.lax.rsqrt(var + eps) * g_ref[...] + b_ref[...]
    y = _gelu(y)
    acc = jnp.dot(y.astype(w_ref.dtype), w_ref[...],
                  preferred_element_type=jnp.float32) + bias_ref[...]
    o_ref[...] = acc.astype(o_ref.dtype)


def pallas_ln_gelu_matmul(x, gamma, beta, w, b, eps=1e-5, out_dtype=jnp.float32):
    """LayerNorm(+GELU) over the last dim of x fused into the matmul epilogue-free
    single-K-step GEMM.  K (= feature dim) must fit one block (true for this model)."""
    M, K = x.shape
    N = w.shape[1]
    tm, Mp = _pick_tile(M, 256)
    tn, Np = _pick_tile(N, 512)

    xp = x if Mp == M else jnp.pad(x, ((0, Mp - M), (0, 0)))
    wp = w.astype(MXU_DTYPE)
    bp = b.astype(jnp.float32).reshape(1, N)
    if Np != N:
        wp = jnp.pad(wp, ((0, 0), (0, Np - N)))
        bp = jnp.pad(bp, ((0, 0), (0, Np - N)))

    out = pl.pallas_call(
        functools.partial(_ln_mm_kernel, eps=eps),
        out_shape=jax.ShapeDtypeStruct((Mp, Np), out_dtype),
        grid=(Mp // tm, Np // tn),
        in_specs=[
            pl.BlockSpec((tm, K), lambda i, j: (i, 0)),
            pl.BlockSpec((1, K), lambda i, j: (0, 0)),
            pl.BlockSpec((1, K), lambda i, j: (0, 0)),
            pl.BlockSpec((K, tn), lambda i, j: (0, j)),
            pl.BlockSpec((1, tn), lambda i, j: (0, j)),
        ],
        out_specs=pl.BlockSpec((tm, tn), lambda i, j: (i, j)),
        compiler_params=pltpu.CompilerParams(
            dimension_semantics=("parallel", "parallel")),
    )(xp, gamma.astype(jnp.float32).reshape(1, K),
      beta.astype(jnp.float32).reshape(1, K), wp, bp)
    if (Mp, Np) != (M, N):
        out = out[:M, :N]
    return out


# ----------------------------------------------------------------------------
# CNN LayerNorm(+GELU) over the feature (F) axis of a (rows, F, C) block
# ----------------------------------------------------------------------------
def _cnn_ln_kernel(x_ref, g_ref, b_ref, o_ref, *, eps):
    x = x_ref[...].astype(jnp.float32)          # (rows, F, C); normalize over F
    mu = jnp.mean(x, axis=1, keepdims=True)
    xc = x - mu
    var = jnp.mean(xc * xc, axis=1, keepdims=True)
    y = xc * jax.lax.rsqrt(var + eps)
    y = y * g_ref[...] + b_ref[...]
    o_ref[...] = _gelu(y).astype(o_ref.dtype)


def pallas_cnn_ln_gelu(x3d, gamma, beta, eps=1e-5):
    """x3d: (R, F, C) with R = B*T rows; LayerNorm over F (per b,t,c), fused GELU."""
    R, F, C = x3d.shape
    tr, Rp = _pick_tile(R, 256)
    xp = x3d if Rp == R else jnp.pad(x3d, ((0, Rp - R), (0, 0), (0, 0)))
    g2 = jnp.broadcast_to(gamma.reshape(F, 1).astype(jnp.float32), (F, C))
    b2 = jnp.broadcast_to(beta.reshape(F, 1).astype(jnp.float32), (F, C))
    out = pl.pallas_call(
        functools.partial(_cnn_ln_kernel, eps=eps),
        out_shape=jax.ShapeDtypeStruct((Rp, F, C), MXU_DTYPE),
        grid=(Rp // tr,),
        in_specs=[
            pl.BlockSpec((tr, F, C), lambda i: (i, 0, 0)),
            pl.BlockSpec((F, C), lambda i: (0, 0)),
            pl.BlockSpec((F, C), lambda i: (0, 0)),
        ],
        out_specs=pl.BlockSpec((tr, F, C), lambda i: (i, 0, 0)),
        compiler_params=pltpu.CompilerParams(dimension_semantics=("parallel",)),
    )(xp, g2, b2)
    return out if Rp == R else out[:R]


# ----------------------------------------------------------------------------
# Fused bidirectional GRU scan (time-major; bwd direction via reversed index maps)
# ----------------------------------------------------------------------------
def _bigru_kernel(xpf_ref, xpb_ref, whf_ref, whb_ref, bhf_ref, bhb_ref,
                  of_ref, ob_ref, hf_scr, hb_scr, *, hidden, tc, t_real):
    c = pl.program_id(0)
    nc = pl.num_programs(0)

    @pl.when(c == 0)
    def _():
        hf_scr[...] = jnp.zeros_like(hf_scr)
        hb_scr[...] = jnp.zeros_like(hb_scr)

    H = hidden

    def step(i, carry):
        h_f = hf_scr[...]                                   # (B, H) f32 carries
        h_b = hb_scr[...]
        # hidden projections: bf16 operands, f32 accumulation, per-direction weights
        hp_f = jnp.dot(h_f.astype(whf_ref.dtype), whf_ref[...],
                       preferred_element_type=jnp.float32) + bhf_ref[...]
        hp_b = jnp.dot(h_b.astype(whb_ref.dtype), whb_ref[...],
                       preferred_element_type=jnp.float32) + bhb_ref[...]
        xf = xpf_ref[i].astype(jnp.float32)                 # fwd: in-chunk forward order
        xb = xpb_ref[tc - 1 - i].astype(jnp.float32)        # bwd: in-chunk reverse order
        # column layout per direction: [r | z | n]
        r_f = jax.nn.sigmoid(xf[:, :H] + hp_f[:, :H])
        z_f = jax.nn.sigmoid(xf[:, H:2 * H] + hp_f[:, H:2 * H])
        n_f = jnp.tanh(xf[:, 2 * H:] + r_f * hp_f[:, 2 * H:])
        hf_new = (1.0 - z_f) * n_f + z_f * h_f

        r_b = jax.nn.sigmoid(xb[:, :H] + hp_b[:, :H])
        z_b = jax.nn.sigmoid(xb[:, H:2 * H] + hp_b[:, H:2 * H])
        n_b = jnp.tanh(xb[:, 2 * H:] + r_b * hp_b[:, 2 * H:])
        hb_new = (1.0 - z_b) * n_b + z_b * h_b
        # mask padded timesteps: the bwd scan hits them first, keep its carry unchanged
        t_b = (nc - 1 - c) * tc + (tc - 1 - i)
        hb_new = jnp.where(t_b < t_real, hb_new, h_b)

        hf_scr[...] = hf_new
        hb_scr[...] = hb_new
        of_ref[i] = hf_new.astype(of_ref.dtype)
        ob_ref[tc - 1 - i] = hb_new.astype(ob_ref.dtype)
        return carry

    jax.lax.fori_loop(0, tc, step, 0, unroll=True)


def pallas_bigru_scan(xp_f, xp_b, whh_f, whh_b, bhh_f, bhh_b, *, hidden, t_real, t_chunk):
    """xp_f/xp_b: (Tp, B, 3H) time-major input projections (both in FORWARD time order).
    Returns (out_f, out_b), each (Tp, B, H), both already in forward time order."""
    Tp, B, H3 = xp_f.shape
    nc = Tp // t_chunk
    bhf = bhh_f.astype(jnp.float32).reshape(1, H3)
    bhb = bhh_b.astype(jnp.float32).reshape(1, H3)

    kern = functools.partial(_bigru_kernel, hidden=hidden, tc=t_chunk, t_real=t_real)
    out_f, out_b = pl.pallas_call(
        kern,
        out_shape=(jax.ShapeDtypeStruct((Tp, B, hidden), MXU_DTYPE),
                   jax.ShapeDtypeStruct((Tp, B, hidden), MXU_DTYPE)),
        grid=(nc,),
        in_specs=[
            pl.BlockSpec((t_chunk, B, H3), lambda c: (c, 0, 0)),
            pl.BlockSpec((t_chunk, B, H3), lambda c, n=nc: (n - 1 - c, 0, 0)),
            pl.BlockSpec((hidden, H3), lambda c: (0, 0)),
            pl.BlockSpec((hidden, H3), lambda c: (0, 0)),
            pl.BlockSpec((1, H3), lambda c: (0, 0)),
            pl.BlockSpec((1, H3), lambda c: (0, 0)),
        ],
        out_specs=(
            pl.BlockSpec((t_chunk, B, hidden), lambda c: (c, 0, 0)),
            pl.BlockSpec((t_chunk, B, hidden), lambda c, n=nc: (n - 1 - c, 0, 0)),
        ),
        scratch_shapes=[pltpu.VMEM((B, hidden), jnp.float32),
                        pltpu.VMEM((B, hidden), jnp.float32)],
        # carry over the time axis -> must stay sequential ("arbitrary")
        compiler_params=pltpu.CompilerParams(dimension_semantics=("arbitrary",)),
    )(xp_f, xp_b, whh_f, whh_b, bhf, bhb)
    return out_f, out_b


# ----------------------------------------------------------------------------
# Model building blocks (layout glue in JAX, all compute in Pallas)
# ----------------------------------------------------------------------------
def _im2col_nhwc(x, k, stride, pad):
    """x: (B, T, F, C) channels-last -> patches (B*To*Fo, k*k*C), flatten order (kt,kf,ci)."""
    B, Ti, Fi, Ci = x.shape
    xp = jnp.pad(x, ((0, 0), (pad, pad), (pad, pad), (0, 0)))
    To = (Ti + 2 * pad - k) // stride + 1
    Fo = (Fi + 2 * pad - k) // stride + 1
    cols = []
    for kt in range(k):
        for kf in range(k):
            cols.append(xp[:, kt:kt + stride * To:stride, kf:kf + stride * Fo:stride, :])
    patches = jnp.stack(cols, axis=3)                       # (B, To, Fo, k*k, C)
    return patches.reshape(B * To * Fo, k * k * Ci), To, Fo


def conv2d_nhwc(x, w, b, stride, padding, residual=None, out_dtype=MXU_DTYPE):
    """PyTorch Conv2d (weight (Cout,Cin,kF,kT), spatial=(F,T)) on a channels-last
    (B, T, F, Cin) activation via im2col + tiled Pallas matmul -> (B, To, Fo, Cout)."""
    # TODO(synk): fold the kxk taps into the matmul K-grid with shifted manual DMA to
    # avoid the 9x im2col materialization in HBM.
    B, Ti, Fi, Ci = x.shape
    Cout, _, kh, kw = w.shape
    k = kh
    patches, To, Fo = _im2col_nhwc(x, k, stride, padding)
    w2 = jnp.transpose(w, (3, 2, 1, 0)).reshape(k * k * Ci, Cout)   # (kt, kf, ci) order
    y = pallas_matmul(patches, w2, b, residual=residual, out_dtype=out_dtype)
    return y.reshape(B, To, Fo, Cout)


def residual_cnn(x, p):
    """x: (B, T, F, C) channels-last.  LN(F)+GELU -> conv -> LN(F)+GELU -> conv (+residual)."""
    B, T, F, C = x.shape
    y = pallas_cnn_ln_gelu(x.reshape(B * T, F, C), p['ln1_g'], p['ln1_b']).reshape(B, T, F, C)
    y = conv2d_nhwc(y, p['conv1_w'], p['conv1_b'], stride=1, padding=1)
    y = pallas_cnn_ln_gelu(y.reshape(B * T, F, C), p['ln2_g'], p['ln2_b']).reshape(B, T, F, C)
    out = conv2d_nhwc(y, p['conv2_w'], p['conv2_b'], stride=1, padding=1,
                      residual=x.reshape(B * T * F, C))     # residual add fused in epilogue
    return out


def bigru_layer(h, p, H):
    """h: (T, B, D) time-major.  LayerNorm+GELU fused into the GRU input projections;
    both directions run in a single scan kernel (bwd via reversed index maps)."""
    T, B, D = h.shape
    x2 = h.reshape(T * B, D)

    # Per-direction input projections; PyTorch weight (3H, D) rows [r; z; n] -> (D, 3H).
    xp_f = pallas_ln_gelu_matmul(x2, p['ln_g'], p['ln_b'],
                                 p['wih_fwd'].T, p['bih_fwd'], out_dtype=MXU_DTYPE)
    xp_b = pallas_ln_gelu_matmul(x2, p['ln_g'], p['ln_b'],
                                 p['wih_bwd'].T, p['bih_bwd'], out_dtype=MXU_DTYPE)
    xp_f = xp_f.reshape(T, B, 3 * H)
    xp_b = xp_b.reshape(T, B, 3 * H)

    Tc, Tp = _pick_time_chunk(T)
    if Tp != T:
        padw = ((0, Tp - T), (0, 0), (0, 0))
        xp_f = jnp.pad(xp_f, padw)
        xp_b = jnp.pad(xp_b, padw)

    out_f, out_b = pallas_bigru_scan(
        xp_f, xp_b,
        p['whh_fwd'].T.astype(MXU_DTYPE), p['whh_bwd'].T.astype(MXU_DTYPE),
        p['bhh_fwd'], p['bhh_bwd'],
        hidden=H, t_real=T, t_chunk=Tc)
    if Tp != T:
        out_f, out_b = out_f[:T], out_b[:T]
    # dropout: inference -> identity
    return jnp.concatenate([out_f, out_b], axis=-1)          # (T, B, 2H)


def asr1_forward(x, params):
    """x: (B, n_feats, T) float32 -> (logits (B, T//2, 29), None)."""
    B, F, T = x.shape
    # channels-last layout for the CNN stage: (B, T, F, C)
    xin = x.transpose(0, 2, 1)[..., None].astype(MXU_DTYPE)
    y = conv2d_nhwc(xin, params['cnn_w'], params['cnn_b'], stride=2, padding=1)
    for p in params['rescnn']:
        y = residual_cnn(y, p)
    B_, Tp, Fp, C = y.shape
    # PyTorch: view(B, C*F, T).transpose(1,2) -> features flattened in (c, f) order.
    # We go straight to TIME-MAJOR rows (t, b) so the whole RNN stack needs no transposes.
    feat = y.transpose(1, 0, 3, 2).reshape(Tp * B_, C * Fp)
    h = pallas_matmul(feat, params['fc_w'].T, params['fc_b'], out_dtype=MXU_DTYPE)
    h = h.reshape(Tp, B_, -1)                               # (T, B, rnn_dim) time-major
    for p in params['birnn']:
        h = bigru_layer(h, p, params['rnn_dim'])
    T2, B2, D2 = h.shape
    z = pallas_matmul(h.reshape(T2 * B2, D2), params['cls_w1'].T, params['cls_b1'],
                      apply_gelu=True, out_dtype=MXU_DTYPE)  # Linear -> GELU (-> dropout id)
    z = pallas_matmul(z, params['cls_w2'].T, params['cls_b2'], out_dtype=jnp.float32)
    z = z.reshape(T2, B2, -1).transpose(1, 0, 2)             # back to batch-major logits
    return z, None


# ----------------------------------------------------------------------------
# Deterministic parameter init (synthetic; shapes follow the PyTorch __init__)
# ----------------------------------------------------------------------------
def init_params(key, n_feats, rnn_dim, n_rnn_layers, n_cnn_layers):
    nf = n_feats // 2
    keys = iter(jax.random.split(key, 128))

    def u(shape, scale=0.1):
        return jax.random.uniform(next(keys), shape, jnp.float32, -scale, scale)

    params = {'rnn_dim': rnn_dim}
    params['cnn_w'] = u((32, 1, 3, 3))
    params['cnn_b'] = u((32,))
    params['rescnn'] = []
    for _ in range(n_cnn_layers):
        params['rescnn'].append(dict(
            ln1_g=jnp.ones((nf,), jnp.float32), ln1_b=jnp.zeros((nf,), jnp.float32),
            conv1_w=u((32, 32, 3, 3)), conv1_b=u((32,)),
            ln2_g=jnp.ones((nf,), jnp.float32), ln2_b=jnp.zeros((nf,), jnp.float32),
            conv2_w=u((32, 32, 3, 3)), conv2_b=u((32,)),
        ))
    params['fc_w'] = u((rnn_dim, nf * 32))
    params['fc_b'] = u((rnn_dim,))
    params['birnn'] = []
    for i in range(n_rnn_layers):
        D = rnn_dim if i == 0 else rnn_dim * 2
        H = rnn_dim
        params['birnn'].append(dict(
            ln_g=jnp.ones((D,), jnp.float32), ln_b=jnp.zeros((D,), jnp.float32),
            wih_fwd=u((3 * H, D)), whh_fwd=u((3 * H, H)),
            bih_fwd=u((3 * H,)), bhh_fwd=u((3 * H,)),
            wih_bwd=u((3 * H, D)), whh_bwd=u((3 * H, H)),
            bih_bwd=u((3 * H,)), bhh_bwd=u((3 * H,)),
        ))
    params['cls_w1'] = u((rnn_dim, 2 * rnn_dim))
    params['cls_b1'] = u((rnn_dim,))
    params['cls_w2'] = u((29, rnn_dim))
    params['cls_b2'] = u((29,))
    return params


# ----------------------------------------------------------------------------
if __name__ == "__main__":
    key = jax.random.PRNGKey(0)
    B, n_feats, T = 2, 16, 16
    rnn_dim, n_rnn_layers, n_cnn_layers = 32, 2, 2
    dropout = 0.1  # inference -> identity

    params = init_params(key, n_feats, rnn_dim, n_rnn_layers, n_cnn_layers)
    x = jax.random.normal(jax.random.fold_in(key, 999), (B, n_feats, T), dtype=jnp.float32)

    fwd = jax.jit(lambda xx: asr1_forward(xx, params))
    logits, aux = fwd(x)
    logits = jax.block_until_ready(logits)

    assert logits.shape == (B, T // 2, 29), logits.shape
    assert aux is None
    assert bool(jnp.all(jnp.isfinite(logits)))
    print("KERNEL_OK")
</pallas_src>

<mosaic_0001>
module attributes {stable_mosaic.version = 11 : i64} {
  func.func @_mm_kernel(%arg0: i32, %arg1: i32, %arg2: i32, %arg3: memref<128x9xbf16, #tpu.memory_space<vmem>>, %arg4: memref<9x32xbf16, #tpu.memory_space<vmem>>, %arg5: memref<1x32xf32, #tpu.memory_space<vmem>>, %arg6: memref<128x32xbf16, #tpu.memory_space<vmem>>, %arg7: memref<128x32xf32, #tpu.memory_space<vmem>>) attributes {dimension_semantics = [#tpu.dimension_semantics<parallel>, #tpu.dimension_semantics<parallel>, #tpu.dimension_semantics<arbitrary>], iteration_bounds = array<i64: 1, 1, 1>, scalar_prefetch = 0 : i64, scratch_operands = 1 : i64, tpu.core_type = #tpu.core_type<tc>, window_params = [{transform_indices = @transform_0, window_bounds = array<i64: 128, 9>}, {transform_indices = @transform_1, window_bounds = array<i64: 9, 32>}, {transform_indices = @transform_2, window_bounds = array<i64: 1, 32>}, {transform_indices = @transform_3, window_bounds = array<i64: 128, 32>}]} {
    %c0_i32 = arith.constant 0 : i32
    %0 = arith.cmpi eq, %arg2, %c0_i32 : i32
    %1 = arith.extui %0 : i1 to i32
    %c0_i32_0 = arith.constant 0 : i32
    %2 = arith.cmpi ne, %1, %c0_i32_0 : i32
    scf.if %2 {
      %cst_10 = arith.constant 0.000000e+00 : f32
      %12 = vector.broadcast %cst_10 : f32 to vector<128x32xf32>
      %c0_11 = arith.constant 0 : index
      %c0_12 = arith.constant 0 : index
      %13 = vector.load %arg7[%c0_11, %c0_12] : memref<128x32xf32, #tpu.memory_space<vmem>>, vector<128x32xf32>
      tpu.vector_store %arg7[%c0_11, %c0_12], %12 {strides = array<i32>} : memref<128x32xf32, #tpu.memory_space<vmem>>, vector<128x32xf32>,
    } else {
    }
    %c0 = arith.constant 0 : index
    %c0_1 = arith.constant 0 : index
    %3 = vector.load %arg7[%c0, %c0_1] : memref<128x32xf32, #tpu.memory_space<vmem>>, vector<128x32xf32>
    %c0_2 = arith.constant 0 : index
    %c0_3 = arith.constant 0 : index
    %4 = vector.load %arg3[%c0_2, %c0_3] : memref<128x9xbf16, #tpu.memory_space<vmem>>, vector<128x9xbf16>
    %c0_4 = arith.constant 0 : index
    %c0_5 = arith.constant 0 : index
    %5 = vector.load %arg4[%c0_4, %c0_5] : memref<9x32xbf16, #tpu.memory_space<vmem>>, vector<9x32xbf16>
    %cst = arith.constant dense<0.000000e+00> : vector<128x32xf32>
    %6 = tpu.matmul %4, %5, %cst {dimension_numbers = #tpu.dot_dimension_numbers<[1], [0], [0], [1], [0, 0, 1, 1], [], []>} : vector<128x9xbf16>, vector<9x32xbf16>, vector<128x32xf32> -> vector<128x32xf32>
    %7 = arith.addf %3, %6 : vector<128x32xf32>
    %c0_6 = arith.constant 0 : index
    %c0_7 = arith.constant 0 : index
    %8 = vector.load %arg7[%c0_6, %c0_7] : memref<128x32xf32, #tpu.memory_space<vmem>>, vector<128x32xf32>
    tpu.vector_store %arg7[%c0_6, %c0_7], %7 {strides = array<i32>} : memref<128x32xf32, #tpu.memory_space<vmem>>, vector<128x32xf32>,
    %c0_i32_8 = arith.constant 0 : i32
    %9 = arith.cmpi eq, %arg2, %c0_i32_8 : i32
    %10 = arith.extui %9 : i1 to i32
    %c0_i32_9 = arith.constant 0 : i32
    %11 = arith.cmpi ne, %10, %c0_i32_9 : i32
    scf.if %11 {
      %c0_10 = arith.constant 0 : index
      %c0_11 = arith.constant 0 : index
      %12 = vector.load %arg7[%c0_10, %c0_11] : memref<128x32xf32, #tpu.memory_space<vmem>>, vector<128x32xf32>
      %c0_12 = arith.constant 0 : index
      %c0_13 = arith.constant 0 : index
      %13 = vector.load %arg5[%c0_12, %c0_13] : memref<1x32xf32, #tpu.memory_space<vmem>>, vector<1x32xf32>
      %14 = vector.broadcast %13 : vector<1x32xf32> to vector<128x32xf32>
      %15 = arith.addf %12, %14 : vector<128x32xf32>
      %16 = arith.truncf %15 : vector<128x32xf32> to vector<128x32xbf16>
      %c0_14 = arith.constant 0 : index
      %c0_15 = arith.constant 0 : index
      %17 = vector.load %arg6[%c0_14, %c0_15] : memref<128x32xbf16, #tpu.memory_space<vmem>>, vector<128x32xbf16>
      tpu.vector_store %arg6[%c0_14, %c0_15], %16 {strides = array<i32>} : memref<128x32xbf16, #tpu.memory_space<vmem>>, vector<128x32xbf16>,
    } else {
    }
    return
  }
  func.func @transform_0(%arg0: i32, %arg1: i32, %arg2: i32) -> (i32, i32) {
    %c0_i32 = arith.constant 0 : i32
    return %arg0, %arg2 : i32, i32
  }
  func.func @transform_1(%arg0: i32, %arg1: i32, %arg2: i32) -> (i32, i32) {
    %c0_i32 = arith.constant 0 : i32
    return %arg2, %arg1 : i32, i32
  }
  func.func @transform_2(%arg0: i32, %arg1: i32, %arg2: i32) -> (i32, i32) {
    %c0_i32 = arith.constant 0 : i32
    %c0_i32_0 = arith.constant 0 : i32
    return %c0_i32, %arg1 : i32, i32
  }
  func.func @transform_3(%arg0: i32, %arg1: i32, %arg2: i32) -> (i32, i32) {
    %c0_i32 = arith.constant 0 : i32
    return %arg0, %arg1 : i32, i32
  }
}

module attributes {stable_mosaic.version = 11 : i64} {
  func.func @_cnn_ln_kernel(%arg0: i32, %arg1: memref<16x8x32xbf16, #tpu.memory_space<vmem>>, %arg2: memref<8x32xf32, #tpu.memory_space<vmem>>, %arg3: memref<8x32xf32, #tpu.memory_space<vmem>>, %arg4: memref<16x8x32xbf16, #tpu.memory_space<vmem>>) attributes {dimension_semantics = [#tpu.dimension_semantics<parallel>], iteration_bounds = array<i64: 1>, scalar_prefetch = 0 : i64, scratch_operands = 0 : i64, tpu.core_type = #tpu.core_type<tc>, window_params = [{transform_indices = @transform_0, window_bounds = array<i64: 16, 8, 32>}, {pipeline_mode = #tpu.pipeline_mode<synchronous>, transform_indices = @transform_1, window_bounds = array<i64: 8, 32>}, {pipeline_mode = #tpu.pipeline_mode<synchronous>, transform_indices = @transform_2, window_bounds = array<i64: 8, 32>}, {transform_indices = @transform_3, window_bounds = array<i64: 16, 8, 32>}]} {
    %c0 = arith.constant 0 : index
    %c0_0 = arith.constant 0 : index
    %c0_1 = arith.constant 0 : index
    %0 = vector.load %arg1[%c0, %c0_0, %c0_1] : memref<16x8x32xbf16, #tpu.memory_space<vmem>>, vector<16x8x32xbf16>
    %1 = arith.extf %0 : vector<16x8x32xbf16> to vector<16x8x32xf32>
    %cst = arith.constant dense<0.000000e+00> : vector<16x32xf32>
    %2 = vector.multi_reduction <add>, %1, %cst [1] : vector<16x8x32xf32> to vector<16x32xf32>
    %3 = vector.shape_cast %2 : vector<16x32xf32> to vector<16x1x32xf32>
    %cst_2 = arith.constant 8.000000e+00 : f32
    %4 = vector.broadcast %cst_2 : f32 to vector<16x1x32xf32>
    %5 = arith.divf %3, %4 : vector<16x1x32xf32>
    %6 = vector.broadcast %5 : vector<16x1x32xf32> to vector<16x8x32xf32>
    %7 = arith.subf %1, %6 : vector<16x8x32xf32>
    %8 = arith.mulf %7, %7 : vector<16x8x32xf32>
    %cst_3 = arith.constant dense<0.000000e+00> : vector<16x32xf32>
    %9 = vector.multi_reduction <add>, %8, %cst_3 [1] : vector<16x8x32xf32> to vector<16x32xf32>
    %10 = vector.shape_cast %9 : vector<16x32xf32> to vector<16x1x32xf32>
    %cst_4 = arith.constant 8.000000e+00 : f32
    %11 = vector.broadcast %cst_4 : f32 to vector<16x1x32xf32>
    %12 = arith.divf %10, %11 : vector<16x1x32xf32>
    %cst_5 = arith.constant 9.99999974E-6 : f32
    %13 = vector.broadcast %cst_5 : f32 to vector<16x1x32xf32>
    %14 = arith.addf %12, %13 : vector<16x1x32xf32>
    %15 = math.rsqrt %14 : vector<16x1x32xf32>
    %16 = vector.broadcast %15 : vector<16x1x32xf32> to vector<16x8x32xf32>
    %17 = arith.mulf %7, %16 : vector<16x8x32xf32>
    %c0_6 = arith.constant 0 : index
    %c0_7 = arith.constant 0 : index
    %18 = vector.load %arg2[%c0_6, %c0_7] : memref<8x32xf32, #tpu.memory_space<vmem>>, vector<8x32xf32>
    %19 = vector.shape_cast %18 : vector<8x32xf32> to vector<1x8x32xf32>
    %20 = vector.broadcast %19 : vector<1x8x32xf32> to vector<16x8x32xf32>
    %21 = arith.mulf %17, %20 : vector<16x8x32xf32>
    %c0_8 = arith.constant 0 : index
    %c0_9 = arith.constant 0 : index
    %22 = vector.load %arg3[%c0_8, %c0_9] : memref<8x32xf32, #tpu.memory_space<vmem>>, vector<8x32xf32>
    %23 = vector.shape_cast %22 : vector<8x32xf32> to vector<1x8x32xf32>
    %24 = vector.broadcast %23 : vector<1x8x32xf32> to vector<16x8x32xf32>
    %25 = arith.addf %21, %24 : vector<16x8x32xf32>
    %cst_10 = arith.constant 5.000000e-01 : f32
    %26 = vector.broadcast %cst_10 : f32 to vector<16x8x32xf32>
    %27 = arith.mulf %26, %25 : vector<16x8x32xf32>
    %cst_11 = arith.constant 0.707106769 : f32
    %28 = vector.broadcast %cst_11 : f32 to vector<16x8x32xf32>
    %29 = arith.mulf %25, %28 : vector<16x8x32xf32>
    %cst_12 = arith.constant 0.000000e+00 : f32
    %30 = vector.broadcast %cst_12 : f32 to vector<16x8x32xf32>
    %31 = arith.cmpf oge, %29, %30 : vector<16x8x32xf32>
    %cst_13 = arith.constant 1.000000e+00 : f32
    %cst_14 = arith.constant -1.000000e+00 : f32
    %32 = vector.broadcast %cst_13 : f32 to vector<16x8x32xf32>
    %33 = vector.broadcast %cst_14 : f32 to vector<16x8x32xf32>
    %34 = arith.select %31, %32, %33 : vector<16x8x32xi1>, vector<16x8x32xf32>
    %35 = math.absf %29 : vector<16x8x32xf32>
    %cst_15 = arith.constant 0.327591091 : f32
    %36 = vector.broadcast %cst_15 : f32 to vector<16x8x32xf32>
    %37 = arith.mulf %36, %35 : vector<16x8x32xf32>
    %cst_16 = arith.constant 1.000000e+00 : f32
    %38 = vector.broadcast %cst_16 : f32 to vector<16x8x32xf32>
    %39 = arith.addf %38, %37 : vector<16x8x32xf32>
    %cst_17 = arith.constant 1.000000e+00 : f32
    %40 = vector.broadcast %cst_17 : f32 to vector<16x8x32xf32>
    %41 = arith.divf %40, %39 : vector<16x8x32xf32>
    %cst_18 = arith.constant 1.06140542 : f32
    %42 = vector.broadcast %cst_18 : f32 to vector<16x8x32xf32>
    %43 = arith.mulf %42, %41 : vector<16x8x32xf32>
    %cst_19 = arith.constant -1.45315206 : f32
    %44 = vector.broadcast %cst_19 : f32 to vector<16x8x32xf32>
    %45 = arith.addf %43, %44 : vector<16x8x32xf32>
    %46 = arith.mulf %45, %41 : vector<16x8x32xf32>
    %cst_20 = arith.constant 1.42141378 : f32
    %47 = vector.broadcast %cst_20 : f32 to vector<16x8x32xf32>
    %48 = arith.addf %46, %47 : vector<16x8x32xf32>
    %49 = arith.mulf %48, %41 : vector<16x8x32xf32>
    %cst_21 = arith.constant -0.284496725 : f32
    %50 = vector.broadcast %cst_21 : f32 to vector<16x8x32xf32>
    %51 = arith.addf %49, %50 : vector<16x8x32xf32>
    %52 = arith.mulf %51, %41 : vector<16x8x32xf32>
    %cst_22 = arith.constant 0.254829586 : f32
    %53 = vector.broadcast %cst_22 : f32 to vector<16x8x32xf32>
    %54 = arith.addf %52, %53 : vector<16x8x32xf32>
    %55 = arith.mulf %54, %41 : vector<16x8x32xf32>
    %cst_23 = arith.constant 0.000000e+00 : f32
    %56 = vector.broadcast %cst_23 : f32 to vector<16x8x32xf32>
    %57 = arith.subf %56, %35 : vector<16x8x32xf32>
    %58 = arith.mulf %57, %35 : vector<16x8x32xf32>
    %59 = math.exp %58 : vector<16x8x32xf32>
    %60 = arith.mulf %55, %59 : vector<16x8x32xf32>
    %cst_24 = arith.constant 1.000000e+00 : f32
    %61 = vector.broadcast %cst_24 : f32 to vector<16x8x32xf32>
    %62 = arith.subf %61, %60 : vector<16x8x32xf32>
    %63 = arith.mulf %34, %62 : vector<16x8x32xf32>
    %cst_25 = arith.constant 1.000000e+00 : f32
    %64 = vector.broadcast %cst_25 : f32 to vector<16x8x32xf32>
    %65 = arith.addf %64, %63 : vector<16x8x32xf32>
    %66 = arith.mulf %27, %65 : vector<16x8x32xf32>
    %67 = arith.truncf %66 : vector<16x8x32xf32> to vector<16x8x32xbf16>
    %c0_26 = arith.constant 0 : index
    %c0_27 = arith.constant 0 : index
    %c0_28 = arith.constant 0 : index
    %68 = vector.load %arg4[%c0_26, %c0_27, %c0_28] : memref<16x8x32xbf16, #tpu.memory_space<vmem>>, vector<16x8x32xbf16>
    tpu.vector_store %arg4[%c0_26, %c0_27, %c0_28], %67 {strides = array<i32>} : memref<16x8x32xbf16, #tpu.memory_space<vmem>>, vector<16x8x32xbf16>,
    return
  }
  func.func @transform_0(%arg0: i32) -> (i32, i32, i32) {
    %c0_i32 = arith.constant 0 : i32
    %c0_i32_0 = arith.constant 0 : i32
    %c0_i32_1 = arith.constant 0 : i32
    return %arg0, %c0_i32, %c0_i32_0 : i32, i32, i32
  }
  func.func @transform_1(%arg0: i32) -> (i32, i32) {
    %c0_i32 = arith.constant 0 : i32
    %c0_i32_0 = arith.constant 0 : i32
    %c0_i32_1 = arith.constant 0 : i32
    return %c0_i32, %c0_i32_0 : i32, i32
  }
  func.func @transform_2(%arg0: i32) -> (i32, i32) {
    %c0_i32 = arith.constant 0 : i32
    %c0_i32_0 = arith.constant 0 : i32
    %c0_i32_1 = arith.constant 0 : i32
    return %c0_i32, %c0_i32_0 : i32, i32
  }
  func.func @transform_3(%arg0: i32) -> (i32, i32, i32) {
    %c0_i32 = arith.constant 0 : i32
    %c0_i32_0 = arith.constant 0 : i32
    %c0_i32_1 = arith.constant 0 : i32
    return %arg0, %c0_i32, %c0_i32_0 : i32, i32, i32
  }
}

module attributes {stable_mosaic.version = 11 : i64} {
  func.func @_mm_kernel(%arg0: i32, %arg1: i32, %arg2: i32, %arg3: memref<128x288xbf16, #tpu.memory_space<vmem>>, %arg4: memref<288x32xbf16, #tpu.memory_space<vmem>>, %arg5: memref<1x32xf32, #tpu.memory_space<vmem>>, %arg6: memref<128x32xbf16, #tpu.memory_space<vmem>>, %arg7: memref<128x32xf32, #tpu.memory_space<vmem>>) attributes {dimension_semantics = [#tpu.dimension_semantics<parallel>, #tpu.dimension_semantics<parallel>, #tpu.dimension_semantics<arbitrary>], iteration_bounds = array<i64: 1, 1, 1>, scalar_prefetch = 0 : i64, scratch_operands = 1 : i64, tpu.core_type = #tpu.core_type<tc>, window_params = [{transform_indices = @transform_0, window_bounds = array<i64: 128, 288>}, {transform_indices = @transform_1, window_bounds = array<i64: 288, 32>}, {transform_indices = @transform_2, window_bounds = array<i64: 1, 32>}, {transform_indices = @transform_3, window_bounds = array<i64: 128, 32>}]} {
    %c0_i32 = arith.constant 0 : i32
    %0 = arith.cmpi eq, %arg2, %c0_i32 : i32
    %1 = arith.extui %0 : i1 to i32
    %c0_i32_0 = arith.constant 0 : i32
    %2 = arith.cmpi ne, %1, %c0_i32_0 : i32
    scf.if %2 {
      %cst_10 = arith.constant 0.000000e+00 : f32
      %12 = vector.broadcast %cst_10 : f32 to vector<128x32xf32>
      %c0_11 = arith.constant 0 : index
      %c0_12 = arith.constant 0 : index
      %13 = vector.load %arg7[%c0_11, %c0_12] : memref<128x32xf32, #tpu.memory_space<vmem>>, vector<128x32xf32>
      tpu.vector_store %arg7[%c0_11, %c0_12], %12 {strides = array<i32>} : memref<128x32xf32, #tpu.memory_space<vmem>>, vector<128x32xf32>,
    } else {
    }
    %c0 = arith.constant 0 : index
    %c0_1 = arith.constant 0 : index
    %3 = vector.load %arg7[%c0, %c0_1] : memref<128x32xf32, #tpu.memory_space<vmem>>, vector<128x32xf32>
    %c0_2 = arith.constant 0 : index
    %c0_3 = arith.constant 0 : index
    %4 = vector.load %arg3[%c0_2, %c0_3] : memref<128x288xbf16, #tpu.memory_space<vmem>>, vector<128x288xbf16>
    %c0_4 = arith.constant 0 : index
    %c0_5 = arith.constant 0 : index
    %5 = vector.load %arg4[%c0_4, %c0_5] : memref<288x32xbf16, #tpu.memory_space<vmem>>, vector<288x32xbf16>
    %cst = arith.constant dense<0.000000e+00> : vector<128x32xf32>
    %6 = tpu.matmul %4, %5, %cst {dimension_numbers = #tpu.dot_dimension_numbers<[1], [0], [0], [1], [0, 0, 1, 1], [], []>} : vector<128x288xbf16>, vector<288x32xbf16>, vector<128x32xf32> -> vector<128x32xf32>
    %7 = arith.addf %3, %6 : vector<128x32xf32>
    %c0_6 = arith.constant 0 : index
    %c0_7 = arith.constant 0 : index
    %8 = vector.load %arg7[%c0_6, %c0_7] : memref<128x32xf32, #tpu.memory_space<vmem>>, vector<128x32xf32>
    tpu.vector_store %arg7[%c0_6, %c0_7], %7 {strides = array<i32>} : memref<128x32xf32, #tpu.memory_space<vmem>>, vector<128x32xf32>,
    %c0_i32_8 = arith.constant 0 : i32
    %9 = arith.cmpi eq, %arg2, %c0_i32_8 : i32
    %10 = arith.extui %9 : i1 to i32
    %c0_i32_9 = arith.constant 0 : i32
    %11 = arith.cmpi ne, %10, %c0_i32_9 : i32
    scf.if %11 {
      %c0_10 = arith.constant 0 : index
      %c0_11 = arith.constant 0 : index
      %12 = vector.load %arg7[%c0_10, %c0_11] : memref<128x32xf32, #tpu.memory_space<vmem>>, vector<128x32xf32>
      %c0_12 = arith.constant 0 : index
      %c0_13 = arith.constant 0 : index
      %13 = vector.load %arg5[%c0_12, %c0_13] : memref<1x32xf32, #tpu.memory_space<vmem>>, vector<1x32xf32>
      %14 = vector.broadcast %13 : vector<1x32xf32> to vector<128x32xf32>
      %15 = arith.addf %12, %14 : vector<128x32xf32>
      %16 = arith.truncf %15 : vector<128x32xf32> to vector<128x32xbf16>
      %c0_14 = arith.constant 0 : index
      %c0_15 = arith.constant 0 : index
      %17 = vector.load %arg6[%c0_14, %c0_15] : memref<128x32xbf16, #tpu.memory_space<vmem>>, vector<128x32xbf16>
      tpu.vector_store %arg6[%c0_14, %c0_15], %16 {strides = array<i32>} : memref<128x32xbf16, #tpu.memory_space<vmem>>, vector<128x32xbf16>,
    } else {
    }
    return
  }
  func.func @transform_0(%arg0: i32, %arg1: i32, %arg2: i32) -> (i32, i32) {
    %c0_i32 = arith.constant 0 : i32
    return %arg0, %arg2 : i32, i32
  }
  func.func @transform_1(%arg0: i32, %arg1: i32, %arg2: i32) -> (i32, i32) {
    %c0_i32 = arith.constant 0 : i32
    return %arg2, %arg1 : i32, i32
  }
  func.func @transform_2(%arg0: i32, %arg1: i32, %arg2: i32) -> (i32, i32) {
    %c0_i32 = arith.constant 0 : i32
    %c0_i32_0 = arith.constant 0 : i32
    return %c0_i32, %arg1 : i32, i32
  }
  func.func @transform_3(%arg0: i32, %arg1: i32, %arg2: i32) -> (i32, i32) {
    %c0_i32 = arith.constant 0 : i32
    return %arg0, %arg1 : i32, i32
  }
}

module attributes {stable_mosaic.version = 11 : i64} {
  func.func @_mm_kernel(%arg0: i32, %arg1: i32, %arg2: i32, %arg3: memref<128x288xbf16, #tpu.memory_space<vmem>>, %arg4: memref<288x32xbf16, #tpu.memory_space<vmem>>, %arg5: memref<1x32xf32, #tpu.memory_space<vmem>>, %arg6: memref<128x32xbf16, #tpu.memory_space<vmem>>, %arg7: memref<128x32xbf16, #tpu.memory_space<vmem>>, %arg8: memref<128x32xf32, #tpu.memory_space<vmem>>) attributes {dimension_semantics = [#tpu.dimension_semantics<parallel>, #tpu.dimension_semantics<parallel>, #tpu.dimension_semantics<arbitrary>], iteration_bounds = array<i64: 1, 1, 1>, scalar_prefetch = 0 : i64, scratch_operands = 1 : i64, tpu.core_type = #tpu.core_type<tc>, window_params = [{transform_indices = @transform_0, window_bounds = array<i64: 128, 288>}, {transform_indices = @transform_1, window_bounds = array<i64: 288, 32>}, {transform_indices = @transform_2, window_bounds = array<i64: 1, 32>}, {transform_indices = @transform_3, window_bounds = array<i64: 128, 32>}, {transform_indices = @transform_4, window_bounds = array<i64: 128, 32>}]} {
    %c0_i32 = arith.constant 0 : i32
    %0 = arith.cmpi eq, %arg2, %c0_i32 : i32
    %1 = arith.extui %0 : i1 to i32
    %c0_i32_0 = arith.constant 0 : i32
    %2 = arith.cmpi ne, %1, %c0_i32_0 : i32
    scf.if %2 {
      %cst_10 = arith.constant 0.000000e+00 : f32
      %12 = vector.broadcast %cst_10 : f32 to vector<128x32xf32>
      %c0_11 = arith.constant 0 : index
      %c0_12 = arith.constant 0 : index
      %13 = vector.load %arg8[%c0_11, %c0_12] : memref<128x32xf32, #tpu.memory_space<vmem>>, vector<128x32xf32>
      tpu.vector_store %arg8[%c0_11, %c0_12], %12 {strides = array<i32>} : memref<128x32xf32, #tpu.memory_space<vmem>>, vector<128x32xf32>,
    } else {
    }
    %c0 = arith.constant 0 : index
    %c0_1 = arith.constant 0 : index
    %3 = vector.load %arg8[%c0, %c0_1] : memref<128x32xf32, #tpu.memory_space<vmem>>, vector<128x32xf32>
    %c0_2 = arith.constant 0 : index
    %c0_3 = arith.constant 0 : index
    %4 = vector.load %arg3[%c0_2, %c0_3] : memref<128x288xbf16, #tpu.memory_space<vmem>>, vector<128x288xbf16>
    %c0_4 = arith.constant 0 : index
    %c0_5 = arith.constant 0 : index
    %5 = vector.load %arg4[%c0_4, %c0_5] : memref<288x32xbf16, #tpu.memory_space<vmem>>, vector<288x32xbf16>
    %cst = arith.constant dense<0.000000e+00> : vector<128x32xf32>
    %6 = tpu.matmul %4, %5, %cst {dimension_numbers = #tpu.dot_dimension_numbers<[1], [0], [0], [1], [0, 0, 1, 1], [], []>} : vector<128x288xbf16>, vector<288x32xbf16>, vector<128x32xf32> -> vector<128x32xf32>
    %7 = arith.addf %3, %6 : vector<128x32xf32>
    %c0_6 = arith.constant 0 : index
    %c0_7 = arith.constant 0 : index
    %8 = vector.load %arg8[%c0_6, %c0_7] : memref<128x32xf32, #tpu.memory_space<vmem>>, vector<128x32xf32>
    tpu.vector_store %arg8[%c0_6, %c0_7], %7 {strides = array<i32>} : memref<128x32xf32, #tpu.memory_space<vmem>>, vector<128x32xf32>,
    %c0_i32_8 = arith.constant 0 : i32
    %9 = arith.cmpi eq, %arg2, %c0_i32_8 : i32
    %10 = arith.extui %9 : i1 to i32
    %c0_i32_9 = arith.constant 0 : i32
    %11 = arith.cmpi ne, %10, %c0_i32_9 : i32
    scf.if %11 {
      %c0_10 = arith.constant 0 : index
      %c0_11 = arith.constant 0 : index
      %12 = vector.load %arg8[%c0_10, %c0_11] : memref<128x32xf32, #tpu.memory_space<vmem>>, vector<128x32xf32>
      %c0_12 = arith.constant 0 : index
      %c0_13 = arith.constant 0 : index
      %13 = vector.load %arg5[%c0_12, %c0_13] : memref<1x32xf32, #tpu.memory_space<vmem>>, vector<1x32xf32>
      %14 = vector.broadcast %13 : vector<1x32xf32> to vector<128x32xf32>
      %15 = arith.addf %12, %14 : vector<128x32xf32>
      %c0_14 = arith.constant 0 : index
      %c0_15 = arith.constant 0 : index
      %16 = vector.load %arg6[%c0_14, %c0_15] : memref<128x32xbf16, #tpu.memory_space<vmem>>, vector<128x32xbf16>
      %17 = arith.extf %16 : vector<128x32xbf16> to vector<128x32xf32>
      %18 = arith.addf %15, %17 : vector<128x32xf32>
      %19 = arith.truncf %18 : vector<128x32xf32> to vector<128x32xbf16>
      %c0_16 = arith.constant 0 : index
      %c0_17 = arith.constant 0 : index
      %20 = vector.load %arg7[%c0_16, %c0_17] : memref<128x32xbf16, #tpu.memory_space<vmem>>, vector<128x32xbf16>
      tpu.vector_store %arg7[%c0_16, %c0_17], %19 {strides = array<i32>} : memref<128x32xbf16, #tpu.memory_space<vmem>>, vector<128x32xbf16>,
    } else {
    }
    return
  }
  func.func @transform_0(%arg0: i32, %arg1: i32, %arg2: i32) -> (i32, i32) {
    %c0_i32 = arith.constant 0 : i32
    return %arg0, %arg2 : i32, i32
  }
  func.func @transform_1(%arg0: i32, %arg1: i32, %arg2: i32) -> (i32, i32) {
    %c0_i32 = arith.constant 0 : i32
    return %arg2, %arg1 : i32, i32
  }
  func.func @transform_2(%arg0: i32, %arg1: i32, %arg2: i32) -> (i32, i32) {
    %c0_i32 = arith.constant 0 : i32
    %c0_i32_0 = arith.constant 0 : i32
    return %c0_i32, %arg1 : i32, i32
  }
  func.func @transform_3(%arg0: i32, %arg1: i32, %arg2: i32) -> (i32, i32) {
    %c0_i32 = arith.constant 0 : i32
    return %arg0, %arg1 : i32, i32
  }
  func.func @transform_4(%arg0: i32, %arg1: i32, %arg2: i32) -> (i32, i32) {
    %c0_i32 = arith.constant 0 : i32
    return %arg0, %arg1 : i32, i32
  }
}

module attributes {stable_mosaic.version = 11 : i64} {
  func.func @_mm_kernel(%arg0: i32, %arg1: i32, %arg2: i32, %arg3: memref<16x256xbf16, #tpu.memory_space<vmem>>, %arg4: memref<256x32xbf16, #tpu.memory_space<vmem>>, %arg5: memref<1x32xf32, #tpu.memory_space<vmem>>, %arg6: memref<16x32xbf16, #tpu.memory_space<vmem>>, %arg7: memref<16x32xf32, #tpu.memory_space<vmem>>) attributes {dimension_semantics = [#tpu.dimension_semantics<parallel>, #tpu.dimension_semantics<parallel>, #tpu.dimension_semantics<arbitrary>], iteration_bounds = array<i64: 1, 1, 1>, scalar_prefetch = 0 : i64, scratch_operands = 1 : i64, tpu.core_type = #tpu.core_type<tc>, window_params = [{transform_indices = @transform_0, window_bounds = array<i64: 16, 256>}, {transform_indices = @transform_1, window_bounds = array<i64: 256, 32>}, {transform_indices = @transform_2, window_bounds = array<i64: 1, 32>}, {transform_indices = @transform_3, window_bounds = array<i64: 16, 32>}]} {
    %c0_i32 = arith.constant 0 : i32
    %0 = arith.cmpi eq, %arg2, %c0_i32 : i32
    %1 = arith.extui %0 : i1 to i32
    %c0_i32_0 = arith.constant 0 : i32
    %2 = arith.cmpi ne, %1, %c0_i32_0 : i32
    scf.if %2 {
      %cst_10 = arith.constant 0.000000e+00 : f32
      %12 = vector.broadcast %cst_10 : f32 to vector<16x32xf32>
      %c0_11 = arith.constant 0 : index
      %c0_12 = arith.constant 0 : index
      %13 = vector.load %arg7[%c0_11, %c0_12] : memref<16x32xf32, #tpu.memory_space<vmem>>, vector<16x32xf32>
      tpu.vector_store %arg7[%c0_11, %c0_12], %12 {strides = array<i32>} : memref<16x32xf32, #tpu.memory_space<vmem>>, vector<16x32xf32>,
    } else {
    }
    %c0 = arith.constant 0 : index
    %c0_1 = arith.constant 0 : index
    %3 = vector.load %arg7[%c0, %c0_1] : memref<16x32xf32, #tpu.memory_space<vmem>>, vector<16x32xf32>
    %c0_2 = arith.constant 0 : index
    %c0_3 = arith.constant 0 : index
    %4 = vector.load %arg3[%c0_2, %c0_3] : memref<16x256xbf16, #tpu.memory_space<vmem>>, vector<16x256xbf16>
    %c0_4 = arith.constant 0 : index
    %c0_5 = arith.constant 0 : index
    %5 = vector.load %arg4[%c0_4, %c0_5] : memref<256x32xbf16, #tpu.memory_space<vmem>>, vector<256x32xbf16>
    %cst = arith.constant dense<0.000000e+00> : vector<16x32xf32>
    %6 = tpu.matmul %4, %5, %cst {dimension_numbers = #tpu.dot_dimension_numbers<[1], [0], [0], [1], [0, 0, 1, 1], [], []>} : vector<16x256xbf16>, vector<256x32xbf16>, vector<16x32xf32> -> vector<16x32xf32>
    %7 = arith.addf %3, %6 : vector<16x32xf32>
    %c0_6 = arith.constant 0 : index
    %c0_7 = arith.constant 0 : index
    %8 = vector.load %arg7[%c0_6, %c0_7] : memref<16x32xf32, #tpu.memory_space<vmem>>, vector<16x32xf32>
    tpu.vector_store %arg7[%c0_6, %c0_7], %7 {strides = array<i32>} : memref<16x32xf32, #tpu.memory_space<vmem>>, vector<16x32xf32>,
    %c0_i32_8 = arith.constant 0 : i32
    %9 = arith.cmpi eq, %arg2, %c0_i32_8 : i32
    %10 = arith.extui %9 : i1 to i32
    %c0_i32_9 = arith.constant 0 : i32
    %11 = arith.cmpi ne, %10, %c0_i32_9 : i32
    scf.if %11 {
      %c0_10 = arith.constant 0 : index
      %c0_11 = arith.constant 0 : index
      %12 = vector.load %arg7[%c0_10, %c0_11] : memref<16x32xf32, #tpu.memory_space<vmem>>, vector<16x32xf32>
      %c0_12 = arith.constant 0 : index
      %c0_13 = arith.constant 0 : index
      %13 = vector.load %arg5[%c0_12, %c0_13] : memref<1x32xf32, #tpu.memory_space<vmem>>, vector<1x32xf32>
      %14 = vector.broadcast %13 : vector<1x32xf32> to vector<16x32xf32>
      %15 = arith.addf %12, %14 : vector<16x32xf32>
      %16 = arith.truncf %15 : vector<16x32xf32> to vector<16x32xbf16>
      %c0_14 = arith.constant 0 : index
      %c0_15 = arith.constant 0 : index
      %17 = vector.load %arg6[%c0_14, %c0_15] : memref<16x32xbf16, #tpu.memory_space<vmem>>, vector<16x32xbf16>
      tpu.vector_store %arg6[%c0_14, %c0_15], %16 {strides = array<i32>} : memref<16x32xbf16, #tpu.memory_space<vmem>>, vector<16x32xbf16>,
    } else {
    }
    return
  }
  func.func @transform_0(%arg0: i32, %arg1: i32, %arg2: i32) -> (i32, i32) {
    %c0_i32 = arith.constant 0 : i32
    return %arg0, %arg2 : i32, i32
  }
  func.func @transform_1(%arg0: i32, %arg1: i32, %arg2: i32) -> (i32, i32) {
    %c0_i32 = arith.constant 0 : i32
    return %arg2, %arg1 : i32, i32
  }
  func.func @transform_2(%arg0: i32, %arg1: i32, %arg2: i32) -> (i32, i32) {
    %c0_i32 = arith.constant 0 : i32
    %c0_i32_0 = arith.constant 0 : i32
    return %c0_i32, %arg1 : i32, i32
  }
  func.func @transform_3(%arg0: i32, %arg1: i32, %arg2: i32) -> (i32, i32) {
    %c0_i32 = arith.constant 0 : i32
    return %arg0, %arg1 : i32, i32
  }
}

module attributes {stable_mosaic.version = 11 : i64} {
  func.func @_ln_mm_kernel(%arg0: i32, %arg1: i32, %arg2: memref<16x32xbf16, #tpu.memory_space<vmem>>, %arg3: memref<1x32xf32, #tpu.memory_space<vmem>>, %arg4: memref<1x32xf32, #tpu.memory_space<vmem>>, %arg5: memref<32x96xbf16, #tpu.memory_space<vmem>>, %arg6: memref<1x96xf32, #tpu.memory_space<vmem>>, %arg7: memref<16x96xbf16, #tpu.memory_space<vmem>>) attributes {dimension_semantics = [#tpu.dimension_semantics<parallel>, #tpu.dimension_semantics<parallel>], iteration_bounds = array<i64: 1, 1>, scalar_prefetch = 0 : i64, scratch_operands = 0 : i64, tpu.core_type = #tpu.core_type<tc>, window_params = [{transform_indices = @transform_0, window_bounds = array<i64: 16, 32>}, {pipeline_mode = #tpu.pipeline_mode<synchronous>, transform_indices = @transform_1, window_bounds = array<i64: 1, 32>}, {pipeline_mode = #tpu.pipeline_mode<synchronous>, transform_indices = @transform_2, window_bounds = array<i64: 1, 32>}, {transform_indices = @transform_3, window_bounds = array<i64: 32, 96>}, {transform_indices = @transform_4, window_bounds = array<i64: 1, 96>}, {transform_indices = @transform_5, window_bounds = array<i64: 16, 96>}]} {
    %c0 = arith.constant 0 : index
    %c0_0 = arith.constant 0 : index
    %0 = vector.load %arg2[%c0, %c0_0] : memref<16x32xbf16, #tpu.memory_space<vmem>>, vector<16x32xbf16>
    %1 = arith.extf %0 : vector<16x32xbf16> to vector<16x32xf32>
    %cst = arith.constant dense<0.000000e+00> : vector<16xf32>
    %2 = vector.multi_reduction <add>, %1, %cst [1] : vector<16x32xf32> to vector<16xf32>
    %3 = vector.shape_cast %2 : vector<16xf32> to vector<16x1xf32>
    %cst_1 = arith.constant 3.200000e+01 : f32
    %4 = vector.broadcast %cst_1 : f32 to vector<16x1xf32>
    %5 = arith.divf %3, %4 : vector<16x1xf32>
    %6 = vector.broadcast %5 : vector<16x1xf32> to vector<16x32xf32>
    %7 = arith.subf %1, %6 : vector<16x32xf32>
    %8 = arith.mulf %7, %7 : vector<16x32xf32>
    %cst_2 = arith.constant dense<0.000000e+00> : vector<16xf32>
    %9 = vector.multi_reduction <add>, %8, %cst_2 [1] : vector<16x32xf32> to vector<16xf32>
    %10 = vector.shape_cast %9 : vector<16xf32> to vector<16x1xf32>
    %cst_3 = arith.constant 3.200000e+01 : f32
    %11 = vector.broadcast %cst_3 : f32 to vector<16x1xf32>
    %12 = arith.divf %10, %11 : vector<16x1xf32>
    %cst_4 = arith.constant 9.99999974E-6 : f32
    %13 = vector.broadcast %cst_4 : f32 to vector<16x1xf32>
    %14 = arith.addf %12, %13 : vector<16x1xf32>
    %15 = math.rsqrt %14 : vector<16x1xf32>
    %16 = vector.broadcast %15 : vector<16x1xf32> to vector<16x32xf32>
    %17 = arith.mulf %7, %16 : vector<16x32xf32>
    %c0_5 = arith.constant 0 : index
    %c0_6 = arith.constant 0 : index
    %18 = vector.load %arg3[%c0_5, %c0_6] : memref<1x32xf32, #tpu.memory_space<vmem>>, vector<1x32xf32>
    %19 = vector.broadcast %18 : vector<1x32xf32> to vector<16x32xf32>
    %20 = arith.mulf %17, %19 : vector<16x32xf32>
    %c0_7 = arith.constant 0 : index
    %c0_8 = arith.constant 0 : index
    %21 = vector.load %arg4[%c0_7, %c0_8] : memref<1x32xf32, #tpu.memory_space<vmem>>, vector<1x32xf32>
    %22 = vector.broadcast %21 : vector<1x32xf32> to vector<16x32xf32>
    %23 = arith.addf %20, %22 : vector<16x32xf32>
    %cst_9 = arith.constant 5.000000e-01 : f32
    %24 = vector.broadcast %cst_9 : f32 to vector<16x32xf32>
    %25 = arith.mulf %24, %23 : vector<16x32xf32>
    %cst_10 = arith.constant 0.707106769 : f32
    %26 = vector.broadcast %cst_10 : f32 to vector<16x32xf32>
    %27 = arith.mulf %23, %26 : vector<16x32xf32>
    %cst_11 = arith.constant 0.000000e+00 : f32
    %28 = vector.broadcast %cst_11 : f32 to vector<16x32xf32>
    %29 = arith.cmpf oge, %27, %28 : vector<16x32xf32>
    %cst_12 = arith.constant 1.000000e+00 : f32
    %cst_13 = arith.constant -1.000000e+00 : f32
    %30 = vector.broadcast %cst_12 : f32 to vector<16x32xf32>
    %31 = vector.broadcast %cst_13 : f32 to vector<16x32xf32>
    %32 = arith.select %29, %30, %31 : vector<16x32xi1>, vector<16x32xf32>
    %33 = math.absf %27 : vector<16x32xf32>
    %cst_14 = arith.constant 0.327591091 : f32
    %34 = vector.broadcast %cst_14 : f32 to vector<16x32xf32>
    %35 = arith.mulf %34, %33 : vector<16x32xf32>
    %cst_15 = arith.constant 1.000000e+00 : f32
    %36 = vector.broadcast %cst_15 : f32 to vector<16x32xf32>
    %37 = arith.addf %36, %35 : vector<16x32xf32>
    %cst_16 = arith.constant 1.000000e+00 : f32
    %38 = vector.broadcast %cst_16 : f32 to vector<16x32xf32>
    %39 = arith.divf %38, %37 : vector<16x32xf32>
    %cst_17 = arith.constant 1.06140542 : f32
    %40 = vector.broadcast %cst_17 : f32 to vector<16x32xf32>
    %41 = arith.mulf %40, %39 : vector<16x32xf32>
    %cst_18 = arith.constant -1.45315206 : f32
    %42 = vector.broadcast %cst_18 : f32 to vector<16x32xf32>
    %43 = arith.addf %41, %42 : vector<16x32xf32>
    %44 = arith.mulf %43, %39 : vector<16x32xf32>
    %cst_19 = arith.constant 1.42141378 : f32
    %45 = vector.broadcast %cst_19 : f32 to vector<16x32xf32>
    %46 = arith.addf %44, %45 : vector<16x32xf32>
    %47 = arith.mulf %46, %39 : vector<16x32xf32>
    %cst_20 = arith.constant -0.284496725 : f32
    %48 = vector.broadcast %cst_20 : f32 to vector<16x32xf32>
    %49 = arith.addf %47, %48 : vector<16x32xf32>
    %50 = arith.mulf %49, %39 : vector<16x32xf32>
    %cst_21 = arith.constant 0.254829586 : f32
    %51 = vector.broadcast %cst_21 : f32 to vector<16x32xf32>
    %52 = arith.addf %50, %51 : vector<16x32xf32>
    %53 = arith.mulf %52, %39 : vector<16x32xf32>
    %cst_22 = arith.constant 0.000000e+00 : f32
    %54 = vector.broadcast %cst_22 : f32 to vector<16x32xf32>
    %55 = arith.subf %54, %33 : vector<16x32xf32>
    %56 = arith.mulf %55, %33 : vector<16x32xf32>
    %57 = math.exp %56 : vector<16x32xf32>
    %58 = arith.mulf %53, %57 : vector<16x32xf32>
    %cst_23 = arith.constant 1.000000e+00 : f32
    %59 = vector.broadcast %cst_23 : f32 to vector<16x32xf32>
    %60 = arith.subf %59, %58 : vector<16x32xf32>
    %61 = arith.mulf %32, %60 : vector<16x32xf32>
    %cst_24 = arith.constant 1.000000e+00 : f32
    %62 = vector.broadcast %cst_24 : f32 to vector<16x32xf32>
    %63 = arith.addf %62, %61 : vector<16x32xf32>
    %64 = arith.mulf %25, %63 : vector<16x32xf32>
    %65 = arith.truncf %64 : vector<16x32xf32> to vector<16x32xbf16>
    %c0_25 = arith.constant 0 : index
    %c0_26 = arith.constant 0 : index
    %66 = vector.load %arg5[%c0_25, %c0_26] : memref<32x96xbf16, #tpu.memory_space<vmem>>, vector<32x96xbf16>
    %cst_27 = arith.constant dense<0.000000e+00> : vector<16x96xf32>
    %67 = tpu.matmul %65, %66, %cst_27 {dimension_numbers = #tpu.dot_dimension_numbers<[1], [0], [0], [1], [0, 0, 1, 1], [], []>} : vector<16x32xbf16>, vector<32x96xbf16>, vector<16x96xf32> -> vector<16x96xf32>
    %c0_28 = arith.constant 0 : index
    %c0_29 = arith.constant 0 : index
    %68 = vector.load %arg6[%c0_28, %c0_29] : memref<1x96xf32, #tpu.memory_space<vmem>>, vector<1x96xf32>
    %69 = vector.broadcast %68 : vector<1x96xf32> to vector<16x96xf32>
    %70 = arith.addf %67, %69 : vector<16x96xf32>
    %71 = arith.truncf %70 : vector<16x96xf32> to vector<16x96xbf16>
    %c0_30 = arith.constant 0 : index
    %c0_31 = arith.constant 0 : index
    %72 = vector.load %arg7[%c0_30, %c0_31] : memref<16x96xbf16, #tpu.memory_space<vmem>>, vector<16x96xbf16>
    tpu.vector_store %arg7[%c0_30, %c0_31], %71 {strides = array<i32>} : memref<16x96xbf16, #tpu.memory_space<vmem>>, vector<16x96xbf16>,
    return
  }
  func.func @transform_0(%arg0: i32, %arg1: i32) -> (i32, i32) {
    %c0_i32 = arith.constant 0 : i32
    %c0_i32_0 = arith.constant 0 : i32
    return %arg0, %c0_i32 : i32, i32
  }
  func.func @transform_1(%arg0: i32, %arg1: i32) -> (i32, i32) {
    %c0_i32 = arith.constant 0 : i32
    %c0_i32_0 = arith.constant 0 : i32
    %c0_i32_1 = arith.constant 0 : i32
    return %c0_i32, %c0_i32_0 : i32, i32
  }
  func.func @transform_2(%arg0: i32, %arg1: i32) -> (i32, i32) {
    %c0_i32 = arith.constant 0 : i32
    %c0_i32_0 = arith.constant 0 : i32
    %c0_i32_1 = arith.constant 0 : i32
    return %c0_i32, %c0_i32_0 : i32, i32
  }
  func.func @transform_3(%arg0: i32, %arg1: i32) -> (i32, i32) {
    %c0_i32 = arith.constant 0 : i32
    %c0_i32_0 = arith.constant 0 : i32
    return %c0_i32, %arg1 : i32, i32
  }
  func.func @transform_4(%arg0: i32, %arg1: i32) -> (i32, i32) {
    %c0_i32 = arith.constant 0 : i32
    %c0_i32_0 = arith.constant 0 : i32
    return %c0_i32, %arg1 : i32, i32
  }
  func.func @transform_5(%arg0: i32, %arg1: i32) -> (i32, i32) {
    %c0_i32 = arith.constant 0 : i32
    return %arg0, %arg1 : i32, i32
  }
}

module attributes {stable_mosaic.version = 11 : i64} {
  func.func @_mm_kernel(%arg0: i32, %arg1: i32, %arg2: i32, %arg3: memref<16x64xbf16, #tpu.memory_space<vmem>>, %arg4: memref<64x32xbf16, #tpu.memory_space<vmem>>, %arg5: memref<1x32xf32, #tpu.memory_space<vmem>>, %arg6: memref<16x32xbf16, #tpu.memory_space<vmem>>, %arg7: memref<16x32xf32, #tpu.memory_space<vmem>>) attributes {dimension_semantics = [#tpu.dimension_semantics<parallel>, #tpu.dimension_semantics<parallel>, #tpu.dimension_semantics<arbitrary>], iteration_bounds = array<i64: 1, 1, 1>, scalar_prefetch = 0 : i64, scratch_operands = 1 : i64, tpu.core_type = #tpu.core_type<tc>, window_params = [{transform_indices = @transform_0, window_bounds = array<i64: 16, 64>}, {transform_indices = @transform_1, window_bounds = array<i64: 64, 32>}, {transform_indices = @transform_2, window_bounds = array<i64: 1, 32>}, {transform_indices = @transform_3, window_bounds = array<i64: 16, 32>}]} {
    %c0_i32 = arith.constant 0 : i32
    %0 = arith.cmpi eq, %arg2, %c0_i32 : i32
    %1 = arith.extui %0 : i1 to i32
    %c0_i32_0 = arith.constant 0 : i32
    %2 = arith.cmpi ne, %1, %c0_i32_0 : i32
    scf.if %2 {
      %cst_10 = arith.constant 0.000000e+00 : f32
      %12 = vector.broadcast %cst_10 : f32 to vector<16x32xf32>
      %c0_11 = arith.constant 0 : index
      %c0_12 = arith.constant 0 : index
      %13 = vector.load %arg7[%c0_11, %c0_12] : memref<16x32xf32, #tpu.memory_space<vmem>>, vector<16x32xf32>
      tpu.vector_store %arg7[%c0_11, %c0_12], %12 {strides = array<i32>} : memref<16x32xf32, #tpu.memory_space<vmem>>, vector<16x32xf32>,
    } else {
    }
    %c0 = arith.constant 0 : index
    %c0_1 = arith.constant 0 : index
    %3 = vector.load %arg7[%c0, %c0_1] : memref<16x32xf32, #tpu.memory_space<vmem>>, vector<16x32xf32>
    %c0_2 = arith.constant 0 : index
    %c0_3 = arith.constant 0 : index
    %4 = vector.load %arg3[%c0_2, %c0_3] : memref<16x64xbf16, #tpu.memory_space<vmem>>, vector<16x64xbf16>
    %c0_4 = arith.constant 0 : index
    %c0_5 = arith.constant 0 : index
    %5 = vector.load %arg4[%c0_4, %c0_5] : memref<64x32xbf16, #tpu.memory_space<vmem>>, vector<64x32xbf16>
    %cst = arith.constant dense<0.000000e+00> : vector<16x32xf32>
    %6 = tpu.matmul %4, %5, %cst {dimension_numbers = #tpu.dot_dimension_numbers<[1], [0], [0], [1], [0, 0, 1, 1], [], []>} : vector<16x64xbf16>, vector<64x32xbf16>, vector<16x32xf32> -> vector<16x32xf32>
    %7 = arith.addf %3, %6 : vector<16x32xf32>
    %c0_6 = arith.constant 0 : index
    %c0_7 = arith.constant 0 : index
    %8 = vector.load %arg7[%c0_6, %c0_7] : memref<16x32xf32, #tpu.memory_space<vmem>>, vector<16x32xf32>
    tpu.vector_store %arg7[%c0_6, %c0_7], %7 {strides = array<i32>} : memref<16x32xf32, #tpu.memory_space<vmem>>, vector<16x32xf32>,
    %c0_i32_8 = arith.constant 0 : i32
    %9 = arith.cmpi eq, %arg2, %c0_i32_8 : i32
    %10 = arith.extui %9 : i1 to i32
    %c0_i32_9 = arith.constant 0 : i32
    %11 = arith.cmpi ne, %10, %c0_i32_9 : i32
    scf.if %11 {
      %c0_10 = arith.constant 0 : index
      %c0_11 = arith.constant 0 : index
      %12 = vector.load %arg7[%c0_10, %c0_11] : memref<16x32xf32, #tpu.memory_space<vmem>>, vector<16x32xf32>
      %c0_12 = arith.constant 0 : index
      %c0_13 = arith.constant 0 : index
      %13 = vector.load %arg5[%c0_12, %c0_13] : memref<1x32xf32, #tpu.memory_space<vmem>>, vector<1x32xf32>
      %14 = vector.broadcast %13 : vector<1x32xf32> to vector<16x32xf32>
      %15 = arith.addf %12, %14 : vector<16x32xf32>
      %cst_14 = arith.constant 5.000000e-01 : f32
      %16 = vector.broadcast %cst_14 : f32 to vector<16x32xf32>
      %17 = arith.mulf %16, %15 : vector<16x32xf32>
      %cst_15 = arith.constant 0.707106769 : f32
      %18 = vector.broadcast %cst_15 : f32 to vector<16x32xf32>
      %19 = arith.mulf %15, %18 : vector<16x32xf32>
      %cst_16 = arith.constant 0.000000e+00 : f32
      %20 = vector.broadcast %cst_16 : f32 to vector<16x32xf32>
      %21 = arith.cmpf oge, %19, %20 : vector<16x32xf32>
      %cst_17 = arith.constant 1.000000e+00 : f32
      %cst_18 = arith.constant -1.000000e+00 : f32
      %22 = vector.broadcast %cst_17 : f32 to vector<16x32xf32>
      %23 = vector.broadcast %cst_18 : f32 to vector<16x32xf32>
      %24 = arith.select %21, %22, %23 : vector<16x32xi1>, vector<16x32xf32>
      %25 = math.absf %19 : vector<16x32xf32>
      %cst_19 = arith.constant 0.327591091 : f32
      %26 = vector.broadcast %cst_19 : f32 to vector<16x32xf32>
      %27 = arith.mulf %26, %25 : vector<16x32xf32>
      %cst_20 = arith.constant 1.000000e+00 : f32
      %28 = vector.broadcast %cst_20 : f32 to vector<16x32xf32>
      %29 = arith.addf %28, %27 : vector<16x32xf32>
      %cst_21 = arith.constant 1.000000e+00 : f32
      %30 = vector.broadcast %cst_21 : f32 to vector<16x32xf32>
      %31 = arith.divf %30, %29 : vector<16x32xf32>
      %cst_22 = arith.constant 1.06140542 : f32
      %32 = vector.broadcast %cst_22 : f32 to vector<16x32xf32>
      %33 = arith.mulf %32, %31 : vector<16x32xf32>
      %cst_23 = arith.constant -1.45315206 : f32
      %34 = vector.broadcast %cst_23 : f32 to vector<16x32xf32>
      %35 = arith.addf %33, %34 : vector<16x32xf32>
      %36 = arith.mulf %35, %31 : vector<16x32xf32>
      %cst_24 = arith.constant 1.42141378 : f32
      %37 = vector.broadcast %cst_24 : f32 to vector<16x32xf32>
      %38 = arith.addf %36, %37 : vector<16x32xf32>
      %39 = arith.mulf %38, %31 : vector<16x32xf32>
      %cst_25 = arith.constant -0.284496725 : f32
      %40 = vector.broadcast %cst_25 : f32 to vector<16x32xf32>
      %41 = arith.addf %39, %40 : vector<16x32xf32>
      %42 = arith.mulf %41, %31 : vector<16x32xf32>
      %cst_26 = arith.constant 0.254829586 : f32
      %43 = vector.broadcast %cst_26 : f32 to vector<16x32xf32>
      %44 = arith.addf %42, %43 : vector<16x32xf32>
      %45 = arith.mulf %44, %31 : vector<16x32xf32>
      %cst_27 = arith.constant 0.000000e+00 : f32
      %46 = vector.broadcast %cst_27 : f32 to vector<16x32xf32>
      %47 = arith.subf %46, %25 : vector<16x32xf32>
      %48 = arith.mulf %47, %25 : vector<16x32xf32>
      %49 = math.exp %48 : vector<16x32xf32>
      %50 = arith.mulf %45, %49 : vector<16x32xf32>
      %cst_28 = arith.constant 1.000000e+00 : f32
      %51 = vector.broadcast %cst_28 : f32 to vector<16x32xf32>
      %52 = arith.subf %51, %50 : vector<16x32xf32>
      %53 = arith.mulf %24, %52 : vector<16x32xf32>
      %cst_29 = arith.constant 1.000000e+00 : f32
      %54 = vector.broadcast %cst_29 : f32 to vector<16x32xf32>
      %55 = arith.addf %54, %53 : vector<16x32xf32>
      %56 = arith.mulf %17, %55 : vector<16x32xf32>
      %57 = arith.truncf %56 : vector<16x32xf32> to vector<16x32xbf16>
      %c0_30 = arith.constant 0 : index
      %c0_31 = arith.constant 0 : index
      %58 = vector.load %arg6[%c0_30, %c0_31] : memref<16x32xbf16, #tpu.memory_space<vmem>>, vector<16x32xbf16>
      tpu.vector_store %arg6[%c0_30, %c0_31], %57 {strides = array<i32>} : memref<16x32xbf16, #tpu.memory_space<vmem>>, vector<16x32xbf16>,
    } else {
    }
    return
  }
  func.func @transform_0(%arg0: i32, %arg1: i32, %arg2: i32) -> (i32, i32) {
    %c0_i32 = arith.constant 0 : i32
    return %arg0, %arg2 : i32, i32
  }
  func.func @transform_1(%arg0: i32, %arg1: i32, %arg2: i32) -> (i32, i32) {
    %c0_i32 = arith.constant 0 : i32
    return %arg2, %arg1 : i32, i32
  }
  func.func @transform_2(%arg0: i32, %arg1: i32, %arg2: i32) -> (i32, i32) {
    %c0_i32 = arith.constant 0 : i32
    %c0_i32_0 = arith.constant 0 : i32
    return %c0_i32, %arg1 : i32, i32
  }
  func.func @transform_3(%arg0: i32, %arg1: i32, %arg2: i32) -> (i32, i32) {
    %c0_i32 = arith.constant 0 : i32
    return %arg0, %arg1 : i32, i32
  }
}

module attributes {stable_mosaic.version = 11 : i64} {
  func.func @_bigru_kernel(%arg0: i32, %arg1: memref<8x2x96xbf16, #tpu.memory_space<vmem>>, %arg2: memref<8x2x96xbf16, #tpu.memory_space<vmem>>, %arg3: memref<32x96xbf16, #tpu.memory_space<vmem>>, %arg4: memref<32x96xbf16, #tpu.memory_space<vmem>>, %arg5: memref<1x96xf32, #tpu.memory_space<vmem>>, %arg6: memref<1x96xf32, #tpu.memory_space<vmem>>, %arg7: memref<8x2x32xbf16, #tpu.memory_space<vmem>>, %arg8: memref<8x2x32xbf16, #tpu.memory_space<vmem>>, %arg9: memref<2x32xf32, #tpu.memory_space<vmem>>, %arg10: memref<2x32xf32, #tpu.memory_space<vmem>>) attributes {dimension_semantics = [#tpu.dimension_semantics<arbitrary>], iteration_bounds = array<i64: 1>, scalar_prefetch = 0 : i64, scratch_operands = 2 : i64, tpu.core_type = #tpu.core_type<tc>, window_params = [{transform_indices = @transform_0, window_bounds = array<i64: 8, 2, 96>}, {transform_indices = @transform_1, window_bounds = array<i64: 8, 2, 96>}, {pipeline_mode = #tpu.pipeline_mode<synchronous>, transform_indices = @transform_2, window_bounds = array<i64: 32, 96>}, {pipeline_mode = #tpu.pipeline_mode<synchronous>, transform_indices = @transform_3, window_bounds = array<i64: 32, 96>}, {pipeline_mode = #tpu.pipeline_mode<synchronous>, transform_indices = @transform_4, window_bounds = array<i64: 1, 96>}, {pipeline_mode = #tpu.pipeline_mode<synchronous>, transform_indices = @transform_5, window_bounds = array<i64: 1, 96>}, {transform_indices = @transform_6, window_bounds = array<i64: 8, 2, 32>}, {transform_indices = @transform_7, window_bounds = array<i64: 8, 2, 32>}]} {
    %c0_i32 = arith.constant 0 : i32
    %0 = arith.cmpi eq, %arg0, %c0_i32 : i32
    %1 = arith.extui %0 : i1 to i32
    %c0_i32_0 = arith.constant 0 : i32
    %2 = arith.cmpi ne, %1, %c0_i32_0 : i32
    scf.if %2 {
      %cst_304 = arith.constant 0.000000e+00 : f32
      %755 = vector.broadcast %cst_304 : f32 to vector<2x32xf32>
      %c0_305 = arith.constant 0 : index
      %c0_306 = arith.constant 0 : index
      %756 = vector.load %arg9[%c0_305, %c0_306] : memref<2x32xf32, #tpu.memory_space<vmem>>, vector<2x32xf32>
      tpu.vector_store %arg9[%c0_305, %c0_306], %755 {strides = array<i32>} : memref<2x32xf32, #tpu.memory_space<vmem>>, vector<2x32xf32>,
      %cst_307 = arith.constant 0.000000e+00 : f32
      %757 = vector.broadcast %cst_307 : f32 to vector<2x32xf32>
      %c0_308 = arith.constant 0 : index
      %c0_309 = arith.constant 0 : index
      %758 = vector.load %arg10[%c0_308, %c0_309] : memref<2x32xf32, #tpu.memory_space<vmem>>, vector<2x32xf32>
      tpu.vector_store %arg10[%c0_308, %c0_309], %757 {strides = array<i32>} : memref<2x32xf32, #tpu.memory_space<vmem>>, vector<2x32xf32>,
    } else {
    }
    %c0_i32_1 = arith.constant 0 : i32
    %c0 = arith.constant 0 : index
    %c0_2 = arith.constant 0 : index
    %3 = vector.load %arg9[%c0, %c0_2] : memref<2x32xf32, #tpu.memory_space<vmem>>, vector<2x32xf32>
    %c0_3 = arith.constant 0 : index
    %c0_4 = arith.constant 0 : index
    %4 = vector.load %arg10[%c0_3, %c0_4] : memref<2x32xf32, #tpu.memory_space<vmem>>, vector<2x32xf32>
    %5 = arith.truncf %3 : vector<2x32xf32> to vector<2x32xbf16>
    %c0_5 = arith.constant 0 : index
    %c0_6 = arith.constant 0 : index
    %6 = vector.load %arg3[%c0_5, %c0_6] : memref<32x96xbf16, #tpu.memory_space<vmem>>, vector<32x96xbf16>
    %cst = arith.constant dense<0.000000e+00> : vector<2x96xf32>
    %7 = tpu.matmul %5, %6, %cst {dimension_numbers = #tpu.dot_dimension_numbers<[1], [0], [0], [1], [0, 0, 1, 1], [], []>} : vector<2x32xbf16>, vector<32x96xbf16>, vector<2x96xf32> -> vector<2x96xf32>
    %c0_7 = arith.constant 0 : index
    %c0_8 = arith.constant 0 : index
    %8 = vector.load %arg5[%c0_7, %c0_8] : memref<1x96xf32, #tpu.memory_space<vmem>>, vector<1x96xf32>
    %9 = vector.broadcast %8 : vector<1x96xf32> to vector<2x96xf32>
    %10 = arith.addf %7, %9 : vector<2x96xf32>
    %11 = arith.truncf %4 : vector<2x32xf32> to vector<2x32xbf16>
    %c0_9 = arith.constant 0 : index
    %c0_10 = arith.constant 0 : index
    %12 = vector.load %arg4[%c0_9, %c0_10] : memref<32x96xbf16, #tpu.memory_space<vmem>>, vector<32x96xbf16>
    %cst_11 = arith.constant dense<0.000000e+00> : vector<2x96xf32>
    %13 = tpu.matmul %11, %12, %cst_11 {dimension_numbers = #tpu.dot_dimension_numbers<[1], [0], [0], [1], [0, 0, 1, 1], [], []>} : vector<2x32xbf16>, vector<32x96xbf16>, vector<2x96xf32> -> vector<2x96xf32>
    %c0_12 = arith.constant 0 : index
    %c0_13 = arith.constant 0 : index
    %14 = vector.load %arg6[%c0_12, %c0_13] : memref<1x96xf32, #tpu.memory_space<vmem>>, vector<1x96xf32>
    %15 = vector.broadcast %14 : vector<1x96xf32> to vector<2x96xf32>
    %16 = arith.addf %13, %15 : vector<2x96xf32>
    %17 = arith.index_cast %c0_i32_1 : i32 to index
    %c0_14 = arith.constant 0 : index
    %c0_15 = arith.constant 0 : index
    %18 = vector.load %arg1[%17, %c0_14, %c0_15] : memref<8x2x96xbf16, #tpu.memory_space<vmem>>, vector<1x2x96xbf16>
    %19 = vector.shape_cast %18 : vector<1x2x96xbf16> to vector<2x96xbf16>
    %20 = arith.extf %19 : vector<2x96xbf16> to vector<2x96xf32>
    %c7_i32 = arith.constant 7 : i32
    %21 = arith.subi %c7_i32, %c0_i32_1 : i32
    %22 = arith.index_cast %21 : i32 to index
    %c0_16 = arith.constant 0 : index
    %c0_17 = arith.constant 0 : index
    %23 = vector.load %arg2[%22, %c0_16, %c0_17] : memref<8x2x96xbf16, #tpu.memory_space<vmem>>, vector<1x2x96xbf16>
    %24 = vector.shape_cast %23 : vector<1x2x96xbf16> to vector<2x96xbf16>
    %25 = arith.extf %24 : vector<2x96xbf16> to vector<2x96xf32>
    %26 = vector.extract_strided_slice %20 {offsets = [0, 0], sizes = [2, 32], strides = [1, 1]} : vector<2x96xf32> to vector<2x32xf32>
    %27 = vector.extract_strided_slice %10 {offsets = [0, 0], sizes = [2, 32], strides = [1, 1]} : vector<2x96xf32> to vector<2x32xf32>
    %28 = arith.addf %26, %27 : vector<2x32xf32>
    %29 = arith.negf %28 : vector<2x32xf32>
    %30 = math.exp %29 : vector<2x32xf32>
    %cst_18 = arith.constant 1.000000e+00 : f32
    %31 = vector.broadcast %cst_18 : f32 to vector<2x32xf32>
    %32 = arith.addf %31, %30 : vector<2x32xf32>
    %33 = arith.divf %31, %32 : vector<2x32xf32>
    %34 = vector.extract_strided_slice %20 {offsets = [0, 32], sizes = [2, 32], strides = [1, 1]} : vector<2x96xf32> to vector<2x32xf32>
    %35 = vector.extract_strided_slice %10 {offsets = [0, 32], sizes = [2, 32], strides = [1, 1]} : vector<2x96xf32> to vector<2x32xf32>
    %36 = arith.addf %34, %35 : vector<2x32xf32>
    %37 = arith.negf %36 : vector<2x32xf32>
    %38 = math.exp %37 : vector<2x32xf32>
    %cst_19 = arith.constant 1.000000e+00 : f32
    %39 = vector.broadcast %cst_19 : f32 to vector<2x32xf32>
    %40 = arith.addf %39, %38 : vector<2x32xf32>
    %41 = arith.divf %39, %40 : vector<2x32xf32>
    %42 = vector.extract_strided_slice %20 {offsets = [0, 64], sizes = [2, 32], strides = [1, 1]} : vector<2x96xf32> to vector<2x32xf32>
    %43 = vector.extract_strided_slice %10 {offsets = [0, 64], sizes = [2, 32], strides = [1, 1]} : vector<2x96xf32> to vector<2x32xf32>
    %44 = arith.mulf %33, %43 : vector<2x32xf32>
    %45 = arith.addf %42, %44 : vector<2x32xf32>
    %46 = math.tanh %45 : vector<2x32xf32>
    %cst_20 = arith.constant 1.000000e+00 : f32
    %47 = vector.broadcast %cst_20 : f32 to vector<2x32xf32>
    %48 = arith.subf %47, %41 : vector<2x32xf32>
    %49 = arith.mulf %48, %46 : vector<2x32xf32>
    %50 = arith.mulf %41, %3 : vector<2x32xf32>
    %51 = arith.addf %49, %50 : vector<2x32xf32>
    %52 = vector.extract_strided_slice %25 {offsets = [0, 0], sizes = [2, 32], strides = [1, 1]} : vector<2x96xf32> to vector<2x32xf32>
    %53 = vector.extract_strided_slice %16 {offsets = [0, 0], sizes = [2, 32], strides = [1, 1]} : vector<2x96xf32> to vector<2x32xf32>
    %54 = arith.addf %52, %53 : vector<2x32xf32>
    %55 = arith.negf %54 : vector<2x32xf32>
    %56 = math.exp %55 : vector<2x32xf32>
    %cst_21 = arith.constant 1.000000e+00 : f32
    %57 = vector.broadcast %cst_21 : f32 to vector<2x32xf32>
    %58 = arith.addf %57, %56 : vector<2x32xf32>
    %59 = arith.divf %57, %58 : vector<2x32xf32>
    %60 = vector.extract_strided_slice %25 {offsets = [0, 32], sizes = [2, 32], strides = [1, 1]} : vector<2x96xf32> to vector<2x32xf32>
    %61 = vector.extract_strided_slice %16 {offsets = [0, 32], sizes = [2, 32], strides = [1, 1]} : vector<2x96xf32> to vector<2x32xf32>
    %62 = arith.addf %60, %61 : vector<2x32xf32>
    %63 = arith.negf %62 : vector<2x32xf32>
    %64 = math.exp %63 : vector<2x32xf32>
    %cst_22 = arith.constant 1.000000e+00 : f32
    %65 = vector.broadcast %cst_22 : f32 to vector<2x32xf32>
    %66 = arith.addf %65, %64 : vector<2x32xf32>
    %67 = arith.divf %65, %66 : vector<2x32xf32>
    %68 = vector.extract_strided_slice %25 {offsets = [0, 64], sizes = [2, 32], strides = [1, 1]} : vector<2x96xf32> to vector<2x32xf32>
    %69 = vector.extract_strided_slice %16 {offsets = [0, 64], sizes = [2, 32], strides = [1, 1]} : vector<2x96xf32> to vector<2x32xf32>
    %70 = arith.mulf %59, %69 : vector<2x32xf32>
    %71 = arith.addf %68, %70 : vector<2x32xf32>
    %72 = math.tanh %71 : vector<2x32xf32>
    %cst_23 = arith.constant 1.000000e+00 : f32
    %73 = vector.broadcast %cst_23 : f32 to vector<2x32xf32>
    %74 = arith.subf %73, %67 : vector<2x32xf32>
    %75 = arith.mulf %74, %72 : vector<2x32xf32>
    %76 = arith.mulf %67, %4 : vector<2x32xf32>
    %77 = arith.addf %75, %76 : vector<2x32xf32>
    %c0_i32_24 = arith.constant 0 : i32
    %78 = arith.subi %c0_i32_24, %arg0 : i32
    %c8_i32 = arith.constant 8 : i32
    %79 = arith.muli %78, %c8_i32 : i32
    %c7_i32_25 = arith.constant 7 : i32
    %80 = arith.subi %c7_i32_25, %c0_i32_1 : i32
    %81 = arith.addi %79, %80 : i32
    %c8_i32_26 = arith.constant 8 : i32
    %82 = arith.cmpi slt, %81, %c8_i32_26 : i32
    %83 = arith.select %82, %77, %4 : vector<2x32xf32>
    %c0_27 = arith.constant 0 : index
    %c0_28 = arith.constant 0 : index
    %84 = vector.load %arg9[%c0_27, %c0_28] : memref<2x32xf32, #tpu.memory_space<vmem>>, vector<2x32xf32>
    tpu.vector_store %arg9[%c0_27, %c0_28], %51 {strides = array<i32>} : memref<2x32xf32, #tpu.memory_space<vmem>>, vector<2x32xf32>,
    %c0_29 = arith.constant 0 : index
    %c0_30 = arith.constant 0 : index
    %85 = vector.load %arg10[%c0_29, %c0_30] : memref<2x32xf32, #tpu.memory_space<vmem>>, vector<2x32xf32>
    tpu.vector_store %arg10[%c0_29, %c0_30], %83 {strides = array<i32>} : memref<2x32xf32, #tpu.memory_space<vmem>>, vector<2x32xf32>,
    %86 = arith.truncf %51 : vector<2x32xf32> to vector<2x32xbf16>
    %87 = arith.index_cast %c0_i32_1 : i32 to index
    %c0_31 = arith.constant 0 : index
    %c0_32 = arith.constant 0 : index
    %88 = vector.load %arg7[%87, %c0_31, %c0_32] : memref<8x2x32xbf16, #tpu.memory_space<vmem>>, vector<1x2x32xbf16>
    %89 = vector.shape_cast %88 : vector<1x2x32xbf16> to vector<2x32xbf16>
    %90 = vector.shape_cast %86 : vector<2x32xbf16> to vector<1x2x32xbf16>
    tpu.vector_store %arg7[%87, %c0_31, %c0_32], %90 {strides = array<i32>} : memref<8x2x32xbf16, #tpu.memory_space<vmem>>, vector<1x2x32xbf16>,
    %91 = arith.truncf %83 : vector<2x32xf32> to vector<2x32xbf16>
    %c7_i32_33 = arith.constant 7 : i32
    %92 = arith.subi %c7_i32_33, %c0_i32_1 : i32
    %93 = arith.index_cast %92 : i32 to index
    %c0_34 = arith.constant 0 : index
    %c0_35 = arith.constant 0 : index
    %94 = vector.load %arg8[%93, %c0_34, %c0_35] : memref<8x2x32xbf16, #tpu.memory_space<vmem>>, vector<1x2x32xbf16>
    %95 = vector.shape_cast %94 : vector<1x2x32xbf16> to vector<2x32xbf16>
    %96 = vector.shape_cast %91 : vector<2x32xbf16> to vector<1x2x32xbf16>
    tpu.vector_store %arg8[%93, %c0_34, %c0_35], %96 {strides = array<i32>} : memref<8x2x32xbf16, #tpu.memory_space<vmem>>, vector<1x2x32xbf16>,
    %c1_i32 = arith.constant 1 : i32
    %c0_36 = arith.constant 0 : index
    %c0_37 = arith.constant 0 : index
    %97 = vector.load %arg9[%c0_36, %c0_37] : memref<2x32xf32, #tpu.memory_space<vmem>>, vector<2x32xf32>
    %c0_38 = arith.constant 0 : index
    %c0_39 = arith.constant 0 : index
    %98 = vector.load %arg10[%c0_38, %c0_39] : memref<2x32xf32, #tpu.memory_space<vmem>>, vector<2x32xf32>
    %99 = arith.truncf %97 : vector<2x32xf32> to vector<2x32xbf16>
    %c0_40 = arith.constant 0 : index
    %c0_41 = arith.constant 0 : index
    %100 = vector.load %arg3[%c0_40, %c0_41] : memref<32x96xbf16, #tpu.memory_space<vmem>>, vector<32x96xbf16>
    %cst_42 = arith.constant dense<0.000000e+00> : vector<2x96xf32>
    %101 = tpu.matmul %99, %100, %cst_42 {dimension_numbers = #tpu.dot_dimension_numbers<[1], [0], [0], [1], [0, 0, 1, 1], [], []>} : vector<2x32xbf16>, vector<32x96xbf16>, vector<2x96xf32> -> vector<2x96xf32>
    %c0_43 = arith.constant 0 : index
    %c0_44 = arith.constant 0 : index
    %102 = vector.load %arg5[%c0_43, %c0_44] : memref<1x96xf32, #tpu.memory_space<vmem>>, vector<1x96xf32>
    %103 = vector.broadcast %102 : vector<1x96xf32> to vector<2x96xf32>
    %104 = arith.addf %101, %103 : vector<2x96xf32>
    %105 = arith.truncf %98 : vector<2x32xf32> to vector<2x32xbf16>
    %c0_45 = arith.constant 0 : index
    %c0_46 = arith.constant 0 : index
    %106 = vector.load %arg4[%c0_45, %c0_46] : memref<32x96xbf16, #tpu.memory_space<vmem>>, vector<32x96xbf16>
    %cst_47 = arith.constant dense<0.000000e+00> : vector<2x96xf32>
    %107 = tpu.matmul %105, %106, %cst_47 {dimension_numbers = #tpu.dot_dimension_numbers<[1], [0], [0], [1], [0, 0, 1, 1], [], []>} : vector<2x32xbf16>, vector<32x96xbf16>, vector<2x96xf32> -> vector<2x96xf32>
    %c0_48 = arith.constant 0 : index
    %c0_49 = arith.constant 0 : index
    %108 = vector.load %arg6[%c0_48, %c0_49] : memref<1x96xf32, #tpu.memory_space<vmem>>, vector<1x96xf32>
    %109 = vector.broadcast %108 : vector<1x96xf32> to vector<2x96xf32>
    %110 = arith.addf %107, %109 : vector<2x96xf32>
    %111 = arith.index_cast %c1_i32 : i32 to index
    %c0_50 = arith.constant 0 : index
    %c0_51 = arith.constant 0 : index
    %112 = vector.load %arg1[%111, %c0_50, %c0_51] : memref<8x2x96xbf16, #tpu.memory_space<vmem>>, vector<1x2x96xbf16>
    %113 = vector.shape_cast %112 : vector<1x2x96xbf16> to vector<2x96xbf16>
    %114 = arith.extf %113 : vector<2x96xbf16> to vector<2x96xf32>
    %c7_i32_52 = arith.constant 7 : i32
    %115 = arith.subi %c7_i32_52, %c1_i32 : i32
    %116 = arith.index_cast %115 : i32 to index
    %c0_53 = arith.constant 0 : index
    %c0_54 = arith.constant 0 : index
    %117 = vector.load %arg2[%116, %c0_53, %c0_54] : memref<8x2x96xbf16, #tpu.memory_space<vmem>>, vector<1x2x96xbf16>
    %118 = vector.shape_cast %117 : vector<1x2x96xbf16> to vector<2x96xbf16>
    %119 = arith.extf %118 : vector<2x96xbf16> to vector<2x96xf32>
    %120 = vector.extract_strided_slice %114 {offsets = [0, 0], sizes = [2, 32], strides = [1, 1]} : vector<2x96xf32> to vector<2x32xf32>
    %121 = vector.extract_strided_slice %104 {offsets = [0, 0], sizes = [2, 32], strides = [1, 1]} : vector<2x96xf32> to vector<2x32xf32>
    %122 = arith.addf %120, %121 : vector<2x32xf32>
    %123 = arith.negf %122 : vector<2x32xf32>
    %124 = math.exp %123 : vector<2x32xf32>
    %cst_55 = arith.constant 1.000000e+00 : f32
    %125 = vector.broadcast %cst_55 : f32 to vector<2x32xf32>
    %126 = arith.addf %125, %124 : vector<2x32xf32>
    %127 = arith.divf %125, %126 : vector<2x32xf32>
    %128 = vector.extract_strided_slice %114 {offsets = [0, 32], sizes = [2, 32], strides = [1, 1]} : vector<2x96xf32> to vector<2x32xf32>
    %129 = vector.extract_strided_slice %104 {offsets = [0, 32], sizes = [2, 32], strides = [1, 1]} : vector<2x96xf32> to vector<2x32xf32>
    %130 = arith.addf %128, %129 : vector<2x32xf32>
    %131 = arith.negf %130 : vector<2x32xf32>
    %132 = math.exp %131 : vector<2x32xf32>
    %cst_56 = arith.constant 1.000000e+00 : f32
    %133 = vector.broadcast %cst_56 : f32 to vector<2x32xf32>
    %134 = arith.addf %133, %132 : vector<2x32xf32>
    %135 = arith.divf %133, %134 : vector<2x32xf32>
    %136 = vector.extract_strided_slice %114 {offsets = [0, 64], sizes = [2, 32], strides = [1, 1]} : vector<2x96xf32> to vector<2x32xf32>
    %137 = vector.extract_strided_slice %104 {offsets = [0, 64], sizes = [2, 32], strides = [1, 1]} : vector<2x96xf32> to vector<2x32xf32>
    %138 = arith.mulf %127, %137 : vector<2x32xf32>
    %139 = arith.addf %136, %138 : vector<2x32xf32>
    %140 = math.tanh %139 : vector<2x32xf32>
    %cst_57 = arith.constant 1.000000e+00 : f32
    %141 = vector.broadcast %cst_57 : f32 to vector<2x32xf32>
    %142 = arith.subf %141, %135 : vector<2x32xf32>
    %143 = arith.mulf %142, %140 : vector<2x32xf32>
    %144 = arith.mulf %135, %97 : vector<2x32xf32>
    %145 = arith.addf %143, %144 : vector<2x32xf32>
    %146 = vector.extract_strided_slice %119 {offsets = [0, 0], sizes = [2, 32], strides = [1, 1]} : vector<2x96xf32> to vector<2x32xf32>
    %147 = vector.extract_strided_slice %110 {offsets = [0, 0], sizes = [2, 32], strides = [1, 1]} : vector<2x96xf32> to vector<2x32xf32>
    %148 = arith.addf %146, %147 : vector<2x32xf32>
    %149 = arith.negf %148 : vector<2x32xf32>
    %150 = math.exp %149 : vector<2x32xf32>
    %cst_58 = arith.constant 1.000000e+00 : f32
    %151 = vector.broadcast %cst_58 : f32 to vector<2x32xf32>
    %152 = arith.addf %151, %150 : vector<2x32xf32>
    %153 = arith.divf %151, %152 : vector<2x32xf32>
    %154 = vector.extract_strided_slice %119 {offsets = [0, 32], sizes = [2, 32], strides = [1, 1]} : vector<2x96xf32> to vector<2x32xf32>
    %155 = vector.extract_strided_slice %110 {offsets = [0, 32], sizes = [2, 32], strides = [1, 1]} : vector<2x96xf32> to vector<2x32xf32>
    %156 = arith.addf %154, %155 : vector<2x32xf32>
    %157 = arith.negf %156 : vector<2x32xf32>
    %158 = math.exp %157 : vector<2x32xf32>
    %cst_59 = arith.constant 1.000000e+00 : f32
    %159 = vector.broadcast %cst_59 : f32 to vector<2x32xf32>
    %160 = arith.addf %159, %158 : vector<2x32xf32>
    %161 = arith.divf %159, %160 : vector<2x32xf32>
    %162 = vector.extract_strided_slice %119 {offsets = [0, 64], sizes = [2, 32], strides = [1, 1]} : vector<2x96xf32> to vector<2x32xf32>
    %163 = vector.extract_strided_slice %110 {offsets = [0, 64], sizes = [2, 32], strides = [1, 1]} : vector<2x96xf32> to vector<2x32xf32>
    %164 = arith.mulf %153, %163 : vector<2x32xf32>
    %165 = arith.addf %162, %164 : vector<2x32xf32>
    %166 = math.tanh %165 : vector<2x32xf32>
    %cst_60 = arith.constant 1.000000e+00 : f32
    %167 = vector.broadcast %cst_60 : f32 to vector<2x32xf32>
    %168 = arith.subf %167, %161 : vector<2x32xf32>
    %169 = arith.mulf %168, %166 : vector<2x32xf32>
    %170 = arith.mulf %161, %98 : vector<2x32xf32>
    %171 = arith.addf %169, %170 : vector<2x32xf32>
    %c0_i32_61 = arith.constant 0 : i32
    %172 = arith.subi %c0_i32_61, %arg0 : i32
    %c8_i32_62 = arith.constant 8 : i32
    %173 = arith.muli %172, %c8_i32_62 : i32
    %c7_i32_63 = arith.constant 7 : i32
    %174 = arith.subi %c7_i32_63, %c1_i32 : i32
    %175 = arith.addi %173, %174 : i32
    %c8_i32_64 = arith.constant 8 : i32
    %176 = arith.cmpi slt, %175, %c8_i32_64 : i32
    %177 = arith.select %176, %171, %98 : vector<2x32xf32>
    %c0_65 = arith.constant 0 : index
    %c0_66 = arith.constant 0 : index
    %178 = vector.load %arg9[%c0_65, %c0_66] : memref<2x32xf32, #tpu.memory_space<vmem>>, vector<2x32xf32>
    tpu.vector_store %arg9[%c0_65, %c0_66], %145 {strides = array<i32>} : memref<2x32xf32, #tpu.memory_space<vmem>>, vector<2x32xf32>,
    %c0_67 = arith.constant 0 : index
    %c0_68 = arith.constant 0 : index
    %179 = vector.load %arg10[%c0_67, %c0_68] : memref<2x32xf32, #tpu.memory_space<vmem>>, vector<2x32xf32>
    tpu.vector_store %arg10[%c0_67, %c0_68], %177 {strides = array<i32>} : memref<2x32xf32, #tpu.memory_space<vmem>>, vector<2x32xf32>,
    %180 = arith.truncf %145 : vector<2x32xf32> to vector<2x32xbf16>
    %181 = arith.index_cast %c1_i32 : i32 to index
    %c0_69 = arith.constant 0 : index
    %c0_70 = arith.constant 0 : index
    %182 = vector.load %arg7[%181, %c0_69, %c0_70] : memref<8x2x32xbf16, #tpu.memory_space<vmem>>, vector<1x2x32xbf16>
    %183 = vector.shape_cast %182 : vector<1x2x32xbf16> to vector<2x32xbf16>
    %184 = vector.shape_cast %180 : vector<2x32xbf16> to vector<1x2x32xbf16>
    tpu.vector_store %arg7[%181, %c0_69, %c0_70], %184 {strides = array<i32>} : memref<8x2x32xbf16, #tpu.memory_space<vmem>>, vector<1x2x32xbf16>,
    %185 = arith.truncf %177 : vector<2x32xf32> to vector<2x32xbf16>
    %c7_i32_71 = arith.constant 7 : i32
    %186 = arith.subi %c7_i32_71, %c1_i32 : i32
    %187 = arith.index_cast %186 : i32 to index
    %c0_72 = arith.constant 0 : index
    %c0_73 = arith.constant 0 : index
    %188 = vector.load %arg8[%187, %c0_72, %c0_73] : memref<8x2x32xbf16, #tpu.memory_space<vmem>>, vector<1x2x32xbf16>
    %189 = vector.shape_cast %188 : vector<1x2x32xbf16> to vector<2x32xbf16>
    %190 = vector.shape_cast %185 : vector<2x32xbf16> to vector<1x2x32xbf16>
    tpu.vector_store %arg8[%187, %c0_72, %c0_73], %190 {strides = array<i32>} : memref<8x2x32xbf16, #tpu.memory_space<vmem>>, vector<1x2x32xbf16>,
    %c2_i32 = arith.constant 2 : i32
    %c0_74 = arith.constant 0 : index
    %c0_75 = arith.constant 0 : index
    %191 = vector.load %arg9[%c0_74, %c0_75] : memref<2x32xf32, #tpu.memory_space<vmem>>, vector<2x32xf32>
    %c0_76 = arith.constant 0 : index
    %c0_77 = arith.constant 0 : index
    %192 = vector.load %arg10[%c0_76, %c0_77] : memref<2x32xf32, #tpu.memory_space<vmem>>, vector<2x32xf32>
    %193 = arith.truncf %191 : vector<2x32xf32> to vector<2x32xbf16>
    %c0_78 = arith.constant 0 : index
    %c0_79 = arith.constant 0 : index
    %194 = vector.load %arg3[%c0_78, %c0_79] : memref<32x96xbf16, #tpu.memory_space<vmem>>, vector<32x96xbf16>
    %cst_80 = arith.constant dense<0.000000e+00> : vector<2x96xf32>
    %195 = tpu.matmul %193, %194, %cst_80 {dimension_numbers = #tpu.dot_dimension_numbers<[1], [0], [0], [1], [0, 0, 1, 1], [], []>} : vector<2x32xbf16>, vector<32x96xbf16>, vector<2x96xf32> -> vector<2x96xf32>
    %c0_81 = arith.constant 0 : index
    %c0_82 = arith.constant 0 : index
    %196 = vector.load %arg5[%c0_81, %c0_82] : memref<1x96xf32, #tpu.memory_space<vmem>>, vector<1x96xf32>
    %197 = vector.broadcast %196 : vector<1x96xf32> to vector<2x96xf32>
    %198 = arith.addf %195, %197 : vector<2x96xf32>
    %199 = arith.truncf %192 : vector<2x32xf32> to vector<2x32xbf16>
    %c0_83 = arith.constant 0 : index
    %c0_84 = arith.constant 0 : index
    %200 = vector.load %arg4[%c0_83, %c0_84] : memref<32x96xbf16, #tpu.memory_space<vmem>>, vector<32x96xbf16>
    %cst_85 = arith.constant dense<0.000000e+00> : vector<2x96xf32>
    %201 = tpu.matmul %199, %200, %cst_85 {dimension_numbers = #tpu.dot_dimension_numbers<[1], [0], [0], [1], [0, 0, 1, 1], [], []>} : vector<2x32xbf16>, vector<32x96xbf16>, vector<2x96xf32> -> vector<2x96xf32>
    %c0_86 = arith.constant 0 : index
    %c0_87 = arith.constant 0 : index
    %202 = vector.load %arg6[%c0_86, %c0_87] : memref<1x96xf32, #tpu.memory_space<vmem>>, vector<1x96xf32>
    %203 = vector.broadcast %202 : vector<1x96xf32> to vector<2x96xf32>
    %204 = arith.addf %201, %203 : vector<2x96xf32>
    %205 = arith.index_cast %c2_i32 : i32 to index
    %c0_88 = arith.constant 0 : index
    %c0_89 = arith.constant 0 : index
    %206 = vector.load %arg1[%205, %c0_88, %c0_89] : memref<8x2x96xbf16, #tpu.memory_space<vmem>>, vector<1x2x96xbf16>
    %207 = vector.shape_cast %206 : vector<1x2x96xbf16> to vector<2x96xbf16>
    %208 = arith.extf %207 : vector<2x96xbf16> to vector<2x96xf32>
    %c7_i32_90 = arith.constant 7 : i32
    %209 = arith.subi %c7_i32_90, %c2_i32 : i32
    %210 = arith.index_cast %209 : i32 to index
    %c0_91 = arith.constant 0 : index
    %c0_92 = arith.constant 0 : index
    %211 = vector.load %arg2[%210, %c0_91, %c0_92] : memref<8x2x96xbf16, #tpu.memory_space<vmem>>, vector<1x2x96xbf16>
    %212 = vector.shape_cast %211 : vector<1x2x96xbf16> to vector<2x96xbf16>
    %213 = arith.extf %212 : vector<2x96xbf16> to vector<2x96xf32>
    %214 = vector.extract_strided_slice %208 {offsets = [0, 0], sizes = [2, 32], strides = [1, 1]} : vector<2x96xf32> to vector<2x32xf32>
    %215 = vector.extract_strided_slice %198 {offsets = [0, 0], sizes = [2, 32], strides = [1, 1]} : vector<2x96xf32> to vector<2x32xf32>
    %216 = arith.addf %214, %215 : vector<2x32xf32>
    %217 = arith.negf %216 : vector<2x32xf32>
    %218 = math.exp %217 : vector<2x32xf32>
    %cst_93 = arith.constant 1.000000e+00 : f32
    %219 = vector.broadcast %cst_93 : f32 to vector<2x32xf32>
    %220 = arith.addf %219, %218 : vector<2x32xf32>
    %221 = arith.divf %219, %220 : vector<2x32xf32>
    %222 = vector.extract_strided_slice %208 {offsets = [0, 32], sizes = [2, 32], strides = [1, 1]} : vector<2x96xf32> to vector<2x32xf32>
    %223 = vector.extract_strided_slice %198 {offsets = [0, 32], sizes = [2, 32], strides = [1, 1]} : vector<2x96xf32> to vector<2x32xf32>
    %224 = arith.addf %222, %223 : vector<2x32xf32>
    %225 = arith.negf %224 : vector<2x32xf32>
    %226 = math.exp %225 : vector<2x32xf32>
    %cst_94 = arith.constant 1.000000e+00 : f32
    %227 = vector.broadcast %cst_94 : f32 to vector<2x32xf32>
    %228 = arith.addf %227, %226 : vector<2x32xf32>
    %229 = arith.divf %227, %228 : vector<2x32xf32>
    %230 = vector.extract_strided_slice %208 {offsets = [0, 64], sizes = [2, 32], strides = [1, 1]} : vector<2x96xf32> to vector<2x32xf32>
    %231 = vector.extract_strided_slice %198 {offsets = [0, 64], sizes = [2, 32], strides = [1, 1]} : vector<2x96xf32> to vector<2x32xf32>
    %232 = arith.mulf %221, %231 : vector<2x32xf32>
    %233 = arith.addf %230, %232 : vector<2x32xf32>
    %234 = math.tanh %233 : vector<2x32xf32>
    %cst_95 = arith.constant 1.000000e+00 : f32
    %235 = vector.broadcast %cst_95 : f32 to vector<2x32xf32>
    %236 = arith.subf %235, %229 : vector<2x32xf32>
    %237 = arith.mulf %236, %234 : vector<2x32xf32>
    %238 = arith.mulf %229, %191 : vector<2x32xf32>
    %239 = arith.addf %237, %238 : vector<2x32xf32>
    %240 = vector.extract_strided_slice %213 {offsets = [0, 0], sizes = [2, 32], strides = [1, 1]} : vector<2x96xf32> to vector<2x32xf32>
    %241 = vector.extract_strided_slice %204 {offsets = [0, 0], sizes = [2, 32], strides = [1, 1]} : vector<2x96xf32> to vector<2x32xf32>
    %242 = arith.addf %240, %241 : vector<2x32xf32>
    %243 = arith.negf %242 : vector<2x32xf32>
    %244 = math.exp %243 : vector<2x32xf32>
    %cst_96 = arith.constant 1.000000e+00 : f32
    %245 = vector.broadcast %cst_96 : f32 to vector<2x32xf32>
    %246 = arith.addf %245, %244 : vector<2x32xf32>
    %247 = arith.divf %245, %246 : vector<2x32xf32>
    %248 = vector.extract_strided_slice %213 {offsets = [0, 32], sizes = [2, 32], strides = [1, 1]} : vector<2x96xf32> to vector<2x32xf32>
    %249 = vector.extract_strided_slice %204 {offsets = [0, 32], sizes = [2, 32], strides = [1, 1]} : vector<2x96xf32> to vector<2x32xf32>
    %250 = arith.addf %248, %249 : vector<2x32xf32>
    %251 = arith.negf %250 : vector<2x32xf32>
    %252 = math.exp %251 : vector<2x32xf32>
    %cst_97 = arith.constant 1.000000e+00 : f32
    %253 = vector.broadcast %cst_97 : f32 to vector<2x32xf32>
    %254 = arith.addf %253, %252 : vector<2x32xf32>
    %255 = arith.divf %253, %254 : vector<2x32xf32>
    %256 = vector.extract_strided_slice %213 {offsets = [0, 64], sizes = [2, 32], strides = [1, 1]} : vector<2x96xf32> to vector<2x32xf32>
    %257 = vector.extract_strided_slice %204 {offsets = [0, 64], sizes = [2, 32], strides = [1, 1]} : vector<2x96xf32> to vector<2x32xf32>
    %258 = arith.mulf %247, %257 : vector<2x32xf32>
    %259 = arith.addf %256, %258 : vector<2x32xf32>
    %260 = math.tanh %259 : vector<2x32xf32>
    %cst_98 = arith.constant 1.000000e+00 : f32
    %261 = vector.broadcast %cst_98 : f32 to vector<2x32xf32>
    %262 = arith.subf %261, %255 : vector<2x32xf32>
    %263 = arith.mulf %262, %260 : vector<2x32xf32>
    %264 = arith.mulf %255, %192 : vector<2x32xf32>
    %265 = arith.addf %263, %264 : vector<2x32xf32>
    %c0_i32_99 = arith.constant 0 : i32
    %266 = arith.subi %c0_i32_99, %arg0 : i32
    %c8_i32_100 = arith.constant 8 : i32
    %267 = arith.muli %266, %c8_i32_100 : i32
    %c7_i32_101 = arith.constant 7 : i32
    %268 = arith.subi %c7_i32_101, %c2_i32 : i32
    %269 = arith.addi %267, %268 : i32
    %c8_i32_102 = arith.constant 8 : i32
    %270 = arith.cmpi slt, %269, %c8_i32_102 : i32
    %271 = arith.select %270, %265, %192 : vector<2x32xf32>
    %c0_103 = arith.constant 0 : index
    %c0_104 = arith.constant 0 : index
    %272 = vector.load %arg9[%c0_103, %c0_104] : memref<2x32xf32, #tpu.memory_space<vmem>>, vector<2x32xf32>
    tpu.vector_store %arg9[%c0_103, %c0_104], %239 {strides = array<i32>} : memref<2x32xf32, #tpu.memory_space<vmem>>, vector<2x32xf32>,
    %c0_105 = arith.constant 0 : index
    %c0_106 = arith.constant 0 : index
    %273 = vector.load %arg10[%c0_105, %c0_106] : memref<2x32xf32, #tpu.memory_space<vmem>>, vector<2x32xf32>
    tpu.vector_store %arg10[%c0_105, %c0_106], %271 {strides = array<i32>} : memref<2x32xf32, #tpu.memory_space<vmem>>, vector<2x32xf32>,
    %274 = arith.truncf %239 : vector<2x32xf32> to vector<2x32xbf16>
    %275 = arith.index_cast %c2_i32 : i32 to index
    %c0_107 = arith.constant 0 : index
    %c0_108 = arith.constant 0 : index
    %276 = vector.load %arg7[%275, %c0_107, %c0_108] : memref<8x2x32xbf16, #tpu.memory_space<vmem>>, vector<1x2x32xbf16>
    %277 = vector.shape_cast %276 : vector<1x2x32xbf16> to vector<2x32xbf16>
    %278 = vector.shape_cast %274 : vector<2x32xbf16> to vector<1x2x32xbf16>
    tpu.vector_store %arg7[%275, %c0_107, %c0_108], %278 {strides = array<i32>} : memref<8x2x32xbf16, #tpu.memory_space<vmem>>, vector<1x2x32xbf16>,
    %279 = arith.truncf %271 : vector<2x32xf32> to vector<2x32xbf16>
    %c7_i32_109 = arith.constant 7 : i32
    %280 = arith.subi %c7_i32_109, %c2_i32 : i32
    %281 = arith.index_cast %280 : i32 to index
    %c0_110 = arith.constant 0 : index
    %c0_111 = arith.constant 0 : index
    %282 = vector.load %arg8[%281, %c0_110, %c0_111] : memref<8x2x32xbf16, #tpu.memory_space<vmem>>, vector<1x2x32xbf16>
    %283 = vector.shape_cast %282 : vector<1x2x32xbf16> to vector<2x32xbf16>
    %284 = vector.shape_cast %279 : vector<2x32xbf16> to vector<1x2x32xbf16>
    tpu.vector_store %arg8[%281, %c0_110, %c0_111], %284 {strides = array<i32>} : memref<8x2x32xbf16, #tpu.memory_space<vmem>>, vector<1x2x32xbf16>,
    %c3_i32 = arith.constant 3 : i32
    %c0_112 = arith.constant 0 : index
    %c0_113 = arith.constant 0 : index
    %285 = vector.load %arg9[%c0_112, %c0_113] : memref<2x32xf32, #tpu.memory_space<vmem>>, vector<2x32xf32>
    %c0_114 = arith.constant 0 : index
    %c0_115 = arith.constant 0 : index
    %286 = vector.load %arg10[%c0_114, %c0_115] : memref<2x32xf32, #tpu.memory_space<vmem>>, vector<2x32xf32>
    %287 = arith.truncf %285 : vector<2x32xf32> to vector<2x32xbf16>
    %c0_116 = arith.constant 0 : index
    %c0_117 = arith.constant 0 : index
    %288 = vector.load %arg3[%c0_116, %c0_117] : memref<32x96xbf16, #tpu.memory_space<vmem>>, vector<32x96xbf16>
    %cst_118 = arith.constant dense<0.000000e+00> : vector<2x96xf32>
    %289 = tpu.matmul %287, %288, %cst_118 {dimension_numbers = #tpu.dot_dimension_numbers<[1], [0], [0], [1], [0, 0, 1, 1], [], []>} : vector<2x32xbf16>, vector<32x96xbf16>, vector<2x96xf32> -> vector<2x96xf32>
    %c0_119 = arith.constant 0 : index
    %c0_120 = arith.constant 0 : index
    %290 = vector.load %arg5[%c0_119, %c0_120] : memref<1x96xf32, #tpu.memory_space<vmem>>, vector<1x96xf32>
    %291 = vector.broadcast %290 : vector<1x96xf32> to vector<2x96xf32>
    %292 = arith.addf %289, %291 : vector<2x96xf32>
    %293 = arith.truncf %286 : vector<2x32xf32> to vector<2x32xbf16>
    %c0_121 = arith.constant 0 : index
    %c0_122 = arith.constant 0 : index
    %294 = vector.load %arg4[%c0_121, %c0_122] : memref<32x96xbf16, #tpu.memory_space<vmem>>, vector<32x96xbf16>
    %cst_123 = arith.constant dense<0.000000e+00> : vector<2x96xf32>
    %295 = tpu.matmul %293, %294, %cst_123 {dimension_numbers = #tpu.dot_dimension_numbers<[1], [0], [0], [1], [0, 0, 1, 1], [], []>} : vector<2x32xbf16>, vector<32x96xbf16>, vector<2x96xf32> -> vector<2x96xf32>
    %c0_124 = arith.constant 0 : index
    %c0_125 = arith.constant 0 : index
    %296 = vector.load %arg6[%c0_124, %c0_125] : memref<1x96xf32, #tpu.memory_space<vmem>>, vector<1x96xf32>
    %297 = vector.broadcast %296 : vector<1x96xf32> to vector<2x96xf32>
    %298 = arith.addf %295, %297 : vector<2x96xf32>
    %299 = arith.index_cast %c3_i32 : i32 to index
    %c0_126 = arith.constant 0 : index
    %c0_127 = arith.constant 0 : index
    %300 = vector.load %arg1[%299, %c0_126, %c0_127] : memref<8x2x96xbf16, #tpu.memory_space<vmem>>, vector<1x2x96xbf16>
    %301 = vector.shape_cast %300 : vector<1x2x96xbf16> to vector<2x96xbf16>
    %302 = arith.extf %301 : vector<2x96xbf16> to vector<2x96xf32>
    %c7_i32_128 = arith.constant 7 : i32
    %303 = arith.subi %c7_i32_128, %c3_i32 : i32
    %304 = arith.index_cast %303 : i32 to index
    %c0_129 = arith.constant 0 : index
    %c0_130 = arith.constant 0 : index
    %305 = vector.load %arg2[%304, %c0_129, %c0_130] : memref<8x2x96xbf16, #tpu.memory_space<vmem>>, vector<1x2x96xbf16>
    %306 = vector.shape_cast %305 : vector<1x2x96xbf16> to vector<2x96xbf16>
    %307 = arith.extf %306 : vector<2x96xbf16> to vector<2x96xf32>
    %308 = vector.extract_strided_slice %302 {offsets = [0, 0], sizes = [2, 32], strides = [1, 1]} : vector<2x96xf32> to vector<2x32xf32>
    %309 = vector.extract_strided_slice %292 {offsets = [0, 0], sizes = [2, 32], strides = [1, 1]} : vector<2x96xf32> to vector<2x32xf32>
    %310 = arith.addf %308, %309 : vector<2x32xf32>
    %311 = arith.negf %310 : vector<2x32xf32>
    %312 = math.exp %311 : vector<2x32xf32>
    %cst_131 = arith.constant 1.000000e+00 : f32
    %313 = vector.broadcast %cst_131 : f32 to vector<2x32xf32>
    %314 = arith.addf %313, %312 : vector<2x32xf32>
    %315 = arith.divf %313, %314 : vector<2x32xf32>
    %316 = vector.extract_strided_slice %302 {offsets = [0, 32], sizes = [2, 32], strides = [1, 1]} : vector<2x96xf32> to vector<2x32xf32>
    %317 = vector.extract_strided_slice %292 {offsets = [0, 32], sizes = [2, 32], strides = [1, 1]} : vector<2x96xf32> to vector<2x32xf32>
    %318 = arith.addf %316, %317 : vector<2x32xf32>
    %319 = arith.negf %318 : vector<2x32xf32>
    %320 = math.exp %319 : vector<2x32xf32>
    %cst_132 = arith.constant 1.000000e+00 : f32
    %321 = vector.broadcast %cst_132 : f32 to vector<2x32xf32>
    %322 = arith.addf %321, %320 : vector<2x32xf32>
    %323 = arith.divf %321, %322 : vector<2x32xf32>
    %324 = vector.extract_strided_slice %302 {offsets = [0, 64], sizes = [2, 32], strides = [1, 1]} : vector<2x96xf32> to vector<2x32xf32>
    %325 = vector.extract_strided_slice %292 {offsets = [0, 64], sizes = [2, 32], strides = [1, 1]} : vector<2x96xf32> to vector<2x32xf32>
    %326 = arith.mulf %315, %325 : vector<2x32xf32>
    %327 = arith.addf %324, %326 : vector<2x32xf32>
    %328 = math.tanh %327 : vector<2x32xf32>
    %cst_133 = arith.constant 1.000000e+00 : f32
    %329 = vector.broadcast %cst_133 : f32 to vector<2x32xf32>
    %330 = arith.subf %329, %323 : vector<2x32xf32>
    %331 = arith.mulf %330, %328 : vector<2x32xf32>
    %332 = arith.mulf %323, %285 : vector<2x32xf32>
    %333 = arith.addf %331, %332 : vector<2x32xf32>
    %334 = vector.extract_strided_slice %307 {offsets = [0, 0], sizes = [2, 32], strides = [1, 1]} : vector<2x96xf32> to vector<2x32xf32>
    %335 = vector.extract_strided_slice %298 {offsets = [0, 0], sizes = [2, 32], strides = [1, 1]} : vector<2x96xf32> to vector<2x32xf32>
    %336 = arith.addf %334, %335 : vector<2x32xf32>
    %337 = arith.negf %336 : vector<2x32xf32>
    %338 = math.exp %337 : vector<2x32xf32>
    %cst_134 = arith.constant 1.000000e+00 : f32
    %339 = vector.broadcast %cst_134 : f32 to vector<2x32xf32>
    %340 = arith.addf %339, %338 : vector<2x32xf32>
    %341 = arith.divf %339, %340 : vector<2x32xf32>
    %342 = vector.extract_strided_slice %307 {offsets = [0, 32], sizes = [2, 32], strides = [1, 1]} : vector<2x96xf32> to vector<2x32xf32>
    %343 = vector.extract_strided_slice %298 {offsets = [0, 32], sizes = [2, 32], strides = [1, 1]} : vector<2x96xf32> to vector<2x32xf32>
    %344 = arith.addf %342, %343 : vector<2x32xf32>
    %345 = arith.negf %344 : vector<2x32xf32>
    %346 = math.exp %345 : vector<2x32xf32>
    %cst_135 = arith.constant 1.000000e+00 : f32
    %347 = vector.broadcast %cst_135 : f32 to vector<2x32xf32>
    %348 = arith.addf %347, %346 : vector<2x32xf32>
    %349 = arith.divf %347, %348 : vector<2x32xf32>
    %350 = vector.extract_strided_slice %307 {offsets = [0, 64], sizes = [2, 32], strides = [1, 1]} : vector<2x96xf32> to vector<2x32xf32>
    %351 = vector.extract_strided_slice %298 {offsets = [0, 64], sizes = [2, 32], strides = [1, 1]} : vector<2x96xf32> to vector<2x32xf32>
    %352 = arith.mulf %341, %351 : vector<2x32xf32>
    %353 = arith.addf %350, %352 : vector<2x32xf32>
    %354 = math.tanh %353 : vector<2x32xf32>
    %cst_136 = arith.constant 1.000000e+00 : f32
    %355 = vector.broadcast %cst_136 : f32 to vector<2x32xf32>
    %356 = arith.subf %355, %349 : vector<2x32xf32>
    %357 = arith.mulf %356, %354 : vector<2x32xf32>
    %358 = arith.mulf %349, %286 : vector<2x32xf32>
    %359 = arith.addf %357, %358 : vector<2x32xf32>
    %c0_i32_137 = arith.constant 0 : i32
    %360 = arith.subi %c0_i32_137, %arg0 : i32
    %c8_i32_138 = arith.constant 8 : i32
    %361 = arith.muli %360, %c8_i32_138 : i32
    %c7_i32_139 = arith.constant 7 : i32
    %362 = arith.subi %c7_i32_139, %c3_i32 : i32
    %363 = arith.addi %361, %362 : i32
    %c8_i32_140 = arith.constant 8 : i32
    %364 = arith.cmpi slt, %363, %c8_i32_140 : i32
    %365 = arith.select %364, %359, %286 : vector<2x32xf32>
    %c0_141 = arith.constant 0 : index
    %c0_142 = arith.constant 0 : index
    %366 = vector.load %arg9[%c0_141, %c0_142] : memref<2x32xf32, #tpu.memory_space<vmem>>, vector<2x32xf32>
    tpu.vector_store %arg9[%c0_141, %c0_142], %333 {strides = array<i32>} : memref<2x32xf32, #tpu.memory_space<vmem>>, vector<2x32xf32>,
    %c0_143 = arith.constant 0 : index
    %c0_144 = arith.constant 0 : index
    %367 = vector.load %arg10[%c0_143, %c0_144] : memref<2x32xf32, #tpu.memory_space<vmem>>, vector<2x32xf32>
    tpu.vector_store %arg10[%c0_143, %c0_144], %365 {strides = array<i32>} : memref<2x32xf32, #tpu.memory_space<vmem>>, vector<2x32xf32>,
    %368 = arith.truncf %333 : vector<2x32xf32> to vector<2x32xbf16>
    %369 = arith.index_cast %c3_i32 : i32 to index
    %c0_145 = arith.constant 0 : index
    %c0_146 = arith.constant 0 : index
    %370 = vector.load %arg7[%369, %c0_145, %c0_146] : memref<8x2x32xbf16, #tpu.memory_space<vmem>>, vector<1x2x32xbf16>
    %371 = vector.shape_cast %370 : vector<1x2x32xbf16> to vector<2x32xbf16>
    %372 = vector.shape_cast %368 : vector<2x32xbf16> to vector<1x2x32xbf16>
    tpu.vector_store %arg7[%369, %c0_145, %c0_146], %372 {strides = array<i32>} : memref<8x2x32xbf16, #tpu.memory_space<vmem>>, vector<1x2x32xbf16>,
    %373 = arith.truncf %365 : vector<2x32xf32> to vector<2x32xbf16>
    %c7_i32_147 = arith.constant 7 : i32
    %374 = arith.subi %c7_i32_147, %c3_i32 : i32
    %375 = arith.index_cast %374 : i32 to index
    %c0_148 = arith.constant 0 : index
    %c0_149 = arith.constant 0 : index
    %376 = vector.load %arg8[%375, %c0_148, %c0_149] : memref<8x2x32xbf16, #tpu.memory_space<vmem>>, vector<1x2x32xbf16>
    %377 = vector.shape_cast %376 : vector<1x2x32xbf16> to vector<2x32xbf16>
    %378 = vector.shape_cast %373 : vector<2x32xbf16> to vector<1x2x32xbf16>
    tpu.vector_store %arg8[%375, %c0_148, %c0_149], %378 {strides = array<i32>} : memref<8x2x32xbf16, #tpu.memory_space<vmem>>, vector<1x2x32xbf16>,
    %c4_i32 = arith.constant 4 : i32
    %c0_150 = arith.constant 0 : index
    %c0_151 = arith.constant 0 : index
    %379 = vector.load %arg9[%c0_150, %c0_151] : memref<2x32xf32, #tpu.memory_space<vmem>>, vector<2x32xf32>
    %c0_152 = arith.constant 0 : index
    %c0_153 = arith.constant 0 : index
    %380 = vector.load %arg10[%c0_152, %c0_153] : memref<2x32xf32, #tpu.memory_space<vmem>>, vector<2x32xf32>
    %381 = arith.truncf %379 : vector<2x32xf32> to vector<2x32xbf16>
    %c0_154 = arith.constant 0 : index
    %c0_155 = arith.constant 0 : index
    %382 = vector.load %arg3[%c0_154, %c0_155] : memref<32x96xbf16, #tpu.memory_space<vmem>>, vector<32x96xbf16>
    %cst_156 = arith.constant dense<0.000000e+00> : vector<2x96xf32>
    %383 = tpu.matmul %381, %382, %cst_156 {dimension_numbers = #tpu.dot_dimension_numbers<[1], [0], [0], [1], [0, 0, 1, 1], [], []>} : vector<2x32xbf16>, vector<32x96xbf16>, vector<2x96xf32> -> vector<2x96xf32>
    %c0_157 = arith.constant 0 : index
    %c0_158 = arith.constant 0 : index
    %384 = vector.load %arg5[%c0_157, %c0_158] : memref<1x96xf32, #tpu.memory_space<vmem>>, vector<1x96xf32>
    %385 = vector.broadcast %384 : vector<1x96xf32> to vector<2x96xf32>
    %386 = arith.addf %383, %385 : vector<2x96xf32>
    %387 = arith.truncf %380 : vector<2x32xf32> to vector<2x32xbf16>
    %c0_159 = arith.constant 0 : index
    %c0_160 = arith.constant 0 : index
    %388 = vector.load %arg4[%c0_159, %c0_160] : memref<32x96xbf16, #tpu.memory_space<vmem>>, vector<32x96xbf16>
    %cst_161 = arith.constant dense<0.000000e+00> : vector<2x96xf32>
    %389 = tpu.matmul %387, %388, %cst_161 {dimension_numbers = #tpu.dot_dimension_numbers<[1], [0], [0], [1], [0, 0, 1, 1], [], []>} : vector<2x32xbf16>, vector<32x96xbf16>, vector<2x96xf32> -> vector<2x96xf32>
    %c0_162 = arith.constant 0 : index
    %c0_163 = arith.constant 0 : index
    %390 = vector.load %arg6[%c0_162, %c0_163] : memref<1x96xf32, #tpu.memory_space<vmem>>, vector<1x96xf32>
    %391 = vector.broadcast %390 : vector<1x96xf32> to vector<2x96xf32>
    %392 = arith.addf %389, %391 : vector<2x96xf32>
    %393 = arith.index_cast %c4_i32 : i32 to index
    %c0_164 = arith.constant 0 : index
    %c0_165 = arith.constant 0 : index
    %394 = vector.load %arg1[%393, %c0_164, %c0_165] : memref<8x2x96xbf16, #tpu.memory_space<vmem>>, vector<1x2x96xbf16>
    %395 = vector.shape_cast %394 : vector<1x2x96xbf16> to vector<2x96xbf16>
    %396 = arith.extf %395 : vector<2x96xbf16> to vector<2x96xf32>
    %c7_i32_166 = arith.constant 7 : i32
    %397 = arith.subi %c7_i32_166, %c4_i32 : i32
    %398 = arith.index_cast %397 : i32 to index
    %c0_167 = arith.constant 0 : index
    %c0_168 = arith.constant 0 : index
    %399 = vector.load %arg2[%398, %c0_167, %c0_168] : memref<8x2x96xbf16, #tpu.memory_space<vmem>>, vector<1x2x96xbf16>
    %400 = vector.shape_cast %399 : vector<1x2x96xbf16> to vector<2x96xbf16>
    %401 = arith.extf %400 : vector<2x96xbf16> to vector<2x96xf32>
    %402 = vector.extract_strided_slice %396 {offsets = [0, 0], sizes = [2, 32], strides = [1, 1]} : vector<2x96xf32> to vector<2x32xf32>
    %403 = vector.extract_strided_slice %386 {offsets = [0, 0], sizes = [2, 32], strides = [1, 1]} : vector<2x96xf32> to vector<2x32xf32>
    %404 = arith.addf %402, %403 : vector<2x32xf32>
    %405 = arith.negf %404 : vector<2x32xf32>
    %406 = math.exp %405 : vector<2x32xf32>
    %cst_169 = arith.constant 1.000000e+00 : f32
    %407 = vector.broadcast %cst_169 : f32 to vector<2x32xf32>
    %408 = arith.addf %407, %406 : vector<2x32xf32>
    %409 = arith.divf %407, %408 : vector<2x32xf32>
    %410 = vector.extract_strided_slice %396 {offsets = [0, 32], sizes = [2, 32], strides = [1, 1]} : vector<2x96xf32> to vector<2x32xf32>
    %411 = vector.extract_strided_slice %386 {offsets = [0, 32], sizes = [2, 32], strides = [1, 1]} : vector<2x96xf32> to vector<2x32xf32>
    %412 = arith.addf %410, %411 : vector<2x32xf32>
    %413 = arith.negf %412 : vector<2x32xf32>
    %414 = math.exp %413 : vector<2x32xf32>
    %cst_170 = arith.constant 1.000000e+00 : f32
    %415 = vector.broadcast %cst_170 : f32 to vector<2x32xf32>
    %416 = arith.addf %415, %414 : vector<2x32xf32>
    %417 = arith.divf %415, %416 : vector<2x32xf32>
    %418 = vector.extract_strided_slice %396 {offsets = [0, 64], sizes = [2, 32], strides = [1, 1]} : vector<2x96xf32> to vector<2x32xf32>
    %419 = vector.extract_strided_slice %386 {offsets = [0, 64], sizes = [2, 32], strides = [1, 1]} : vector<2x96xf32> to vector<2x32xf32>
    %420 = arith.mulf %409, %419 : vector<2x32xf32>
    %421 = arith.addf %418, %420 : vector<2x32xf32>
    %422 = math.tanh %421 : vector<2x32xf32>
    %cst_171 = arith.constant 1.000000e+00 : f32
    %423 = vector.broadcast %cst_171 : f32 to vector<2x32xf32>
    %424 = arith.subf %423, %417 : vector<2x32xf32>
    %425 = arith.mulf %424, %422 : vector<2x32xf32>
    %426 = arith.mulf %417, %379 : vector<2x32xf32>
    %427 = arith.addf %425, %426 : vector<2x32xf32>
    %428 = vector.extract_strided_slice %401 {offsets = [0, 0], sizes = [2, 32], strides = [1, 1]} : vector<2x96xf32> to vector<2x32xf32>
    %429 = vector.extract_strided_slice %392 {offsets = [0, 0], sizes = [2, 32], strides = [1, 1]} : vector<2x96xf32> to vector<2x32xf32>
    %430 = arith.addf %428, %429 : vector<2x32xf32>
    %431 = arith.negf %430 : vector<2x32xf32>
    %432 = math.exp %431 : vector<2x32xf32>
    %cst_172 = arith.constant 1.000000e+00 : f32
    %433 = vector.broadcast %cst_172 : f32 to vector<2x32xf32>
    %434 = arith.addf %433, %432 : vector<2x32xf32>
    %435 = arith.divf %433, %434 : vector<2x32xf32>
    %436 = vector.extract_strided_slice %401 {offsets = [0, 32], sizes = [2, 32], strides = [1, 1]} : vector<2x96xf32> to vector<2x32xf32>
    %437 = vector.extract_strided_slice %392 {offsets = [0, 32], sizes = [2, 32], strides = [1, 1]} : vector<2x96xf32> to vector<2x32xf32>
    %438 = arith.addf %436, %437 : vector<2x32xf32>
    %439 = arith.negf %438 : vector<2x32xf32>
    %440 = math.exp %439 : vector<2x32xf32>
    %cst_173 = arith.constant 1.000000e+00 : f32
    %441 = vector.broadcast %cst_173 : f32 to vector<2x32xf32>
    %442 = arith.addf %441, %440 : vector<2x32xf32>
    %443 = arith.divf %441, %442 : vector<2x32xf32>
    %444 = vector.extract_strided_slice %401 {offsets = [0, 64], sizes = [2, 32], strides = [1, 1]} : vector<2x96xf32> to vector<2x32xf32>
    %445 = vector.extract_strided_slice %392 {offsets = [0, 64], sizes = [2, 32], strides = [1, 1]} : vector<2x96xf32> to vector<2x32xf32>
    %446 = arith.mulf %435, %445 : vector<2x32xf32>
    %447 = arith.addf %444, %446 : vector<2x32xf32>
    %448 = math.tanh %447 : vector<2x32xf32>
    %cst_174 = arith.constant 1.000000e+00 : f32
    %449 = vector.broadcast %cst_174 : f32 to vector<2x32xf32>
    %450 = arith.subf %449, %443 : vector<2x32xf32>
    %451 = arith.mulf %450, %448 : vector<2x32xf32>
    %452 = arith.mulf %443, %380 : vector<2x32xf32>
    %453 = arith.addf %451, %452 : vector<2x32xf32>
    %c0_i32_175 = arith.constant 0 : i32
    %454 = arith.subi %c0_i32_175, %arg0 : i32
    %c8_i32_176 = arith.constant 8 : i32
    %455 = arith.muli %454, %c8_i32_176 : i32
    %c7_i32_177 = arith.constant 7 : i32
    %456 = arith.subi %c7_i32_177, %c4_i32 : i32
    %457 = arith.addi %455, %456 : i32
    %c8_i32_178 = arith.constant 8 : i32
    %458 = arith.cmpi slt, %457, %c8_i32_178 : i32
    %459 = arith.select %458, %453, %380 : vector<2x32xf32>
    %c0_179 = arith.constant 0 : index
    %c0_180 = arith.constant 0 : index
    %460 = vector.load %arg9[%c0_179, %c0_180] : memref<2x32xf32, #tpu.memory_space<vmem>>, vector<2x32xf32>
    tpu.vector_store %arg9[%c0_179, %c0_180], %427 {strides = array<i32>} : memref<2x32xf32, #tpu.memory_space<vmem>>, vector<2x32xf32>,
    %c0_181 = arith.constant 0 : index
    %c0_182 = arith.constant 0 : index
    %461 = vector.load %arg10[%c0_181, %c0_182] : memref<2x32xf32, #tpu.memory_space<vmem>>, vector<2x32xf32>
    tpu.vector_store %arg10[%c0_181, %c0_182], %459 {strides = array<i32>} : memref<2x32xf32, #tpu.memory_space<vmem>>, vector<2x32xf32>,
    %462 = arith.truncf %427 : vector<2x32xf32> to vector<2x32xbf16>
    %463 = arith.index_cast %c4_i32 : i32 to index
    %c0_183 = arith.constant 0 : index
    %c0_184 = arith.constant 0 : index
    %464 = vector.load %arg7[%463, %c0_183, %c0_184] : memref<8x2x32xbf16, #tpu.memory_space<vmem>>, vector<1x2x32xbf16>
    %465 = vector.shape_cast %464 : vector<1x2x32xbf16> to vector<2x32xbf16>
    %466 = vector.shape_cast %462 : vector<2x32xbf16> to vector<1x2x32xbf16>
    tpu.vector_store %arg7[%463, %c0_183, %c0_184], %466 {strides = array<i32>} : memref<8x2x32xbf16, #tpu.memory_space<vmem>>, vector<1x2x32xbf16>,
    %467 = arith.truncf %459 : vector<2x32xf32> to vector<2x32xbf16>
    %c7_i32_185 = arith.constant 7 : i32
    %468 = arith.subi %c7_i32_185, %c4_i32 : i32
    %469 = arith.index_cast %468 : i32 to index
    %c0_186 = arith.constant 0 : index
    %c0_187 = arith.constant 0 : index
    %470 = vector.load %arg8[%469, %c0_186, %c0_187] : memref<8x2x32xbf16, #tpu.memory_space<vmem>>, vector<1x2x32xbf16>
    %471 = vector.shape_cast %470 : vector<1x2x32xbf16> to vector<2x32xbf16>
    %472 = vector.shape_cast %467 : vector<2x32xbf16> to vector<1x2x32xbf16>
    tpu.vector_store %arg8[%469, %c0_186, %c0_187], %472 {strides = array<i32>} : memref<8x2x32xbf16, #tpu.memory_space<vmem>>, vector<1x2x32xbf16>,
    %c5_i32 = arith.constant 5 : i32
    %c0_188 = arith.constant 0 : index
    %c0_189 = arith.constant 0 : index
    %473 = vector.load %arg9[%c0_188, %c0_189] : memref<2x32xf32, #tpu.memory_space<vmem>>, vector<2x32xf32>
    %c0_190 = arith.constant 0 : index
    %c0_191 = arith.constant 0 : index
    %474 = vector.load %arg10[%c0_190, %c0_191] : memref<2x32xf32, #tpu.memory_space<vmem>>, vector<2x32xf32>
    %475 = arith.truncf %473 : vector<2x32xf32> to vector<2x32xbf16>
    %c0_192 = arith.constant 0 : index
    %c0_193 = arith.constant 0 : index
    %476 = vector.load %arg3[%c0_192, %c0_193] : memref<32x96xbf16, #tpu.memory_space<vmem>>, vector<32x96xbf16>
    %cst_194 = arith.constant dense<0.000000e+00> : vector<2x96xf32>
    %477 = tpu.matmul %475, %476, %cst_194 {dimension_numbers = #tpu.dot_dimension_numbers<[1], [0], [0], [1], [0, 0, 1, 1], [], []>} : vector<2x32xbf16>, vector<32x96xbf16>, vector<2x96xf32> -> vector<2x96xf32>
    %c0_195 = arith.constant 0 : index
    %c0_196 = arith.constant 0 : index
    %478 = vector.load %arg5[%c0_195, %c0_196] : memref<1x96xf32, #tpu.memory_space<vmem>>, vector<1x96xf32>
    %479 = vector.broadcast %478 : vector<1x96xf32> to vector<2x96xf32>
    %480 = arith.addf %477, %479 : vector<2x96xf32>
    %481 = arith.truncf %474 : vector<2x32xf32> to vector<2x32xbf16>
    %c0_197 = arith.constant 0 : index
    %c0_198 = arith.constant 0 : index
    %482 = vector.load %arg4[%c0_197, %c0_198] : memref<32x96xbf16, #tpu.memory_space<vmem>>, vector<32x96xbf16>
    %cst_199 = arith.constant dense<0.000000e+00> : vector<2x96xf32>
    %483 = tpu.matmul %481, %482, %cst_199 {dimension_numbers = #tpu.dot_dimension_numbers<[1], [0], [0], [1], [0, 0, 1, 1], [], []>} : vector<2x32xbf16>, vector<32x96xbf16>, vector<2x96xf32> -> vector<2x96xf32>
    %c0_200 = arith.constant 0 : index
    %c0_201 = arith.constant 0 : index
    %484 = vector.load %arg6[%c0_200, %c0_201] : memref<1x96xf32, #tpu.memory_space<vmem>>, vector<1x96xf32>
    %485 = vector.broadcast %484 : vector<1x96xf32> to vector<2x96xf32>
    %486 = arith.addf %483, %485 : vector<2x96xf32>
    %487 = arith.index_cast %c5_i32 : i32 to index
    %c0_202 = arith.constant 0 : index
    %c0_203 = arith.constant 0 : index
    %488 = vector.load %arg1[%487, %c0_202, %c0_203] : memref<8x2x96xbf16, #tpu.memory_space<vmem>>, vector<1x2x96xbf16>
    %489 = vector.shape_cast %488 : vector<1x2x96xbf16> to vector<2x96xbf16>
    %490 = arith.extf %489 : vector<2x96xbf16> to vector<2x96xf32>
    %c7_i32_204 = arith.constant 7 : i32
    %491 = arith.subi %c7_i32_204, %c5_i32 : i32
    %492 = arith.index_cast %491 : i32 to index
    %c0_205 = arith.constant 0 : index
    %c0_206 = arith.constant 0 : index
    %493 = vector.load %arg2[%492, %c0_205, %c0_206] : memref<8x2x96xbf16, #tpu.memory_space<vmem>>, vector<1x2x96xbf16>
    %494 = vector.shape_cast %493 : vector<1x2x96xbf16> to vector<2x96xbf16>
    %495 = arith.extf %494 : vector<2x96xbf16> to vector<2x96xf32>
    %496 = vector.extract_strided_slice %490 {offsets = [0, 0], sizes = [2, 32], strides = [1, 1]} : vector<2x96xf32> to vector<2x32xf32>
    %497 = vector.extract_strided_slice %480 {offsets = [0, 0], sizes = [2, 32], strides = [1, 1]} : vector<2x96xf32> to vector<2x32xf32>
    %498 = arith.addf %496, %497 : vector<2x32xf32>
    %499 = arith.negf %498 : vector<2x32xf32>
    %500 = math.exp %499 : vector<2x32xf32>
    %cst_207 = arith.constant 1.000000e+00 : f32
    %501 = vector.broadcast %cst_207 : f32 to vector<2x32xf32>
    %502 = arith.addf %501, %500 : vector<2x32xf32>
    %503 = arith.divf %501, %502 : vector<2x32xf32>
    %504 = vector.extract_strided_slice %490 {offsets = [0, 32], sizes = [2, 32], strides = [1, 1]} : vector<2x96xf32> to vector<2x32xf32>
    %505 = vector.extract_strided_slice %480 {offsets = [0, 32], sizes = [2, 32], strides = [1, 1]} : vector<2x96xf32> to vector<2x32xf32>
    %506 = arith.addf %504, %505 : vector<2x32xf32>
    %507 = arith.negf %506 : vector<2x32xf32>
    %508 = math.exp %507 : vector<2x32xf32>
    %cst_208 = arith.constant 1.000000e+00 : f32
    %509 = vector.broadcast %cst_208 : f32 to vector<2x32xf32>
    %510 = arith.addf %509, %508 : vector<2x32xf32>
    %511 = arith.divf %509, %510 : vector<2x32xf32>
    %512 = vector.extract_strided_slice %490 {offsets = [0, 64], sizes = [2, 32], strides = [1, 1]} : vector<2x96xf32> to vector<2x32xf32>
    %513 = vector.extract_strided_slice %480 {offsets = [0, 64], sizes = [2, 32], strides = [1, 1]} : vector<2x96xf32> to vector<2x32xf32>
    %514 = arith.mulf %503, %513 : vector<2x32xf32>
    %515 = arith.addf %512, %514 : vector<2x32xf32>
    %516 = math.tanh %515 : vector<2x32xf32>
    %cst_209 = arith.constant 1.000000e+00 : f32
    %517 = vector.broadcast %cst_209 : f32 to vector<2x32xf32>
    %518 = arith.subf %517, %511 : vector<2x32xf32>
    %519 = arith.mulf %518, %516 : vector<2x32xf32>
    %520 = arith.mulf %511, %473 : vector<2x32xf32>
    %521 = arith.addf %519, %520 : vector<2x32xf32>
    %522 = vector.extract_strided_slice %495 {offsets = [0, 0], sizes = [2, 32], strides = [1, 1]} : vector<2x96xf32> to vector<2x32xf32>
    %523 = vector.extract_strided_slice %486 {offsets = [0, 0], sizes = [2, 32], strides = [1, 1]} : vector<2x96xf32> to vector<2x32xf32>
    %524 = arith.addf %522, %523 : vector<2x32xf32>
    %525 = arith.negf %524 : vector<2x32xf32>
    %526 = math.exp %525 : vector<2x32xf32>
    %cst_210 = arith.constant 1.000000e+00 : f32
    %527 = vector.broadcast %cst_210 : f32 to vector<2x32xf32>
    %528 = arith.addf %527, %526 : vector<2x32xf32>
    %529 = arith.divf %527, %528 : vector<2x32xf32>
    %530 = vector.extract_strided_slice %495 {offsets = [0, 32], sizes = [2, 32], strides = [1, 1]} : vector<2x96xf32> to vector<2x32xf32>
    %531 = vector.extract_strided_slice %486 {offsets = [0, 32], sizes = [2, 32], strides = [1, 1]} : vector<2x96xf32> to vector<2x32xf32>
    %532 = arith.addf %530, %531 : vector<2x32xf32>
    %533 = arith.negf %532 : vector<2x32xf32>
    %534 = math.exp %533 : vector<2x32xf32>
    %cst_211 = arith.constant 1.000000e+00 : f32
    %535 = vector.broadcast %cst_211 : f32 to vector<2x32xf32>
    %536 = arith.addf %535, %534 : vector<2x32xf32>
    %537 = arith.divf %535, %536 : vector<2x32xf32>
    %538 = vector.extract_strided_slice %495 {offsets = [0, 64], sizes = [2, 32], strides = [1, 1]} : vector<2x96xf32> to vector<2x32xf32>
    %539 = vector.extract_strided_slice %486 {offsets = [0, 64], sizes = [2, 32], strides = [1, 1]} : vector<2x96xf32> to vector<2x32xf32>
    %540 = arith.mulf %529, %539 : vector<2x32xf32>
    %541 = arith.addf %538, %540 : vector<2x32xf32>
    %542 = math.tanh %541 : vector<2x32xf32>
    %cst_212 = arith.constant 1.000000e+00 : f32
    %543 = vector.broadcast %cst_212 : f32 to vector<2x32xf32>
    %544 = arith.subf %543, %537 : vector<2x32xf32>
    %545 = arith.mulf %544, %542 : vector<2x32xf32>
    %546 = arith.mulf %537, %474 : vector<2x32xf32>
    %547 = arith.addf %545, %546 : vector<2x32xf32>
    %c0_i32_213 = arith.constant 0 : i32
    %548 = arith.subi %c0_i32_213, %arg0 : i32
    %c8_i32_214 = arith.constant 8 : i32
    %549 = arith.muli %548, %c8_i32_214 : i32
    %c7_i32_215 = arith.constant 7 : i32
    %550 = arith.subi %c7_i32_215, %c5_i32 : i32
    %551 = arith.addi %549, %550 : i32
    %c8_i32_216 = arith.constant 8 : i32
    %552 = arith.cmpi slt, %551, %c8_i32_216 : i32
    %553 = arith.select %552, %547, %474 : vector<2x32xf32>
    %c0_217 = arith.constant 0 : index
    %c0_218 = arith.constant 0 : index
    %554 = vector.load %arg9[%c0_217, %c0_218] : memref<2x32xf32, #tpu.memory_space<vmem>>, vector<2x32xf32>
    tpu.vector_store %arg9[%c0_217, %c0_218], %521 {strides = array<i32>} : memref<2x32xf32, #tpu.memory_space<vmem>>, vector<2x32xf32>,
    %c0_219 = arith.constant 0 : index
    %c0_220 = arith.constant 0 : index
    %555 = vector.load %arg10[%c0_219, %c0_220] : memref<2x32xf32, #tpu.memory_space<vmem>>, vector<2x32xf32>
    tpu.vector_store %arg10[%c0_219, %c0_220], %553 {strides = array<i32>} : memref<2x32xf32, #tpu.memory_space<vmem>>, vector<2x32xf32>,
    %556 = arith.truncf %521 : vector<2x32xf32> to vector<2x32xbf16>
    %557 = arith.index_cast %c5_i32 : i32 to index
    %c0_221 = arith.constant 0 : index
    %c0_222 = arith.constant 0 : index
    %558 = vector.load %arg7[%557, %c0_221, %c0_222] : memref<8x2x32xbf16, #tpu.memory_space<vmem>>, vector<1x2x32xbf16>
    %559 = vector.shape_cast %558 : vector<1x2x32xbf16> to vector<2x32xbf16>
    %560 = vector.shape_cast %556 : vector<2x32xbf16> to vector<1x2x32xbf16>
    tpu.vector_store %arg7[%557, %c0_221, %c0_222], %560 {strides = array<i32>} : memref<8x2x32xbf16, #tpu.memory_space<vmem>>, vector<1x2x32xbf16>,
    %561 = arith.truncf %553 : vector<2x32xf32> to vector<2x32xbf16>
    %c7_i32_223 = arith.constant 7 : i32
    %562 = arith.subi %c7_i32_223, %c5_i32 : i32
    %563 = arith.index_cast %562 : i32 to index
    %c0_224 = arith.constant 0 : index
    %c0_225 = arith.constant 0 : index
    %564 = vector.load %arg8[%563, %c0_224, %c0_225] : memref<8x2x32xbf16, #tpu.memory_space<vmem>>, vector<1x2x32xbf16>
    %565 = vector.shape_cast %564 : vector<1x2x32xbf16> to vector<2x32xbf16>
    %566 = vector.shape_cast %561 : vector<2x32xbf16> to vector<1x2x32xbf16>
    tpu.vector_store %arg8[%563, %c0_224, %c0_225], %566 {strides = array<i32>} : memref<8x2x32xbf16, #tpu.memory_space<vmem>>, vector<1x2x32xbf16>,
    %c6_i32 = arith.constant 6 : i32
    %c0_226 = arith.constant 0 : index
    %c0_227 = arith.constant 0 : index
    %567 = vector.load %arg9[%c0_226, %c0_227] : memref<2x32xf32, #tpu.memory_space<vmem>>, vector<2x32xf32>
    %c0_228 = arith.constant 0 : index
    %c0_229 = arith.constant 0 : index
    %568 = vector.load %arg10[%c0_228, %c0_229] : memref<2x32xf32, #tpu.memory_space<vmem>>, vector<2x32xf32>
    %569 = arith.truncf %567 : vector<2x32xf32> to vector<2x32xbf16>
    %c0_230 = arith.constant 0 : index
    %c0_231 = arith.constant 0 : index
    %570 = vector.load %arg3[%c0_230, %c0_231] : memref<32x96xbf16, #tpu.memory_space<vmem>>, vector<32x96xbf16>
    %cst_232 = arith.constant dense<0.000000e+00> : vector<2x96xf32>
    %571 = tpu.matmul %569, %570, %cst_232 {dimension_numbers = #tpu.dot_dimension_numbers<[1], [0], [0], [1], [0, 0, 1, 1], [], []>} : vector<2x32xbf16>, vector<32x96xbf16>, vector<2x96xf32> -> vector<2x96xf32>
    %c0_233 = arith.constant 0 : index
    %c0_234 = arith.constant 0 : index
    %572 = vector.load %arg5[%c0_233, %c0_234] : memref<1x96xf32, #tpu.memory_space<vmem>>, vector<1x96xf32>
    %573 = vector.broadcast %572 : vector<1x96xf32> to vector<2x96xf32>
    %574 = arith.addf %571, %573 : vector<2x96xf32>
    %575 = arith.truncf %568 : vector<2x32xf32> to vector<2x32xbf16>
    %c0_235 = arith.constant 0 : index
    %c0_236 = arith.constant 0 : index
    %576 = vector.load %arg4[%c0_235, %c0_236] : memref<32x96xbf16, #tpu.memory_space<vmem>>, vector<32x96xbf16>
    %cst_237 = arith.constant dense<0.000000e+00> : vector<2x96xf32>
    %577 = tpu.matmul %575, %576, %cst_237 {dimension_numbers = #tpu.dot_dimension_numbers<[1], [0], [0], [1], [0, 0, 1, 1], [], []>} : vector<2x32xbf16>, vector<32x96xbf16>, vector<2x96xf32> -> vector<2x96xf32>
    %c0_238 = arith.constant 0 : index
    %c0_239 = arith.constant 0 : index
    %578 = vector.load %arg6[%c0_238, %c0_239] : memref<1x96xf32, #tpu.memory_space<vmem>>, vector<1x96xf32>
    %579 = vector.broadcast %578 : vector<1x96xf32> to vector<2x96xf32>
    %580 = arith.addf %577, %579 : vector<2x96xf32>
    %581 = arith.index_cast %c6_i32 : i32 to index
    %c0_240 = arith.constant 0 : index
    %c0_241 = arith.constant 0 : index
    %582 = vector.load %arg1[%581, %c0_240, %c0_241] : memref<8x2x96xbf16, #tpu.memory_space<vmem>>, vector<1x2x96xbf16>
    %583 = vector.shape_cast %582 : vector<1x2x96xbf16> to vector<2x96xbf16>
    %584 = arith.extf %583 : vector<2x96xbf16> to vector<2x96xf32>
    %c7_i32_242 = arith.constant 7 : i32
    %585 = arith.subi %c7_i32_242, %c6_i32 : i32
    %586 = arith.index_cast %585 : i32 to index
    %c0_243 = arith.constant 0 : index
    %c0_244 = arith.constant 0 : index
    %587 = vector.load %arg2[%586, %c0_243, %c0_244] : memref<8x2x96xbf16, #tpu.memory_space<vmem>>, vector<1x2x96xbf16>
    %588 = vector.shape_cast %587 : vector<1x2x96xbf16> to vector<2x96xbf16>
    %589 = arith.extf %588 : vector<2x96xbf16> to vector<2x96xf32>
    %590 = vector.extract_strided_slice %584 {offsets = [0, 0], sizes = [2, 32], strides = [1, 1]} : vector<2x96xf32> to vector<2x32xf32>
    %591 = vector.extract_strided_slice %574 {offsets = [0, 0], sizes = [2, 32], strides = [1, 1]} : vector<2x96xf32> to vector<2x32xf32>
    %592 = arith.addf %590, %591 : vector<2x32xf32>
    %593 = arith.negf %592 : vector<2x32xf32>
    %594 = math.exp %593 : vector<2x32xf32>
    %cst_245 = arith.constant 1.000000e+00 : f32
    %595 = vector.broadcast %cst_245 : f32 to vector<2x32xf32>
    %596 = arith.addf %595, %594 : vector<2x32xf32>
    %597 = arith.divf %595, %596 : vector<2x32xf32>
    %598 = vector.extract_strided_slice %584 {offsets = [0, 32], sizes = [2, 32], strides = [1, 1]} : vector<2x96xf32> to vector<2x32xf32>
    %599 = vector.extract_strided_slice %574 {offsets = [0, 32], sizes = [2, 32], strides = [1, 1]} : vector<2x96xf32> to vector<2x32xf32>
    %600 = arith.addf %598, %599 : vector<2x32xf32>
    %601 = arith.negf %600 : vector<2x32xf32>
    %602 = math.exp %601 : vector<2x32xf32>
    %cst_246 = arith.constant 1.000000e+00 : f32
    %603 = vector.broadcast %cst_246 : f32 to vector<2x32xf32>
    %604 = arith.addf %603, %602 : vector<2x32xf32>
    %605 = arith.divf %603, %604 : vector<2x32xf32>
    %606 = vector.extract_strided_slice %584 {offsets = [0, 64], sizes = [2, 32], strides = [1, 1]} : vector<2x96xf32> to vector<2x32xf32>
    %607 = vector.extract_strided_slice %574 {offsets = [0, 64], sizes = [2, 32], strides = [1, 1]} : vector<2x96xf32> to vector<2x32xf32>
    %608 = arith.mulf %597, %607 : vector<2x32xf32>
    %609 = arith.addf %606, %608 : vector<2x32xf32>
    %610 = math.tanh %609 : vector<2x32xf32>
    %cst_247 = arith.constant 1.000000e+00 : f32
    %611 = vector.broadcast %cst_247 : f32 to vector<2x32xf32>
    %612 = arith.subf %611, %605 : vector<2x32xf32>
    %613 = arith.mulf %612, %610 : vector<2x32xf32>
    %614 = arith.mulf %605, %567 : vector<2x32xf32>
    %615 = arith.addf %613, %614 : vector<2x32xf32>
    %616 = vector.extract_strided_slice %589 {offsets = [0, 0], sizes = [2, 32], strides = [1, 1]} : vector<2x96xf32> to vector<2x32xf32>
    %617 = vector.extract_strided_slice %580 {offsets = [0, 0], sizes = [2, 32], strides = [1, 1]} : vector<2x96xf32> to vector<2x32xf32>
    %618 = arith.addf %616, %617 : vector<2x32xf32>
    %619 = arith.negf %618 : vector<2x32xf32>
    %620 = math.exp %619 : vector<2x32xf32>
    %cst_248 = arith.constant 1.000000e+00 : f32
    %621 = vector.broadcast %cst_248 : f32 to vector<2x32xf32>
    %622 = arith.addf %621, %620 : vector<2x32xf32>
    %623 = arith.divf %621, %622 : vector<2x32xf32>
    %624 = vector.extract_strided_slice %589 {offsets = [0, 32], sizes = [2, 32], strides = [1, 1]} : vector<2x96xf32> to vector<2x32xf32>
    %625 = vector.extract_strided_slice %580 {offsets = [0, 32], sizes = [2, 32], strides = [1, 1]} : vector<2x96xf32> to vector<2x32xf32>
    %626 = arith.addf %624, %625 : vector<2x32xf32>
    %627 = arith.negf %626 : vector<2x32xf32>
    %628 = math.exp %627 : vector<2x32xf32>
    %cst_249 = arith.constant 1.000000e+00 : f32
    %629 = vector.broadcast %cst_249 : f32 to vector<2x32xf32>
    %630 = arith.addf %629, %628 : vector<2x32xf32>
    %631 = arith.divf %629, %630 : vector<2x32xf32>
    %632 = vector.extract_strided_slice %589 {offsets = [0, 64], sizes = [2, 32], strides = [1, 1]} : vector<2x96xf32> to vector<2x32xf32>
    %633 = vector.extract_strided_slice %580 {offsets = [0, 64], sizes = [2, 32], strides = [1, 1]} : vector<2x96xf32> to vector<2x32xf32>
    %634 = arith.mulf %623, %633 : vector<2x32xf32>
    %635 = arith.addf %632, %634 : vector<2x32xf32>
    %636 = math.tanh %635 : vector<2x32xf32>
    %cst_250 = arith.constant 1.000000e+00 : f32
    %637 = vector.broadcast %cst_250 : f32 to vector<2x32xf32>
    %638 = arith.subf %637, %631 : vector<2x32xf32>
    %639 = arith.mulf %638, %636 : vector<2x32xf32>
    %640 = arith.mulf %631, %568 : vector<2x32xf32>
    %641 = arith.addf %639, %640 : vector<2x32xf32>
    %c0_i32_251 = arith.constant 0 : i32
    %642 = arith.subi %c0_i32_251, %arg0 : i32
    %c8_i32_252 = arith.constant 8 : i32
    %643 = arith.muli %642, %c8_i32_252 : i32
    %c7_i32_253 = arith.constant 7 : i32
    %644 = arith.subi %c7_i32_253, %c6_i32 : i32
    %645 = arith.addi %643, %644 : i32
    %c8_i32_254 = arith.constant 8 : i32
    %646 = arith.cmpi slt, %645, %c8_i32_254 : i32
    %647 = arith.select %646, %641, %568 : vector<2x32xf32>
    %c0_255 = arith.constant 0 : index
    %c0_256 = arith.constant 0 : index
    %648 = vector.load %arg9[%c0_255, %c0_256] : memref<2x32xf32, #tpu.memory_space<vmem>>, vector<2x32xf32>
    tpu.vector_store %arg9[%c0_255, %c0_256], %615 {strides = array<i32>} : memref<2x32xf32, #tpu.memory_space<vmem>>, vector<2x32xf32>,
    %c0_257 = arith.constant 0 : index
    %c0_258 = arith.constant 0 : index
    %649 = vector.load %arg10[%c0_257, %c0_258] : memref<2x32xf32, #tpu.memory_space<vmem>>, vector<2x32xf32>
    tpu.vector_store %arg10[%c0_257, %c0_258], %647 {strides = array<i32>} : memref<2x32xf32, #tpu.memory_space<vmem>>, vector<2x32xf32>,
    %650 = arith.truncf %615 : vector<2x32xf32> to vector<2x32xbf16>
    %651 = arith.index_cast %c6_i32 : i32 to index
    %c0_259 = arith.constant 0 : index
    %c0_260 = arith.constant 0 : index
    %652 = vector.load %arg7[%651, %c0_259, %c0_260] : memref<8x2x32xbf16, #tpu.memory_space<vmem>>, vector<1x2x32xbf16>
    %653 = vector.shape_cast %652 : vector<1x2x32xbf16> to vector<2x32xbf16>
    %654 = vector.shape_cast %650 : vector<2x32xbf16> to vector<1x2x32xbf16>
    tpu.vector_store %arg7[%651, %c0_259, %c0_260], %654 {strides = array<i32>} : memref<8x2x32xbf16, #tpu.memory_space<vmem>>, vector<1x2x32xbf16>,
    %655 = arith.truncf %647 : vector<2x32xf32> to vector<2x32xbf16>
    %c7_i32_261 = arith.constant 7 : i32
    %656 = arith.subi %c7_i32_261, %c6_i32 : i32
    %657 = arith.index_cast %656 : i32 to index
    %c0_262 = arith.constant 0 : index
    %c0_263 = arith.constant 0 : index
    %658 = vector.load %arg8[%657, %c0_262, %c0_263] : memref<8x2x32xbf16, #tpu.memory_space<vmem>>, vector<1x2x32xbf16>
    %659 = vector.shape_cast %658 : vector<1x2x32xbf16> to vector<2x32xbf16>
    %660 = vector.shape_cast %655 : vector<2x32xbf16> to vector<1x2x32xbf16>
    tpu.vector_store %arg8[%657, %c0_262, %c0_263], %660 {strides = array<i32>} : memref<8x2x32xbf16, #tpu.memory_space<vmem>>, vector<1x2x32xbf16>,
    %c7_i32_264 = arith.constant 7 : i32
    %c0_265 = arith.constant 0 : index
    %c0_266 = arith.constant 0 : index
    %661 = vector.load %arg9[%c0_265, %c0_266] : memref<2x32xf32, #tpu.memory_space<vmem>>, vector<2x32xf32>
    %c0_267 = arith.constant 0 : index
    %c0_268 = arith.constant 0 : index
    %662 = vector.load %arg10[%c0_267, %c0_268] : memref<2x32xf32, #tpu.memory_space<vmem>>, vector<2x32xf32>
    %663 = arith.truncf %661 : vector<2x32xf32> to vector<2x32xbf16>
    %c0_269 = arith.constant 0 : index
    %c0_270 = arith.constant 0 : index
    %664 = vector.load %arg3[%c0_269, %c0_270] : memref<32x96xbf16, #tpu.memory_space<vmem>>, vector<32x96xbf16>
    %cst_271 = arith.constant dense<0.000000e+00> : vector<2x96xf32>
    %665 = tpu.matmul %663, %664, %cst_271 {dimension_numbers = #tpu.dot_dimension_numbers<[1], [0], [0], [1], [0, 0, 1, 1], [], []>} : vector<2x32xbf16>, vector<32x96xbf16>, vector<2x96xf32> -> vector<2x96xf32>
    %c0_272 = arith.constant 0 : index
    %c0_273 = arith.constant 0 : index
    %666 = vector.load %arg5[%c0_272, %c0_273] : memref<1x96xf32, #tpu.memory_space<vmem>>, vector<1x96xf32>
    %667 = vector.broadcast %666 : vector<1x96xf32> to vector<2x96xf32>
    %668 = arith.addf %665, %667 : vector<2x96xf32>
    %669 = arith.truncf %662 : vector<2x32xf32> to vector<2x32xbf16>
    %c0_274 = arith.constant 0 : index
    %c0_275 = arith.constant 0 : index
    %670 = vector.load %arg4[%c0_274, %c0_275] : memref<32x96xbf16, #tpu.memory_space<vmem>>, vector<32x96xbf16>
    %cst_276 = arith.constant dense<0.000000e+00> : vector<2x96xf32>
    %671 = tpu.matmul %669, %670, %cst_276 {dimension_numbers = #tpu.dot_dimension_numbers<[1], [0], [0], [1], [0, 0, 1, 1], [], []>} : vector<2x32xbf16>, vector<32x96xbf16>, vector<2x96xf32> -> vector<2x96xf32>
    %c0_277 = arith.constant 0 : index
    %c0_278 = arith.constant 0 : index
    %672 = vector.load %arg6[%c0_277, %c0_278] : memref<1x96xf32, #tpu.memory_space<vmem>>, vector<1x96xf32>
    %673 = vector.broadcast %672 : vector<1x96xf32> to vector<2x96xf32>
    %674 = arith.addf %671, %673 : vector<2x96xf32>
    %675 = arith.index_cast %c7_i32_264 : i32 to index
    %c0_279 = arith.constant 0 : index
    %c0_280 = arith.constant 0 : index
    %676 = vector.load %arg1[%675, %c0_279, %c0_280] : memref<8x2x96xbf16, #tpu.memory_space<vmem>>, vector<1x2x96xbf16>
    %677 = vector.shape_cast %676 : vector<1x2x96xbf16> to vector<2x96xbf16>
    %678 = arith.extf %677 : vector<2x96xbf16> to vector<2x96xf32>
    %c7_i32_281 = arith.constant 7 : i32
    %679 = arith.subi %c7_i32_281, %c7_i32_264 : i32
    %680 = arith.index_cast %679 : i32 to index
    %c0_282 = arith.constant 0 : index
    %c0_283 = arith.constant 0 : index
    %681 = vector.load %arg2[%680, %c0_282, %c0_283] : memref<8x2x96xbf16, #tpu.memory_space<vmem>>, vector<1x2x96xbf16>
    %682 = vector.shape_cast %681 : vector<1x2x96xbf16> to vector<2x96xbf16>
    %683 = arith.extf %682 : vector<2x96xbf16> to vector<2x96xf32>
    %684 = vector.extract_strided_slice %678 {offsets = [0, 0], sizes = [2, 32], strides = [1, 1]} : vector<2x96xf32> to vector<2x32xf32>
    %685 = vector.extract_strided_slice %668 {offsets = [0, 0], sizes = [2, 32], strides = [1, 1]} : vector<2x96xf32> to vector<2x32xf32>
    %686 = arith.addf %684, %685 : vector<2x32xf32>
    %687 = arith.negf %686 : vector<2x32xf32>
    %688 = math.exp %687 : vector<2x32xf32>
    %cst_284 = arith.constant 1.000000e+00 : f32
    %689 = vector.broadcast %cst_284 : f32 to vector<2x32xf32>
    %690 = arith.addf %689, %688 : vector<2x32xf32>
    %691 = arith.divf %689, %690 : vector<2x32xf32>
    %692 = vector.extract_strided_slice %678 {offsets = [0, 32], sizes = [2, 32], strides = [1, 1]} : vector<2x96xf32> to vector<2x32xf32>
    %693 = vector.extract_strided_slice %668 {offsets = [0, 32], sizes = [2, 32], strides = [1, 1]} : vector<2x96xf32> to vector<2x32xf32>
    %694 = arith.addf %692, %693 : vector<2x32xf32>
    %695 = arith.negf %694 : vector<2x32xf32>
    %696 = math.exp %695 : vector<2x32xf32>
    %cst_285 = arith.constant 1.000000e+00 : f32
    %697 = vector.broadcast %cst_285 : f32 to vector<2x32xf32>
    %698 = arith.addf %697, %696 : vector<2x32xf32>
    %699 = arith.divf %697, %698 : vector<2x32xf32>
    %700 = vector.extract_strided_slice %678 {offsets = [0, 64], sizes = [2, 32], strides = [1, 1]} : vector<2x96xf32> to vector<2x32xf32>
    %701 = vector.extract_strided_slice %668 {offsets = [0, 64], sizes = [2, 32], strides = [1, 1]} : vector<2x96xf32> to vector<2x32xf32>
    %702 = arith.mulf %691, %701 : vector<2x32xf32>
    %703 = arith.addf %700, %702 : vector<2x32xf32>
    %704 = math.tanh %703 : vector<2x32xf32>
    %cst_286 = arith.constant 1.000000e+00 : f32
    %705 = vector.broadcast %cst_286 : f32 to vector<2x32xf32>
    %706 = arith.subf %705, %699 : vector<2x32xf32>
    %707 = arith.mulf %706, %704 : vector<2x32xf32>
    %708 = arith.mulf %699, %661 : vector<2x32xf32>
    %709 = arith.addf %707, %708 : vector<2x32xf32>
    %710 = vector.extract_strided_slice %683 {offsets = [0, 0], sizes = [2, 32], strides = [1, 1]} : vector<2x96xf32> to vector<2x32xf32>
    %711 = vector.extract_strided_slice %674 {offsets = [0, 0], sizes = [2, 32], strides = [1, 1]} : vector<2x96xf32> to vector<2x32xf32>
    %712 = arith.addf %710, %711 : vector<2x32xf32>
    %713 = arith.negf %712 : vector<2x32xf32>
    %714 = math.exp %713 : vector<2x32xf32>
    %cst_287 = arith.constant 1.000000e+00 : f32
    %715 = vector.broadcast %cst_287 : f32 to vector<2x32xf32>
    %716 = arith.addf %715, %714 : vector<2x32xf32>
    %717 = arith.divf %715, %716 : vector<2x32xf32>
    %718 = vector.extract_strided_slice %683 {offsets = [0, 32], sizes = [2, 32], strides = [1, 1]} : vector<2x96xf32> to vector<2x32xf32>
    %719 = vector.extract_strided_slice %674 {offsets = [0, 32], sizes = [2, 32], strides = [1, 1]} : vector<2x96xf32> to vector<2x32xf32>
    %720 = arith.addf %718, %719 : vector<2x32xf32>
    %721 = arith.negf %720 : vector<2x32xf32>
    %722 = math.exp %721 : vector<2x32xf32>
    %cst_288 = arith.constant 1.000000e+00 : f32
    %723 = vector.broadcast %cst_288 : f32 to vector<2x32xf32>
    %724 = arith.addf %723, %722 : vector<2x32xf32>
    %725 = arith.divf %723, %724 : vector<2x32xf32>
    %726 = vector.extract_strided_slice %683 {offsets = [0, 64], sizes = [2, 32], strides = [1, 1]} : vector<2x96xf32> to vector<2x32xf32>
    %727 = vector.extract_strided_slice %674 {offsets = [0, 64], sizes = [2, 32], strides = [1, 1]} : vector<2x96xf32> to vector<2x32xf32>
    %728 = arith.mulf %717, %727 : vector<2x32xf32>
    %729 = arith.addf %726, %728 : vector<2x32xf32>
    %730 = math.tanh %729 : vector<2x32xf32>
    %cst_289 = arith.constant 1.000000e+00 : f32
    %731 = vector.broadcast %cst_289 : f32 to vector<2x32xf32>
    %732 = arith.subf %731, %725 : vector<2x32xf32>
    %733 = arith.mulf %732, %730 : vector<2x32xf32>
    %734 = arith.mulf %725, %662 : vector<2x32xf32>
    %735 = arith.addf %733, %734 : vector<2x32xf32>
    %c0_i32_290 = arith.constant 0 : i32
    %736 = arith.subi %c0_i32_290, %arg0 : i32
    %c8_i32_291 = arith.constant 8 : i32
    %737 = arith.muli %736, %c8_i32_291 : i32
    %c7_i32_292 = arith.constant 7 : i32
    %738 = arith.subi %c7_i32_292, %c7_i32_264 : i32
    %739 = arith.addi %737, %738 : i32
    %c8_i32_293 = arith.constant 8 : i32
    %740 = arith.cmpi slt, %739, %c8_i32_293 : i32
    %741 = arith.select %740, %735, %662 : vector<2x32xf32>
    %c0_294 = arith.constant 0 : index
    %c0_295 = arith.constant 0 : index
    %742 = vector.load %arg9[%c0_294, %c0_295] : memref<2x32xf32, #tpu.memory_space<vmem>>, vector<2x32xf32>
    tpu.vector_store %arg9[%c0_294, %c0_295], %709 {strides = array<i32>} : memref<2x32xf32, #tpu.memory_space<vmem>>, vector<2x32xf32>,
    %c0_296 = arith.constant 0 : index
    %c0_297 = arith.constant 0 : index
    %743 = vector.load %arg10[%c0_296, %c0_297] : memref<2x32xf32, #tpu.memory_space<vmem>>, vector<2x32xf32>
    tpu.vector_store %arg10[%c0_296, %c0_297], %741 {strides = array<i32>} : memref<2x32xf32, #tpu.memory_space<vmem>>, vector<2x32xf32>,
    %744 = arith.truncf %709 : vector<2x32xf32> to vector<2x32xbf16>
    %745 = arith.index_cast %c7_i32_264 : i32 to index
    %c0_298 = arith.constant 0 : index
    %c0_299 = arith.constant 0 : index
    %746 = vector.load %arg7[%745, %c0_298, %c0_299] : memref<8x2x32xbf16, #tpu.memory_space<vmem>>, vector<1x2x32xbf16>
    %747 = vector.shape_cast %746 : vector<1x2x32xbf16> to vector<2x32xbf16>
    %748 = vector.shape_cast %744 : vector<2x32xbf16> to vector<1x2x32xbf16>
    tpu.vector_store %arg7[%745, %c0_298, %c0_299], %748 {strides = array<i32>} : memref<8x2x32xbf16, #tpu.memory_space<vmem>>, vector<1x2x32xbf16>,
    %749 = arith.truncf %741 : vector<2x32xf32> to vector<2x32xbf16>
    %c7_i32_300 = arith.constant 7 : i32
    %750 = arith.subi %c7_i32_300, %c7_i32_264 : i32
    %751 = arith.index_cast %750 : i32 to index
    %c0_301 = arith.constant 0 : index
    %c0_302 = arith.constant 0 : index
    %752 = vector.load %arg8[%751, %c0_301, %c0_302] : memref<8x2x32xbf16, #tpu.memory_space<vmem>>, vector<1x2x32xbf16>
    %753 = vector.shape_cast %752 : vector<1x2x32xbf16> to vector<2x32xbf16>
    %754 = vector.shape_cast %749 : vector<2x32xbf16> to vector<1x2x32xbf16>
    tpu.vector_store %arg8[%751, %c0_301, %c0_302], %754 {strides = array<i32>} : memref<8x2x32xbf16, #tpu.memory_space<vmem>>, vector<1x2x32xbf16>,
    %c8_i32_303 = arith.constant 8 : i32
    return
  }
  func.func @transform_0(%arg0: i32) -> (i32, i32, i32) {
    %c0_i32 = arith.constant 0 : i32
    %c0_i32_0 = arith.constant 0 : i32
    %c0_i32_1 = arith.constant 0 : i32
    return %arg0, %c0_i32, %c0_i32_0 : i32, i32, i32
  }
  func.func @transform_1(%arg0: i32) -> (i32, i32, i32) {
    %c0_i32 = arith.constant 0 : i32
    %0 = arith.subi %c0_i32, %arg0 : i32
    %c0_i32_0 = arith.constant 0 : i32
    %c0_i32_1 = arith.constant 0 : i32
    %c0_i32_2 = arith.constant 0 : i32
    return %0, %c0_i32_0, %c0_i32_1 : i32, i32, i32
  }
  func.func @transform_2(%arg0: i32) -> (i32, i32) {
    %c0_i32 = arith.constant 0 : i32
    %c0_i32_0 = arith.constant 0 : i32
    %c0_i32_1 = arith.constant 0 : i32
    return %c0_i32, %c0_i32_0 : i32, i32
  }
  func.func @transform_3(%arg0: i32) -> (i32, i32) {
    %c0_i32 = arith.constant 0 : i32
    %c0_i32_0 = arith.constant 0 : i32
    %c0_i32_1 = arith.constant 0 : i32
    return %c0_i32, %c0_i32_0 : i32, i32
  }
  func.func @transform_4(%arg0: i32) -> (i32, i32) {
    %c0_i32 = arith.constant 0 : i32
    %c0_i32_0 = arith.constant 0 : i32
    %c0_i32_1 = arith.constant 0 : i32
    return %c0_i32, %c0_i32_0 : i32, i32
  }
  func.func @transform_5(%arg0: i32) -> (i32, i32) {
    %c0_i32 = arith.constant 0 : i32
    %c0_i32_0 = arith.constant 0 : i32
    %c0_i32_1 = arith.constant 0 : i32
    return %c0_i32, %c0_i32_0 : i32, i32
  }
  func.func @transform_6(%arg0: i32) -> (i32, i32, i32) {
    %c0_i32 = arith.constant 0 : i32
    %c0_i32_0 = arith.constant 0 : i32
    %c0_i32_1 = arith.constant 0 : i32
    return %arg0, %c0_i32, %c0_i32_0 : i32, i32, i32
  }
  func.func @transform_7(%arg0: i32) -> (i32, i32, i32) {
    %c0_i32 = arith.constant 0 : i32
    %0 = arith.subi %c0_i32, %arg0 : i32
    %c0_i32_0 = arith.constant 0 : i32
    %c0_i32_1 = arith.constant 0 : i32
    %c0_i32_2 = arith.constant 0 : i32
    return %0, %c0_i32_0, %c0_i32_1 : i32, i32, i32
  }
}

module attributes {stable_mosaic.version = 11 : i64} {
  func.func @_mm_kernel(%arg0: i32, %arg1: i32, %arg2: i32, %arg3: memref<16x32xbf16, #tpu.memory_space<vmem>>, %arg4: memref<32x29xbf16, #tpu.memory_space<vmem>>, %arg5: memref<1x29xf32, #tpu.memory_space<vmem>>, %arg6: memref<16x29xf32, #tpu.memory_space<vmem>>, %arg7: memref<16x29xf32, #tpu.memory_space<vmem>>) attributes {dimension_semantics = [#tpu.dimension_semantics<parallel>, #tpu.dimension_semantics<parallel>, #tpu.dimension_semantics<arbitrary>], iteration_bounds = array<i64: 1, 1, 1>, scalar_prefetch = 0 : i64, scratch_operands = 1 : i64, tpu.core_type = #tpu.core_type<tc>, window_params = [{transform_indices = @transform_0, window_bounds = array<i64: 16, 32>}, {transform_indices = @transform_1, window_bounds = array<i64: 32, 29>}, {transform_indices = @transform_2, window_bounds = array<i64: 1, 29>}, {transform_indices = @transform_3, window_bounds = array<i64: 16, 29>}]} {
    %c0_i32 = arith.constant 0 : i32
    %0 = arith.cmpi eq, %arg2, %c0_i32 : i32
    %1 = arith.extui %0 : i1 to i32
    %c0_i32_0 = arith.constant 0 : i32
    %2 = arith.cmpi ne, %1, %c0_i32_0 : i32
    scf.if %2 {
      %cst_10 = arith.constant 0.000000e+00 : f32
      %12 = vector.broadcast %cst_10 : f32 to vector<16x29xf32>
      %c0_11 = arith.constant 0 : index
      %c0_12 = arith.constant 0 : index
      %13 = vector.load %arg7[%c0_11, %c0_12] : memref<16x29xf32, #tpu.memory_space<vmem>>, vector<16x29xf32>
      tpu.vector_store %arg7[%c0_11, %c0_12], %12 {strides = array<i32>} : memref<16x29xf32, #tpu.memory_space<vmem>>, vector<16x29xf32>,
    } else {
    }
    %c0 = arith.constant 0 : index
    %c0_1 = arith.constant 0 : index
    %3 = vector.load %arg7[%c0, %c0_1] : memref<16x29xf32, #tpu.memory_space<vmem>>, vector<16x29xf32>
    %c0_2 = arith.constant 0 : index
    %c0_3 = arith.constant 0 : index
    %4 = vector.load %arg3[%c0_2, %c0_3] : memref<16x32xbf16, #tpu.memory_space<vmem>>, vector<16x32xbf16>
    %c0_4 = arith.constant 0 : index
    %c0_5 = arith.constant 0 : index
    %5 = vector.load %arg4[%c0_4, %c0_5] : memref<32x29xbf16, #tpu.memory_space<vmem>>, vector<32x29xbf16>
    %cst = arith.constant dense<0.000000e+00> : vector<16x29xf32>
    %6 = tpu.matmul %4, %5, %cst {dimension_numbers = #tpu.dot_dimension_numbers<[1], [0], [0], [1], [0, 0, 1, 1], [], []>} : vector<16x32xbf16>, vector<32x29xbf16>, vector<16x29xf32> -> vector<16x29xf32>
    %7 = arith.addf %3, %6 : vector<16x29xf32>
    %c0_6 = arith.constant 0 : index
    %c0_7 = arith.constant 0 : index
    %8 = vector.load %arg7[%c0_6, %c0_7] : memref<16x29xf32, #tpu.memory_space<vmem>>, vector<16x29xf32>
    tpu.vector_store %arg7[%c0_6, %c0_7], %7 {strides = array<i32>} : memref<16x29xf32, #tpu.memory_space<vmem>>, vector<16x29xf32>,
    %c0_i32_8 = arith.constant 0 : i32
    %9 = arith.cmpi eq, %arg2, %c0_i32_8 : i32
    %10 = arith.extui %9 : i1 to i32
    %c0_i32_9 = arith.constant 0 : i32
    %11 = arith.cmpi ne, %10, %c0_i32_9 : i32
    scf.if %11 {
      %c0_10 = arith.constant 0 : index
      %c0_11 = arith.constant 0 : index
      %12 = vector.load %arg7[%c0_10, %c0_11] : memref<16x29xf32, #tpu.memory_space<vmem>>, vector<16x29xf32>
      %c0_12 = arith.constant 0 : index
      %c0_13 = arith.constant 0 : index
      %13 = vector.load %arg5[%c0_12, %c0_13] : memref<1x29xf32, #tpu.memory_space<vmem>>, vector<1x29xf32>
      %14 = vector.broadcast %13 : vector<1x29xf32> to vector<16x29xf32>
      %15 = arith.addf %12, %14 : vector<16x29xf32>
      %c0_14 = arith.constant 0 : index
      %c0_15 = arith.constant 0 : index
      %16 = vector.load %arg6[%c0_14, %c0_15] : memref<16x29xf32, #tpu.memory_space<vmem>>, vector<16x29xf32>
      tpu.vector_store %arg6[%c0_14, %c0_15], %15 {strides = array<i32>} : memref<16x29xf32, #tpu.memory_space<vmem>>, vector<16x29xf32>,
    } else {
    }
    return
  }
  func.func @transform_0(%arg0: i32, %arg1: i32, %arg2: i32) -> (i32, i32) {
    %c0_i32 = arith.constant 0 : i32
    return %arg0, %arg2 : i32, i32
  }
  func.func @transform_1(%arg0: i32, %arg1: i32, %arg2: i32) -> (i32, i32) {
    %c0_i32 = arith.constant 0 : i32
    return %arg2, %arg1 : i32, i32
  }
  func.func @transform_2(%arg0: i32, %arg1: i32, %arg2: i32) -> (i32, i32) {
    %c0_i32 = arith.constant 0 : i32
    %c0_i32_0 = arith.constant 0 : i32
    return %c0_i32, %arg1 : i32, i32
  }
  func.func @transform_3(%arg0: i32, %arg1: i32, %arg2: i32) -> (i32, i32) {
    %c0_i32 = arith.constant 0 : i32
    return %arg0, %arg1 : i32, i32
  }
}

module attributes {stable_mosaic.version = 11 : i64} {
  func.func @_ln_mm_kernel(%arg0: i32, %arg1: i32, %arg2: memref<16x64xbf16, #tpu.memory_space<vmem>>, %arg3: memref<1x64xf32, #tpu.memory_space<vmem>>, %arg4: memref<1x64xf32, #tpu.memory_space<vmem>>, %arg5: memref<64x96xbf16, #tpu.memory_space<vmem>>, %arg6: memref<1x96xf32, #tpu.memory_space<vmem>>, %arg7: memref<16x96xbf16, #tpu.memory_space<vmem>>) attributes {dimension_semantics = [#tpu.dimension_semantics<parallel>, #tpu.dimension_semantics<parallel>], iteration_bounds = array<i64: 1, 1>, scalar_prefetch = 0 : i64, scratch_operands = 0 : i64, tpu.core_type = #tpu.core_type<tc>, window_params = [{transform_indices = @transform_0, window_bounds = array<i64: 16, 64>}, {pipeline_mode = #tpu.pipeline_mode<synchronous>, transform_indices = @transform_1, window_bounds = array<i64: 1, 64>}, {pipeline_mode = #tpu.pipeline_mode<synchronous>, transform_indices = @transform_2, window_bounds = array<i64: 1, 64>}, {transform_indices = @transform_3, window_bounds = array<i64: 64, 96>}, {transform_indices = @transform_4, window_bounds = array<i64: 1, 96>}, {transform_indices = @transform_5, window_bounds = array<i64: 16, 96>}]} {
    %c0 = arith.constant 0 : index
    %c0_0 = arith.constant 0 : index
    %0 = vector.load %arg2[%c0, %c0_0] : memref<16x64xbf16, #tpu.memory_space<vmem>>, vector<16x64xbf16>
    %1 = arith.extf %0 : vector<16x64xbf16> to vector<16x64xf32>
    %cst = arith.constant dense<0.000000e+00> : vector<16xf32>
    %2 = vector.multi_reduction <add>, %1, %cst [1] : vector<16x64xf32> to vector<16xf32>
    %3 = vector.shape_cast %2 : vector<16xf32> to vector<16x1xf32>
    %cst_1 = arith.constant 6.400000e+01 : f32
    %4 = vector.broadcast %cst_1 : f32 to vector<16x1xf32>
    %5 = arith.divf %3, %4 : vector<16x1xf32>
    %6 = vector.broadcast %5 : vector<16x1xf32> to vector<16x64xf32>
    %7 = arith.subf %1, %6 : vector<16x64xf32>
    %8 = arith.mulf %7, %7 : vector<16x64xf32>
    %cst_2 = arith.constant dense<0.000000e+00> : vector<16xf32>
    %9 = vector.multi_reduction <add>, %8, %cst_2 [1] : vector<16x64xf32> to vector<16xf32>
    %10 = vector.shape_cast %9 : vector<16xf32> to vector<16x1xf32>
    %cst_3 = arith.constant 6.400000e+01 : f32
    %11 = vector.broadcast %cst_3 : f32 to vector<16x1xf32>
    %12 = arith.divf %10, %11 : vector<16x1xf32>
    %cst_4 = arith.constant 9.99999974E-6 : f32
    %13 = vector.broadcast %cst_4 : f32 to vector<16x1xf32>
    %14 = arith.addf %12, %13 : vector<16x1xf32>
    %15 = math.rsqrt %14 : vector<16x1xf32>
    %16 = vector.broadcast %15 : vector<16x1xf32> to vector<16x64xf32>
    %17 = arith.mulf %7, %16 : vector<16x64xf32>
    %c0_5 = arith.constant 0 : index
    %c0_6 = arith.constant 0 : index
    %18 = vector.load %arg3[%c0_5, %c0_6] : memref<1x64xf32, #tpu.memory_space<vmem>>, vector<1x64xf32>
    %19 = vector.broadcast %18 : vector<1x64xf32> to vector<16x64xf32>
    %20 = arith.mulf %17, %19 : vector<16x64xf32>
    %c0_7 = arith.constant 0 : index
    %c0_8 = arith.constant 0 : index
    %21 = vector.load %arg4[%c0_7, %c0_8] : memref<1x64xf32, #tpu.memory_space<vmem>>, vector<1x64xf32>
    %22 = vector.broadcast %21 : vector<1x64xf32> to vector<16x64xf32>
    %23 = arith.addf %20, %22 : vector<16x64xf32>
    %cst_9 = arith.constant 5.000000e-01 : f32
    %24 = vector.broadcast %cst_9 : f32 to vector<16x64xf32>
    %25 = arith.mulf %24, %23 : vector<16x64xf32>
    %cst_10 = arith.constant 0.707106769 : f32
    %26 = vector.broadcast %cst_10 : f32 to vector<16x64xf32>
    %27 = arith.mulf %23, %26 : vector<16x64xf32>
    %cst_11 = arith.constant 0.000000e+00 : f32
    %28 = vector.broadcast %cst_11 : f32 to vector<16x64xf32>
    %29 = arith.cmpf oge, %27, %28 : vector<16x64xf32>
    %cst_12 = arith.constant 1.000000e+00 : f32
    %cst_13 = arith.constant -1.000000e+00 : f32
    %30 = vector.broadcast %cst_12 : f32 to vector<16x64xf32>
    %31 = vector.broadcast %cst_13 : f32 to vector<16x64xf32>
    %32 = arith.select %29, %30, %31 : vector<16x64xi1>, vector<16x64xf32>
    %33 = math.absf %27 : vector<16x64xf32>
    %cst_14 = arith.constant 0.327591091 : f32
    %34 = vector.broadcast %cst_14 : f32 to vector<16x64xf32>
    %35 = arith.mulf %34, %33 : vector<16x64xf32>
    %cst_15 = arith.constant 1.000000e+00 : f32
    %36 = vector.broadcast %cst_15 : f32 to vector<16x64xf32>
    %37 = arith.addf %36, %35 : vector<16x64xf32>
    %cst_16 = arith.constant 1.000000e+00 : f32
    %38 = vector.broadcast %cst_16 : f32 to vector<16x64xf32>
    %39 = arith.divf %38, %37 : vector<16x64xf32>
    %cst_17 = arith.constant 1.06140542 : f32
    %40 = vector.broadcast %cst_17 : f32 to vector<16x64xf32>
    %41 = arith.mulf %40, %39 : vector<16x64xf32>
    %cst_18 = arith.constant -1.45315206 : f32
    %42 = vector.broadcast %cst_18 : f32 to vector<16x64xf32>
    %43 = arith.addf %41, %42 : vector<16x64xf32>
    %44 = arith.mulf %43, %39 : vector<16x64xf32>
    %cst_19 = arith.constant 1.42141378 : f32
    %45 = vector.broadcast %cst_19 : f32 to vector<16x64xf32>
    %46 = arith.addf %44, %45 : vector<16x64xf32>
    %47 = arith.mulf %46, %39 : vector<16x64xf32>
    %cst_20 = arith.constant -0.284496725 : f32
    %48 = vector.broadcast %cst_20 : f32 to vector<16x64xf32>
    %49 = arith.addf %47, %48 : vector<16x64xf32>
    %50 = arith.mulf %49, %39 : vector<16x64xf32>
    %cst_21 = arith.constant 0.254829586 : f32
    %51 = vector.broadcast %cst_21 : f32 to vector<16x64xf32>
    %52 = arith.addf %50, %51 : vector<16x64xf32>
    %53 = arith.mulf %52, %39 : vector<16x64xf32>
    %cst_22 = arith.constant 0.000000e+00 : f32
    %54 = vector.broadcast %cst_22 : f32 to vector<16x64xf32>
    %55 = arith.subf %54, %33 : vector<16x64xf32>
    %56 = arith.mulf %55, %33 : vector<16x64xf32>
    %57 = math.exp %56 : vector<16x64xf32>
    %58 = arith.mulf %53, %57 : vector<16x64xf32>
    %cst_23 = arith.constant 1.000000e+00 : f32
    %59 = vector.broadcast %cst_23 : f32 to vector<16x64xf32>
    %60 = arith.subf %59, %58 : vector<16x64xf32>
    %61 = arith.mulf %32, %60 : vector<16x64xf32>
    %cst_24 = arith.constant 1.000000e+00 : f32
    %62 = vector.broadcast %cst_24 : f32 to vector<16x64xf32>
    %63 = arith.addf %62, %61 : vector<16x64xf32>
    %64 = arith.mulf %25, %63 : vector<16x64xf32>
    %65 = arith.truncf %64 : vector<16x64xf32> to vector<16x64xbf16>
    %c0_25 = arith.constant 0 : index
    %c0_26 = arith.constant 0 : index
    %66 = vector.load %arg5[%c0_25, %c0_26] : memref<64x96xbf16, #tpu.memory_space<vmem>>, vector<64x96xbf16>
    %cst_27 = arith.constant dense<0.000000e+00> : vector<16x96xf32>
    %67 = tpu.matmul %65, %66, %cst_27 {dimension_numbers = #tpu.dot_dimension_numbers<[1], [0], [0], [1], [0, 0, 1, 1], [], []>} : vector<16x64xbf16>, vector<64x96xbf16>, vector<16x96xf32> -> vector<16x96xf32>
    %c0_28 = arith.constant 0 : index
    %c0_29 = arith.constant 0 : index
    %68 = vector.load %arg6[%c0_28, %c0_29] : memref<1x96xf32, #tpu.memory_space<vmem>>, vector<1x96xf32>
    %69 = vector.broadcast %68 : vector<1x96xf32> to vector<16x96xf32>
    %70 = arith.addf %67, %69 : vector<16x96xf32>
    %71 = arith.truncf %70 : vector<16x96xf32> to vector<16x96xbf16>
    %c0_30 = arith.constant 0 : index
    %c0_31 = arith.constant 0 : index
    %72 = vector.load %arg7[%c0_30, %c0_31] : memref<16x96xbf16, #tpu.memory_space<vmem>>, vector<16x96xbf16>
    tpu.vector_store %arg7[%c0_30, %c0_31], %71 {strides = array<i32>} : memref<16x96xbf16, #tpu.memory_space<vmem>>, vector<16x96xbf16>,
    return
  }
  func.func @transform_0(%arg0: i32, %arg1: i32) -> (i32, i32) {
    %c0_i32 = arith.constant 0 : i32
    %c0_i32_0 = arith.constant 0 : i32
    return %arg0, %c0_i32 : i32, i32
  }
  func.func @transform_1(%arg0: i32, %arg1: i32) -> (i32, i32) {
    %c0_i32 = arith.constant 0 : i32
    %c0_i32_0 = arith.constant 0 : i32
    %c0_i32_1 = arith.constant 0 : i32
    return %c0_i32, %c0_i32_0 : i32, i32
  }
  func.func @transform_2(%arg0: i32, %arg1: i32) -> (i32, i32) {
    %c0_i32 = arith.constant 0 : i32
    %c0_i32_0 = arith.constant 0 : i32
    %c0_i32_1 = arith.constant 0 : i32
    return %c0_i32, %c0_i32_0 : i32, i32
  }
  func.func @transform_3(%arg0: i32, %arg1: i32) -> (i32, i32) {
    %c0_i32 = arith.constant 0 : i32
    %c0_i32_0 = arith.constant 0 : i32
    return %c0_i32, %arg1 : i32, i32
  }
  func.func @transform_4(%arg0: i32, %arg1: i32) -> (i32, i32) {
    %c0_i32 = arith.constant 0 : i32
    %c0_i32_0 = arith.constant 0 : i32
    return %c0_i32, %arg1 : i32, i32
  }
  func.func @transform_5(%arg0: i32, %arg1: i32) -> (i32, i32) {
    %c0_i32 = arith.constant 0 : i32
    return %arg0, %arg1 : i32, i32
  }
}

</mosaic_0001>

<bundles_post_ra>
// kernel: _lambda_.18
= control target key start
LH: loop header
LB: loop body
LE: loop exit
PB: predicated region body
PF: predicated region fallthrough
CT: control target
= control target key end

     0   :  { %vm140_vm0 = vcmask 1043456   ;;  %vm141_vm1 = vcmask 1044480   ;;  %v364_v2 = vmov 65535   ;;  %vm19_vm2 = vcmask 261120   ;;  %s541_s1 = inlined_call_operand.vmem [shape: bf16[9,32], index: 1, kind: input, shape index: {}]   ;;  %s542_s0 = inlined_call_operand.vmem [shape: bf16[128,9], index: 0, kind: input, shape index: {}]   ;;  %s543_s2 = inlined_call_operand.vmem [shape: f32[1,32], index: 2, kind: input, shape index: {}]   ;;  %s544_s3 = inlined_call_operand.vmem [shape: bf16[128,32], index: 3, kind: output, shape index: {}]  }
   0x1   :  { %v339_v0 = vld [vmem:[%s541_s1] sm:$0xf]  ;;  %v357_v1 = vld [vmem:[%s541_s1] sm:$0x10]  ;;  %v142_v3 = vsel %vm140_vm0, 4294967295, %v364_v2  ;;  %v365_v6 = vmov 0.0  }
   0x2   :  { %v340_v4 = vor.u32 %v357_v1, %v339_v0  ;;  %v143_v5 = vsel %vm141_vm1, %v142_v3, 0  ;;  %20 = vst.msk [vmem:[#allocation2] sm:$0xff] %vm19_vm2, %v365_v6  ;;  %v349_v8 = vld [vmem:[%s542_s0] sm:$0xff]  ;;  %v351_v9 = vld [vmem:[%s542_s0 + $0x10] sm:$0xff]  ;;  %vm115_vm3 = vcmask 72704   ;;  %v350_v12 = vld [vmem:[%s542_s0 + $0x8] sm:$0xff] }
   0x3   :  { %21 = vst.msk [vmem:[#allocation2 + $0x8] sm:$0xff] %vm19_vm2, %v365_v6  ;;  %v353_v10 = vld [vmem:[%s542_s0 + $0x20] sm:$0xff]  ;;  %v355_v11 = vld [vmem:[%s542_s0 + $0x30] sm:$0xff]  ;;  %v352_v13 = vld [vmem:[%s542_s0 + $0x18] sm:$0xff]  ;;  %vm284_vm4 = vcmask 257024  }
   0x4   :  { %v145_v7 = vand.u32 %v340_v4, %v143_v5  ;;  %22 = vst.msk [vmem:[#allocation2 + $0x10] sm:$0xff] %vm19_vm2, %v365_v6  ;;  %v354_v14 = vld [vmem:[%s542_s0 + $0x28] sm:$0xff]  ;;  %v356_v15 = vld [vmem:[%s542_s0 + $0x38] sm:$0xff]  ;;  %v445_v26 = vld [vmem:[%s543_s2] ss:$0 sm:$0xff] }
   0x5   :  { %23 = vst.msk [vmem:[#allocation2 + $0x18] sm:$0xff] %vm19_vm2, %v365_v6 }
   0x6   :  { %154 = vmatpush.bf16.msra.mxu0 %v145_v7  ;;  %358 = vmatpush.bf16.msra.mxu1 %v145_v7  ;;  %24 = vst.msk [vmem:[#allocation2 + $0x20] sm:$0xff] %vm19_vm2, %v365_v6 }
   0x7   :  { %359 = vmatpush.bf16.msra.mxu2 %v145_v7  ;;  %360 = vmatpush.bf16.msra.mxu3 %v145_v7  ;;  %25 = vst.msk [vmem:[#allocation2 + $0x28] sm:$0xff] %vm19_vm2, %v365_v6 }
   0x8   :  { %26 = vst.msk [vmem:[#allocation2 + $0x30] sm:$0xff] %vm19_vm2, %v365_v6 }
   0x9   :  { %341 = vmatmul.msk.bf16.vlgmr.msra.gmra.mxu0 %vm115_vm3, %v349_v8  ;;  %343 = vmatmul.msk.bf16.vlgmr.msra.gmra.mxu1 %vm115_vm3, %v351_v9  ;;  %27 = vst.msk [vmem:[#allocation2 + $0x38] sm:$0xff] %vm19_vm2, %v365_v6  ;;  %v36_v16 = vld [vmem:[#allocation2] sm:$0xff] }
   0xa   :  { %345 = vmatmul.msk.bf16.vlgmr.msra.gmra.mxu2 %vm115_vm3, %v353_v10  ;;  %347 = vmatmul.msk.bf16.vlgmr.msra.gmra.mxu3 %vm115_vm3, %v355_v11  ;;  %28 = vst.msk [vmem:[#allocation2 + $0x40] sm:$0xff] %vm19_vm2, %v365_v6  ;;  %v37_v24 = vld [vmem:[#allocation2 + $0x8] sm:$0xff] }
   0xb   :  { %29 = vst.msk [vmem:[#allocation2 + $0x48] sm:$0xff] %vm19_vm2, %v365_v6  ;;  %v38_v43 = vld [vmem:[#allocation2 + $0x10] sm:$0xff] }
   0xc   :  { %30 = vst.msk [vmem:[#allocation2 + $0x50] sm:$0xff] %vm19_vm2, %v365_v6  ;;  %v39_v2 = vld [vmem:[#allocation2 + $0x18] sm:$0xff] }
   0xd   :  { %31 = vst.msk [vmem:[#allocation2 + $0x58] sm:$0xff] %vm19_vm2, %v365_v6  ;;  %v40_v17 = vld [vmem:[#allocation2 + $0x20] sm:$0xff] }
   0xe   :  { %32 = vst.msk [vmem:[#allocation2 + $0x60] sm:$0xff] %vm19_vm2, %v365_v6  ;;  %v41_v25 = vld [vmem:[#allocation2 + $0x28] sm:$0xff] }
   0xf   :  { %33 = vst.msk [vmem:[#allocation2 + $0x68] sm:$0xff] %vm19_vm2, %v365_v6  ;;  %v42_v44 = vld [vmem:[#allocation2 + $0x30] sm:$0xff] }
  0x10   :  { %34 = vst.msk [vmem:[#allocation2 + $0x70] sm:$0xff] %vm19_vm2, %v365_v6  ;;  %v43_v3 = vld [vmem:[#allocation2 + $0x38] sm:$0xff] }
  0x11   :  { %35 = vst.msk [vmem:[#allocation2 + $0x78] sm:$0xff] %vm19_vm2, %v365_v6  ;;  %v44_v22 = vld [vmem:[#allocation2 + $0x40] sm:$0xff] }
  0x12   :  { %v45_v40 = vld [vmem:[#allocation2 + $0x48] sm:$0xff] }
  0x13   :  { %v46_v63 = vld [vmem:[#allocation2 + $0x50] sm:$0xff] }
  0x15   :  { %v48_v23 = vld [vmem:[#allocation2 + $0x60] sm:$0xff] }
  0x16   :  { %v49_v41 = vld [vmem:[#allocation2 + $0x68] sm:$0xff] }
  0x17   :  { %v50_v0 = vld [vmem:[#allocation2 + $0x70] sm:$0xff] }
  0x19   :  { %342 = vmatmul.msk.bf16.gmra.mxu0 %vm115_vm3, %v350_v12  ;;  %344 = vmatmul.msk.bf16.gmra.mxu1 %vm115_vm3, %v352_v13 }
  0x1a   :  { %346 = vmatmul.msk.bf16.gmra.mxu2 %vm115_vm3, %v354_v14  ;;  %348 = vmatmul.msk.bf16.gmra.mxu3 %vm115_vm3, %v356_v15 }
  0x86   :  { %v156_v18 = vpop.f32.mrf.mxu0  ;;  %v166_v19 = vpop.f32.mrf.mxu1 }
  0x87   :  { %v196_v20 = vadd.f32 %v156_v18, %v36_v16  ;;  %v200_v21 = vadd.f32 %v166_v19, %v40_v17 }
  0x89   :  { %213 = vst.msk [vmem:[#allocation2] sm:$0xff] %vm19_vm2, %v196_v20 }
  0x8a   :  { %217 = vst.msk [vmem:[#allocation2 + $0x20] sm:$0xff] %vm19_vm2, %v200_v21 }
  0x8d   :  { %v176_v27 = vpop.f32.mrf.mxu2  ;;  %v186_v28 = vpop.f32.mrf.mxu3 }
  0x8e   :  { %v204_v29 = vadd.f32 %v176_v27, %v44_v22  ;;  %v208_v30 = vadd.f32 %v186_v28, %v48_v23  ;;  %v158_v31 = vpop.f32.mrf.mxu0  ;;  %v168_v32 = vpop.f32.mrf.mxu1  ;;  %v47_v23 = vld [vmem:[#allocation2 + $0x58] sm:$0xff] }
  0x8f   :  { %v197_v33 = vadd.f32 %v158_v31, %v37_v24  ;;  %v201_v34 = vadd.f32 %v168_v32, %v41_v25  ;;  %v51_v24 = vld [vmem:[#allocation2 + $0x78] sm:$0xff] }
  0x90   :  { %v232_v35 = vld [vmem:[#allocation2] sm:$0xff]  ;;  %221 = vst.msk [vmem:[#allocation2 + $0x40] sm:$0xff] %vm19_vm2, %v204_v29 }
  0x91   :  { %v252_v36 = vadd.f32 %v445_v26, %v232_v35  ;;  %v236_v37 = vld [vmem:[#allocation2 + $0x20] sm:$0xff]  ;;  %225 = vst.msk [vmem:[#allocation2 + $0x60] sm:$0xff] %vm19_vm2, %v208_v30 }
  0x92   :  { %v256_v38 = vadd.f32 %v445_v26, %v236_v37  ;;  %214 = vst.msk [vmem:[#allocation2 + $0x8] sm:$0xff] %vm19_vm2, %v197_v33 }
  0x93   :  { %v268_v39 = vpack.c.bf16 %v252_v36, %v252_v36  ;;  %218 = vst.msk [vmem:[#allocation2 + $0x28] sm:$0xff] %vm19_vm2, %v201_v34 }
  0x94   :  { %v272_v42 = vpack.c.bf16 %v256_v38, %v256_v38 }
  0x95   :  { %285 = vst.msk [vmem:[%s544_s3] sm:$0xf] %vm284_vm4, %v268_v39  ;;  %v178_v45 = vpop.f32.mrf.mxu2  ;;  %v188_v46 = vpop.f32.mrf.mxu3 }
  0x96   :  { %289 = vst.msk [vmem:[%s544_s3 + $0x10] sm:$0xf] %vm284_vm4, %v272_v42  ;;  %v205_v47 = vadd.f32 %v178_v45, %v45_v40  ;;  %v209_v48 = vadd.f32 %v188_v46, %v49_v41  ;;  %v161_v49 = vpop.f32.mrf.mxu0  ;;  %v171_v50 = vpop.f32.mrf.mxu1 }
  0x97   :  { %v240_v51 = vld [vmem:[#allocation2 + $0x40] sm:$0xff]  ;;  %v198_v52 = vadd.f32 %v161_v49, %v38_v43  ;;  %v202_v53 = vadd.f32 %v171_v50, %v42_v44 }
  0x98   :  { %v260_v54 = vadd.f32 %v445_v26, %v240_v51  ;;  %v244_v55 = vld [vmem:[#allocation2 + $0x60] sm:$0xff]  ;;  %222 = vst.msk [vmem:[#allocation2 + $0x48] sm:$0xff] %vm19_vm2, %v205_v47 }
  0x99   :  { %v264_v56 = vadd.f32 %v445_v26, %v244_v55  ;;  %v233_v57 = vld [vmem:[#allocation2 + $0x8] sm:$0xff]  ;;  %226 = vst.msk [vmem:[#allocation2 + $0x68] sm:$0xff] %vm19_vm2, %v209_v48 }
  0x9a   :  { %v276_v58 = vpack.c.bf16 %v260_v54, %v260_v54  ;;  %v253_v59 = vadd.f32 %v445_v26, %v233_v57  ;;  %v237_v60 = vld [vmem:[#allocation2 + $0x28] sm:$0xff]  ;;  %215 = vst.msk [vmem:[#allocation2 + $0x10] sm:$0xff] %vm19_vm2, %v198_v52 }
  0x9b   :  { %v280_v61 = vpack.c.bf16 %v264_v56, %v264_v56  ;;  %v257_v62 = vadd.f32 %v445_v26, %v237_v60  ;;  %219 = vst.msk [vmem:[#allocation2 + $0x30] sm:$0xff] %vm19_vm2, %v202_v53 }
  0x9c   :  { %293 = vst.msk [vmem:[%s544_s3 + $0x20] sm:$0xf] %vm284_vm4, %v276_v58  ;;  %v269_v1 = vpack.c.bf16 %v253_v59, %v253_v59 }
  0x9d   :  { %297 = vst.msk [vmem:[%s544_s3 + $0x30] sm:$0xf] %vm284_vm4, %v280_v61  ;;  %v273_v4 = vpack.c.bf16 %v257_v62, %v257_v62  ;;  %v181_v5 = vpop.f32.mrf.mxu2  ;;  %v191_v6 = vpop.f32.mrf.mxu3 }
  0x9e   :  { %286 = vst.msk [vmem:[%s544_s3 + $0x4] sm:$0xf] %vm284_vm4, %v269_v1  ;;  %v206_v7 = vadd.f32 %v181_v5, %v46_v63  ;;  %v210_v8 = vadd.f32 %v191_v6, %v50_v0  ;;  %v163_v9 = vpop.f32.mrf.mxu0  ;;  %v173_v10 = vpop.f32.mrf.mxu1 }
  0x9f   :  { %290 = vst.msk [vmem:[%s544_s3 + $0x14] sm:$0xf] %vm284_vm4, %v273_v4  ;;  %v241_v11 = vld [vmem:[#allocation2 + $0x48] sm:$0xff]  ;;  %v199_v12 = vadd.f32 %v163_v9, %v39_v2  ;;  %v203_v13 = vadd.f32 %v173_v10, %v43_v3 }
  0xa0   :  { %v261_v14 = vadd.f32 %v445_v26, %v241_v11  ;;  %v245_v15 = vld [vmem:[#allocation2 + $0x68] sm:$0xff]  ;;  %223 = vst.msk [vmem:[#allocation2 + $0x50] sm:$0xff] %vm19_vm2, %v206_v7 }
  0xa1   :  { %v265_v16 = vadd.f32 %v445_v26, %v245_v15  ;;  %v234_v17 = vld [vmem:[#allocation2 + $0x10] sm:$0xff]  ;;  %227 = vst.msk [vmem:[#allocation2 + $0x70] sm:$0xff] %vm19_vm2, %v210_v8 }
  0xa2   :  { %v277_v18 = vpack.c.bf16 %v261_v14, %v261_v14  ;;  %v254_v19 = vadd.f32 %v445_v26, %v234_v17  ;;  %v238_v20 = vld [vmem:[#allocation2 + $0x30] sm:$0xff]  ;;  %216 = vst.msk [vmem:[#allocation2 + $0x18] sm:$0xff] %vm19_vm2, %v199_v12 }
  0xa3   :  { %v281_v21 = vpack.c.bf16 %v265_v16, %v265_v16  ;;  %v258_v22 = vadd.f32 %v445_v26, %v238_v20  ;;  %220 = vst.msk [vmem:[#allocation2 + $0x38] sm:$0xff] %vm19_vm2, %v203_v13 }
  0xa4   :  { %294 = vst.msk [vmem:[%s544_s3 + $0x24] sm:$0xf] %vm284_vm4, %v277_v18  ;;  %v270_v25 = vpack.c.bf16 %v254_v19, %v254_v19 }
  0xa5   :  { %298 = vst.msk [vmem:[%s544_s3 + $0x34] sm:$0xf] %vm284_vm4, %v281_v21  ;;  %v274_v27 = vpack.c.bf16 %v258_v22, %v258_v22  ;;  %v183_v28 = vpop.f32.mrf.mxu2  ;;  %v193_v29 = vpop.f32.mrf.mxu3 }
  0xa6   :  { %287 = vst.msk [vmem:[%s544_s3 + $0x8] sm:$0xf] %vm284_vm4, %v270_v25  ;;  %v207_v30 = vadd.f32 %v183_v28, %v47_v23  ;;  %v211_v31 = vadd.f32 %v193_v29, %v51_v24 }
  0xa7   :  { %291 = vst.msk [vmem:[%s544_s3 + $0x18] sm:$0xf] %vm284_vm4, %v274_v27  ;;  %v242_v32 = vld [vmem:[#allocation2 + $0x50] sm:$0xff] }
  0xa8   :  { %v262_v33 = vadd.f32 %v445_v26, %v242_v32  ;;  %v246_v34 = vld [vmem:[#allocation2 + $0x70] sm:$0xff]  ;;  %224 = vst.msk [vmem:[#allocation2 + $0x58] sm:$0xff] %vm19_vm2, %v207_v30 }
  0xa9   :  { %v266_v35 = vadd.f32 %v445_v26, %v246_v34  ;;  %v235_v36 = vld [vmem:[#allocation2 + $0x18] sm:$0xff]  ;;  %228 = vst.msk [vmem:[#allocation2 + $0x78] sm:$0xff] %vm19_vm2, %v211_v31 }
  0xaa   :  { %v278_v37 = vpack.c.bf16 %v262_v33, %v262_v33  ;;  %v255_v38 = vadd.f32 %v445_v26, %v235_v36  ;;  %v239_v39 = vld [vmem:[#allocation2 + $0x38] sm:$0xff] }
  0xab   :  { %v282_v40 = vpack.c.bf16 %v266_v35, %v266_v35  ;;  %v259_v41 = vadd.f32 %v445_v26, %v239_v39 }
  0xac   :  { %295 = vst.msk [vmem:[%s544_s3 + $0x28] sm:$0xf] %vm284_vm4, %v278_v37  ;;  %v271_v42 = vpack.c.bf16 %v255_v38, %v255_v38 }
  0xad   :  { %299 = vst.msk [vmem:[%s544_s3 + $0x38] sm:$0xf] %vm284_vm4, %v282_v40  ;;  %v275_v43 = vpack.c.bf16 %v259_v41, %v259_v41 }
  0xae   :  { %288 = vst.msk [vmem:[%s544_s3 + $0xc] sm:$0xf] %vm284_vm4, %v271_v42 }
  0xaf   :  { %292 = vst.msk [vmem:[%s544_s3 + $0x1c] sm:$0xf] %vm284_vm4, %v275_v43  ;;  %v243_v44 = vld [vmem:[#allocation2 + $0x58] sm:$0xff] }
  0xb0   :  { %v263_v45 = vadd.f32 %v445_v26, %v243_v44  ;;  %v247_v46 = vld [vmem:[#allocation2 + $0x78] sm:$0xff] }
  0xb1   :  { %v267_v47 = vadd.f32 %v445_v26, %v247_v46 }
  0xb2   :  { %v279_v48 = vpack.c.bf16 %v263_v45, %v263_v45 }
  0xb3   :  { %v283_v49 = vpack.c.bf16 %v267_v47, %v267_v47 }
  0xb4   :  { %296 = vst.msk [vmem:[%s544_s3 + $0x2c] sm:$0xf] %vm284_vm4, %v279_v48 }
  0xb5   :  { %300 = vst.msk [vmem:[%s544_s3 + $0x3c] sm:$0xf] %vm284_vm4, %v283_v49 }

// kernel: _lambda_.19
= control target key start
LH: loop header
LB: loop body
LE: loop exit
PB: predicated region body
PF: predicated region fallthrough
CT: control target
= control target key end

     0   :  { %vm46_vm0 = vcmask 261120   ;;  %v1384_v21 = vmov 8.0   ;;  %s2949_s0 = inlined_call_operand.vmem [shape: bf16[16,8,32], index: 0, kind: input, shape index: {}]   ;;  %s2950_s1 = inlined_call_operand.vmem [shape: f32[8,32], index: 1, kind: input, shape index: {}]   ;;  %s2951_s2 = inlined_call_operand.vmem [shape: f32[8,32], index: 2, kind: input, shape index: {}]   ;;  %s2952_s3 = inlined_call_operand.vmem [shape: bf16[16,8,32], index: 3, kind: output, shape index: {}]  }
   0x1   :  { %v1409_v0 = vld [vmem:[%s2949_s0] sm:$0xff]   ;;  %v1415_v2 = vld [vmem:[%s2949_s0 + $0x8] sm:$0xff]   ;;  %v1426_v7 = vld [vmem:[%s2949_s0 + $0x10] sm:$0xff]   ;;  %1286 = vrcp.f32 %v1384_v21 }
   0x2   :  { %v1247_v1 = vunpack.c.l.bf16 %v1409_v0  ;;  %v1248_v3 = vunpack.c.h.bf16 %v1409_v0  ;;  %v1251_v4 = vunpack.c.l.bf16 %v1415_v2  ;;  %v1252_v5 = vunpack.c.h.bf16 %v1415_v2  ;;  %v1431_v8 = vld [vmem:[%s2949_s0 + $0x18] sm:$0xff]   ;;  %v1458_v26 = vld [vmem:[%s2949_s0 + $0x20] sm:$0xff]   ;;  %v1463_v29 = vld [vmem:[%s2949_s0 + $0x28] sm:$0xff]  }
   0x3   :  { %v1255_v13 = vunpack.c.l.bf16 %v1426_v7  ;;  %v1256_v14 = vunpack.c.h.bf16 %v1426_v7  ;;  %v1259_v15 = vunpack.c.l.bf16 %v1431_v8  ;;  %v1260_v19 = vunpack.c.h.bf16 %v1431_v8  ;;  %v1471_v32 = vld [vmem:[%s2949_s0 + $0x30] sm:$0xff]   ;;  %v1478_v38 = vld [vmem:[%s2949_s0 + $0x38] sm:$0xff]  }
   0x4   :  { %v47_v6 = vsel %vm46_vm0, %v1247_v1, 0.0  ;;  %v54_v9 = vsel %vm46_vm0, %v1248_v3, 0.0  ;;  %v61_v11 = vsel %vm46_vm0, %v1251_v4, 0.0  ;;  %v68_v12 = vsel %vm46_vm0, %v1252_v5, 0.0 }
   0x5   :  { %v48_v10 = vrot.slane %v47_v6, 4  ;;  %v55_v16 = vrot.slane %v54_v9, 4  ;;  %v62_v17 = vrot.slane %v61_v11, 4  ;;  %v69_v18 = vrot.slane %v68_v12, 4 }
   0x6   :  { %v75_v23 = vsel %vm46_vm0, %v1255_v13, 0.0  ;;  %v82_v24 = vsel %vm46_vm0, %v1256_v14, 0.0  ;;  %v89_v25 = vsel %vm46_vm0, %v1259_v15, 0.0  ;;  %v96_v31 = vsel %vm46_vm0, %v1260_v19, 0.0 }
   0x7   :  { %v49_v20 = vadd.f32 %v48_v10, %v47_v6  ;;  %v56_v22 = vadd.f32 %v55_v16, %v54_v9  ;;  %v63_v27 = vadd.f32 %v62_v17, %v61_v11  ;;  %v70_v28 = vadd.f32 %v69_v18, %v68_v12  ;;  %v1287_v40 = vpop.eup %1286 }
   0x8   :  { %v76_v33 = vrot.slane %v75_v23, 4  ;;  %v83_v34 = vrot.slane %v82_v24, 4  ;;  %v90_v35 = vrot.slane %v89_v25, 4  ;;  %v1263_v36 = vunpack.c.l.bf16 %v1458_v26 }
   0x9   :  { %v50_v30 = vrot.slane %v49_v20, 2  ;;  %v1264_v37 = vunpack.c.h.bf16 %v1458_v26  ;;  %v57_v39 = vrot.slane %v56_v22, 2  ;;  %v2957_v41 = vunpack.c.l.bf16 %v1463_v29 }
   0xa   :  { %v64_v42 = vrot.slane %v63_v27, 2  ;;  %v71_v43 = vrot.slane %v70_v28, 2  ;;  %v97_v44 = vrot.slane %v96_v31, 4  ;;  %v2956_v45 = vunpack.c.h.bf16 %v1463_v29 }
   0xb   :  { %v2955_v46 = vunpack.c.l.bf16 %v1471_v32  ;;  %v2953_v47 = vunpack.c.h.bf16 %v1471_v32  ;;  %v51_v48 = vadd.f32 %v50_v30, %v49_v20  ;;  %v2954_v49 = vunpack.c.l.bf16 %v1478_v38 }
   0xc   :  { %v77_v50 = vadd.f32 %v76_v33, %v75_v23  ;;  %v84_v51 = vadd.f32 %v83_v34, %v82_v24  ;;  %v91_v52 = vadd.f32 %v90_v35, %v89_v25  ;;  %v2958_v53 = vunpack.c.h.bf16 %v1478_v38 }
   0xd   :  { %v58_v54 = vadd.f32 %v57_v39, %v56_v22  ;;  %v103_v55 = vsel %vm46_vm0, %v1263_v36, 0.0  ;;  %v160_v56 = vmul.f32 8.0, %v1287_v40  ;;  %v65_v57 = vadd.f32 %v64_v42, %v63_v27 }
   0xe   :  { %v72_v58 = vadd.f32 %v71_v43, %v70_v28  ;;  %v98_v59 = vadd.f32 %v97_v44, %v96_v31  ;;  %v110_v60 = vsel %vm46_vm0, %v1264_v37, 0.0  ;;  %v52_v61 = vrot.slane %v51_v48, 1 }
   0xf   :  { %v117_v62 = vsel %vm46_vm0, %v2957_v41, 0.0  ;;  %v124_v63 = vsel %vm46_vm0, %v2956_v45, 0.0  ;;  %v161_v6 = vsub.f32 1.0, %v160_v56  ;;  %v78_v9 = vrot.slane %v77_v50, 2 }
  0x10   :  { %v85_v10 = vrot.slane %v84_v51, 2  ;;  %v92_v11 = vrot.slane %v91_v52, 2  ;;  %v104_v12 = vrot.slane %v103_v55, 4  ;;  %v59_v16 = vrot.slane %v58_v54, 1 }
  0x11   :  { %v111_v17 = vrot.slane %v110_v60, 4  ;;  %v131_v18 = vsel %vm46_vm0, %v2955_v46, 0.0  ;;  %v162_v20 = vmul.f32 %v1287_v40, %v161_v6  ;;  %v118_v21 = vrot.slane %v117_v62, 4 }
  0x12   :  { %v125_v22 = vrot.slane %v124_v63, 4  ;;  %v138_v23 = vsel %vm46_vm0, %v2953_v47, 0.0  ;;  %vm164_vm1 = vweird.f32 %v1287_v40  ;;  %v53_v24 = vadd.f32 %v52_v61, %v51_v48 }
  0x13   :  { %v66_v25 = vrot.slane %v65_v57, 1  ;;  %v99_v27 = vrot.slane %v98_v59, 2  ;;  %v163_v28 = vadd.f32 %v1287_v40, %v162_v20  ;;  %v105_v30 = vadd.f32 %v104_v12, %v103_v55 }
  0x14   :  { %v132_v31 = vrot.slane %v131_v18, 4  ;;  %v145_v33 = vsel %vm46_vm0, %v2954_v49, 0.0  ;;  %v152_v34 = vsel %vm46_vm0, %v2958_v53, 0.0  ;;  %v79_v35 = vadd.f32 %v78_v9, %v77_v50 }
  0x15   :  { %v112_v39 = vadd.f32 %v111_v17, %v110_v60  ;;  %v139_v42 = vrot.slane %v138_v23, 4  ;;  %v1510_v43 = vsel %vm164_vm1, %v1287_v40, %v163_v28  ;;  %v60_v44 = vadd.f32 %v59_v16, %v58_v54 }
  0x16   :  { %v73_v48 = vrot.slane %v72_v58, 1  ;;  %v119_v56 = vadd.f32 %v118_v21, %v117_v62  ;;  %v126_v61 = vadd.f32 %v125_v22, %v124_v63  ;;  %v86_v6 = vadd.f32 %v85_v10, %v84_v51 }
  0x17   :  { %v146_v55 = vrot.slane %v145_v33, 4  ;;  %v153_v12 = vrot.slane %v152_v34, 4  ;;  %v166_v20 = vmul.f32 %v1510_v43, %v53_v24  ;;  %v67_v47 = vadd.f32 %v66_v25, %v65_v57 }
  0x18   :  { %v93_v49 = vadd.f32 %v92_v11, %v91_v52  ;;  %v106_v46 = vrot.slane %v105_v30, 2  ;;  %v133_v45 = vadd.f32 %v132_v31, %v131_v18  ;;  %v80_v41 = vrot.slane %v79_v35, 1 }
  0x19   :  { %v100_v53 = vadd.f32 %v99_v27, %v98_v59  ;;  %v113_v50 = vrot.slane %v112_v39, 2  ;;  %v140_v60 = vadd.f32 %v139_v42, %v138_v23  ;;  %v74_v9 = vadd.f32 %v73_v48, %v72_v58 }
  0x1a   :  { %v120_v40 = vrot.slane %v119_v56, 2  ;;  %v127_v17 = vrot.slane %v126_v61, 2  ;;  %v167_v54 = vmul.f32 %v1510_v43, %v60_v44  ;;  %v87_v62 = vrot.slane %v86_v6, 1 }
  0x1b   :  { %v147_v63 = vadd.f32 %v146_v55, %v145_v33  ;;  %v154_v51 = vadd.f32 %v153_v12, %v152_v34  ;;  %v1516_v10 = vsub.f32 %v1247_v1, %v166_v20  ;;  %v94_v57 = vrot.slane %v93_v49, 1 }
  0x1c   :  { %v107_v52 = vadd.f32 %v106_v46, %v105_v30  ;;  %v134_v11 = vrot.slane %v133_v45, 2  ;;  %v168_v16 = vmul.f32 %v1510_v43, %v67_v47  ;;  %v81_v59 = vadd.f32 %v80_v41, %v79_v35 }
  0x1d   :  { %v101_v18 = vrot.slane %v100_v53, 1  ;;  %v114_v21 = vadd.f32 %v113_v50, %v112_v39  ;;  %v141_v58 = vrot.slane %v140_v60, 2  ;;  %v121_v22 = vadd.f32 %v120_v40, %v119_v56 }
  0x1e   :  { %v128_v23 = vadd.f32 %v127_v17, %v126_v61  ;;  %v169_v24 = vmul.f32 %v1510_v43, %v74_v9  ;;  %v1522_v25 = vsub.f32 %v1248_v3, %v167_v54  ;;  %v88_v27 = vadd.f32 %v87_v62, %v86_v6 }
  0x1f   :  { %v148_v1 = vrot.slane %v147_v63, 2  ;;  %v155_v28 = vrot.slane %v154_v51, 2  ;;  %v198_v46 = vmul.f32 %v1516_v10, %v1516_v10  ;;  %v95_v30 = vadd.f32 %v94_v57, %v93_v49 }
  0x20   :  { %v108_v47 = vrot.slane %v107_v52, 1  ;;  %v135_v41 = vadd.f32 %v134_v11, %v133_v45  ;;  %v1528_v31 = vsub.f32 %v1251_v4, %v168_v16  ;;  %v102_v33 = vadd.f32 %v101_v18, %v100_v53 }
  0x21   :  { %v115_v34 = vrot.slane %v114_v21, 1  ;;  %v142_v35 = vadd.f32 %v141_v58, %v140_v60  ;;  %v170_v0 = vmul.f32 %v1510_v43, %v81_v59  ;;  %v122_v3 = vrot.slane %v121_v22, 1 }
  0x22   :  { %v129_v39 = vrot.slane %v128_v23, 1  ;;  %v1533_v42 = vsub.f32 %v1252_v5, %v169_v24  ;;  %v199_v49 = vmul.f32 %v1522_v25, %v1522_v25  ;;  %v149_v44 = vadd.f32 %v148_v1, %v147_v63 }
  0x23   :  { %v156_v45 = vadd.f32 %v155_v28, %v154_v51  ;;  %v171_v48 = vmul.f32 %v1510_v43, %v88_v27  ;;  %v214_v4 = vsel %vm46_vm0, %v198_v46, 0.0  ;;  %v109_v53 = vadd.f32 %v108_v47, %v107_v52 }
  0x24   :  { %v136_v56 = vrot.slane %v135_v41, 1  ;;  %v172_v61 = vmul.f32 %v1510_v43, %v95_v30  ;;  %v200_v6 = vmul.f32 %v1528_v31, %v1528_v31  ;;  %v116_v55 = vadd.f32 %v115_v34, %v114_v21 }
  0x25   :  { %v143_v2 = vrot.slane %v142_v35, 1  ;;  %v173_v5 = vmul.f32 %v1510_v43, %v102_v33  ;;  %v1545_v12 = vsub.f32 %v1255_v13, %v170_v0  ;;  %v123_v20 = vadd.f32 %v122_v3, %v121_v22 }
  0x26   :  { %v201_v50 = vmul.f32 %v1533_v42, %v1533_v42  ;;  %v215_v60 = vrot.slane %v214_v4, 4  ;;  %v221_v9 = vsel %vm46_vm0, %v199_v49, 0.0  ;;  %v130_v40 = vadd.f32 %v129_v39, %v128_v23 }
  0x27   :  { %v150_v17 = vrot.slane %v149_v44, 1  ;;  %v157_v54 = vrot.slane %v156_v45, 1  ;;  %v1552_v62 = vsub.f32 %v1256_v14, %v171_v48  ;;  %v137_v63 = vadd.f32 %v136_v56, %v135_v41 }
  0x28   :  { %v174_v51 = vmul.f32 %v1510_v43, %v109_v53  ;;  %v1557_v13 = vsub.f32 %v1259_v15, %v172_v61  ;;  %v228_v57 = vsel %vm46_vm0, %v200_v6, 0.0  ;;  %v144_v52 = vadd.f32 %v143_v2, %v142_v35 }
  0x29   :  { %v1562_v11 = vsub.f32 %v1260_v19, %v173_v5  ;;  %v202_v16 = vmul.f32 %v1545_v12, %v1545_v12  ;;  %v222_v7 = vrot.slane %v221_v9, 4  ;;  %v175_v14 = vmul.f32 %v1510_v43, %v116_v55 }
  0x2a   :  { %v176_v59 = vmul.f32 %v1510_v43, %v123_v20  ;;  %v216_v18 = vadd.f32 %v215_v60, %v214_v4  ;;  %v235_v21 = vsel %vm46_vm0, %v201_v50, 0.0  ;;  %v151_v15 = vadd.f32 %v150_v17, %v149_v44 }
  0x2b   :  { %2975 = vst [vmem:[#allocation2_spill] sm:$0xff] %v1562_v11  ;;  %v158_v58 = vadd.f32 %v157_v54, %v156_v45  ;;  %v203_v22 = vmul.f32 %v1552_v62, %v1552_v62  ;;  %v229_v23 = vrot.slane %v228_v57, 4  ;;  %v177_v8 = vmul.f32 %v1510_v43, %v130_v40 }
  0x2c   :  { %v178_v19 = vmul.f32 %v1510_v43, %v137_v63  ;;  %v1575_v24 = vsub.f32 %v1263_v36, %v174_v51  ;;  %v204_v27 = vmul.f32 %v1557_v13, %v1557_v13  ;;  %v205_v1 = vmul.f32 %v1562_v11, %v1562_v11 }
  0x2d   :  { %v223_v28 = vadd.f32 %v222_v7, %v221_v9  ;;  %v236_v46 = vrot.slane %v235_v21, 4  ;;  %v242_v30 = vsel %vm46_vm0, %v202_v16, 0.0  ;;  %v179_v47 = vmul.f32 %v1510_v43, %v144_v52 }
  0x2e   :  { %2976 = vst [vmem:[#allocation3_spill] sm:$0xff] %v1575_v24  ;;  %v1585_v41 = vsub.f32 %v1264_v37, %v175_v14  ;;  %v2978_v33 = vunpack.c.l.bf16 %v1463_v29  ;;  %v217_v34 = vrot.slane %v216_v18, 2  ;;  %v180_v35 = vmul.f32 %v1510_v43, %v151_v15 }
  0x2f   :  { %v181_v0 = vmul.f32 %v1510_v43, %v158_v58  ;;  %v230_v3 = vadd.f32 %v229_v23, %v228_v57  ;;  %v249_v39 = vsel %vm46_vm0, %v203_v22, 0.0  ;;  %v2980_v49 = vunpack.c.h.bf16 %v1463_v29 }
  0x30   :  { %2977 = vst [vmem:[#allocation4_spill] sm:$0xff] %v1585_v41  ;;  %v1589_v36 = vsub.f32 %v2978_v33, %v176_v59  ;;  %v2982_v26 = vunpack.c.l.bf16 %v1471_v32  ;;  %v206_v45 = vmul.f32 %v1575_v24, %v1575_v24  ;;  %v243_v48 = vrot.slane %v242_v30, 4 }
  0x31   :  { %v1596_v44 = vsub.f32 %v2980_v49, %v177_v8  ;;  %v224_v4 = vrot.slane %v223_v28, 2  ;;  %v237_v53 = vadd.f32 %v236_v46, %v235_v21  ;;  %v256_v56 = vsel %vm46_vm0, %v204_v27, 0.0 }
  0x32   :  { %2979 = vst [vmem:[#allocation5_spill] sm:$0xff] %v1589_v36  ;;  %v1600_v37 = vsub.f32 %v2982_v26, %v178_v19  ;;  %v263_v61 = vsel %vm46_vm0, %v205_v1, 0.0  ;;  %v207_v6 = vmul.f32 %v1585_v41, %v1585_v41  ;;  %v208_v29 = vmul.f32 %v1589_v36, %v1589_v36 }
  0x33   :  { %2981 = vst [vmem:[#allocation6_spill] sm:$0xff] %v1596_v44  ;;  %v218_v55 = vadd.f32 %v217_v34, %v216_v18  ;;  %v250_v2 = vrot.slane %v249_v39, 4  ;;  %v2984_v5 = vunpack.c.h.bf16 %v1471_v32  ;;  %v2986_v50 = vunpack.c.l.bf16 %v1478_v38 }
  0x34   :  { %2983 = vst [vmem:[#allocation7_spill] sm:$0xff] %v1600_v37  ;;  %v2988_v9 = vunpack.c.h.bf16 %v1478_v38  ;;  %v231_v17 = vrot.slane %v230_v3, 2  ;;  %v209_v54 = vmul.f32 %v1596_v44, %v1596_v44  ;;  %v244_v63 = vadd.f32 %v243_v48, %v242_v30 }
  0x35   :  { %v1612_v20 = vsub.f32 %v2984_v5, %v179_v47  ;;  %v1616_v60 = vsub.f32 %v2986_v50, %v180_v35  ;;  %v257_v51 = vrot.slane %v256_v56, 4  ;;  %v264_v57 = vrot.slane %v263_v61, 4 }
  0x36   :  { %v1620_v40 = vsub.f32 %v2988_v9, %v181_v0  ;;  %v210_v32 = vmul.f32 %v1600_v37, %v1600_v37  ;;  %v225_v52 = vadd.f32 %v224_v4, %v223_v28  ;;  %v238_v16 = vrot.slane %v237_v53, 2 }
  0x37   :  { %2985 = vst [vmem:[#allocation8_spill] sm:$0xff] %v1612_v20  ;;  %v270_v7 = vsel %vm46_vm0, %v206_v45, 0.0  ;;  %v219_v14 = vrot.slane %v218_v55, 1  ;;  %v251_v59 = vadd.f32 %v250_v2, %v249_v39  ;;  %v277_v38 = vsel %vm46_vm0, %v207_v6, 0.0 }
  0x38   :  { %2987 = vst [vmem:[#allocation9_spill] sm:$0xff] %v1616_v60  ;;  %v284_v18 = vsel %vm46_vm0, %v208_v29, 0.0  ;;  %v211_v21 = vmul.f32 %v1612_v20, %v1612_v20  ;;  %v212_v15 = vmul.f32 %v1616_v60, %v1616_v60  ;;  %v213_v58 = vmul.f32 %v1620_v40, %v1620_v40 }
  0x39   :  { %2989 = vst [vmem:[#allocation10_spill] sm:$0xff] %v1620_v40  ;;  %v232_v22 = vadd.f32 %v231_v17, %v230_v3  ;;  %v245_v23 = vrot.slane %v244_v63, 2  ;;  %v258_v8 = vadd.f32 %v257_v51, %v256_v56  ;;  %v265_v19 = vadd.f32 %v264_v57, %v263_v61 }
  0x3a   :  { %v271_v27 = vrot.slane %v270_v7, 4  ;;  %v226_v1 = vrot.slane %v225_v52, 1  ;;  %v278_v28 = vrot.slane %v277_v38, 4  ;;  %v285_v46 = vrot.slane %v284_v18, 4 }
  0x3b   :  { %v291_v30 = vsel %vm46_vm0, %v209_v54, 0.0  ;;  %v220_v47 = vadd.f32 %v219_v14, %v218_v55  ;;  %v239_v33 = vadd.f32 %v238_v16, %v237_v53  ;;  %v252_v34 = vrot.slane %v251_v59, 2 }
  0x3c   :  { %v298_v35 = vsel %vm46_vm0, %v210_v32, 0.0  ;;  %v233_v0 = vrot.slane %v232_v22, 1  ;;  %v305_v39 = vsel %vm46_vm0, %v211_v21, 0.0  ;;  %v312_v49 = vsel %vm46_vm0, %v212_v15, 0.0 }
  0x3d   :  { %v319_v3 = vsel %vm46_vm0, %v213_v58, 0.0  ;;  %v246_v26 = vadd.f32 %v245_v23, %v244_v63  ;;  %v259_v45 = vrot.slane %v258_v8, 2  ;;  %v272_v48 = vadd.f32 %v271_v27, %v270_v7 }
  0x3e   :  { %v292_v4 = vrot.slane %v291_v30, 4  ;;  %v227_v56 = vadd.f32 %v226_v1, %v225_v52  ;;  %v279_v61 = vadd.f32 %v278_v28, %v277_v38  ;;  %v286_v6 = vadd.f32 %v285_v46, %v284_v18 }
  0x3f   :  { %v299_v29 = vrot.slane %v298_v35, 4  ;;  %v306_v55 = vrot.slane %v305_v39, 4  ;;  %v313_v53 = vrot.slane %v312_v49, 4  ;;  %v320_v2 = vrot.slane %v319_v3, 4 }
  0x40   :  { %v326_v5 = vmul.f32 %v220_v47, %v1510_v43  ;;  %v234_v50 = vadd.f32 %v233_v0, %v232_v22  ;;  %v240_v9 = vrot.slane %v239_v33, 1  ;;  %v253_v17 = vadd.f32 %v252_v34, %v251_v59 }
  0x41   :  { %v266_v54 = vrot.slane %v265_v19, 2  ;;  %v247_v51 = vrot.slane %v246_v26, 1  ;;  %v260_v57 = vadd.f32 %v259_v45, %v258_v8  ;;  %v273_v32 = vrot.slane %v272_v48, 2 }
  0x42   :  { %v293_v63 = vadd.f32 %v292_v4, %v291_v30  ;;  %v280_v16 = vrot.slane %v279_v61, 2  ;;  %v287_v7 = vrot.slane %v286_v6, 2  ;;  %v300_v14 = vadd.f32 %v299_v29, %v298_v35 }
  0x43   :  { %v327_v52 = vmul.f32 %v227_v56, %v1510_v43  ;;  %v307_v38 = vadd.f32 %v306_v55, %v305_v39  ;;  %v314_v18 = vadd.f32 %v313_v53, %v312_v49  ;;  %v321_v21 = vadd.f32 %v320_v2, %v319_v3 }
  0x44   :  { %v1642_v15 = vadd.f32 1e-05, %v326_v5  ;;  %v241_v58 = vadd.f32 %v240_v9, %v239_v33  ;;  %v254_v23 = vrot.slane %v253_v17, 1  ;;  %v267_v22 = vadd.f32 %v266_v54, %v265_v19 }
  0x45   :  { %v328_v59 = vmul.f32 %v234_v50, %v1510_v43  ;;  %v248_v27 = vadd.f32 %v247_v51, %v246_v26  ;;  %v261_v1 = vrot.slane %v260_v57, 1  ;;  %v274_v8 = vadd.f32 %v273_v32, %v272_v48 }
  0x46   :  { %v294_v28 = vrot.slane %v293_v63, 2  ;;  %v281_v46 = vadd.f32 %v280_v16, %v279_v61  ;;  %v288_v30 = vadd.f32 %v287_v7, %v286_v6  ;;  %v301_v47 = vrot.slane %v300_v14, 2 }
  0x47   :  { %v1645_v34 = vadd.f32 1e-05, %v327_v52  ;;  %v308_v35 = vrot.slane %v307_v38, 2  ;;  %v315_v0 = vrot.slane %v314_v18, 2  ;;  %v322_v39 = vrot.slane %v321_v21, 2 }
  0x48   :  { %1288 = vrsqrt.f32 %v1642_v15  ;;  %v255_v49 = vadd.f32 %v254_v23, %v253_v17  ;;  %v268_v33 = vrot.slane %v267_v22, 1  ;;  %v329_v19 = vmul.f32 %v241_v58, %v1510_v43 }
  0x49   :  { %v1649_v3 = vadd.f32 1e-05, %v328_v59  ;;  %v262_v26 = vadd.f32 %v261_v1, %v260_v57  ;;  %v275_v45 = vrot.slane %v274_v8, 1  ;;  %v330_v48 = vmul.f32 %v248_v27, %v1510_v43 }
  0x4a   :  { %v282_v4 = vrot.slane %v281_v46, 1  ;;  %v295_v56 = vadd.f32 %v294_v28, %v293_v63  ;;  %v302_v61 = vadd.f32 %v301_v47, %v300_v14  ;;  %1290 = vrsqrt.f32 %v1645_v34 }
  0x4b   :  { %v289_v6 = vrot.slane %v288_v30, 1  ;;  %v309_v29 = vadd.f32 %v308_v35, %v307_v38  ;;  %v316_v55 = vadd.f32 %v315_v0, %v314_v18  ;;  %v323_v53 = vadd.f32 %v322_v39, %v321_v21 }
  0x4c   :  { %v269_v2 = vadd.f32 %v268_v33, %v267_v22  ;;  %v331_v5 = vmul.f32 %v255_v49, %v1510_v43  ;;  %v1654_v50 = vadd.f32 1e-05, %v329_v19  ;;  %1292 = vrsqrt.f32 %v1649_v3 }
  0x4d   :  { %v276_v17 = vadd.f32 %v275_v45, %v274_v8  ;;  %v332_v54 = vmul.f32 %v262_v26, %v1510_v43  ;;  %v1660_v51 = vadd.f32 1e-05, %v330_v48  ;;  %v283_v57 = vadd.f32 %v282_v4, %v281_v46 }
  0x4e   :  { %v1657_v9 = vpop.eup %1288  ;;  %v296_v32 = vrot.slane %v295_v56, 1  ;;  %v303_v63 = vrot.slane %v302_v61, 1  ;;  %v290_v16 = vadd.f32 %v289_v6, %v288_v30  ;;  %v310_v7 = vrot.slane %v309_v29, 1 }
  0x4f   :  { %v317_v14 = vrot.slane %v316_v55, 1  ;;  %v324_v52 = vrot.slane %v323_v53, 1  ;;  %v333_v18 = vmul.f32 %v269_v2, %v1510_v43  ;;  %v1665_v21 = vadd.f32 1e-05, %v331_v5 }
  0x50   :  { %v1662_v38 = vpop.eup %1290  ;;  %v359_v58 = vmul.f32 %v1657_v9, %v1642_v15  ;;  %1294 = vrsqrt.f32 %v1654_v50  ;;  %v334_v23 = vmul.f32 %v276_v17, %v1510_v43  ;;  %v1671_v22 = vadd.f32 1e-05, %v332_v54 }
  0x51   :  { %1296 = vrsqrt.f32 %v1660_v51  ;;  %v297_v27 = vadd.f32 %v296_v32, %v295_v56  ;;  %v304_v1 = vadd.f32 %v303_v63, %v302_v61  ;;  %v335_v8 = vmul.f32 %v283_v57, %v1510_v43 }
  0x52   :  { %v1674_v59 = vpop.eup %1292  ;;  %v311_v28 = vadd.f32 %v310_v7, %v309_v29  ;;  %v318_v46 = vadd.f32 %v317_v14, %v316_v55  ;;  %v336_v30 = vmul.f32 %v290_v16, %v1510_v43  ;;  %v369_v47 = vmul.f32 %v1662_v38, %v1645_v34 }
  0x53   :  { %v325_v35 = vadd.f32 %v324_v52, %v323_v53  ;;  %v1680_v0 = vadd.f32 1e-05, %v333_v18  ;;  %v360_v39 = vmul.f32 %v1657_v9, %v359_v58  ;;  %1298 = vrsqrt.f32 %v1665_v21 }
  0x54   :  { %v1684_v49 = vadd.f32 1e-05, %v334_v23  ;;  %v379_v33 = vmul.f32 %v1674_v59, %v1649_v3  ;;  %1300 = vrsqrt.f32 %v1671_v22  ;;  %v337_v26 = vmul.f32 %v297_v27, %v1510_v43 }
  0x55   :  { %v1692_v45 = vadd.f32 1e-05, %v335_v8  ;;  %v338_v4 = vmul.f32 %v304_v1, %v1510_v43  ;;  %v339_v56 = vmul.f32 %v311_v28, %v1510_v43  ;;  %v1698_v61 = vadd.f32 1e-05, %v336_v30 }
  0x56   :  { %v1689_v19 = vpop.eup %1294  ;;  %v370_v6 = vmul.f32 %v1662_v38, %v369_v47  ;;  %v340_v29 = vmul.f32 %v318_v46, %v1510_v43  ;;  %v341_v55 = vmul.f32 %v325_v35, %v1510_v43  ;;  %v361_v53 = vmul.f32 0.5, %v360_v39 }
  0x57   :  { %v1694_v48 = vpop.eup %1296  ;;  %1302 = vrsqrt.f32 %v1680_v0  ;;  %v380_v2 = vmul.f32 %v1674_v59, %v379_v33  ;;  %v389_v5 = vmul.f32 %v1689_v19, %v1654_v50  ;;  %v1710_v54 = vadd.f32 1e-05, %v337_v26 }
  0x58   :  { %1304 = vrsqrt.f32 %v1684_v49  ;;  %vm364_vm2 = vweird.f32 %v1642_v15  ;;  %v399_v57 = vmul.f32 %v1694_v48, %v1660_v51  ;;  %v1718_v32 = vadd.f32 1e-05, %v338_v4 }
  0x59   :  { %v1708_v17 = vpop.eup %1298  ;;  %1306 = vrsqrt.f32 %v1692_v45  ;;  %v1720_v63 = vadd.f32 1e-05, %v339_v56  ;;  %v371_v16 = vmul.f32 0.5, %v370_v6  ;;  %v1723_v7 = vadd.f32 1e-05, %v340_v29 }
  0x5a   :  { %v1716_v43 = vpop.eup %1300  ;;  %1308 = vrsqrt.f32 %v1698_v61  ;;  %v1725_v14 = vadd.f32 1e-05, %v341_v55  ;;  %v362_v52 = vsub.f32 1.5, %v361_v53  ;;  %vm374_vm3 = vweird.f32 %v1645_v34 }
  0x5b   :  { %v381_v18 = vmul.f32 0.5, %v380_v2  ;;  %vm384_vm4 = vweird.f32 %v1649_v3  ;;  %v390_v58 = vmul.f32 %v1689_v19, %v389_v5  ;;  %v409_v23 = vmul.f32 %v1708_v17, %v1665_v21 }
  0x5c   :  { %vm365_vm5 = vweird.f32 %v1657_v9  ;;  %v400_v1 = vmul.f32 %v1694_v48, %v399_v57  ;;  %v419_v8 = vmul.f32 %v1716_v43, %v1671_v22  ;;  %1310 = vrsqrt.f32 %v1710_v54  ;;  %v3033_v57 = vld [vmem:[#allocation2_spill] sm:$0xff] }
  0x5d   :  { %v1732_v27 = vpop.eup %1302  ;;  %v372_v46 = vsub.f32 1.5, %v371_v16  ;;  %vm375_vm6 = vweird.f32 %v1662_v38  ;;  %vm394_vm7 = vweird.f32 %v1654_v50  ;;  %1312 = vrsqrt.f32 %v1718_v32  ;;  %vm1759_vm11 = vmor %vm364_vm2, %vm365_vm5 }
  0x5e   :  { %v1739_v28 = vpop.eup %1304  ;;  %v1747_v47 = vmul.f32 %v1657_v9, %v362_v52  ;;  %vm385_vm8 = vweird.f32 %v1674_v59  ;;  %vm395_vm9 = vweird.f32 %v1689_v19  ;;  %vm404_vm10 = vweird.f32 %v1660_v51  ;;  %vm1789_vm15 = vmor %vm374_vm3, %vm375_vm6 }
  0x5f   :  { %v1744_v30 = vpop.eup %1306  ;;  %1314 = vrsqrt.f32 %v1720_v63  ;;  %v382_v33 = vsub.f32 1.5, %v381_v18  ;;  %v391_v26 = vmul.f32 0.5, %v390_v58  ;;  %v410_v4 = vmul.f32 %v1708_v17, %v409_v23  ;;  %vm1829_vm5 = vmor %vm384_vm4, %vm385_vm8 }
  0x60   :  { %v1753_v35 = vpop.eup %1308  ;;  %1316 = vrsqrt.f32 %v1723_v7  ;;  %v401_v56 = vmul.f32 0.5, %v400_v1  ;;  %vm414_vm12 = vweird.f32 %v1665_v21  ;;  %v420_v6 = vmul.f32 %v1716_v43, %v419_v8  ;;  %vm1850_vm8 = vmor %vm394_vm7, %vm395_vm9 }
  0x61   :  { %v429_v29 = vmul.f32 %v1732_v27, %v1680_v0  ;;  %1318 = vrsqrt.f32 %v1725_v14  ;;  %v1771_v15 = vmul.f32 %v1662_v38, %v372_v46  ;;  %vm405_vm13 = vweird.f32 %v1694_v48 }
  0x62   :  { %vm424_vm14 = vweird.f32 %v1671_v22  ;;  %v439_v55 = vmul.f32 %v1739_v28, %v1684_v49  ;;  %v449_v53 = vmul.f32 %v1744_v30, %v1692_v45  ;;  %v1779_v2 = vpop.eup %1310  ;;  %vm415_vm0 = vweird.f32 %v1708_v17  ;;  %vm1867_vm7 = vmor %vm404_vm10, %vm405_vm13 }
  0x63   :  { %vm425_vm1 = vweird.f32 %v1716_v43  ;;  %vm434_vm2 = vweird.f32 %v1680_v0  ;;  %v459_v16 = vmul.f32 %v1753_v35, %v1698_v61  ;;  %v1798_v52 = vpop.eup %1312  ;;  %v1801_v18 = vmul.f32 %v1674_v59, %v382_v33  ;;  %vm1880_vm9 = vmor %vm414_vm12, %vm415_vm0 }
  0x64   :  { %v392_v58 = vsub.f32 1.5, %v391_v26  ;;  %v411_v34 = vmul.f32 0.5, %v410_v4  ;;  %v469_v23 = vmul.f32 %v1779_v2, %v1710_v54  ;;  %v402_v8 = vsub.f32 1.5, %v401_v56  ;;  %vm1894_vm13 = vmor %vm424_vm14, %vm425_vm1 }
  0x65   :  { %v1806_v1 = vpop.eup %1314  ;;  %v421_v46 = vmul.f32 0.5, %v420_v6  ;;  %v430_v5 = vmul.f32 %v1732_v27, %v429_v29  ;;  %v479_v40 = vmul.f32 %v1798_v52, %v1718_v32  ;;  %v440_v4 = vmul.f32 %v1739_v28, %v439_v55 }
  0x66   :  { %v1812_v33 = vpop.eup %1316  ;;  %v450_v60 = vmul.f32 %v1744_v30, %v449_v53  ;;  %vm464_vm6 = vweird.f32 %v1698_v61  ;;  %v489_v56 = vmul.f32 %v1806_v1, %v1720_v63  ;;  %v2994_v29 = vmov 0 }
  0x67   :  { %v1823_v6 = vpop.eup %1318  ;;  %v2995_v29 = vsel %vm1829_vm5, 4294967295, %v2994_v29  ;;  %v460_v26 = vmul.f32 %v1753_v35, %v459_v16  ;;  %v470_v55 = vmul.f32 %v1779_v2, %v469_v23  ;;  %v480_v53 = vmul.f32 %v1798_v52, %v479_v40 }
  0x68   :  { %v499_v20 = vmul.f32 %v1812_v33, %v1723_v7  ;;  %v1840_v37 = vmul.f32 %v1689_v19, %v392_v58  ;;  %v412_v44 = vsub.f32 1.5, %v411_v34  ;;  %v490_v3 = vmul.f32 %v1806_v1, %v489_v56 }
  0x69   :  { %v509_v16 = vmul.f32 %v1823_v6, %v1725_v14  ;;  %v1855_v23 = vmul.f32 %v1694_v48, %v402_v8  ;;  %v431_v58 = vmul.f32 0.5, %v430_v5  ;;  %vm435_vm3 = vweird.f32 %v1732_v27 }
  0x6a   :  { %v500_v34 = vmul.f32 %v1812_v33, %v499_v20  ;;  %v441_v8 = vmul.f32 0.5, %v440_v4  ;;  %v451_v36 = vmul.f32 0.5, %v450_v60  ;;  %v422_v41 = vsub.f32 1.5, %v421_v46  ;;  %vm1903_vm0 = vmor %vm434_vm2, %vm435_vm3 }
  0x6b   :  { %v510_v5 = vmul.f32 %v1823_v6, %v509_v16  ;;  %v461_v24 = vmul.f32 0.5, %v460_v26  ;;  %v471_v20 = vmul.f32 0.5, %v470_v55  ;;  %v481_v11 = vmul.f32 0.5, %v480_v53 }
  0x6c   :  { %v397_v56 = vsel %vm1850_vm8, %v1689_v19, %v1840_v37  ;;  %vm445_vm10 = vweird.f32 %v1739_v28  ;;  %v491_v60 = vmul.f32 0.5, %v490_v3  ;;  %v501_v46 = vmul.f32 0.5, %v500_v34  ;;  %v3038_v37 = vld [vmem:[#allocation7_spill] sm:$0xff]  ;;  %v3039_v19 = vld [vmem:[#allocation8_spill] sm:$0xff] }
  0x6d   :  { %v407_v26 = vsel %vm1867_vm7, %v1694_v48, %v1855_v23  ;;  %v413_v4 = vmul.f32 %v1708_v17, %v412_v44  ;;  %v432_v21 = vsub.f32 1.5, %v431_v58  ;;  %vm455_vm12 = vweird.f32 %v1744_v30 }
  0x6e   :  { %v442_v44 = vsub.f32 1.5, %v441_v8  ;;  %v452_v48 = vsub.f32 1.5, %v451_v36  ;;  %vm465_vm8 = vweird.f32 %v1753_v35  ;;  %v511_v22 = vmul.f32 0.5, %v510_v5  ;;  %v3041_v36 = vld [vmem:[#allocation10_spill] sm:$0xff] }
  0x6f   :  { %vm3006_vm14 = vweird.f32 %v1684_v49  ;;  %v462_v53 = vsub.f32 1.5, %v461_v24  ;;  %v472_v3 = vsub.f32 1.5, %v471_v20  ;;  %vm475_vm7 = vweird.f32 %v1779_v2 }
  0x70   :  { %vm1910_vm1 = vmor %vm3006_vm14, %vm445_vm10  ;;  %v482_v0 = vsub.f32 1.5, %v481_v11  ;;  %v423_v16 = vmul.f32 %v1716_v43, %v422_v41  ;;  %vm3009_vm2 = vweird.f32 %v1692_v45  ;;  %v492_v49 = vsub.f32 1.5, %v491_v60 }
  0x71   :  { %vm1918_vm3 = vmor %vm3009_vm2, %vm455_vm12  ;;  %v502_v40 = vsub.f32 1.5, %v501_v46  ;;  %v433_v23 = vmul.f32 %v1732_v27, %v432_v21  ;;  %vm494_vm14 = vweird.f32 %v1720_v63  ;;  %vm495_vm5 = vweird.f32 %v1806_v1 }
  0x72   :  { %vm1926_vm10 = vmor %vm464_vm6, %vm465_vm8  ;;  %v443_v11 = vmul.f32 %v1739_v28, %v442_v44  ;;  %v453_v41 = vmul.f32 %v1744_v30, %v452_v48  ;;  %vm3014_vm2 = vweird.f32 %v1710_v54  ;;  %v512_v61 = vsub.f32 1.5, %v511_v22  ;;  %v3040_v48 = vld [vmem:[#allocation9_spill] sm:$0xff] }
  0x73   :  { %vm1937_vm4 = vmor %vm3014_vm2, %vm475_vm7  ;;  %v417_v63 = vsel %vm1880_vm9, %v1708_v17, %v413_v4  ;;  %v463_v58 = vmul.f32 %v1753_v35, %v462_v53  ;;  %v473_v34 = vmul.f32 %v1779_v2, %v472_v3  ;;  %v483_v50 = vmul.f32 %v1798_v52, %v482_v0 }
  0x74   :  { %vm3017_vm8 = vweird.f32 %v1798_v52  ;;  %vm3018_vm7 = vweird.f32 %v1718_v32  ;;  %v493_v8 = vmul.f32 %v1806_v1, %v492_v49  ;;  %vm1957_vm12 = vmor %vm494_vm14, %vm495_vm5  ;;  %v503_v17 = vmul.f32 %v1812_v33, %v502_v40 }
  0x75   :  { %vm1952_vm2 = vmor %vm3018_vm7, %vm3017_vm8  ;;  %vm514_vm9 = vweird.f32 %v1725_v14  ;;  %vm515_vm6 = vweird.f32 %v1823_v6  ;;  %v427_v32 = vsel %vm1894_vm13, %v1716_v43, %v423_v16  ;;  %v437_v20 = vsel %vm1903_vm0, %v1732_v27, %v433_v23  ;;  %v534_v14 = vld [vmem:[%s2950_s1] sm:$0xff] }
  0x76   :  { %vm3023_vm8 = vweird.f32 %v1812_v33  ;;  %vm3024_vm5 = vweird.f32 %v1723_v7  ;;  %v3027_v60 = vsel %vm1759_vm11, %v1657_v9, %v1747_v47  ;;  %v3028_v43 = vsel %vm1789_vm15, %v1662_v38, %v1771_v15  ;;  %vm2014_vm15 = vmor %vm514_vm9, %vm515_vm6 }
  0x77   :  { %vm1974_vm14 = vmor %vm3024_vm5, %vm3023_vm8  ;;  %v518_v46 = vmul.f32 %v3027_v60, %v1516_v10  ;;  %v519_v27 = vmul.f32 %v3028_v43, %v1522_v25  ;;  %v447_v7 = vsel %vm1910_vm1, %v1739_v28, %v443_v11  ;;  %v457_v4 = vsel %vm1918_vm3, %v1744_v30, %v453_v41 }
  0x78   :  { %v513_v39 = vmul.f32 %v1823_v6, %v512_v61  ;;  %vm3029_vm11 = vnez %v2995_v29  ;;  %v467_v25 = vsel %vm1926_vm10, %v1753_v35, %v463_v58  ;;  %v477_v38 = vsel %vm1937_vm4, %v1779_v2, %v473_v34  ;;  %v3035_v29 = vld [vmem:[#allocation4_spill] sm:$0xff] }
  0x79   :  { %v3030_v10 = vsel %vm3029_vm11, %v1674_v59, %v1801_v18  ;;  %v487_v28 = vsel %vm1952_vm2, %v1798_v52, %v483_v50  ;;  %v497_v59 = vsel %vm1957_vm12, %v1806_v1, %v493_v8  ;;  %v507_v47 = vsel %vm1974_vm14, %v1812_v33, %v503_v17  ;;  %v3034_v52 = vld [vmem:[#allocation3_spill] sm:$0xff] }
  0x7a   :  { %v520_v9 = vmul.f32 %v3030_v10, %v1528_v31  ;;  %v521_v31 = vmul.f32 %v397_v56, %v1533_v42  ;;  %v522_v35 = vmul.f32 %v407_v26, %v1545_v12  ;;  %v523_v15 = vmul.f32 %v417_v63, %v1552_v62  ;;  %v3036_v56 = vld [vmem:[#allocation5_spill] sm:$0xff]  ;;  %v3037_v26 = vld [vmem:[#allocation6_spill] sm:$0xff] }
  0x7b   :  { %v524_v2 = vmul.f32 %v427_v32, %v1557_v13  ;;  %v525_v42 = vmul.f32 %v437_v20, %v3033_v57  ;;  %v526_v18 = vmul.f32 %v447_v7, %v3034_v52  ;;  %v527_v1 = vmul.f32 %v457_v4, %v3035_v29 }
  0x7c   :  { %v517_v33 = vsel %vm2014_vm15, %v1823_v6, %v513_v39  ;;  %v528_v12 = vmul.f32 %v467_v25, %v3036_v56  ;;  %v529_v62 = vmul.f32 %v477_v38, %v3037_v26  ;;  %v530_v21 = vmul.f32 %v487_v28, %v3038_v37  ;;  %v551_v6 = vld [vmem:[%s2951_s2] sm:$0xff] }
  0x7d   :  { %v531_v44 = vmul.f32 %v497_v59, %v3039_v19  ;;  %v532_v13 = vmul.f32 %v507_v47, %v3040_v48  ;;  %v535_v22 = vmul.f32 %v534_v14, %v518_v46  ;;  %v536_v55 = vmul.f32 %v534_v14, %v519_v27 }
  0x7e   :  { %v537_v53 = vmul.f32 %v534_v14, %v520_v9  ;;  %v538_v3 = vmul.f32 %v534_v14, %v521_v31  ;;  %v539_v0 = vmul.f32 %v534_v14, %v522_v35  ;;  %v540_v16 = vmul.f32 %v534_v14, %v523_v15 }
  0x7f   :  { %v533_v49 = vmul.f32 %v517_v33, %v3041_v36  ;;  %v541_v40 = vmul.f32 %v534_v14, %v524_v2  ;;  %v542_v23 = vmul.f32 %v534_v14, %v525_v42  ;;  %v543_v24 = vmul.f32 %v534_v14, %v526_v18 }
  0x80   :  { %v544_v11 = vmul.f32 %v534_v14, %v527_v1  ;;  %v545_v41 = vmul.f32 %v534_v14, %v528_v12  ;;  %v546_v45 = vmul.f32 %v534_v14, %v529_v62  ;;  %v547_v61 = vmul.f32 %v534_v14, %v530_v21 }
  0x81   :  { %v548_v63 = vmul.f32 %v534_v14, %v531_v44  ;;  %v549_v58 = vmul.f32 %v534_v14, %v532_v13  ;;  %v552_v34 = vadd.f32 %v551_v6, %v535_v22  ;;  %v553_v50 = vadd.f32 %v551_v6, %v536_v55 }
  0x82   :  { %v554_v54 = vadd.f32 %v551_v6, %v537_v53  ;;  %v555_v8 = vadd.f32 %v551_v6, %v538_v3  ;;  %v556_v5 = vadd.f32 %v551_v6, %v539_v0  ;;  %v557_v17 = vadd.f32 %v551_v6, %v540_v16 }
  0x83   :  { %v550_v32 = vmul.f32 %v534_v14, %v533_v49  ;;  %v558_v20 = vadd.f32 %v551_v6, %v541_v40  ;;  %v559_v51 = vadd.f32 %v551_v6, %v542_v23  ;;  %v560_v60 = vadd.f32 %v551_v6, %v543_v24 }
  0x84   :  { %v561_v46 = vadd.f32 %v551_v6, %v544_v11  ;;  %v562_v43 = vadd.f32 %v551_v6, %v545_v41  ;;  %v563_v27 = vadd.f32 %v551_v6, %v546_v45  ;;  %v2046_v7 = vadd.f32 %v551_v6, %v547_v61 }
  0x85   :  { %v2048_v4 = vadd.f32 %v551_v6, %v548_v63  ;;  %v2050_v39 = vadd.f32 %v551_v6, %v549_v58  ;;  %v2052_v10 = vmul.f32 0.5, %v552_v34  ;;  %v2054_v9 = vmul.f32 0.5, %v553_v50 }
  0x86   :  { %3042 = vst [vmem:[#allocation2_spill] sm:$0xff] %v2046_v7  ;;  %v2056_v25 = vmul.f32 0.5, %v554_v54  ;;  %v2058_v38 = vmul.f32 0.5, %v555_v8  ;;  %v2060_v28 = vmul.f32 0.5, %v556_v5  ;;  %v2062_v30 = vmul.f32 0.5, %v557_v17 }
  0x87   :  { %3043 = vst [vmem:[#allocation3_spill] sm:$0xff] %v2048_v4  ;;  %v2064_v31 = vmul.f32 0.5, %v558_v20  ;;  %v2066_v59 = vmul.f32 0.5, %v559_v51  ;;  %v2068_v47 = vmul.f32 0.5, %v560_v60  ;;  %v2070_v35 = vmul.f32 0.5, %v561_v46 }
  0x88   :  { %3044 = vst [vmem:[#allocation4_spill] sm:$0xff] %v2050_v39  ;;  %v2072_v15 = vmul.f32 0.5, %v562_v43  ;;  %v2074_v14 = vmul.f32 0.5, %v563_v27  ;;  %v584_v2 = vmul.f32 0.70710677, %v552_v34  ;;  %v2076_v42 = vadd.f32 %v551_v6, %v550_v32 }
  0x89   :  { %3045 = vst [vmem:[#allocation5_spill] sm:$0xff] %v2052_v10  ;;  %v585_v57 = vmul.f32 0.70710677, %v553_v50  ;;  %v586_v52 = vmul.f32 0.70710677, %v554_v54  ;;  %v1385_v6 = vmov -1.0  }
  0x8a   :  { %3046 = vst [vmem:[#allocation6_spill] sm:$0xff] %v2054_v9  ;;  %v587_v18 = vmul.f32 0.70710677, %v555_v8  ;;  %v588_v29 = vmul.f32 0.70710677, %v556_v5  ;;  %vm600_vm4 = vcmp.ge.f32.partialorder %v584_v2, 0.0 }
  0x8b   :  { %3047 = vst [vmem:[#allocation7_spill] sm:$0xff] %v2056_v25  ;;  %v589_v1 = vmul.f32 0.70710677, %v557_v17  ;;  %v590_v33 = vmul.f32 0.70710677, %v558_v20  ;;  %vm601_vm13 = vcmp.ge.f32.partialorder %v585_v57, 0.0 }
  0x8c   :  { %3048 = vst [vmem:[#allocation8_spill] sm:$0xff] %v2058_v38  ;;  %v591_v56 = vmul.f32 0.70710677, %v559_v51  ;;  %v592_v12 = vmul.f32 0.70710677, %v560_v60  ;;  %vm602_vm0 = vcmp.ge.f32.partialorder %v586_v52, 0.0 }
  0x8d   :  { %3049 = vst [vmem:[#allocation9_spill] sm:$0xff] %v2060_v28  ;;  %v593_v26 = vmul.f32 0.70710677, %v561_v46  ;;  %v594_v62 = vmul.f32 0.70710677, %v562_v43  ;;  %vm603_vm1 = vcmp.ge.f32.partialorder %v587_v18, 0.0 }
  0x8e   :  { %3050 = vst [vmem:[#allocation10_spill] sm:$0xff] %v2062_v30  ;;  %v2078_v37 = vmul.f32 0.70710677, %v563_v27  ;;  %v2081_v21 = vmul.f32 0.70710677, %v2046_v7  ;;  %vm604_vm3 = vcmp.ge.f32.partialorder %v588_v29, 0.0 }
  0x8f   :  { %3051 = vst [vmem:[#allocation11_spill] sm:$0xff] %v2064_v31  ;;  %v2084_v19 = vmul.f32 0.70710677, %v2048_v4  ;;  %v2087_v44 = vmul.f32 0.70710677, %v2050_v39  ;;  %vm605_vm10 = vcmp.ge.f32.partialorder %v589_v1, 0.0 }
  0x90   :  { %3052 = vst [vmem:[#allocation12_spill] sm:$0xff] %v2066_v59  ;;  %v2090_v48 = vmul.f32 0.70710677, %v2076_v42  ;;  %v2092_v13 = vand.u32 2147483647, %v584_v2  ;;  %vm606_vm12 = vcmp.ge.f32.partialorder %v590_v33, 0.0 }
  0x91   :  { %3053 = vst [vmem:[#allocation13_spill] sm:$0xff] %v2068_v47  ;;  %v2094_v22 = vand.u32 2147483647, %v585_v57  ;;  %v2096_v55 = vand.u32 2147483647, %v586_v52  ;;  %vm607_vm6 = vcmp.ge.f32.partialorder %v591_v56, 0.0 }
  0x92   :  { %3054 = vst [vmem:[#allocation14_spill] sm:$0xff] %v2070_v35  ;;  %vm608_vm7 = vcmp.ge.f32.partialorder %v592_v12, 0.0  ;;  %vm609_vm2 = vcmp.ge.f32.partialorder %v593_v26, 0.0  ;;  %vm610_vm9 = vcmp.ge.f32.partialorder %v594_v62, 0.0  ;;  %v2098_v53 = vand.u32 2147483647, %v587_v18 }
  0x93   :  { %3055 = vst [vmem:[#allocation15_spill] sm:$0xff] %v2072_v15  ;;  %v648_v3 = vmul.f32 0.3275911, %v2092_v13  ;;  %vm611_vm8 = vcmp.ge.f32.partialorder %v2078_v37, 0.0  ;;  %vm612_vm5 = vcmp.ge.f32.partialorder %v2081_v21, 0.0  ;;  %v2107_v36 = vsel %vm600_vm4, 1.0, %v1385_v6 }
  0x94   :  { %3056 = vst [vmem:[#allocation16_spill] sm:$0xff] %v2074_v14  ;;  %v2103_v0 = vand.u32 2147483647, %v588_v29  ;;  %v649_v16 = vmul.f32 0.3275911, %v2094_v22  ;;  %v2110_v49 = vsel %vm601_vm13, 1.0, %v1385_v6 }
  0x95   :  { %3057 = vst [vmem:[#allocation17_spill] sm:$0xff] %v2076_v42  ;;  %v2113_v40 = vsel %vm602_vm0, 1.0, %v1385_v6  ;;  %v650_v23 = vmul.f32 0.3275911, %v2096_v55  ;;  %vm613_vm14 = vcmp.ge.f32.partialorder %v2084_v19, 0.0  ;;  %v2118_v24 = vsel %vm603_vm1, 1.0, %v1385_v6 }
  0x96   :  { %3058 = vst [vmem:[#allocation18_spill] sm:$0xff] %v2107_v36  ;;  %v2121_v11 = vsel %vm604_vm3, 1.0, %v1385_v6  ;;  %v2124_v41 = vsel %vm605_vm10, 1.0, %v1385_v6  ;;  %v2126_v45 = vand.u32 2147483647, %v589_v1  ;;  %vm614_vm11 = vcmp.ge.f32.partialorder %v2087_v44, 0.0 }
  0x97   :  { %3059 = vst [vmem:[#allocation19_spill] sm:$0xff] %v2110_v49  ;;  %vm615_vm15 = vcmp.ge.f32.partialorder %v2090_v48, 0.0  ;;  %v2131_v61 = vsel %vm606_vm12, 1.0, %v1385_v6  ;;  %v2134_v63 = vsel %vm607_vm6, 1.0, %v1385_v6  ;;  %v651_v58 = vmul.f32 0.3275911, %v2098_v53 }
  0x98   :  { %3060 = vst [vmem:[#allocation20_spill] sm:$0xff] %v2113_v40  ;;  %v2137_v34 = vadd.f32 1.0, %v648_v3  ;;  %v2140_v50 = vsel %vm608_vm7, 1.0, %v1385_v6  ;;  %v2143_v54 = vsel %vm609_vm2, 1.0, %v1385_v6  ;;  %v652_v8 = vmul.f32 0.3275911, %v2103_v0 }
  0x99   :  { %3061 = vst [vmem:[#allocation21_spill] sm:$0xff] %v2118_v24  ;;  %v2146_v5 = vadd.f32 1.0, %v649_v16  ;;  %v2149_v17 = vsel %vm610_vm9, 1.0, %v1385_v6  ;;  %v2151_v32 = vand.u32 2147483647, %v590_v33  ;;  %v2155_v51 = vadd.f32 1.0, %v650_v23 }
  0x9a   :  { %3062 = vst [vmem:[#allocation22_spill] sm:$0xff] %v2121_v11  ;;  %v2153_v20 = vand.u32 2147483647, %v591_v56  ;;  %v2157_v60 = vand.u32 2147483647, %v592_v12  ;;  %v2167_v57 = vadd.f32 1.0, %v651_v58  ;;  %1320 = vrcp.f32 %v2137_v34 }
  0x9b   :  { %3063 = vst [vmem:[#allocation23_spill] sm:$0xff] %v2124_v41  ;;  %v2159_v46 = vand.u32 2147483647, %v593_v26  ;;  %v653_v43 = vmul.f32 0.3275911, %v2126_v45  ;;  %v2176_v29 = vadd.f32 1.0, %v652_v8  ;;  %1322 = vrcp.f32 %v2146_v5 }
  0x9c   :  { %3064 = vst [vmem:[#allocation24_spill] sm:$0xff] %v2131_v61  ;;  %v2162_v27 = vand.u32 2147483647, %v594_v62  ;;  %v2165_v2 = vand.u32 2147483647, %v2078_v37  ;;  %1324 = vrcp.f32 %v2155_v51  ;;  %v2189_v12 = vsel %vm611_vm8, 1.0, %v1385_v6 }
  0x9d   :  { %3065 = vst [vmem:[#allocation25_spill] sm:$0xff] %v2134_v63  ;;  %v2171_v52 = vand.u32 2147483647, %v2081_v21  ;;  %v2174_v18 = vand.u32 2147483647, %v2084_v19  ;;  %v2193_v26 = vsel %vm612_vm5, 1.0, %v1385_v6  ;;  %1326 = vrcp.f32 %v2167_v57 }
  0x9e   :  { %3066 = vst [vmem:[#allocation26_spill] sm:$0xff] %v2140_v50  ;;  %v2180_v1 = vand.u32 2147483647, %v2087_v44  ;;  %v2183_v33 = vand.u32 2147483647, %v2090_v48  ;;  %v2196_v3 = vadd.f32 1.0, %v653_v43  ;;  %1328 = vrcp.f32 %v2176_v29 }
  0x9f   :  { %3067 = vst [vmem:[#allocation27_spill] sm:$0xff] %v2143_v54  ;;  %v654_v56 = vmul.f32 0.3275911, %v2151_v32  ;;  %v655_v62 = vmul.f32 0.3275911, %v2153_v20  ;;  %v2210_v43 = vsel %vm613_vm14, 1.0, %v1385_v6  ;;  %vm685_vm4 = vweird.f32 %v2137_v34 }
  0xa0   :  { %3068 = vst [vmem:[#allocation28_spill] sm:$0xff] %v2149_v17  ;;  %v656_v16 = vmul.f32 0.3275911, %v2157_v60  ;;  %v657_v23 = vmul.f32 0.3275911, %v2159_v46  ;;  %v2206_v14 = vpop.eup %1320  ;;  %v2220_v4 = vsel %vm614_vm11, 1.0, %v1385_v6  ;;  %1330 = vrcp.f32 %v2196_v3 }
  0xa1   :  { %3069 = vst [vmem:[#allocation29_spill] sm:$0xff] %v2183_v33  ;;  %v658_v58 = vmul.f32 0.3275911, %v2162_v27  ;;  %v659_v37 = vmul.f32 0.3275911, %v2165_v2  ;;  %v2214_v39 = vadd.f32 1.0, %v654_v56  ;;  %v2216_v35 = vpop.eup %1322  ;;  %v681_v44 = vmul.f32 %v2206_v14, %v2137_v34 }
  0xa2   :  { %3070 = vst [vmem:[#allocation30_spill] sm:$0xff] %v2189_v12  ;;  %v660_v8 = vmul.f32 0.3275911, %v2171_v52  ;;  %v661_v21 = vmul.f32 0.3275911, %v2174_v18  ;;  %v2224_v47 = vsel %vm615_vm15, 1.0, %v1385_v6  ;;  %v2229_v19 = vpop.eup %1324  ;;  %vm700_vm13 = vweird.f32 %v2146_v5 }
  0xa3   :  { %3071 = vst [vmem:[#allocation31_spill] sm:$0xff] %v2193_v26  ;;  %v662_v42 = vmul.f32 0.3275911, %v2180_v1  ;;  %v663_v15 = vmul.f32 0.3275911, %v2183_v33  ;;  %v2226_v7 = vadd.f32 1.0, %v655_v62  ;;  %v696_v62 = vmul.f32 %v2216_v35, %v2146_v5 }
  0xa4   :  { %3072 = vst [vmem:[#allocation32_spill] sm:$0xff] %v2210_v43  ;;  %v2231_v59 = vadd.f32 1.0, %v656_v16  ;;  %v2233_v56 = vadd.f32 1.0, %v657_v23  ;;  %v2235_v31 = vadd.f32 1.0, %v658_v58  ;;  %v2239_v30 = vadd.f32 1.0, %v659_v37 }
  0xa5   :  { %3073 = vst [vmem:[#allocation33_spill] sm:$0xff] %v2220_v4  ;;  %v2241_v48 = vadd.f32 1.0, %v660_v8  ;;  %v2243_v6 = vadd.f32 1.0, %v661_v21  ;;  %v2249_v16 = vadd.f32 1.0, %v662_v42  ;;  %v2251_v23 = vadd.f32 1.0, %v663_v15 }
  0xa6   :  { %3074 = vst [vmem:[#allocation34_spill] sm:$0xff] %v2224_v47  ;;  %v2247_v47 = vpop.eup %1326  ;;  %v711_v58 = vmul.f32 %v2229_v19, %v2155_v51  ;;  %1332 = vrcp.f32 %v2214_v39  ;;  %v691_v8 = vand.u32 2147483648, %v2137_v34  ;;  %v706_v21 = vand.u32 2147483648, %v2146_v5 }
  0xa7   :  { %v2256_v37 = vpop.eup %1328  ;;  %v726_v4 = vmul.f32 %v2247_v47, %v2167_v57  ;;  %v682_v42 = vsub.f32 1.0, %v681_v44  ;;  %v689_v15 = vand.u32 2147483647, %v2137_v34  ;;  %v721_v28 = vand.u32 2147483648, %v2155_v51 }
  0xa8   :  { %v741_v43 = vmul.f32 %v2256_v37, %v2176_v29  ;;  %v2267_v26 = vpop.eup %1330  ;;  %v697_v38 = vsub.f32 1.0, %v696_v62  ;;  %v704_v25 = vand.u32 2147483647, %v2146_v5  ;;  %vm715_vm0 = vweird.f32 %v2155_v51 }
  0xa9   :  { %v712_v9 = vsub.f32 1.0, %v711_v58  ;;  %v719_v10 = vand.u32 2147483647, %v2155_v51  ;;  %v727_v44 = vsub.f32 1.0, %v726_v4  ;;  %v734_v12 = vand.u32 2147483647, %v2167_v57 }
  0xaa   :  { %v2274_v17 = vor.u32 1.1754944e-38, %v691_v8  ;;  %v2276_v54 = vor.u32 1.1754944e-38, %v706_v21  ;;  %v742_v50 = vsub.f32 1.0, %v741_v43  ;;  %v756_v62 = vmul.f32 %v2267_v26, %v2196_v3 }
  0xab   :  { %v683_v61 = vmul.f32 %v2206_v14, %v682_v42  ;;  %v2283_v41 = vor.u32 1.1754944e-38, %v721_v28  ;;  %vm730_vm1 = vweird.f32 %v2167_v57  ;;  %v736_v4 = vand.u32 2147483648, %v2167_v57 }
  0xac   :  { %v2280_v63 = vpop.eup %1332  ;;  %vm686_vm3 = vweird.f32 %v2206_v14  ;;  %vm2288_vm10 = vcmp.eq.f32.partialorder %v689_v15, 8.507059e+37  ;;  %v698_v43 = vmul.f32 %v2216_v35, %v697_v38  ;;  %vm2293_vm12 = vcmp.eq.f32.partialorder %v704_v25, 8.507059e+37 }
  0xad   :  { %v749_v21 = vand.u32 2147483647, %v2176_v29  ;;  %v771_v28 = vmul.f32 %v2280_v63, %v2214_v39  ;;  %vm701_vm6 = vweird.f32 %v2216_v35  ;;  %v713_v42 = vmul.f32 %v2229_v19, %v712_v9  ;;  %vm2320_vm5 = vmor %vm685_vm4, %vm686_vm3 }
  0xae   :  { %vm2302_vm7 = vcmp.eq.f32.partialorder %v719_v10, 8.507059e+37  ;;  %v728_v11 = vmul.f32 %v2247_v47, %v727_v44  ;;  %vm2307_vm2 = vcmp.eq.f32.partialorder %v734_v12, 8.507059e+37  ;;  %v751_v38 = vand.u32 2147483648, %v2176_v29  ;;  %vm2332_vm11 = vmor %vm700_vm13, %vm701_vm6 }
  0xaf   :  { %vm716_vm9 = vweird.f32 %v2229_v19  ;;  %v743_v24 = vmul.f32 %v2256_v37, %v742_v50  ;;  %vm745_vm8 = vweird.f32 %v2176_v29  ;;  %v757_v40 = vsub.f32 1.0, %v756_v62 }
  0xb0   :  { %v684_v10 = vadd.f32 %v2206_v14, %v683_v61  ;;  %vm731_vm14 = vweird.f32 %v2247_v47  ;;  %v764_v12 = vand.u32 2147483647, %v2196_v3  ;;  %1334 = vrcp.f32 %v2226_v7  ;;  %vm2342_vm4 = vmor %vm715_vm0, %vm716_vm9 }
  0xb1   :  { %v699_v50 = vadd.f32 %v2216_v35, %v698_v43  ;;  %v737_v34 = vor.u32 1.1754944e-38, %v736_v4  ;;  %vm746_vm15 = vweird.f32 %v2256_v37  ;;  %v772_v44 = vsub.f32 1.0, %v771_v28  ;;  %vm2353_vm3 = vmor %vm730_vm1, %vm731_vm14 }
  0xb2   :  { %v714_v62 = vadd.f32 %v2229_v19, %v713_v42  ;;  %v729_v5 = vadd.f32 %v2247_v47, %v728_v11  ;;  %vm2347_vm13 = vcmp.eq.f32.partialorder %v749_v21, 8.507059e+37  ;;  %v752_v4 = vor.u32 1.1754944e-38, %v751_v38  ;;  %vm2366_vm6 = vmor %vm745_vm8, %vm746_vm15 }
  0xb3   :  { %v744_v42 = vadd.f32 %v2256_v37, %v743_v24  ;;  %v758_v51 = vmul.f32 %v2267_v26, %v757_v40  ;;  %vm760_vm0 = vweird.f32 %v2196_v3  ;;  %1336 = vrcp.f32 %v2231_v59 }
  0xb4   :  { %v688_v11 = vsel %vm2320_vm5, %v2206_v14, %v684_v10  ;;  %vm761_vm1 = vweird.f32 %v2267_v26  ;;  %vm2371_vm9 = vcmp.eq.f32.partialorder %v764_v12, 8.507059e+37  ;;  %v766_v40 = vand.u32 2147483648, %v2196_v3 }
  0xb5   :  { %v703_v21 = vsel %vm2332_vm11, %v2216_v35, %v699_v50  ;;  %v773_v14 = vmul.f32 %v2280_v63, %v772_v44  ;;  %vm775_vm5 = vweird.f32 %v2214_v39  ;;  %1338 = vrcp.f32 %v2233_v56  ;;  %vm2412_vm14 = vmor %vm760_vm0, %vm761_vm1 }
  0xb6   :  { %v2382_v29 = vpop.eup %1334  ;;  %v718_v38 = vsel %vm2342_vm4, %v2229_v19, %v714_v62  ;;  %v733_v10 = vsel %vm2353_vm3, %v2247_v47, %v729_v5  ;;  %v779_v9 = vand.u32 2147483647, %v2214_v39  ;;  %v781_v35 = vand.u32 2147483648, %v2214_v39 }
  0xb7   :  { %v748_v12 = vsel %vm2366_vm6, %v2256_v37, %v744_v42  ;;  %v759_v50 = vadd.f32 %v2267_v26, %v758_v51  ;;  %vm776_vm8 = vweird.f32 %v2280_v63  ;;  %1340 = vrcp.f32 %v2235_v31 }
  0xb8   :  { %v2401_v19 = vsel %vm2288_vm10, %v2274_v17, %v688_v11  ;;  %v2406_v47 = vsel %vm2293_vm12, %v2276_v54, %v703_v21  ;;  %v767_v61 = vor.u32 1.1754944e-38, %v766_v40  ;;  %v786_v44 = vmul.f32 %v2382_v29, %v2226_v7  ;;  %vm2437_vm10 = vmor %vm775_vm5, %vm776_vm8 }
  0xb9   :  { %v2418_v58 = vpop.eup %1336  ;;  %v2423_v17 = vsel %vm2302_vm7, %v2283_v41, %v718_v38  ;;  %v2427_v54 = vsel %vm2307_vm2, %v737_v34, %v733_v10  ;;  %v774_v3 = vadd.f32 %v2280_v63, %v773_v14  ;;  %1342 = vrcp.f32 %v2239_v30 }
  0xba   :  { %v2433_v8 = vsel %vm2347_vm13, %v752_v4, %v748_v12  ;;  %vm2441_vm12 = vcmp.eq.f32.partialorder %v779_v9, 8.507059e+37  ;;  %v782_v15 = vor.u32 1.1754944e-38, %v781_v35  ;;  %v801_v25 = vmul.f32 %v2418_v58, %v2231_v59 }
  0xbb   :  { %v2447_v34 = vpop.eup %1338  ;;  %v763_v49 = vsel %vm2412_vm14, %v2267_v26, %v759_v50  ;;  %vm790_vm7 = vweird.f32 %v2226_v7  ;;  %v796_v39 = vand.u32 2147483648, %v2226_v7  ;;  %1344 = vrcp.f32 %v2241_v48 }
  0xbc   :  { %v787_v43 = vsub.f32 1.0, %v786_v44  ;;  %v794_v5 = vand.u32 2147483647, %v2226_v7  ;;  %v811_v4 = vand.u32 2147483648, %v2231_v59  ;;  %v816_v28 = vmul.f32 %v2447_v34, %v2233_v56 }
  0xbd   :  { %v2459_v42 = vpop.eup %1340  ;;  %v778_v26 = vsel %vm2437_vm10, %v2280_v63, %v774_v3  ;;  %v802_v51 = vsub.f32 1.0, %v801_v25  ;;  %v809_v11 = vand.u32 2147483647, %v2231_v59  ;;  %v826_v57 = vand.u32 2147483648, %v2233_v56 }
  0xbe   :  { %v2468_v40 = vsel %vm2371_vm9, %v767_v61, %v763_v49  ;;  %v817_v21 = vsub.f32 1.0, %v816_v28  ;;  %v824_v14 = vand.u32 2147483647, %v2233_v56  ;;  %v831_v38 = vmul.f32 %v2459_v42, %v2235_v31 }
  0xbf   :  { %v2473_v10 = vpop.eup %1342  ;;  %v797_v9 = vor.u32 1.1754944e-38, %v796_v39  ;;  %vm805_vm2 = vweird.f32 %v2231_v59  ;;  %vm820_vm11 = vweird.f32 %v2233_v56  ;;  %1346 = vrcp.f32 %v2243_v6 }
  0xc0   :  { %v2480_v63 = vsel %vm2441_vm12, %v782_v15, %v778_v26  ;;  %v788_v24 = vmul.f32 %v2382_v29, %v787_v43  ;;  %vm791_vm15 = vweird.f32 %v2382_v29  ;;  %vm2484_vm4 = vcmp.eq.f32.partialorder %v794_v5, 8.507059e+37 }
  0xc1   :  { %v812_v12 = vor.u32 1.1754944e-38, %v811_v4  ;;  %v2488_v50 = vpop.eup %1344  ;;  %v803_v37 = vmul.f32 %v2418_v58, %v802_v51  ;;  %vm2491_vm13 = vcmp.eq.f32.partialorder %v809_v11, 8.507059e+37  ;;  %v827_v44 = vor.u32 1.1754944e-38, %v826_v57  ;;  %vm2518_vm5 = vmor %vm790_vm7, %vm791_vm15 }
  0xc2   :  { %v841_v3 = vand.u32 2147483648, %v2235_v31  ;;  %v846_v62 = vmul.f32 %v2473_v10, %v2239_v30  ;;  %v818_v41 = vmul.f32 %v2447_v34, %v817_v21  ;;  %vm2499_vm3 = vcmp.eq.f32.partialorder %v824_v14, 8.507059e+37 }
  0xc3   :  { %v832_v25 = vsub.f32 1.0, %v831_v38  ;;  %vm835_vm0 = vweird.f32 %v2235_v31  ;;  %v861_v49 = vmul.f32 %v2488_v50, %v2241_v48  ;;  %vm806_vm6 = vweird.f32 %v2418_v58 }
  0xc4   :  { %v839_v39 = vand.u32 2147483647, %v2235_v31  ;;  %v847_v43 = vsub.f32 1.0, %v846_v62  ;;  %vm850_vm1 = vweird.f32 %v2239_v30  ;;  %v789_v5 = vadd.f32 %v2382_v29, %v788_v24  ;;  %vm2527_vm8 = vmor %vm805_vm2, %vm806_vm6 }
  0xc5   :  { %vm821_vm9 = vweird.f32 %v2447_v34  ;;  %v854_v4 = vand.u32 2147483647, %v2239_v30  ;;  %v862_v28 = vsub.f32 1.0, %v861_v49  ;;  %v2512_v26 = vpop.eup %1346  ;;  %v804_v11 = vadd.f32 %v2418_v58, %v803_v37 }
  0xc6   :  { %v842_v57 = vor.u32 1.1754944e-38, %v841_v3  ;;  %v856_v21 = vand.u32 2147483648, %v2239_v30  ;;  %1348 = vrcp.f32 %v2249_v16  ;;  %v819_v38 = vadd.f32 %v2447_v34, %v818_v41  ;;  %vm2538_vm14 = vmor %vm820_vm11, %vm821_vm9 }
  0xc7   :  { %v833_v7 = vmul.f32 %v2459_v42, %v832_v25  ;;  %v869_v24 = vand.u32 2147483647, %v2241_v48  ;;  %v876_v37 = vmul.f32 %v2512_v26, %v2243_v6  ;;  %vm836_vm10 = vweird.f32 %v2459_v42 }
  0xc8   :  { %vm2543_vm12 = vcmp.eq.f32.partialorder %v839_v39, 8.507059e+37  ;;  %v848_v62 = vmul.f32 %v2473_v10, %v847_v43  ;;  %vm865_vm7 = vweird.f32 %v2241_v48  ;;  %v871_v41 = vand.u32 2147483648, %v2241_v48  ;;  %vm2583_vm9 = vmor %vm835_vm0, %vm836_vm10 }
  0xc9   :  { %v793_v56 = vsel %vm2518_vm5, %v2382_v29, %v789_v5  ;;  %vm2553_vm2 = vcmp.eq.f32.partialorder %v854_v4, 8.507059e+37  ;;  %v863_v49 = vmul.f32 %v2488_v50, %v862_v28  ;;  %v877_v39 = vsub.f32 1.0, %v876_v37 }
  0xca   :  { %1350 = vrcp.f32 %v2251_v23  ;;  %v808_v43 = vsel %vm2527_vm8, %v2418_v58, %v804_v11  ;;  %vm851_vm11 = vweird.f32 %v2473_v10  ;;  %v857_v36 = vor.u32 1.1754944e-38, %v856_v21 }
  0xcb   :  { %v884_v33 = vand.u32 2147483647, %v2243_v6  ;;  %v823_v29 = vsel %vm2538_vm14, %v2447_v34, %v819_v38  ;;  %v834_v5 = vadd.f32 %v2459_v42, %v833_v7  ;;  %vm866_vm15 = vweird.f32 %v2488_v50 }
  0xcc   :  { %vm2569_vm6 = vcmp.eq.f32.partialorder %v869_v24, 8.507059e+37  ;;  %v2573_v28 = vpop.eup %1348  ;;  %v2577_v58 = vsel %vm2484_vm4, %v797_v9, %v793_v56  ;;  %v849_v51 = vadd.f32 %v2473_v10, %v848_v62  ;;  %v872_v11 = vor.u32 1.1754944e-38, %v871_v41  ;;  %vm2595_vm4 = vmor %vm850_vm1, %vm851_vm11 }
  0xcd   :  { %vm880_vm5 = vweird.f32 %v2243_v6  ;;  %v2591_v21 = vsel %vm2491_vm13, %v812_v12, %v808_v43  ;;  %v864_v31 = vadd.f32 %v2488_v50, %v863_v49  ;;  %v878_v35 = vmul.f32 %v2512_v26, %v877_v39  ;;  %vm2609_vm13 = vmor %vm865_vm7, %vm866_vm15 }
  0xce   :  { %v891_v14 = vmul.f32 %v2573_v28, %v2249_v16  ;;  %v2605_v38 = vsel %vm2499_vm3, %v827_v44, %v823_v29  ;;  %vm2613_vm0 = vcmp.eq.f32.partialorder %v884_v33, 8.507059e+37  ;;  %v886_v61 = vand.u32 2147483648, %v2243_v6 }
  0xcf   :  { %vm895_vm1 = vweird.f32 %v2249_v16  ;;  %v838_v44 = vsel %vm2583_vm9, %v2459_v42, %v834_v5  ;;  %vm881_vm3 = vweird.f32 %v2512_v26  ;;  %v899_v15 = vand.u32 2147483647, %v2249_v16 }
  0xd0   :  { %v1351_v7 = vpop.eup %1350  ;;  %v892_v48 = vsub.f32 1.0, %v891_v14  ;;  %v853_v33 = vsel %vm2595_vm4, %v2473_v10, %v849_v51  ;;  %v901_v24 = vand.u32 2147483648, %v2249_v16  ;;  %v914_v3 = vand.u32 2147483647, %v2251_v23  ;;  %vm2638_vm14 = vmor %vm880_vm5, %vm881_vm3 }
  0xd1   :  { %v906_v37 = vmul.f32 %v1351_v7, %v2251_v23  ;;  %v868_v62 = vsel %vm2609_vm13, %v2488_v50, %v864_v31  ;;  %v879_v42 = vadd.f32 %v2512_v26, %v878_v35  ;;  %vm896_vm8 = vweird.f32 %v2573_v28 }
  0xd2   :  { %v893_v41 = vmul.f32 %v2573_v28, %v892_v48  ;;  %vm910_vm10 = vweird.f32 %v2251_v23  ;;  %vm911_vm7 = vweird.f32 %v1351_v7  ;;  %v916_v49 = vand.u32 2147483648, %v2251_v23  ;;  %vm2663_vm15 = vmor %vm895_vm1, %vm896_vm8 }
  0xd3   :  { %v907_v56 = vsub.f32 1.0, %v906_v37  ;;  %v2646_v50 = vsel %vm2543_vm12, %v842_v57, %v838_v44  ;;  %v887_v39 = vor.u32 1.1754944e-38, %v886_v61  ;;  %vm2649_vm11 = vcmp.eq.f32.partialorder %v899_v15, 8.507059e+37  ;;  %vm2670_vm12 = vmor %vm910_vm10, %vm911_vm7 }
  0xd4   :  { %v894_v43 = vadd.f32 %v2573_v28, %v893_v41  ;;  %v2655_v6 = vsel %vm2553_vm2, %v857_v36, %v853_v33  ;;  %v2659_v5 = vsel %vm2569_vm6, %v872_v11, %v868_v62  ;;  %v902_v57 = vor.u32 1.1754944e-38, %v901_v24 }
  0xd5   :  { %v908_v59 = vmul.f32 %v1351_v7, %v907_v56  ;;  %v883_v34 = vsel %vm2638_vm14, %v2512_v26, %v879_v42  ;;  %vm2674_vm2 = vcmp.eq.f32.partialorder %v914_v3, 8.507059e+37  ;;  %v920_v16 = vmul.f32 1.0614054, %v2401_v19 }
  0xd6   :  { %v921_v4 = vmul.f32 1.0614054, %v2406_v47  ;;  %v917_v11 = vor.u32 1.1754944e-38, %v916_v49  ;;  %v922_v9 = vmul.f32 1.0614054, %v2423_v17  ;;  %v898_v26 = vsel %vm2663_vm15, %v2573_v28, %v894_v43 }
  0xd7   :  { %v909_v51 = vadd.f32 %v1351_v7, %v908_v59  ;;  %v923_v31 = vmul.f32 1.0614054, %v2427_v54  ;;  %v924_v35 = vmul.f32 1.0614054, %v2433_v8  ;;  %v925_v14 = vmul.f32 1.0614054, %v2468_v40 }
  0xd8   :  { %v2690_v61 = vsel %vm2613_vm0, %v887_v39, %v883_v34  ;;  %v926_v48 = vmul.f32 1.0614054, %v2480_v63  ;;  %v927_v15 = vmul.f32 1.0614054, %v2577_v58  ;;  %v928_v33 = vmul.f32 1.0614054, %v2591_v21 }
  0xd9   :  { %v913_v44 = vsel %vm2670_vm12, %v1351_v7, %v909_v51  ;;  %v929_v28 = vmul.f32 1.0614054, %v2605_v38  ;;  %v930_v24 = vmul.f32 1.0614054, %v2646_v50  ;;  %v2701_v37 = vsel %vm2649_vm11, %v902_v57, %v898_v26 }
  0xda   :  { %v931_v30 = vmul.f32 1.0614054, %v2655_v6  ;;  %v932_v3 = vmul.f32 1.0614054, %v2659_v5  ;;  %v2708_v62 = vsel %vm2674_vm2, %v917_v11, %v913_v44  ;;  %v933_v42 = vmul.f32 1.0614054, %v2690_v61 }
  0xdb   :  { %v936_v41 = vadd.f32 -1.4531521, %v920_v16  ;;  %v937_v10 = vadd.f32 -1.4531521, %v921_v4  ;;  %v938_v56 = vadd.f32 -1.4531521, %v922_v9 }
  0xdc   :  { %v939_v49 = vadd.f32 -1.4531521, %v923_v31  ;;  %v940_v39 = vadd.f32 -1.4531521, %v924_v35  ;;  %v934_v43 = vmul.f32 1.0614054, %v2701_v37 }
  0xdd   :  { %v941_v29 = vadd.f32 -1.4531521, %v925_v14  ;;  %v942_v23 = vadd.f32 -1.4531521, %v926_v48  ;;  %v935_v57 = vmul.f32 1.0614054, %v2708_v62  ;;  %v952_v44 = vmul.f32 %v936_v41, %v2401_v19 }
  0xde   :  { %v943_v59 = vadd.f32 -1.4531521, %v927_v15  ;;  %v944_v34 = vadd.f32 -1.4531521, %v928_v33  ;;  %v945_v25 = vadd.f32 -1.4531521, %v929_v28  ;;  %v953_v16 = vmul.f32 %v937_v10, %v2406_v47 }
  0xdf   :  { %v946_v51 = vadd.f32 -1.4531521, %v930_v24  ;;  %v947_v36 = vadd.f32 -1.4531521, %v931_v30  ;;  %v948_v11 = vadd.f32 -1.4531521, %v932_v3  ;;  %v954_v9 = vmul.f32 %v938_v56, %v2423_v17 }
  0xe0   :  { %v949_v26 = vadd.f32 -1.4531521, %v933_v42  ;;  %v950_v4 = vadd.f32 -1.4531521, %v934_v43  ;;  %v955_v31 = vmul.f32 %v939_v49, %v2427_v54  ;;  %v956_v35 = vmul.f32 %v940_v39, %v2433_v8 }
  0xe1   :  { %v951_v14 = vadd.f32 -1.4531521, %v935_v57  ;;  %v957_v48 = vmul.f32 %v941_v29, %v2468_v40  ;;  %v958_v15 = vmul.f32 %v942_v23, %v2480_v63  ;;  %v959_v33 = vmul.f32 %v943_v59, %v2577_v58 }
  0xe2   :  { %v960_v28 = vmul.f32 %v944_v34, %v2591_v21  ;;  %v961_v24 = vmul.f32 %v945_v25, %v2605_v38  ;;  %v962_v30 = vmul.f32 %v946_v51, %v2646_v50  ;;  %v963_v3 = vmul.f32 %v947_v36, %v2655_v6 }
  0xe3   :  { %v964_v42 = vmul.f32 %v948_v11, %v2659_v5  ;;  %v965_v41 = vmul.f32 %v949_v26, %v2690_v61  ;;  %v968_v10 = vadd.f32 1.4214138, %v952_v44  ;;  %v969_v56 = vadd.f32 1.4214138, %v953_v16 }
  0xe4   :  { %v966_v49 = vmul.f32 %v950_v4, %v2701_v37  ;;  %v970_v39 = vadd.f32 1.4214138, %v954_v9  ;;  %v971_v43 = vadd.f32 1.4214138, %v955_v31  ;;  %v972_v29 = vadd.f32 1.4214138, %v956_v35 }
  0xe5   :  { %v967_v23 = vmul.f32 %v951_v14, %v2708_v62  ;;  %v973_v57 = vadd.f32 1.4214138, %v957_v48  ;;  %v974_v59 = vadd.f32 1.4214138, %v958_v15  ;;  %v975_v34 = vadd.f32 1.4214138, %v959_v33 }
  0xe6   :  { %v976_v25 = vadd.f32 1.4214138, %v960_v28  ;;  %v977_v51 = vadd.f32 1.4214138, %v961_v24  ;;  %v978_v7 = vadd.f32 1.4214138, %v962_v30  ;;  %v984_v26 = vmul.f32 %v968_v10, %v2401_v19 }
  0xe7   :  { %v979_v36 = vadd.f32 1.4214138, %v963_v3  ;;  %v980_v12 = vadd.f32 1.4214138, %v964_v42  ;;  %v981_v11 = vadd.f32 1.4214138, %v965_v41  ;;  %v985_v16 = vmul.f32 %v969_v56, %v2406_v47 }
  0xe8   :  { %v982_v44 = vadd.f32 1.4214138, %v966_v49  ;;  %v986_v4 = vmul.f32 %v970_v39, %v2423_v17  ;;  %v987_v9 = vmul.f32 %v971_v43, %v2427_v54  ;;  %v983_v31 = vadd.f32 1.4214138, %v967_v23 }
  0xe9   :  { %v988_v35 = vmul.f32 %v972_v29, %v2433_v8  ;;  %v989_v14 = vmul.f32 %v973_v57, %v2468_v40  ;;  %v990_v48 = vmul.f32 %v974_v59, %v2480_v63  ;;  %v991_v15 = vmul.f32 %v975_v34, %v2577_v58 }
  0xea   :  { %v992_v33 = vmul.f32 %v976_v25, %v2591_v21  ;;  %v993_v28 = vmul.f32 %v977_v51, %v2605_v38  ;;  %v994_v24 = vmul.f32 %v978_v7, %v2646_v50  ;;  %v995_v30 = vmul.f32 %v979_v36, %v2655_v6 }
  0xeb   :  { %v996_v3 = vmul.f32 %v980_v12, %v2659_v5  ;;  %v997_v42 = vmul.f32 %v981_v11, %v2690_v61  ;;  %v1000_v41 = vadd.f32 -0.28449672, %v984_v26  ;;  %v998_v10 = vmul.f32 %v982_v44, %v2701_v37 }
  0xec   :  { %v1001_v56 = vadd.f32 -0.28449672, %v985_v16  ;;  %v1002_v49 = vadd.f32 -0.28449672, %v986_v4  ;;  %v1003_v39 = vadd.f32 -0.28449672, %v987_v9  ;;  %v999_v43 = vmul.f32 %v983_v31, %v2708_v62 }
  0xed   :  { %v1004_v29 = vadd.f32 -0.28449672, %v988_v35  ;;  %v1005_v23 = vadd.f32 -0.28449672, %v989_v14  ;;  %v1006_v57 = vadd.f32 -0.28449672, %v990_v48  ;;  %v1016_v16 = vmul.f32 %v1000_v41, %v2401_v19 }
  0xee   :  { %v1007_v59 = vadd.f32 -0.28449672, %v991_v15  ;;  %v1008_v34 = vadd.f32 -0.28449672, %v992_v33  ;;  %v1009_v7 = vadd.f32 -0.28449672, %v993_v28  ;;  %v1017_v4 = vmul.f32 %v1001_v56, %v2406_v47 }
  0xef   :  { %v1010_v25 = vadd.f32 -0.28449672, %v994_v24  ;;  %v1011_v51 = vadd.f32 -0.28449672, %v995_v30  ;;  %v1012_v36 = vadd.f32 -0.28449672, %v996_v3  ;;  %v1018_v31 = vmul.f32 %v1002_v49, %v2423_v17 }
  0xf0   :  { %v3139_v12 = vsub.f32 0.0, %v2092_v13  ;;  %v1013_v26 = vadd.f32 -0.28449672, %v997_v42  ;;  %v1014_v44 = vadd.f32 -0.28449672, %v998_v10  ;;  %v1019_v35 = vmul.f32 %v1003_v39, %v2427_v54 }
  0xf1   :  { %v1015_v9 = vadd.f32 -0.28449672, %v999_v43  ;;  %v1020_v14 = vmul.f32 %v1004_v29, %v2433_v8  ;;  %v1021_v48 = vmul.f32 %v1005_v23, %v2468_v40  ;;  %v1022_v15 = vmul.f32 %v1006_v57, %v2480_v63 }
  0xf2   :  { %v1080_v11 = vmul.f32 %v3139_v12, %v2092_v13  ;;  %v1023_v33 = vmul.f32 %v1007_v59, %v2577_v58  ;;  %v1024_v13 = vmul.f32 %v1008_v34, %v2591_v21  ;;  %v1025_v28 = vmul.f32 %v1009_v7, %v2605_v38 }
  0xf3   :  { %v1026_v24 = vmul.f32 %v1010_v25, %v2646_v50  ;;  %v1027_v30 = vmul.f32 %v1011_v51, %v2655_v6  ;;  %v1028_v3 = vmul.f32 %v1012_v36, %v2659_v5  ;;  %v1029_v42 = vmul.f32 %v1013_v26, %v2690_v61 }
  0xf4   :  { %v1030_v41 = vmul.f32 %v1014_v44, %v2701_v37  ;;  %v1032_v10 = vadd.f32 0.2548296, %v1016_v16  ;;  %v1033_v56 = vadd.f32 0.2548296, %v1017_v4  ;;  %v1034_v49 = vadd.f32 0.2548296, %v1018_v31 }
  0xf5   :  { %v2763_v39 = vadd.f32 0.2548296, %v1019_v35  ;;  %v1066_v43 = vsub.f32 0.0, %v2096_v55  ;;  %v1067_v29 = vsub.f32 0.0, %v2098_v53  ;;  %v1031_v23 = vmul.f32 %v1015_v9, %v2708_v62 }
  0xf6   :  { %v2768_v57 = vadd.f32 0.2548296, %v1020_v14  ;;  %v2770_v59 = vadd.f32 0.2548296, %v1021_v48  ;;  %v1068_v34 = vsub.f32 0.0, %v2103_v0  ;;  %v1069_v51 = vsub.f32 0.0, %v2126_v45 }
  0xf7   :  { %v2773_v7 = vadd.f32 0.2548296, %v1022_v15  ;;  %v2775_v25 = vadd.f32 0.2548296, %v1023_v33  ;;  %v3140_v36 = vsub.f32 0.0, %v2094_v22  ;;  %v2786_v16 = vmul.f32 %v1032_v10, %v2401_v19 }
  0xf8   :  { %v2781_v26 = vadd.f32 0.2548296, %v1024_v13  ;;  %v2783_v44 = vadd.f32 0.2548296, %v1025_v28  ;;  %v1070_v4 = vsub.f32 0.0, %v2151_v32  ;;  %v1071_v31 = vsub.f32 0.0, %v2153_v20 }
  0xf9   :  { %v1081_v12 = vmul.f32 %v3140_v36, %v2094_v22  ;;  %v2789_v9 = vadd.f32 0.2548296, %v1026_v24  ;;  %v1082_v35 = vmul.f32 %v1066_v43, %v2096_v55  ;;  %v1083_v14 = vmul.f32 %v1067_v29, %v2098_v53  ;;  %v3141_v36 = vld [vmem:[#allocation29_spill] sm:$0xff] }
  0xfa   :  { %v2794_v48 = vadd.f32 0.2548296, %v1027_v30  ;;  %v2797_v22 = vmul.f32 %v1033_v56, %v2406_v47  ;;  %v1072_v15 = vsub.f32 0.0, %v2157_v60  ;;  %v1084_v19 = vmul.f32 %v1068_v34, %v2103_v0 }
  0xfb   :  { %v2801_v33 = vadd.f32 0.2548296, %v1028_v3  ;;  %v2803_v13 = vadd.f32 0.2548296, %v1029_v42  ;;  %v1073_v28 = vsub.f32 0.0, %v2159_v46  ;;  %v1085_v24 = vmul.f32 %v1069_v51, %v2126_v45 }
  0xfc   :  { %v1074_v55 = vsub.f32 0.0, %v2162_v27  ;;  %v1086_v53 = vmul.f32 %v1070_v4, %v2151_v32  ;;  %v1096_v30 = vmul.f32 1.442695, %v1080_v11  ;;  %v1098_v10 = vmul.f32 1.442695, %v1081_v12 }
  0xfd   :  { %v1075_v47 = vsub.f32 0.0, %v2165_v2  ;;  %v1087_v56 = vmul.f32 %v1071_v31, %v2153_v20  ;;  %v1100_v43 = vmul.f32 1.442695, %v1082_v35  ;;  %v1102_v0 = vmul.f32 1.442695, %v1083_v14 }
  0xfe   :  { %v1076_v3 = vsub.f32 0.0, %v2171_v52  ;;  %v1088_v42 = vmul.f32 %v1072_v15, %v2157_v60  ;;  %1352 = vpow2.f32 %v1096_v30  ;;  %v1104_v29 = vmul.f32 1.442695, %v1084_v19 }
  0xff   :  { %v1077_v45 = vsub.f32 0.0, %v2174_v18  ;;  %v1089_v34 = vmul.f32 %v1073_v28, %v2159_v46  ;;  %1354 = vpow2.f32 %v1098_v10  ;;  %v1106_v32 = vmul.f32 1.442695, %v1085_v24 }
 0x100   :  { %v1078_v11 = vsub.f32 0.0, %v2180_v1  ;;  %v1090_v51 = vmul.f32 %v1074_v55, %v2162_v27  ;;  %1356 = vpow2.f32 %v1100_v43  ;;  %v1108_v20 = vmul.f32 1.442695, %v1086_v53 }
 0x101   :  { %v1079_v12 = vsub.f32 0.0, %v3141_v36  ;;  %v1091_v4 = vmul.f32 %v1075_v47, %v2165_v2  ;;  %1358 = vpow2.f32 %v1102_v0  ;;  %v1110_v60 = vmul.f32 1.442695, %v1087_v56 }
 0x102   :  { %v2819_v31 = vadd.f32 0.2548296, %v1030_v41  ;;  %v1092_v35 = vmul.f32 %v1076_v3, %v2171_v52  ;;  %1360 = vpow2.f32 %v1104_v29  ;;  %v1112_v46 = vmul.f32 1.442695, %v1088_v42 }
 0x103   :  { %v1050_v14 = vmul.f32 %v1034_v49, %v2423_v17  ;;  %v1093_v15 = vmul.f32 %v1077_v45, %v2174_v18  ;;  %1362 = vpow2.f32 %v1106_v32  ;;  %v1114_v27 = vmul.f32 1.442695, %v1089_v34 }
 0x104   :  { %v1353_v19 = vpop.eup %1352  ;;  %v1047_v28 = vadd.f32 0.2548296, %v1031_v23  ;;  %v1094_v24 = vmul.f32 %v1078_v11, %v2180_v1  ;;  %1364 = vpow2.f32 %v1108_v20  ;;  %v1116_v2 = vmul.f32 1.442695, %v1090_v51 }
 0x105   :  { %v1355_v55 = vpop.eup %1354  ;;  %v1051_v41 = vmul.f32 %v2763_v39, %v2427_v54  ;;  %v1095_v52 = vmul.f32 %v1079_v12, %v3141_v36  ;;  %1366 = vpow2.f32 %v1110_v60  ;;  %v1118_v53 = vmul.f32 1.442695, %v1091_v4 }
 0x106   :  { %v1357_v30 = vpop.eup %1356  ;;  %v1052_v18 = vmul.f32 %v2768_v57, %v2433_v8  ;;  %v1053_v17 = vmul.f32 %v2770_v59, %v2468_v40  ;;  %1368 = vpow2.f32 %v1112_v46  ;;  %v1120_v49 = vmul.f32 1.442695, %v1092_v35 }
 0x107   :  { %v1359_v1 = vpop.eup %1358  ;;  %v1054_v23 = vmul.f32 %v2773_v7, %v2480_v63  ;;  %v1055_v54 = vmul.f32 %v2775_v25, %v2577_v58  ;;  %1370 = vpow2.f32 %v1114_v27  ;;  %v1122_v39 = vmul.f32 1.442695, %v1093_v15  ;;  %v3143_v27 = vld [vmem:[#allocation19_spill] sm:$0xff] }
 0x108   :  { %v1361_v10 = vpop.eup %1360  ;;  %1372 = vpow2.f32 %v1116_v2  ;;  %v1124_v47 = vmul.f32 1.442695, %v1094_v24  ;;  %v1128_v56 = vmul.f32 %v1353_v19, %v2786_v16  ;;  %v1129_v8 = vmul.f32 %v1355_v55, %v2797_v22  ;;  %v3145_v24 = vld [vmem:[#allocation21_spill] sm:$0xff] }
 0x109   :  { %v1363_v57 = vpop.eup %1362  ;;  %1374 = vpow2.f32 %v1118_v53  ;;  %v1126_v40 = vmul.f32 1.442695, %v1095_v52  ;;  %v1130_v59 = vmul.f32 %v1357_v30, %v1050_v14  ;;  %v1131_v43 = vmul.f32 %v1359_v1, %v1051_v41  ;;  %v3142_v14 = vld [vmem:[#allocation18_spill] sm:$0xff] }
 0x10a   :  { %v1365_v0 = vpop.eup %1364  ;;  %v1056_v63 = vmul.f32 %v2781_v26, %v2591_v21  ;;  %v1057_v58 = vmul.f32 %v2783_v44, %v2605_v38  ;;  %1376 = vpow2.f32 %v1120_v49  ;;  %v1132_v7 = vmul.f32 %v1361_v10, %v1052_v18  ;;  %v3146_v52 = vld [vmem:[#allocation22_spill] sm:$0xff] }
 0x10b   :  { %v1367_v25 = vpop.eup %1366  ;;  %v1058_v16 = vmul.f32 %v2789_v9, %v2646_v50  ;;  %v1059_v22 = vmul.f32 %v2794_v48, %v2655_v6  ;;  %1378 = vpow2.f32 %v1122_v39  ;;  %v1133_v3 = vmul.f32 %v1363_v57, %v1053_v17  ;;  %v3147_v17 = vld [vmem:[#allocation23_spill] sm:$0xff] }
 0x10c   :  { %v1369_v42 = vpop.eup %1368  ;;  %1380 = vpow2.f32 %v1124_v47  ;;  %v1134_v29 = vmul.f32 %v1365_v0, %v1054_v23  ;;  %v1144_v45 = vsub.f32 1.0, %v1128_v56  ;;  %v1145_v34 = vsub.f32 1.0, %v1129_v8  ;;  %v3149_v47 = vld [vmem:[#allocation25_spill] sm:$0xff]  ;;  %v3150_v0 = vld [vmem:[#allocation26_spill] sm:$0xff] }
 0x10d   :  { %v1371_v21 = vpop.eup %1370  ;;  %1382 = vpow2.f32 %v1126_v40  ;;  %v1135_v26 = vmul.f32 %v1367_v25, %v1055_v54  ;;  %v1146_v38 = vsub.f32 1.0, %v1130_v59  ;;  %v1147_v44 = vsub.f32 1.0, %v1131_v43  ;;  %v3148_v54 = vld [vmem:[#allocation24_spill] sm:$0xff]  ;;  %v3151_v25 = vld [vmem:[#allocation27_spill] sm:$0xff] }
 0x10e   :  { %v1373_v32 = vpop.eup %1372  ;;  %v1060_v11 = vmul.f32 %v2801_v33, %v2659_v5  ;;  %v1061_v50 = vmul.f32 %v2803_v13, %v2690_v61  ;;  %v1136_v6 = vmul.f32 %v1369_v42, %v1056_v63  ;;  %v1148_v9 = vsub.f32 1.0, %v1132_v7  ;;  %v3144_v13 = vld [vmem:[#allocation20_spill] sm:$0xff] }
 0x10f   :  { %v1375_v48 = vpop.eup %1374  ;;  %v1062_v51 = vmul.f32 %v2819_v31, %v2701_v37  ;;  %v1137_v20 = vmul.f32 %v1371_v21, %v1057_v58  ;;  %v1138_v36 = vmul.f32 %v1373_v32, %v1058_v16  ;;  %v1149_v12 = vsub.f32 1.0, %v1133_v3  ;;  %v3155_v32 = vld [vmem:[#allocation6_spill] sm:$0xff] }
 0x110   :  { %v1377_v4 = vpop.eup %1376  ;;  %v1063_v60 = vmul.f32 %v1047_v28, %v2708_v62  ;;  %v1139_v35 = vmul.f32 %v1375_v48, %v1059_v22  ;;  %v1150_v46 = vsub.f32 1.0, %v1134_v29  ;;  %v1160_v15 = vmul.f32 %v1144_v45, %v3142_v14  ;;  %v3152_v22 = vld [vmem:[#allocation28_spill] sm:$0xff]  ;;  %v3153_v45 = vld [vmem:[#allocation30_spill] sm:$0xff] }
 0x111   :  { %v1379_v5 = vpop.eup %1378  ;;  %v1151_v33 = vsub.f32 1.0, %v1135_v26  ;;  %v1161_v61 = vmul.f32 %v1145_v34, %v3143_v27  ;;  %v1162_v19 = vmul.f32 %v1146_v38, %v3144_v13  ;;  %v1163_v2 = vmul.f32 %v1147_v44, %v3145_v24  ;;  %v3154_v26 = vld [vmem:[#allocation5_spill] sm:$0xff]  ;;  %v3164_v24 = vld [vmem:[#allocation11_spill] sm:$0xff] }
 0x112   :  { %v1381_v55 = vpop.eup %1380  ;;  %v1140_v37 = vmul.f32 %v1377_v4, %v1060_v11  ;;  %v1141_v31 = vmul.f32 %v1379_v5, %v1061_v50  ;;  %v1152_v41 = vsub.f32 1.0, %v1136_v6  ;;  %v1164_v53 = vmul.f32 %v1148_v9, %v3146_v52  ;;  %v3156_v50 = vld [vmem:[#allocation7_spill] sm:$0xff]  ;;  %v3157_v9 = vld [vmem:[#allocation8_spill] sm:$0xff] }
 0x113   :  { %v1383_v30 = vpop.eup %1382  ;;  %v1142_v62 = vmul.f32 %v1381_v55, %v1062_v51  ;;  %v1153_v28 = vsub.f32 1.0, %v1137_v20  ;;  %v1154_v18 = vsub.f32 1.0, %v1138_v36  ;;  %v1165_v49 = vmul.f32 %v1149_v12, %v3147_v17  ;;  %v3158_v51 = vld [vmem:[#allocation31_spill] sm:$0xff]  ;;  %v3159_v36 = vld [vmem:[#allocation32_spill] sm:$0xff] }
 0x114   :  { %vm1224_vm6 = vcmask 257024   ;;  %v1143_v1 = vmul.f32 %v1383_v30, %v1063_v60  ;;  %v1155_v23 = vsub.f32 1.0, %v1139_v35  ;;  %v1166_v39 = vmul.f32 %v1150_v46, %v3148_v54  ;;  %v3160_v60 = vld [vmem:[#allocation9_spill] sm:$0xff]  ;;  %v3166_v30 = vld [vmem:[#allocation2_spill] sm:$0xff] }
 0x115   :  { %v1176_v10 = vadd.f32 1.0, %v1160_v15  ;;  %v1167_v56 = vmul.f32 %v1151_v33, %v3149_v47  ;;  %v1177_v8 = vadd.f32 1.0, %v1161_v61  ;;  %v1178_v57 = vadd.f32 1.0, %v1162_v19  ;;  %v3161_v46 = vld [vmem:[#allocation33_spill] sm:$0xff]  ;;  %v3162_v33 = vld [vmem:[#allocation10_spill] sm:$0xff] }
 0x116   :  { %v1179_v40 = vadd.f32 1.0, %v1163_v2  ;;  %v1156_v59 = vsub.f32 1.0, %v1140_v37  ;;  %v1157_v43 = vsub.f32 1.0, %v1141_v31  ;;  %v1168_v63 = vmul.f32 %v1152_v41, %v3150_v0  ;;  %v3163_v61 = vld [vmem:[#allocation34_spill] sm:$0xff]  ;;  %v3165_v37 = vld [vmem:[#allocation12_spill] sm:$0xff]  ;;  %v3172_v0 = vld [vmem:[#allocation17_spill] sm:$0xff] }
 0x117   :  { %v1180_v58 = vadd.f32 1.0, %v1164_v53  ;;  %v1158_v7 = vsub.f32 1.0, %v1142_v62  ;;  %v1169_v16 = vmul.f32 %v1153_v28, %v3151_v25  ;;  %v1170_v3 = vmul.f32 %v1154_v18, %v3152_v22  ;;  %v3167_v18 = vld [vmem:[#allocation13_spill] sm:$0xff] }
 0x118   :  { %v1181_v42 = vadd.f32 1.0, %v1165_v49  ;;  %v1159_v29 = vsub.f32 1.0, %v1143_v1  ;;  %v1171_v34 = vmul.f32 %v1155_v23, %v3153_v45  ;;  %v1182_v21 = vadd.f32 1.0, %v1166_v39  ;;  %v3168_v1 = vld [vmem:[#allocation3_spill] sm:$0xff]  ;;  %v3169_v39 = vld [vmem:[#allocation14_spill] sm:$0xff] }
 0x119   :  { %v1192_v38 = vmul.f32 %v1176_v10, %v3154_v26  ;;  %v1183_v44 = vadd.f32 1.0, %v1167_v56  ;;  %v1193_v11 = vmul.f32 %v1177_v8, %v3155_v32  ;;  %v1194_v6 = vmul.f32 %v1178_v57, %v3156_v50  ;;  %v3170_v56 = vld [vmem:[#allocation4_spill] sm:$0xff] }
 0x11a   :  { %v1195_v48 = vmul.f32 %v1179_v40, %v3157_v9  ;;  %v1172_v20 = vmul.f32 %v1156_v59, %v3158_v51  ;;  %v1173_v12 = vmul.f32 %v1157_v43, %v3159_v36  ;;  %v1184_v4 = vadd.f32 1.0, %v1168_v63  ;;  %v3171_v40 = vld [vmem:[#allocation15_spill] sm:$0xff] }
 0x11b   :  { %v1196_v35 = vmul.f32 %v1180_v58, %v3160_v60  ;;  %v1174_v14 = vmul.f32 %v1158_v7, %v3161_v46  ;;  %v1185_v15 = vadd.f32 1.0, %v1169_v16  ;;  %v1186_v5 = vadd.f32 1.0, %v1170_v3  ;;  %v3173_v7 = vld [vmem:[#allocation16_spill] sm:$0xff] }
 0x11c   :  { %v1197_v27 = vmul.f32 %v1181_v42, %v3162_v33  ;;  %v1175_v13 = vmul.f32 %v1159_v29, %v3163_v61  ;;  %v1187_v19 = vadd.f32 1.0, %v1171_v34  ;;  %v1198_v2 = vmul.f32 %v1182_v21, %v3164_v24 }
 0x11d   :  { %v1208_v55 = vpack.c.bf16 %v1192_v38, %v1192_v38  ;;  %v1199_v31 = vmul.f32 %v1183_v44, %v3165_v37  ;;  %v1209_v41 = vpack.c.bf16 %v1193_v11, %v1193_v11  ;;  %v1210_v52 = vpack.c.bf16 %v1194_v6, %v1194_v6 }
 0x11e   :  { %v1211_v53 = vpack.c.bf16 %v1195_v48, %v1195_v48  ;;  %v580_v62 = vmul.f32 0.5, %v3166_v30  ;;  %v1188_v28 = vadd.f32 1.0, %v1172_v20  ;;  %v1200_v17 = vmul.f32 %v1184_v4, %v3167_v18 }
 0x11f   :  { %v1212_v49 = vpack.c.bf16 %v1196_v35, %v1196_v35  ;;  %1225 = vst.msk [vmem:[%s2952_s3] sm:$0xf] %vm1224_vm6, %v1208_v55  ;;  %v581_v23 = vmul.f32 0.5, %v3168_v1  ;;  %v1189_v54 = vadd.f32 1.0, %v1173_v12  ;;  %v1201_v10 = vmul.f32 %v1185_v15, %v3169_v39 }
 0x120   :  { %v1213_v47 = vpack.c.bf16 %v1197_v27, %v1197_v27  ;;  %1226 = vst.msk [vmem:[%s2952_s3 + $0x4] sm:$0xf] %vm1224_vm6, %v1209_v41  ;;  %v582_v8 = vmul.f32 0.5, %v3170_v56  ;;  %v1190_v57 = vadd.f32 1.0, %v1174_v14  ;;  %v1202_v59 = vmul.f32 %v1186_v5, %v3171_v40 }
 0x121   :  { %v1214_v43 = vpack.c.bf16 %v1198_v2, %v1198_v2  ;;  %1227 = vst.msk [vmem:[%s2952_s3 + $0x8] sm:$0xf] %vm1224_vm6, %v1210_v52  ;;  %v583_v63 = vmul.f32 0.5, %v3172_v0  ;;  %v1191_v58 = vadd.f32 1.0, %v1175_v13  ;;  %v1203_v25 = vmul.f32 %v1187_v19, %v3173_v7 }
 0x122   :  { %v1215_v16 = vpack.c.bf16 %v1199_v31, %v1199_v31  ;;  %1228 = vst.msk [vmem:[%s2952_s3 + $0xc] sm:$0xf] %vm1224_vm6, %v1211_v53  ;;  %v1204_v22 = vmul.f32 %v1188_v28, %v580_v62  ;;  %v1216_v3 = vpack.c.bf16 %v1200_v17, %v1200_v17  ;;  %v1205_v42 = vmul.f32 %v1189_v54, %v581_v23 }
 0x123   :  { %1229 = vst.msk [vmem:[%s2952_s3 + $0x10] sm:$0xf] %vm1224_vm6, %v1212_v49  ;;  %v1217_v29 = vpack.c.bf16 %v1201_v10, %v1201_v10  ;;  %v1206_v45 = vmul.f32 %v1190_v57, %v582_v8  ;;  %v1218_v34 = vpack.c.bf16 %v1202_v59, %v1202_v59  ;;  %v1207_v21 = vmul.f32 %v1191_v58, %v583_v63 }
 0x124   :  { %1230 = vst.msk [vmem:[%s2952_s3 + $0x14] sm:$0xf] %vm1224_vm6, %v1213_v47  ;;  %v1219_v26 = vpack.c.bf16 %v1203_v25, %v1203_v25  ;;  %v1220_v38 = vpack.c.bf16 %v1204_v22, %v1204_v22  ;;  %v1221_v44 = vpack.c.bf16 %v1205_v42, %v1205_v42 }
 0x125   :  { %1231 = vst.msk [vmem:[%s2952_s3 + $0x18] sm:$0xf] %vm1224_vm6, %v1214_v43  ;;  %v1222_v32 = vpack.c.bf16 %v1206_v45, %v1206_v45  ;;  %v1223_v11 = vpack.c.bf16 %v1207_v21, %v1207_v21 }
 0x126   :  { %1232 = vst.msk [vmem:[%s2952_s3 + $0x1c] sm:$0xf] %vm1224_vm6, %v1215_v16 }
 0x127   :  { %1233 = vst.msk [vmem:[%s2952_s3 + $0x20] sm:$0xf] %vm1224_vm6, %v1216_v3 }
 0x128   :  { %1234 = vst.msk [vmem:[%s2952_s3 + $0x24] sm:$0xf] %vm1224_vm6, %v1217_v29 }
 0x129   :  { %1235 = vst.msk [vmem:[%s2952_s3 + $0x28] sm:$0xf] %vm1224_vm6, %v1218_v34 }
 0x12a   :  { %1236 = vst.msk [vmem:[%s2952_s3 + $0x2c] sm:$0xf] %vm1224_vm6, %v1219_v26 }
 0x12b   :  { %1237 = vst.msk [vmem:[%s2952_s3 + $0x30] sm:$0xf] %vm1224_vm6, %v1220_v38 }
 0x12c   :  { %1238 = vst.msk [vmem:[%s2952_s3 + $0x34] sm:$0xf] %vm1224_vm6, %v1221_v44 }
 0x12d   :  { %1239 = vst.msk [vmem:[%s2952_s3 + $0x38] sm:$0xf] %vm1224_vm6, %v1222_v32 }
 0x12e   :  { %1240 = vst.msk [vmem:[%s2952_s3 + $0x3c] sm:$0xf] %vm1224_vm6, %v1223_v11 }

// kernel: _lambda_.20
= control target key start
LH: loop header
LB: loop body
LE: loop exit
PB: predicated region body
PF: predicated region fallthrough
CT: control target
= control target key end

     0   :  { %vm19_vm0 = vcmask 261120   ;;  %vm607_vm1 = vcmask 257024   ;;  %s1220_s1 = inlined_call_operand.vmem [shape: bf16[288,32], index: 1, kind: input, shape index: {}]   ;;  %s1221_s0 = inlined_call_operand.vmem [shape: bf16[128,288], index: 0, kind: input, shape index: {}]   ;;  %s1222_s2 = inlined_call_operand.vmem [shape: f32[1,32], index: 2, kind: input, shape index: {}]   ;;  %s1223_s3 = inlined_call_operand.vmem [shape: bf16[128,32], index: 3, kind: output, shape index: {}]  }
   0x1   :  { %v835_v0 = vld [vmem:[%s1220_s1 + $0x38] sm:$0xff]  ;;  %v845_v2 = vld [vmem:[%s1220_s1 + $0x88] sm:$0xff]  ;;  %v834_v3 = vld [vmem:[%s1220_s1 + $0x30] sm:$0xff] }
   0x2   :  { %v843_v1 = vld [vmem:[%s1220_s1 + $0x78] sm:$0xff]  ;;  %373 = vmatpush.bf16.msra.mxu0 %v835_v0  ;;  %846 = vmatpush.bf16.msra.mxu3 %v835_v0  ;;  %v842_v4 = vld [vmem:[%s1220_s1 + $0x70] sm:$0xff]  ;;  %v844_v5 = vld [vmem:[%s1220_s1 + $0x80] sm:$0xff] }
   0x3   :  { %422 = vmatpush.bf16.msra.mxu1 %v843_v1  ;;  %477 = vmatpush.bf16.msra.mxu2 %v845_v2  ;;  %v638_v6 = vld [vmem:[%s1221_s0 + $0x8] sm:$0xf]  ;;  %v806_v7 = vld [vmem:[%s1221_s0 + $0x10] sm:$0xf0]  ;;  %v832_v11 = vld [vmem:[%s1220_s1 + $0x20] sm:$0xff] }
   0x4   :  { %v639_v8 = vor.u32 %v806_v7, %v638_v6  ;;  %v833_v9 = vld [vmem:[%s1220_s1 + $0x28] sm:$0xff]  ;;  %v840_v12 = vld [vmem:[%s1220_s1 + $0x60] sm:$0xff]  ;;  %v831_v13 = vld [vmem:[%s1220_s1 + $0x18] sm:$0xff] }
   0x5   :  { %v841_v10 = vld [vmem:[%s1220_s1 + $0x68] sm:$0xff]  ;;  %v839_v14 = vld [vmem:[%s1220_s1 + $0x58] sm:$0xff]  ;;  %v830_v15 = vld [vmem:[%s1220_s1 + $0x10] sm:$0xff] }
   0x6   :  { %374 = vmatpush.bf16.msra.mxu0 %v834_v3  ;;  %847 = vmatpush.bf16.msra.mxu3 %v834_v3  ;;  %v838_v16 = vld [vmem:[%s1220_s1 + $0x50] sm:$0xff]  ;;  %v650_v17 = vld [vmem:[%s1221_s0 + $0x20] sm:$0xf]  ;;  %v809_v18 = vld [vmem:[%s1221_s0 + $0x28] sm:$0xf0] }
   0x7   :  { %423 = vmatpush.bf16.msra.mxu1 %v842_v4  ;;  %478 = vmatpush.bf16.msra.mxu2 %v844_v5  ;;  %v651_v19 = vor.u32 %v809_v18, %v650_v17  ;;  %v829_v20 = vld [vmem:[%s1220_s1 + $0x8] sm:$0xff]  ;;  %v828_v22 = vld [vmem:[%s1220_s1] sm:$0xff]  ;;  %v702_v26 = vld [vmem:[%s1221_s0 + $0x90] sm:$0xf] }
   0x8   :  { %v837_v21 = vld [vmem:[%s1220_s1 + $0x48] sm:$0xff]  ;;  %v836_v23 = vld [vmem:[%s1220_s1 + $0x40] sm:$0xff]  ;;  %v823_v27 = vld [vmem:[%s1221_s0 + $0x98] sm:$0xf0] }
   0x9   :  { %v630_v24 = vld [vmem:[%s1221_s0] sm:$0xf]  ;;  %v805_v25 = vld [vmem:[%s1221_s0 + $0x8] sm:$0xf0]  ;;  %v804_v28 = vld [vmem:[%s1221_s0 + $0x4] sm:$0xf]  ;;  %v703_v31 = vor.u32 %v823_v27, %v702_v26 }
   0xa   :  { %796 = vmatmul.msk.bf16.vlgmr.msra.gmra.mxu2 %vm19_vm0, %v639_v8  ;;  %375 = vmatpush.bf16.msra.mxu0 %v833_v9  ;;  %v632_v29 = vld [vmem:[%s1221_s0 + $0xc] sm:$0xf0]  ;;  %v631_v30 = vor.u32 %v805_v25, %v630_v24  ;;  %v662_v33 = vld [vmem:[%s1221_s0 + $0x38] sm:$0xf]  ;;  %v812_v34 = vld [vmem:[%s1221_s0 + $0x40] sm:$0xf0] }
   0xb   :  { %848 = vmatpush.bf16.msra.mxu3 %v833_v9  ;;  %424 = vmatpush.bf16.msra.mxu1 %v841_v10  ;;  %v635_v32 = vor.u32 %v804_v28, %v632_v29  ;;  %v663_v35 = vor.u32 %v812_v34, %v662_v33  ;;  %v642_v36 = vld [vmem:[%s1221_s0 + $0x18] sm:$0xf]  ;;  %v808_v37 = vld [vmem:[%s1221_s0 + $0x20] sm:$0xf0]  ;;  %v714_v38 = vld [vmem:[%s1221_s0 + $0xa8] sm:$0xf] }
   0xc   :  { %v826_v39 = vld [vmem:[%s1221_s0 + $0xb0] sm:$0xf0]  ;;  %v807_v40 = vld [vmem:[%s1221_s0 + $0x1c] sm:$0xf]  ;;  %v644_v41 = vld [vmem:[%s1221_s0 + $0x24] sm:$0xf0]  ;;  %v643_v42 = vor.u32 %v808_v37, %v642_v36 }
   0xd   :  { %v715_v43 = vor.u32 %v826_v39, %v714_v38  ;;  %v647_v44 = vor.u32 %v807_v40, %v644_v41  ;;  %v674_v45 = vld [vmem:[%s1221_s0 + $0x50] sm:$0xf]  ;;  %v815_v46 = vld [vmem:[%s1221_s0 + $0x58] sm:$0xf0]  ;;  %v810_v50 = vld [vmem:[%s1221_s0 + $0x34] sm:$0xf] }
   0xe   :  { %376 = vmatpush.bf16.msra.mxu0 %v832_v11  ;;  %v675_v47 = vor.u32 %v815_v46, %v674_v45  ;;  %v654_v48 = vld [vmem:[%s1221_s0 + $0x30] sm:$0xf]  ;;  %v811_v49 = vld [vmem:[%s1221_s0 + $0x38] sm:$0xf0]  ;;  %v656_v51 = vld [vmem:[%s1221_s0 + $0x3c] sm:$0xf0] }
   0xf   :  { %849 = vmatpush.bf16.msra.mxu3 %v832_v11  ;;  %425 = vmatpush.bf16.msra.mxu1 %v840_v12  ;;  %v822_v52 = vld [vmem:[%s1221_s0 + $0x94] sm:$0xf]  ;;  %v704_v53 = vld [vmem:[%s1221_s0 + $0x9c] sm:$0xf0]  ;;  %v655_v54 = vor.u32 %v811_v49, %v654_v48  ;;  %v659_v55 = vor.u32 %v810_v50, %v656_v51  ;;  %v686_v57 = vld [vmem:[%s1221_s0 + $0x68] sm:$0xf] }
  0x10   :  { %v707_v56 = vor.u32 %v822_v52, %v704_v53  ;;  %v818_v58 = vld [vmem:[%s1221_s0 + $0x70] sm:$0xf0]  ;;  %v666_v60 = vld [vmem:[%s1221_s0 + $0x48] sm:$0xf]  ;;  %v813_v62 = vld [vmem:[%s1221_s0 + $0x4c] sm:$0xf] }
  0x11   :  { %v687_v59 = vor.u32 %v818_v58, %v686_v57  ;;  %v814_v61 = vld [vmem:[%s1221_s0 + $0x50] sm:$0xf0]  ;;  %v668_v63 = vld [vmem:[%s1221_s0 + $0x54] sm:$0xf0]  ;;  %v825_v0 = vld [vmem:[%s1221_s0 + $0xac] sm:$0xf] }
  0x12   :  { %377 = vmatpush.bf16.msra.mxu0 %v831_v13  ;;  %v667_v2 = vor.u32 %v814_v61, %v666_v60  ;;  %v671_v3 = vor.u32 %v813_v62, %v668_v63  ;;  %v698_v5 = vld [vmem:[%s1221_s0 + $0x80] sm:$0xf]  ;;  %v821_v6 = vld [vmem:[%s1221_s0 + $0x88] sm:$0xf0]  ;;  %v680_v11 = vld [vmem:[%s1221_s0 + $0x6c] sm:$0xf0] }
  0x13   :  { %850 = vmatpush.bf16.msra.mxu3 %v831_v13  ;;  %426 = vmatpush.bf16.msra.mxu1 %v839_v14  ;;  %v699_v7 = vor.u32 %v821_v6, %v698_v5  ;;  %v678_v8 = vld [vmem:[%s1221_s0 + $0x60] sm:$0xf]  ;;  %v817_v9 = vld [vmem:[%s1221_s0 + $0x68] sm:$0xf0]  ;;  %v690_v17 = vld [vmem:[%s1221_s0 + $0x78] sm:$0xf] }
  0x14   :  { %v820_v18 = vld [vmem:[%s1221_s0 + $0x80] sm:$0xf0]  ;;  %v827_v24 = vld [vmem:[%s1221_s0 + $0xb8] sm:$0xf0]  ;;  %v864_v26 = vmov 0.0  }
  0x15   :  { %20 = vst.msk [vmem:[#allocation2] sm:$0xff] %vm19_vm0, %v864_v26  ;;  %v1111_v41 = vld [vmem:[%s1222_s2] ss:$0 sm:$0xff] }
  0x16   :  { %378 = vmatpush.bf16.msra.mxu0 %v830_v15  ;;  %21 = vst.msk [vmem:[#allocation2 + $0x8] sm:$0xff] %vm19_vm0, %v864_v26 }
  0x17   :  { %851 = vmatpush.bf16.msra.mxu3 %v830_v15  ;;  %427 = vmatpush.bf16.msra.mxu1 %v838_v16  ;;  %v824_v15 = vld [vmem:[%s1221_s0 + $0xa0] sm:$0xf0]  ;;  %22 = vst.msk [vmem:[#allocation2 + $0x10] sm:$0xff] %vm19_vm0, %v864_v26 }
  0x18   :  { %23 = vst.msk [vmem:[#allocation2 + $0x18] sm:$0xff] %vm19_vm0, %v864_v26 }
  0x19   :  { %24 = vst.msk [vmem:[#allocation2 + $0x20] sm:$0xff] %vm19_vm0, %v864_v26 }
  0x1a   :  { %797 = vmatmul.msk.bf16.gmra.mxu2 %vm19_vm0, %v651_v19  ;;  %379 = vmatpush.bf16.msra.mxu0 %v829_v20  ;;  %v819_v19 = vld [vmem:[%s1221_s0 + $0x7c] sm:$0xf]  ;;  %25 = vst.msk [vmem:[#allocation2 + $0x28] sm:$0xff] %vm19_vm0, %v864_v26 }
  0x1b   :  { %852 = vmatpush.bf16.msra.mxu3 %v829_v20  ;;  %428 = vmatpush.bf16.msra.mxu1 %v837_v21  ;;  %v692_v20 = vld [vmem:[%s1221_s0 + $0x84] sm:$0xf0]  ;;  %26 = vst.msk [vmem:[#allocation2 + $0x30] sm:$0xff] %vm19_vm0, %v864_v26 }
  0x1c   :  { %27 = vst.msk [vmem:[#allocation2 + $0x38] sm:$0xff] %vm19_vm0, %v864_v26  ;;  %v36_v33 = vld [vmem:[#allocation2] sm:$0xff] }
  0x1d   :  { %28 = vst.msk [vmem:[#allocation2 + $0x40] sm:$0xff] %vm19_vm0, %v864_v26  ;;  %v37_v40 = vld [vmem:[#allocation2 + $0x8] sm:$0xff] }
  0x1e   :  { %380 = vmatpush.bf16.msra.mxu0 %v828_v22  ;;  %29 = vst.msk [vmem:[#allocation2 + $0x48] sm:$0xff] %vm19_vm0, %v864_v26  ;;  %v38_v51 = vld [vmem:[#allocation2 + $0x10] sm:$0xff] }
  0x1f   :  { %853 = vmatpush.bf16.msra.mxu3 %v828_v22  ;;  %429 = vmatpush.bf16.msra.mxu1 %v836_v23  ;;  %v695_v22 = vor.u32 %v819_v19, %v692_v20  ;;  %30 = vst.msk [vmem:[#allocation2 + $0x50] sm:$0xff] %vm19_vm0, %v864_v26  ;;  %v39_v61 = vld [vmem:[#allocation2 + $0x18] sm:$0xff] }
  0x20   :  { %31 = vst.msk [vmem:[#allocation2 + $0x58] sm:$0xff] %vm19_vm0, %v864_v26 }
  0x21   :  { %381 = vmatmul.bf16.vlgmr.msra.gmra.mxu0 %v631_v30  ;;  %32 = vst.msk [vmem:[#allocation2 + $0x60] sm:$0xff] %vm19_vm0, %v864_v26  ;;  %v41_v19 = vld [vmem:[#allocation2 + $0x28] sm:$0xff] }
  0x22   :  { %411 = vmatmul.bf16.vlgmr.msra.gmra.mxu3 %v703_v31  ;;  %430 = vmatmul.bf16.vlgmr.msra.gmra.mxu1 %v635_v32  ;;  %33 = vst.msk [vmem:[#allocation2 + $0x68] sm:$0xff] %vm19_vm0, %v864_v26 }
  0x23   :  { %854 = vmatpush.bf16.msrb.mxu3 %v843_v1  ;;  %v716_v1 = vld [vmem:[%s1221_s0 + $0xb4] sm:$0xf0]  ;;  %34 = vst.msk [vmem:[#allocation2 + $0x70] sm:$0xff] %vm19_vm0, %v864_v26 }
  0x24   :  { %35 = vst.msk [vmem:[#allocation2 + $0x78] sm:$0xff] %vm19_vm0, %v864_v26 }
  0x27   :  { %855 = vmatpush.bf16.msrb.mxu3 %v842_v4  ;;  %v719_v4 = vor.u32 %v825_v0, %v716_v1 }
  0x2a   :  { %798 = vmatmul.msk.bf16.gmra.mxu2 %vm19_vm0, %v663_v35 }
  0x2b   :  { %856 = vmatpush.bf16.msrb.mxu3 %v841_v10  ;;  %v816_v10 = vld [vmem:[%s1221_s0 + $0x64] sm:$0xf] }
  0x2c   :  { %v683_v13 = vor.u32 %v816_v10, %v680_v11 }
  0x2f   :  { %857 = vmatpush.bf16.msrb.mxu3 %v840_v12  ;;  %v679_v12 = vor.u32 %v817_v9, %v678_v8  ;;  %v40_v8 = vld [vmem:[#allocation2 + $0x20] sm:$0xff] }
  0x31   :  { %386 = vmatmul.bf16.gmra.mxu0 %v643_v42 }
  0x32   :  { %416 = vmatmul.bf16.gmra.mxu3 %v715_v43  ;;  %435 = vmatmul.bf16.gmra.mxu1 %v647_v44 }
  0x33   :  { %858 = vmatpush.bf16.msrb.mxu3 %v839_v14  ;;  %v710_v14 = vld [vmem:[%s1221_s0 + $0x98] sm:$0xf] }
  0x37   :  { %859 = vmatpush.bf16.msrb.mxu3 %v838_v16  ;;  %v711_v16 = vor.u32 %v824_v15, %v710_v14 }
  0x3a   :  { %799 = vmatmul.msk.bf16.gmra.mxu2 %vm19_vm0, %v675_v47 }
  0x3b   :  { %860 = vmatpush.bf16.msrb.mxu3 %v837_v21  ;;  %v691_v21 = vor.u32 %v820_v18, %v690_v17 }
  0x3f   :  { %861 = vmatpush.bf16.msrb.mxu3 %v836_v23  ;;  %v722_v23 = vld [vmem:[%s1221_s0 + $0xb0] sm:$0xf] }
  0x40   :  { %v723_v25 = vor.u32 %v827_v24, %v722_v23 }
  0x41   :  { %391 = vmatmul.bf16.gmra.mxu0 %v655_v54 }
  0x42   :  { %440 = vmatmul.bf16.gmra.mxu1 %v659_v55  ;;  %460 = vmatmul.bf16.vlgmr.msrb.gmra.mxu3 %v707_v56 }
  0x4a   :  { %800 = vmatmul.msk.bf16.gmra.mxu2 %vm19_vm0, %v687_v59 }
  0x51   :  { %396 = vmatmul.bf16.gmra.mxu0 %v667_v2 }
  0x52   :  { %445 = vmatmul.bf16.gmra.mxu1 %v671_v3  ;;  %465 = vmatmul.bf16.gmra.mxu3 %v719_v4 }
  0x5a   :  { %801 = vmatmul.msk.bf16.gmra.mxu2 %vm19_vm0, %v699_v7 }
  0x61   :  { %401 = vmatmul.bf16.gmra.mxu0 %v679_v12 }
  0x62   :  { %450 = vmatmul.bf16.gmra.mxu1 %v683_v13 }
  0x6a   :  { %802 = vmatmul.msk.bf16.gmra.mxu2 %vm19_vm0, %v711_v16 }
  0x71   :  { %406 = vmatmul.bf16.gmra.mxu0 %v691_v21 }
  0x72   :  { %455 = vmatmul.bf16.gmra.mxu1 %v695_v22 }
  0x7a   :  { %803 = vmatmul.msk.bf16.gmra.mxu2 %vm19_vm0, %v723_v25 }
  0x8d   :  { %v480_v27 = vpop.f32.mrf.mxu2 }
  0x95   :  { %v482_v28 = vpop.f32.mrf.mxu2 }
  0x9d   :  { %v485_v29 = vpop.f32.mrf.mxu2 }
  0x9e   :  { %v382_v30 = vpop.f32.mrf.mxu0 }
  0x9f   :  { %v431_v31 = vpop.f32.mrf.mxu1 }
  0xa0   :  { %v432_v32 = vadd.f32 %v431_v31, %v382_v30  ;;  %v42_v30 = vld [vmem:[#allocation2 + $0x30] sm:$0xff] }
  0xa2   :  { %v481_v34 = vadd.f32 %v480_v27, %v432_v32 }
  0xa4   :  { %v520_v35 = vadd.f32 %v481_v34, %v36_v33 }
  0xa5   :  { %v487_v36 = vpop.f32.mrf.mxu2  ;;  %v1125_v63 = vpop.f32.mrf.mxu3 }
  0xa6   :  { %536 = vst.msk [vmem:[#allocation2] sm:$0xff] %vm19_vm0, %v520_v35  ;;  %v384_v37 = vpop.f32.mrf.mxu0 }
  0xa7   :  { %v433_v38 = vpop.f32.mrf.mxu1 }
  0xa8   :  { %v434_v39 = vadd.f32 %v433_v38, %v384_v37 }
  0xaa   :  { %v483_v42 = vadd.f32 %v482_v28, %v434_v39 }
  0xac   :  { %v521_v43 = vadd.f32 %v483_v42, %v37_v40  ;;  %v43_v42 = vld [vmem:[#allocation2 + $0x38] sm:$0xff] }
  0xad   :  { %v555_v44 = vld [vmem:[#allocation2] sm:$0xff]  ;;  %v490_v45 = vpop.f32.mrf.mxu2  ;;  %v1133_v11 = vpop.f32.mrf.mxu3 }
  0xae   :  { %v575_v46 = vadd.f32 %v1111_v41, %v555_v44  ;;  %537 = vst.msk [vmem:[#allocation2 + $0x8] sm:$0xff] %vm19_vm0, %v521_v43  ;;  %v387_v47 = vpop.f32.mrf.mxu0 }
  0xaf   :  { %v436_v48 = vpop.f32.mrf.mxu1 }
  0xb0   :  { %v591_v49 = vpack.c.bf16 %v575_v46, %v575_v46  ;;  %v437_v50 = vadd.f32 %v436_v48, %v387_v47 }
  0xb2   :  { %608 = vst.msk [vmem:[%s1223_s3] sm:$0xf] %vm607_vm1, %v591_v49  ;;  %v486_v52 = vadd.f32 %v485_v29, %v437_v50 }
  0xb4   :  { %v522_v53 = vadd.f32 %v486_v52, %v38_v51  ;;  %v44_v52 = vld [vmem:[#allocation2 + $0x40] sm:$0xff] }
  0xb5   :  { %v556_v54 = vld [vmem:[#allocation2 + $0x8] sm:$0xff]  ;;  %v492_v55 = vpop.f32.mrf.mxu2  ;;  %v1143_v26 = vpop.f32.mrf.mxu3 }
  0xb6   :  { %v576_v56 = vadd.f32 %v1111_v41, %v556_v54  ;;  %538 = vst.msk [vmem:[#allocation2 + $0x10] sm:$0xff] %vm19_vm0, %v522_v53  ;;  %v389_v57 = vpop.f32.mrf.mxu0 }
  0xb7   :  { %v438_v58 = vpop.f32.mrf.mxu1 }
  0xb8   :  { %v592_v59 = vpack.c.bf16 %v576_v56, %v576_v56  ;;  %v439_v60 = vadd.f32 %v438_v58, %v389_v57 }
  0xba   :  { %609 = vst.msk [vmem:[%s1223_s3 + $0x4] sm:$0xf] %vm607_vm1, %v592_v59  ;;  %v488_v62 = vadd.f32 %v487_v36, %v439_v60 }
  0xbc   :  { %v523_v0 = vadd.f32 %v488_v62, %v39_v61 }
  0xbd   :  { %v557_v1 = vld [vmem:[#allocation2 + $0x10] sm:$0xff]  ;;  %v495_v2 = vpop.f32.mrf.mxu2  ;;  %v1151_v40 = vpop.f32.mrf.mxu3 }
  0xbe   :  { %v577_v3 = vadd.f32 %v1111_v41, %v557_v1  ;;  %539 = vst.msk [vmem:[#allocation2 + $0x18] sm:$0xff] %vm19_vm0, %v523_v0  ;;  %v392_v4 = vpop.f32.mrf.mxu0  ;;  %v45_v0 = vld [vmem:[#allocation2 + $0x48] sm:$0xff] }
  0xbf   :  { %v441_v5 = vpop.f32.mrf.mxu1 }
  0xc0   :  { %v593_v6 = vpack.c.bf16 %v577_v3, %v577_v3  ;;  %v442_v7 = vadd.f32 %v441_v5, %v392_v4 }
  0xc2   :  { %610 = vst.msk [vmem:[%s1223_s3 + $0x8] sm:$0xf] %vm607_vm1, %v593_v6  ;;  %v491_v9 = vadd.f32 %v490_v45, %v442_v7  ;;  %v48_v6 = vld [vmem:[#allocation2 + $0x60] sm:$0xff] }
  0xc4   :  { %v524_v10 = vadd.f32 %v491_v9, %v40_v8 }
  0xc5   :  { %v558_v12 = vld [vmem:[#allocation2 + $0x18] sm:$0xff]  ;;  %v497_v13 = vpop.f32.mrf.mxu2  ;;  %v461_v54 = vpop.f32.mrf.mxu3 }
  0xc6   :  { %v578_v14 = vadd.f32 %v1111_v41, %v558_v12  ;;  %540 = vst.msk [vmem:[#allocation2 + $0x20] sm:$0xff] %vm19_vm0, %v524_v10  ;;  %v394_v15 = vpop.f32.mrf.mxu0 }
  0xc7   :  { %v443_v16 = vpop.f32.mrf.mxu1 }
  0xc8   :  { %v594_v17 = vpack.c.bf16 %v578_v14, %v578_v14  ;;  %v444_v18 = vadd.f32 %v443_v16, %v394_v15  ;;  %v46_v16 = vld [vmem:[#allocation2 + $0x50] sm:$0xff] }
  0xca   :  { %611 = vst.msk [vmem:[%s1223_s3 + $0xc] sm:$0xf] %vm607_vm1, %v594_v17  ;;  %v493_v20 = vadd.f32 %v492_v55, %v444_v18 }
  0xcc   :  { %v525_v21 = vadd.f32 %v493_v20, %v41_v19  ;;  %v49_v20 = vld [vmem:[#allocation2 + $0x68] sm:$0xff] }
  0xcd   :  { %v559_v22 = vld [vmem:[#allocation2 + $0x20] sm:$0xff]  ;;  %v500_v23 = vpop.f32.mrf.mxu2  ;;  %v463_v4 = vpop.f32.mrf.mxu3 }
  0xce   :  { %v579_v24 = vadd.f32 %v1111_v41, %v559_v22  ;;  %541 = vst.msk [vmem:[#allocation2 + $0x28] sm:$0xff] %vm19_vm0, %v525_v21  ;;  %v397_v25 = vpop.f32.mrf.mxu0  ;;  %v464_v17 = vadd.f32 %v463_v4, %v1133_v11 }
  0xcf   :  { %v446_v27 = vpop.f32.mrf.mxu1 }
  0xd0   :  { %v595_v28 = vpack.c.bf16 %v579_v24, %v579_v24  ;;  %v447_v29 = vadd.f32 %v446_v27, %v397_v25 }
  0xd2   :  { %612 = vst.msk [vmem:[%s1223_s3 + $0x10] sm:$0xf] %vm607_vm1, %v595_v28  ;;  %v496_v31 = vadd.f32 %v495_v2, %v447_v29  ;;  %v462_v2 = vadd.f32 %v461_v54, %v1125_v63 }
  0xd4   :  { %v526_v32 = vadd.f32 %v496_v31, %v42_v30  ;;  %v47_v31 = vld [vmem:[#allocation2 + $0x58] sm:$0xff] }
  0xd5   :  { %v560_v33 = vld [vmem:[#allocation2 + $0x28] sm:$0xff]  ;;  %v502_v34 = vpop.f32.mrf.mxu2  ;;  %v466_v25 = vpop.f32.mrf.mxu3 }
  0xd6   :  { %v580_v35 = vadd.f32 %v1111_v41, %v560_v33  ;;  %542 = vst.msk [vmem:[#allocation2 + $0x30] sm:$0xff] %vm19_vm0, %v526_v32  ;;  %v399_v36 = vpop.f32.mrf.mxu0 }
  0xd7   :  { %v448_v37 = vpop.f32.mrf.mxu1 }
  0xd8   :  { %v596_v38 = vpack.c.bf16 %v580_v35, %v580_v35  ;;  %v449_v39 = vadd.f32 %v448_v37, %v399_v36 }
  0xda   :  { %613 = vst.msk [vmem:[%s1223_s3 + $0x14] sm:$0xf] %vm607_vm1, %v596_v38  ;;  %v498_v43 = vadd.f32 %v497_v13, %v449_v39  ;;  %v50_v38 = vld [vmem:[#allocation2 + $0x70] sm:$0xff] }
  0xdc   :  { %v527_v44 = vadd.f32 %v498_v43, %v43_v42 }
  0xdd   :  { %v561_v45 = vld [vmem:[#allocation2 + $0x30] sm:$0xff]  ;;  %v505_v46 = vpop.f32.mrf.mxu2 }
  0xde   :  { %v581_v47 = vadd.f32 %v1111_v41, %v561_v45  ;;  %543 = vst.msk [vmem:[#allocation2 + $0x38] sm:$0xff] %vm19_vm0, %v527_v44  ;;  %v402_v48 = vpop.f32.mrf.mxu0 }
  0xdf   :  { %v451_v49 = vpop.f32.mrf.mxu1 }
  0xe0   :  { %v597_v50 = vpack.c.bf16 %v581_v47, %v581_v47  ;;  %v452_v51 = vadd.f32 %v451_v49, %v402_v48 }
  0xe2   :  { %614 = vst.msk [vmem:[%s1223_s3 + $0x18] sm:$0xf] %vm607_vm1, %v597_v50  ;;  %v501_v53 = vadd.f32 %v500_v23, %v452_v51  ;;  %v51_v51 = vld [vmem:[#allocation2 + $0x78] sm:$0xff] }
  0xe4   :  { %v528_v55 = vadd.f32 %v501_v53, %v44_v52 }
  0xe5   :  { %v562_v56 = vld [vmem:[#allocation2 + $0x38] sm:$0xff]  ;;  %v507_v57 = vpop.f32.mrf.mxu2 }
  0xe6   :  { %v582_v58 = vadd.f32 %v1111_v41, %v562_v56  ;;  %544 = vst.msk [vmem:[#allocation2 + $0x40] sm:$0xff] %vm19_vm0, %v528_v55  ;;  %v404_v59 = vpop.f32.mrf.mxu0 }
  0xe7   :  { %v453_v60 = vpop.f32.mrf.mxu1 }
  0xe8   :  { %v598_v61 = vpack.c.bf16 %v582_v58, %v582_v58  ;;  %v454_v62 = vadd.f32 %v453_v60, %v404_v59 }
  0xea   :  { %615 = vst.msk [vmem:[%s1223_s3 + $0x1c] sm:$0xf] %vm607_vm1, %v598_v61  ;;  %v503_v1 = vadd.f32 %v502_v34, %v454_v62  ;;  %v467_v34 = vadd.f32 %v466_v25, %v1143_v26 }
  0xec   :  { %v529_v3 = vadd.f32 %v503_v1, %v45_v0 }
  0xed   :  { %v563_v5 = vld [vmem:[#allocation2 + $0x40] sm:$0xff]  ;;  %v510_v7 = vpop.f32.mrf.mxu2 }
  0xee   :  { %v583_v8 = vadd.f32 %v1111_v41, %v563_v5  ;;  %545 = vst.msk [vmem:[#allocation2 + $0x48] sm:$0xff] %vm19_vm0, %v529_v3  ;;  %v511_v9 = vadd.f32 %v510_v7, %v462_v2  ;;  %v407_v10 = vpop.f32.mrf.mxu0 }
  0xef   :  { %v456_v12 = vpop.f32.mrf.mxu1 }
  0xf0   :  { %v599_v13 = vpack.c.bf16 %v583_v8, %v583_v8  ;;  %v532_v14 = vadd.f32 %v511_v9, %v48_v6  ;;  %v457_v15 = vadd.f32 %v456_v12, %v407_v10 }
  0xf2   :  { %616 = vst.msk [vmem:[%s1223_s3 + $0x20] sm:$0xf] %vm607_vm1, %v599_v13  ;;  %v506_v63 = vadd.f32 %v505_v46, %v457_v15  ;;  %v468_v46 = vpop.f32.mrf.mxu3 }
  0xf3   :  { %548 = vst.msk [vmem:[#allocation2 + $0x60] sm:$0xff] %vm19_vm0, %v532_v14  ;;  %v469_v48 = vadd.f32 %v468_v46, %v1151_v40 }
  0xf4   :  { %v530_v18 = vadd.f32 %v506_v63, %v46_v16 }
  0xf5   :  { %v564_v19 = vld [vmem:[#allocation2 + $0x48] sm:$0xff]  ;;  %v512_v21 = vpop.f32.mrf.mxu2 }
  0xf6   :  { %v584_v22 = vadd.f32 %v1111_v41, %v564_v19  ;;  %546 = vst.msk [vmem:[#allocation2 + $0x50] sm:$0xff] %vm19_vm0, %v530_v18  ;;  %v513_v23 = vadd.f32 %v512_v21, %v464_v17  ;;  %v409_v24 = vpop.f32.mrf.mxu0 }
  0xf7   :  { %v458_v27 = vpop.f32.mrf.mxu1 }
  0xf8   :  { %v600_v28 = vpack.c.bf16 %v584_v22, %v584_v22  ;;  %v533_v29 = vadd.f32 %v513_v23, %v49_v20  ;;  %v459_v30 = vadd.f32 %v458_v27, %v409_v24 }
  0xfa   :  { %617 = vst.msk [vmem:[%s1223_s3 + $0x24] sm:$0xf] %vm607_vm1, %v600_v28  ;;  %v567_v11 = vld [vmem:[#allocation2 + $0x60] sm:$0xff]  ;;  %v508_v32 = vadd.f32 %v507_v57, %v459_v30 }
  0xfb   :  { %v587_v33 = vadd.f32 %v1111_v41, %v567_v11  ;;  %549 = vst.msk [vmem:[#allocation2 + $0x68] sm:$0xff] %vm19_vm0, %v533_v29 }
  0xfc   :  { %v531_v35 = vadd.f32 %v508_v32, %v47_v31 }
  0xfd   :  { %v603_v36 = vpack.c.bf16 %v587_v33, %v587_v33  ;;  %v565_v37 = vld [vmem:[#allocation2 + $0x50] sm:$0xff]  ;;  %v515_v39 = vpop.f32.mrf.mxu2 }
  0xfe   :  { %v585_v42 = vadd.f32 %v1111_v41, %v565_v37  ;;  %547 = vst.msk [vmem:[#allocation2 + $0x58] sm:$0xff] %vm19_vm0, %v531_v35  ;;  %v516_v43 = vadd.f32 %v515_v39, %v467_v34 }
  0xff   :  { %620 = vst.msk [vmem:[%s1223_s3 + $0x30] sm:$0xf] %vm607_vm1, %v603_v36 }
 0x100   :  { %v601_v44 = vpack.c.bf16 %v585_v42, %v585_v42  ;;  %v534_v45 = vadd.f32 %v516_v43, %v50_v38 }
 0x102   :  { %618 = vst.msk [vmem:[%s1223_s3 + $0x28] sm:$0xf] %vm607_vm1, %v601_v44  ;;  %v568_v26 = vld [vmem:[#allocation2 + $0x68] sm:$0xff] }
 0x103   :  { %v588_v47 = vadd.f32 %v1111_v41, %v568_v26  ;;  %550 = vst.msk [vmem:[#allocation2 + $0x70] sm:$0xff] %vm19_vm0, %v534_v45 }
 0x105   :  { %v604_v49 = vpack.c.bf16 %v588_v47, %v588_v47  ;;  %v566_v50 = vld [vmem:[#allocation2 + $0x58] sm:$0xff]  ;;  %v517_v52 = vpop.f32.mrf.mxu2 }
 0x106   :  { %v586_v53 = vadd.f32 %v1111_v41, %v566_v50  ;;  %v518_v54 = vadd.f32 %v517_v52, %v469_v48 }
 0x107   :  { %621 = vst.msk [vmem:[%s1223_s3 + $0x34] sm:$0xf] %vm607_vm1, %v604_v49 }
 0x108   :  { %v602_v55 = vpack.c.bf16 %v586_v53, %v586_v53  ;;  %v535_v56 = vadd.f32 %v518_v54, %v51_v51 }
 0x10a   :  { %619 = vst.msk [vmem:[%s1223_s3 + $0x2c] sm:$0xf] %vm607_vm1, %v602_v55  ;;  %v569_v40 = vld [vmem:[#allocation2 + $0x70] sm:$0xff] }
 0x10b   :  { %v589_v57 = vadd.f32 %v1111_v41, %v569_v40  ;;  %551 = vst.msk [vmem:[#allocation2 + $0x78] sm:$0xff] %vm19_vm0, %v535_v56 }
 0x10d   :  { %v605_v58 = vpack.c.bf16 %v589_v57, %v589_v57 }
 0x10f   :  { %622 = vst.msk [vmem:[%s1223_s3 + $0x38] sm:$0xf] %vm607_vm1, %v605_v58 }
 0x112   :  { %v570_v59 = vld [vmem:[#allocation2 + $0x78] sm:$0xff] }
 0x113   :  { %v590_v60 = vadd.f32 %v1111_v41, %v570_v59 }
 0x115   :  { %v606_v61 = vpack.c.bf16 %v590_v60, %v590_v60 }
 0x117   :  { %623 = vst.msk [vmem:[%s1223_s3 + $0x3c] sm:$0xf] %vm607_vm1, %v606_v61 }

// kernel: _lambda_.22
= control target key start
LH: loop header
LB: loop body
LE: loop exit
PB: predicated region body
PF: predicated region fallthrough
CT: control target
= control target key end

     0   :  { %vm22_vm0 = vcmask 261120   ;;  %vm658_vm1 = vcmask 257024   ;;  %s1339_s1 = inlined_call_operand.vmem [shape: bf16[288,32], index: 1, kind: input, shape index: {}]   ;;  %s1340_s0 = inlined_call_operand.vmem [shape: bf16[128,288], index: 0, kind: input, shape index: {}]   ;;  %s1341_s2 = inlined_call_operand.vmem [shape: f32[1,32], index: 2, kind: input, shape index: {}]   ;;  %s1342_s3 = inlined_call_operand.vmem [shape: bf16[128,32], index: 3, kind: input, shape index: {}]   ;;  %s1343_s4 = inlined_call_operand.vmem [shape: bf16[128,32], index: 4, kind: output, shape index: {}]  }
   0x1   :  { %v886_v0 = vld [vmem:[%s1339_s1 + $0x38] sm:$0xff]  ;;  %v896_v2 = vld [vmem:[%s1339_s1 + $0x88] sm:$0xff]  ;;  %v885_v3 = vld [vmem:[%s1339_s1 + $0x30] sm:$0xff] }
   0x2   :  { %v894_v1 = vld [vmem:[%s1339_s1 + $0x78] sm:$0xff]  ;;  %376 = vmatpush.bf16.msra.mxu0 %v886_v0  ;;  %936 = vmatpush.bf16.msra.mxu3 %v886_v0  ;;  %v893_v4 = vld [vmem:[%s1339_s1 + $0x70] sm:$0xff]  ;;  %v895_v5 = vld [vmem:[%s1339_s1 + $0x80] sm:$0xff] }
   0x3   :  { %425 = vmatpush.bf16.msra.mxu1 %v894_v1  ;;  %480 = vmatpush.bf16.msra.mxu2 %v896_v2  ;;  %v689_v6 = vld [vmem:[%s1340_s0 + $0x8] sm:$0xf]  ;;  %v857_v7 = vld [vmem:[%s1340_s0 + $0x10] sm:$0xf0]  ;;  %v883_v11 = vld [vmem:[%s1339_s1 + $0x20] sm:$0xff] }
   0x4   :  { %v690_v8 = vor.u32 %v857_v7, %v689_v6  ;;  %v884_v9 = vld [vmem:[%s1339_s1 + $0x28] sm:$0xff]  ;;  %v891_v12 = vld [vmem:[%s1339_s1 + $0x60] sm:$0xff]  ;;  %v882_v13 = vld [vmem:[%s1339_s1 + $0x18] sm:$0xff] }
   0x5   :  { %v892_v10 = vld [vmem:[%s1339_s1 + $0x68] sm:$0xff]  ;;  %v890_v14 = vld [vmem:[%s1339_s1 + $0x58] sm:$0xff]  ;;  %v881_v15 = vld [vmem:[%s1339_s1 + $0x10] sm:$0xff] }
   0x6   :  { %377 = vmatpush.bf16.msra.mxu0 %v885_v3  ;;  %937 = vmatpush.bf16.msra.mxu3 %v885_v3  ;;  %v889_v16 = vld [vmem:[%s1339_s1 + $0x50] sm:$0xff]  ;;  %v701_v17 = vld [vmem:[%s1340_s0 + $0x20] sm:$0xf]  ;;  %v860_v18 = vld [vmem:[%s1340_s0 + $0x28] sm:$0xf0] }
   0x7   :  { %426 = vmatpush.bf16.msra.mxu1 %v893_v4  ;;  %481 = vmatpush.bf16.msra.mxu2 %v895_v5  ;;  %v702_v19 = vor.u32 %v860_v18, %v701_v17  ;;  %v880_v20 = vld [vmem:[%s1339_s1 + $0x8] sm:$0xff]  ;;  %v879_v22 = vld [vmem:[%s1339_s1] sm:$0xff]  ;;  %v753_v26 = vld [vmem:[%s1340_s0 + $0x90] sm:$0xf] }
   0x8   :  { %v888_v21 = vld [vmem:[%s1339_s1 + $0x48] sm:$0xff]  ;;  %v887_v23 = vld [vmem:[%s1339_s1 + $0x40] sm:$0xff]  ;;  %v874_v27 = vld [vmem:[%s1340_s0 + $0x98] sm:$0xf0] }
   0x9   :  { %v681_v24 = vld [vmem:[%s1340_s0] sm:$0xf]  ;;  %v856_v25 = vld [vmem:[%s1340_s0 + $0x8] sm:$0xf0]  ;;  %v855_v28 = vld [vmem:[%s1340_s0 + $0x4] sm:$0xf]  ;;  %v754_v31 = vor.u32 %v874_v27, %v753_v26 }
   0xa   :  { %847 = vmatmul.msk.bf16.vlgmr.msra.gmra.mxu2 %vm22_vm0, %v690_v8  ;;  %378 = vmatpush.bf16.msra.mxu0 %v884_v9  ;;  %v683_v29 = vld [vmem:[%s1340_s0 + $0xc] sm:$0xf0]  ;;  %v682_v30 = vor.u32 %v856_v25, %v681_v24  ;;  %v713_v33 = vld [vmem:[%s1340_s0 + $0x38] sm:$0xf]  ;;  %v863_v34 = vld [vmem:[%s1340_s0 + $0x40] sm:$0xf0] }
   0xb   :  { %938 = vmatpush.bf16.msra.mxu3 %v884_v9  ;;  %427 = vmatpush.bf16.msra.mxu1 %v892_v10  ;;  %v686_v32 = vor.u32 %v855_v28, %v683_v29  ;;  %v714_v35 = vor.u32 %v863_v34, %v713_v33  ;;  %v693_v36 = vld [vmem:[%s1340_s0 + $0x18] sm:$0xf]  ;;  %v859_v37 = vld [vmem:[%s1340_s0 + $0x20] sm:$0xf0]  ;;  %v765_v38 = vld [vmem:[%s1340_s0 + $0xa8] sm:$0xf] }
   0xc   :  { %v877_v39 = vld [vmem:[%s1340_s0 + $0xb0] sm:$0xf0]  ;;  %v858_v40 = vld [vmem:[%s1340_s0 + $0x1c] sm:$0xf]  ;;  %v695_v41 = vld [vmem:[%s1340_s0 + $0x24] sm:$0xf0]  ;;  %v694_v42 = vor.u32 %v859_v37, %v693_v36 }
   0xd   :  { %v766_v43 = vor.u32 %v877_v39, %v765_v38  ;;  %v698_v44 = vor.u32 %v858_v40, %v695_v41  ;;  %v725_v45 = vld [vmem:[%s1340_s0 + $0x50] sm:$0xf]  ;;  %v866_v46 = vld [vmem:[%s1340_s0 + $0x58] sm:$0xf0]  ;;  %v861_v50 = vld [vmem:[%s1340_s0 + $0x34] sm:$0xf] }
   0xe   :  { %379 = vmatpush.bf16.msra.mxu0 %v883_v11  ;;  %v726_v47 = vor.u32 %v866_v46, %v725_v45  ;;  %v705_v48 = vld [vmem:[%s1340_s0 + $0x30] sm:$0xf]  ;;  %v862_v49 = vld [vmem:[%s1340_s0 + $0x38] sm:$0xf0]  ;;  %v707_v51 = vld [vmem:[%s1340_s0 + $0x3c] sm:$0xf0] }
   0xf   :  { %939 = vmatpush.bf16.msra.mxu3 %v883_v11  ;;  %428 = vmatpush.bf16.msra.mxu1 %v891_v12  ;;  %v873_v52 = vld [vmem:[%s1340_s0 + $0x94] sm:$0xf]  ;;  %v755_v53 = vld [vmem:[%s1340_s0 + $0x9c] sm:$0xf0]  ;;  %v706_v54 = vor.u32 %v862_v49, %v705_v48  ;;  %v710_v55 = vor.u32 %v861_v50, %v707_v51  ;;  %v737_v57 = vld [vmem:[%s1340_s0 + $0x68] sm:$0xf] }
  0x10   :  { %v758_v56 = vor.u32 %v873_v52, %v755_v53  ;;  %v869_v58 = vld [vmem:[%s1340_s0 + $0x70] sm:$0xf0]  ;;  %v717_v60 = vld [vmem:[%s1340_s0 + $0x48] sm:$0xf]  ;;  %v864_v62 = vld [vmem:[%s1340_s0 + $0x4c] sm:$0xf] }
  0x11   :  { %v738_v59 = vor.u32 %v869_v58, %v737_v57  ;;  %v865_v61 = vld [vmem:[%s1340_s0 + $0x50] sm:$0xf0]  ;;  %v719_v63 = vld [vmem:[%s1340_s0 + $0x54] sm:$0xf0]  ;;  %v876_v0 = vld [vmem:[%s1340_s0 + $0xac] sm:$0xf] }
  0x12   :  { %380 = vmatpush.bf16.msra.mxu0 %v882_v13  ;;  %v718_v2 = vor.u32 %v865_v61, %v717_v60  ;;  %v722_v3 = vor.u32 %v864_v62, %v719_v63  ;;  %v749_v5 = vld [vmem:[%s1340_s0 + $0x80] sm:$0xf]  ;;  %v872_v6 = vld [vmem:[%s1340_s0 + $0x88] sm:$0xf0]  ;;  %v731_v11 = vld [vmem:[%s1340_s0 + $0x6c] sm:$0xf0] }
  0x13   :  { %940 = vmatpush.bf16.msra.mxu3 %v882_v13  ;;  %429 = vmatpush.bf16.msra.mxu1 %v890_v14  ;;  %v750_v7 = vor.u32 %v872_v6, %v749_v5  ;;  %v729_v8 = vld [vmem:[%s1340_s0 + $0x60] sm:$0xf]  ;;  %v868_v9 = vld [vmem:[%s1340_s0 + $0x68] sm:$0xf0]  ;;  %v741_v17 = vld [vmem:[%s1340_s0 + $0x78] sm:$0xf] }
  0x14   :  { %v871_v18 = vld [vmem:[%s1340_s0 + $0x80] sm:$0xf0]  ;;  %v878_v24 = vld [vmem:[%s1340_s0 + $0xb8] sm:$0xf0]  ;;  %v954_v26 = vmov 0.0  }
  0x15   :  { %23 = vst.msk [vmem:[#allocation2] sm:$0xff] %vm22_vm0, %v954_v26  ;;  %v898_v40 = vld [vmem:[%s1342_s3] sm:$0xff]  }
  0x16   :  { %381 = vmatpush.bf16.msra.mxu0 %v881_v15  ;;  %24 = vst.msk [vmem:[#allocation2 + $0x8] sm:$0xff] %vm22_vm0, %v954_v26 }
  0x17   :  { %941 = vmatpush.bf16.msra.mxu3 %v881_v15  ;;  %430 = vmatpush.bf16.msra.mxu1 %v889_v16  ;;  %v875_v15 = vld [vmem:[%s1340_s0 + $0xa0] sm:$0xf0]  ;;  %25 = vst.msk [vmem:[#allocation2 + $0x10] sm:$0xff] %vm22_vm0, %v954_v26 }
  0x18   :  { %26 = vst.msk [vmem:[#allocation2 + $0x18] sm:$0xff] %vm22_vm0, %v954_v26 }
  0x19   :  { %27 = vst.msk [vmem:[#allocation2 + $0x20] sm:$0xff] %vm22_vm0, %v954_v26 }
  0x1a   :  { %848 = vmatmul.msk.bf16.gmra.mxu2 %vm22_vm0, %v702_v19  ;;  %382 = vmatpush.bf16.msra.mxu0 %v880_v20  ;;  %v870_v19 = vld [vmem:[%s1340_s0 + $0x7c] sm:$0xf]  ;;  %28 = vst.msk [vmem:[#allocation2 + $0x28] sm:$0xff] %vm22_vm0, %v954_v26 }
  0x1b   :  { %942 = vmatpush.bf16.msra.mxu3 %v880_v20  ;;  %431 = vmatpush.bf16.msra.mxu1 %v888_v21  ;;  %v743_v20 = vld [vmem:[%s1340_s0 + $0x84] sm:$0xf0]  ;;  %29 = vst.msk [vmem:[#allocation2 + $0x30] sm:$0xff] %vm22_vm0, %v954_v26 }
  0x1c   :  { %30 = vst.msk [vmem:[#allocation2 + $0x38] sm:$0xff] %vm22_vm0, %v954_v26  ;;  %v39_v33 = vld [vmem:[#allocation2] sm:$0xff] }
  0x1d   :  { %31 = vst.msk [vmem:[#allocation2 + $0x40] sm:$0xff] %vm22_vm0, %v954_v26  ;;  %v40_v41 = vld [vmem:[#allocation2 + $0x8] sm:$0xff] }
  0x1e   :  { %383 = vmatpush.bf16.msra.mxu0 %v879_v22  ;;  %32 = vst.msk [vmem:[#allocation2 + $0x48] sm:$0xff] %vm22_vm0, %v954_v26  ;;  %v41_v53 = vld [vmem:[#allocation2 + $0x10] sm:$0xff] }
  0x1f   :  { %943 = vmatpush.bf16.msra.mxu3 %v879_v22  ;;  %432 = vmatpush.bf16.msra.mxu1 %v887_v23  ;;  %v746_v22 = vor.u32 %v870_v19, %v743_v20  ;;  %33 = vst.msk [vmem:[#allocation2 + $0x50] sm:$0xff] %vm22_vm0, %v954_v26 }
  0x20   :  { %34 = vst.msk [vmem:[#allocation2 + $0x58] sm:$0xff] %vm22_vm0, %v954_v26 }
  0x21   :  { %384 = vmatmul.bf16.vlgmr.msra.gmra.mxu0 %v682_v30  ;;  %35 = vst.msk [vmem:[#allocation2 + $0x60] sm:$0xff] %vm22_vm0, %v954_v26 }
  0x22   :  { %414 = vmatmul.bf16.vlgmr.msra.gmra.mxu3 %v754_v31  ;;  %433 = vmatmul.bf16.vlgmr.msra.gmra.mxu1 %v686_v32  ;;  %36 = vst.msk [vmem:[#allocation2 + $0x68] sm:$0xff] %vm22_vm0, %v954_v26 }
  0x23   :  { %944 = vmatpush.bf16.msrb.mxu3 %v894_v1  ;;  %v767_v1 = vld [vmem:[%s1340_s0 + $0xb4] sm:$0xf0]  ;;  %37 = vst.msk [vmem:[#allocation2 + $0x70] sm:$0xff] %vm22_vm0, %v954_v26 }
  0x24   :  { %38 = vst.msk [vmem:[#allocation2 + $0x78] sm:$0xff] %vm22_vm0, %v954_v26 }
  0x27   :  { %945 = vmatpush.bf16.msrb.mxu3 %v893_v4  ;;  %v770_v4 = vor.u32 %v876_v0, %v767_v1  ;;  %v929_v1 = vld [vmem:[%s1342_s3 + $0x8] sm:$0xff]  }
  0x28   :  { %v903_v6 = vunpack.c.l.bf16 %v929_v1 }
  0x2a   :  { %849 = vmatmul.msk.bf16.gmra.mxu2 %vm22_vm0, %v714_v35 }
  0x2b   :  { %946 = vmatpush.bf16.msrb.mxu3 %v892_v10  ;;  %v867_v10 = vld [vmem:[%s1340_s0 + $0x64] sm:$0xf] }
  0x2c   :  { %v734_v13 = vor.u32 %v867_v10, %v731_v11 }
  0x2f   :  { %947 = vmatpush.bf16.msrb.mxu3 %v891_v12  ;;  %v730_v12 = vor.u32 %v868_v9, %v729_v8 }
  0x31   :  { %389 = vmatmul.bf16.gmra.mxu0 %v694_v42  ;;  %v1209_v42 = vld [vmem:[%s1341_s2] ss:$0 sm:$0xff] }
  0x32   :  { %419 = vmatmul.bf16.gmra.mxu3 %v766_v43  ;;  %438 = vmatmul.bf16.gmra.mxu1 %v698_v44  ;;  %v899_v44 = vunpack.c.l.bf16 %v898_v40 }
  0x33   :  { %948 = vmatpush.bf16.msrb.mxu3 %v890_v14  ;;  %v761_v14 = vld [vmem:[%s1340_s0 + $0x98] sm:$0xf] }
  0x37   :  { %949 = vmatpush.bf16.msrb.mxu3 %v889_v16  ;;  %v762_v16 = vor.u32 %v875_v15, %v761_v14  ;;  %v43_v15 = vld [vmem:[#allocation2 + $0x20] sm:$0xff] }
  0x3a   :  { %850 = vmatmul.msk.bf16.gmra.mxu2 %vm22_vm0, %v726_v47 }
  0x3b   :  { %950 = vmatpush.bf16.msrb.mxu3 %v888_v21  ;;  %v742_v21 = vor.u32 %v871_v18, %v741_v17  ;;  %v904_v18 = vunpack.c.h.bf16 %v929_v1 }
  0x3f   :  { %951 = vmatpush.bf16.msrb.mxu3 %v887_v23  ;;  %v773_v23 = vld [vmem:[%s1340_s0 + $0xb0] sm:$0xf] }
  0x40   :  { %v774_v25 = vor.u32 %v878_v24, %v773_v23 }
  0x41   :  { %394 = vmatmul.bf16.gmra.mxu0 %v706_v54 }
  0x42   :  { %443 = vmatmul.bf16.gmra.mxu1 %v710_v55  ;;  %463 = vmatmul.bf16.vlgmr.msrb.gmra.mxu3 %v758_v56  ;;  %v900_v56 = vunpack.c.h.bf16 %v898_v40 }
  0x4a   :  { %851 = vmatmul.msk.bf16.gmra.mxu2 %vm22_vm0, %v738_v59 }
  0x51   :  { %399 = vmatmul.bf16.gmra.mxu0 %v718_v2  ;;  %v42_v2 = vld [vmem:[#allocation2 + $0x18] sm:$0xff] }
  0x52   :  { %448 = vmatmul.bf16.gmra.mxu1 %v722_v3  ;;  %468 = vmatmul.bf16.gmra.mxu3 %v770_v4 }
  0x5a   :  { %852 = vmatmul.msk.bf16.gmra.mxu2 %vm22_vm0, %v750_v7 }
  0x61   :  { %404 = vmatmul.bf16.gmra.mxu0 %v730_v12 }
  0x62   :  { %453 = vmatmul.bf16.gmra.mxu1 %v734_v13 }
  0x6a   :  { %853 = vmatmul.msk.bf16.gmra.mxu2 %vm22_vm0, %v762_v16 }
  0x71   :  { %409 = vmatmul.bf16.gmra.mxu0 %v742_v21 }
  0x72   :  { %458 = vmatmul.bf16.gmra.mxu1 %v746_v22 }
  0x7a   :  { %854 = vmatmul.msk.bf16.gmra.mxu2 %vm22_vm0, %v774_v25 }
  0x8d   :  { %v483_v27 = vpop.f32.mrf.mxu2 }
  0x95   :  { %v485_v28 = vpop.f32.mrf.mxu2 }
  0x9d   :  { %v488_v29 = vpop.f32.mrf.mxu2 }
  0x9e   :  { %v385_v30 = vpop.f32.mrf.mxu0 }
  0x9f   :  { %v434_v31 = vpop.f32.mrf.mxu1 }
  0xa0   :  { %v435_v32 = vadd.f32 %v434_v31, %v385_v30 }
  0xa2   :  { %v484_v34 = vadd.f32 %v483_v27, %v435_v32 }
  0xa4   :  { %v523_v35 = vadd.f32 %v484_v34, %v39_v33 }
  0xa5   :  { %v490_v36 = vpop.f32.mrf.mxu2  ;;  %v1222_v5 = vpop.f32.mrf.mxu3 }
  0xa6   :  { %539 = vst.msk [vmem:[#allocation2] sm:$0xff] %vm22_vm0, %v523_v35  ;;  %v387_v37 = vpop.f32.mrf.mxu0 }
  0xa7   :  { %v436_v38 = vpop.f32.mrf.mxu1 }
  0xa8   :  { %v437_v39 = vadd.f32 %v436_v38, %v387_v37 }
  0xaa   :  { %v486_v43 = vadd.f32 %v485_v28, %v437_v39  ;;  %v930_v28 = vld [vmem:[%s1342_s3 + $0x10] sm:$0xff]  }
  0xab   :  { %v907_v32 = vunpack.c.l.bf16 %v930_v28 }
  0xac   :  { %v524_v45 = vadd.f32 %v486_v43, %v40_v41  ;;  %v45_v43 = vld [vmem:[#allocation2 + $0x30] sm:$0xff] }
  0xad   :  { %v558_v46 = vld [vmem:[#allocation2] sm:$0xff]  ;;  %v493_v47 = vpop.f32.mrf.mxu2  ;;  %v1234_v20 = vpop.f32.mrf.mxu3 }
  0xae   :  { %v578_v48 = vadd.f32 %v1209_v42, %v558_v46  ;;  %540 = vst.msk [vmem:[#allocation2 + $0x8] sm:$0xff] %vm22_vm0, %v524_v45  ;;  %v390_v49 = vpop.f32.mrf.mxu0  ;;  %v908_v46 = vunpack.c.h.bf16 %v930_v28 }
  0xaf   :  { %v439_v50 = vpop.f32.mrf.mxu1 }
  0xb0   :  { %v626_v51 = vadd.f32 %v899_v44, %v578_v48  ;;  %v440_v52 = vadd.f32 %v439_v50, %v390_v49 }
  0xb2   :  { %v642_v54 = vpack.c.bf16 %v626_v51, %v626_v51  ;;  %v489_v55 = vadd.f32 %v488_v29, %v440_v52  ;;  %v44_v29 = vld [vmem:[#allocation2 + $0x28] sm:$0xff] }
  0xb4   :  { %659 = vst.msk [vmem:[%s1343_s4] sm:$0xf] %vm658_vm1, %v642_v54  ;;  %v525_v57 = vadd.f32 %v489_v55, %v41_v53 }
  0xb5   :  { %v559_v58 = vld [vmem:[#allocation2 + $0x8] sm:$0xff]  ;;  %v495_v59 = vpop.f32.mrf.mxu2  ;;  %v1247_v38 = vpop.f32.mrf.mxu3 }
  0xb6   :  { %v579_v60 = vadd.f32 %v1209_v42, %v559_v58  ;;  %541 = vst.msk [vmem:[#allocation2 + $0x10] sm:$0xff] %vm22_vm0, %v525_v57  ;;  %v392_v61 = vpop.f32.mrf.mxu0  ;;  %v46_v57 = vld [vmem:[#allocation2 + $0x38] sm:$0xff] }
  0xb7   :  { %v441_v62 = vpop.f32.mrf.mxu1 }
  0xb8   :  { %v627_v63 = vadd.f32 %v900_v56, %v579_v60  ;;  %v442_v0 = vadd.f32 %v441_v62, %v392_v61  ;;  %v931_v56 = vld [vmem:[%s1342_s3 + $0x18] sm:$0xff]  }
  0xb9   :  { %v911_v60 = vunpack.c.l.bf16 %v931_v56 }
  0xba   :  { %v643_v3 = vpack.c.bf16 %v627_v63, %v627_v63  ;;  %v491_v4 = vadd.f32 %v490_v36, %v442_v0 }
  0xbc   :  { %660 = vst.msk [vmem:[%s1343_s4 + $0x4] sm:$0xf] %vm658_vm1, %v643_v3  ;;  %v526_v7 = vadd.f32 %v491_v4, %v42_v2 }
  0xbd   :  { %v560_v8 = vld [vmem:[#allocation2 + $0x10] sm:$0xff]  ;;  %v498_v9 = vpop.f32.mrf.mxu2  ;;  %v1255_v55 = vpop.f32.mrf.mxu3 }
  0xbe   :  { %v580_v10 = vadd.f32 %v1209_v42, %v560_v8  ;;  %542 = vst.msk [vmem:[#allocation2 + $0x18] sm:$0xff] %vm22_vm0, %v526_v7  ;;  %v395_v11 = vpop.f32.mrf.mxu0 }
  0xbf   :  { %v444_v12 = vpop.f32.mrf.mxu1 }
  0xc0   :  { %v628_v13 = vadd.f32 %v903_v6, %v580_v10  ;;  %v445_v14 = vadd.f32 %v444_v12, %v395_v11  ;;  %v47_v6 = vld [vmem:[#allocation2 + $0x40] sm:$0xff]  ;;  %v912_v10 = vunpack.c.h.bf16 %v931_v56 }
  0xc2   :  { %v644_v16 = vpack.c.bf16 %v628_v13, %v628_v13  ;;  %v494_v17 = vadd.f32 %v493_v47, %v445_v14 }
  0xc4   :  { %661 = vst.msk [vmem:[%s1343_s4 + $0x8] sm:$0xf] %vm658_vm1, %v644_v16  ;;  %v527_v19 = vadd.f32 %v494_v17, %v43_v15 }
  0xc5   :  { %v561_v21 = vld [vmem:[#allocation2 + $0x18] sm:$0xff]  ;;  %v500_v22 = vpop.f32.mrf.mxu2 }
  0xc6   :  { %v581_v23 = vadd.f32 %v1209_v42, %v561_v21  ;;  %543 = vst.msk [vmem:[#allocation2 + $0x20] sm:$0xff] %vm22_vm0, %v527_v19  ;;  %v397_v24 = vpop.f32.mrf.mxu0  ;;  %v932_v19 = vld [vmem:[%s1342_s3 + $0x20] sm:$0xff]   ;;  %v48_v21 = vld [vmem:[#allocation2 + $0x48] sm:$0xff] }
  0xc7   :  { %v446_v25 = vpop.f32.mrf.mxu1 }
  0xc8   :  { %v629_v26 = vadd.f32 %v904_v18, %v581_v23  ;;  %v447_v27 = vadd.f32 %v446_v25, %v397_v24  ;;  %v915_v25 = vunpack.c.l.bf16 %v932_v19 }
  0xca   :  { %v645_v30 = vpack.c.bf16 %v629_v26, %v629_v26  ;;  %v496_v31 = vadd.f32 %v495_v59, %v447_v27 }
  0xcc   :  { %662 = vst.msk [vmem:[%s1343_s4 + $0xc] sm:$0xf] %vm658_vm1, %v645_v30  ;;  %v528_v33 = vadd.f32 %v496_v31, %v44_v29  ;;  %v51_v29 = vld [vmem:[#allocation2 + $0x60] sm:$0xff] }
  0xcd   :  { %v562_v34 = vld [vmem:[#allocation2 + $0x20] sm:$0xff]  ;;  %v503_v35 = vpop.f32.mrf.mxu2 }
  0xce   :  { %v582_v36 = vadd.f32 %v1209_v42, %v562_v34  ;;  %544 = vst.msk [vmem:[#allocation2 + $0x28] sm:$0xff] %vm22_vm0, %v528_v33  ;;  %v400_v37 = vpop.f32.mrf.mxu0 }
  0xcf   :  { %v449_v39 = vpop.f32.mrf.mxu1 }
  0xd0   :  { %v630_v40 = vadd.f32 %v907_v32, %v582_v36  ;;  %v450_v41 = vadd.f32 %v449_v39, %v400_v37  ;;  %v49_v37 = vld [vmem:[#allocation2 + $0x50] sm:$0xff] }
  0xd2   :  { %v646_v44 = vpack.c.bf16 %v630_v40, %v630_v40  ;;  %v499_v45 = vadd.f32 %v498_v9, %v450_v41  ;;  %v464_v9 = vpop.f32.mrf.mxu3 }
  0xd3   :  { %v465_v24 = vadd.f32 %v464_v9, %v1222_v5 }
  0xd4   :  { %663 = vst.msk [vmem:[%s1343_s4 + $0x10] sm:$0xf] %vm658_vm1, %v646_v44  ;;  %v529_v47 = vadd.f32 %v499_v45, %v45_v43  ;;  %v916_v43 = vunpack.c.h.bf16 %v932_v19 }
  0xd5   :  { %v563_v48 = vld [vmem:[#allocation2 + $0x28] sm:$0xff]  ;;  %v505_v49 = vpop.f32.mrf.mxu2 }
  0xd6   :  { %v583_v50 = vadd.f32 %v1209_v42, %v563_v48  ;;  %545 = vst.msk [vmem:[#allocation2 + $0x30] sm:$0xff] %vm22_vm0, %v529_v47  ;;  %v402_v51 = vpop.f32.mrf.mxu0  ;;  %v52_v47 = vld [vmem:[#allocation2 + $0x68] sm:$0xff] }
  0xd7   :  { %v451_v52 = vpop.f32.mrf.mxu1 }
  0xd8   :  { %v631_v53 = vadd.f32 %v908_v46, %v583_v50  ;;  %v452_v54 = vadd.f32 %v451_v52, %v402_v51  ;;  %v934_v46 = vld [vmem:[%s1342_s3 + $0x30] sm:$0xff]  }
  0xda   :  { %v647_v58 = vpack.c.bf16 %v631_v53, %v631_v53  ;;  %v501_v59 = vadd.f32 %v500_v22, %v452_v54  ;;  %v466_v27 = vpop.f32.mrf.mxu3  ;;  %v923_v54 = vunpack.c.l.bf16 %v934_v46 }
  0xdb   :  { %v467_v41 = vadd.f32 %v466_v27, %v1234_v20 }
  0xdc   :  { %664 = vst.msk [vmem:[%s1343_s4 + $0x14] sm:$0xf] %vm658_vm1, %v647_v58  ;;  %v530_v61 = vadd.f32 %v501_v59, %v46_v57  ;;  %v933_v59 = vld [vmem:[%s1342_s3 + $0x28] sm:$0xff]  }
  0xdd   :  { %v564_v62 = vld [vmem:[#allocation2 + $0x30] sm:$0xff]  ;;  %v508_v63 = vpop.f32.mrf.mxu2  ;;  %v920_v19 = vunpack.c.h.bf16 %v933_v59 }
  0xde   :  { %v584_v0 = vadd.f32 %v1209_v42, %v564_v62  ;;  %546 = vst.msk [vmem:[#allocation2 + $0x38] sm:$0xff] %vm22_vm0, %v530_v61  ;;  %v405_v1 = vpop.f32.mrf.mxu0 }
  0xdf   :  { %v454_v2 = vpop.f32.mrf.mxu1 }
  0xe0   :  { %v632_v3 = vadd.f32 %v911_v60, %v584_v0  ;;  %v455_v4 = vadd.f32 %v454_v2, %v405_v1  ;;  %v50_v60 = vld [vmem:[#allocation2 + $0x58] sm:$0xff]  ;;  %v919_v2 = vunpack.c.l.bf16 %v933_v59 }
  0xe2   :  { %v648_v7 = vpack.c.bf16 %v632_v3, %v632_v3  ;;  %v504_v8 = vadd.f32 %v503_v35, %v455_v4  ;;  %v469_v51 = vpop.f32.mrf.mxu3 }
  0xe3   :  { %v470_v0 = vadd.f32 %v469_v51, %v1247_v38 }
  0xe4   :  { %665 = vst.msk [vmem:[%s1343_s4 + $0x18] sm:$0xf] %vm658_vm1, %v648_v7  ;;  %v531_v11 = vadd.f32 %v504_v8, %v47_v6  ;;  %v53_v6 = vld [vmem:[#allocation2 + $0x70] sm:$0xff] }
  0xe5   :  { %v565_v12 = vld [vmem:[#allocation2 + $0x38] sm:$0xff]  ;;  %v510_v13 = vpop.f32.mrf.mxu2 }
  0xe6   :  { %v585_v14 = vadd.f32 %v1209_v42, %v565_v12  ;;  %547 = vst.msk [vmem:[#allocation2 + $0x40] sm:$0xff] %vm22_vm0, %v531_v11  ;;  %v407_v15 = vpop.f32.mrf.mxu0  ;;  %v924_v11 = vunpack.c.h.bf16 %v934_v46 }
  0xe7   :  { %v456_v16 = vpop.f32.mrf.mxu1 }
  0xe8   :  { %v633_v17 = vadd.f32 %v912_v10, %v585_v14  ;;  %v457_v18 = vadd.f32 %v456_v16, %v407_v15 }
  0xea   :  { %v649_v22 = vpack.c.bf16 %v633_v17, %v633_v17  ;;  %v506_v23 = vadd.f32 %v505_v49, %v457_v18 }
  0xec   :  { %666 = vst.msk [vmem:[%s1343_s4 + $0x1c] sm:$0xf] %vm658_vm1, %v649_v22  ;;  %v532_v26 = vadd.f32 %v506_v23, %v48_v21  ;;  %v935_v22 = vld [vmem:[%s1342_s3 + $0x38] sm:$0xff]  }
  0xed   :  { %v566_v28 = vld [vmem:[#allocation2 + $0x40] sm:$0xff]  ;;  %v513_v30 = vpop.f32.mrf.mxu2  ;;  %v54_v23 = vld [vmem:[#allocation2 + $0x78] sm:$0xff] }
  0xee   :  { %v586_v31 = vadd.f32 %v1209_v42, %v566_v28  ;;  %548 = vst.msk [vmem:[#allocation2 + $0x48] sm:$0xff] %vm22_vm0, %v532_v26  ;;  %v514_v32 = vadd.f32 %v513_v30, %v465_v24  ;;  %v410_v33 = vpop.f32.mrf.mxu0  ;;  %v927_v28 = vunpack.c.l.bf16 %v935_v22 }
  0xef   :  { %v459_v34 = vpop.f32.mrf.mxu1 }
  0xf0   :  { %v634_v35 = vadd.f32 %v915_v25, %v586_v31  ;;  %v535_v5 = vadd.f32 %v514_v32, %v51_v29  ;;  %v460_v36 = vadd.f32 %v459_v34, %v410_v33 }
  0xf2   :  { %v650_v39 = vpack.c.bf16 %v634_v35, %v634_v35  ;;  %551 = vst.msk [vmem:[#allocation2 + $0x60] sm:$0xff] %vm22_vm0, %v535_v5  ;;  %v509_v40 = vadd.f32 %v508_v63, %v460_v36  ;;  %v928_v35 = vunpack.c.h.bf16 %v935_v22 }
  0xf4   :  { %667 = vst.msk [vmem:[%s1343_s4 + $0x20] sm:$0xf] %vm658_vm1, %v650_v39  ;;  %v533_v44 = vadd.f32 %v509_v40, %v49_v37 }
  0xf5   :  { %v567_v45 = vld [vmem:[#allocation2 + $0x48] sm:$0xff]  ;;  %v515_v48 = vpop.f32.mrf.mxu2 }
  0xf6   :  { %v587_v49 = vadd.f32 %v1209_v42, %v567_v45  ;;  %549 = vst.msk [vmem:[#allocation2 + $0x50] sm:$0xff] %vm22_vm0, %v533_v44  ;;  %v516_v50 = vadd.f32 %v515_v48, %v467_v41  ;;  %v412_v20 = vpop.f32.mrf.mxu0 }
  0xf7   :  { %v461_v52 = vpop.f32.mrf.mxu1 }
  0xf8   :  { %v635_v53 = vadd.f32 %v916_v43, %v587_v49  ;;  %v536_v56 = vadd.f32 %v516_v50, %v52_v47  ;;  %v462_v57 = vadd.f32 %v461_v52, %v412_v20 }
  0xf9   :  { %v570_v58 = vld [vmem:[#allocation2 + $0x60] sm:$0xff] }
  0xfa   :  { %v651_v61 = vpack.c.bf16 %v635_v53, %v635_v53  ;;  %v590_v62 = vadd.f32 %v1209_v42, %v570_v58  ;;  %552 = vst.msk [vmem:[#allocation2 + $0x68] sm:$0xff] %vm22_vm0, %v536_v56  ;;  %v511_v63 = vadd.f32 %v510_v13, %v462_v57  ;;  %v471_v13 = vpop.f32.mrf.mxu3 }
  0xfb   :  { %v472_v17 = vadd.f32 %v471_v13, %v1255_v55 }
  0xfc   :  { %668 = vst.msk [vmem:[%s1343_s4 + $0x24] sm:$0xf] %vm658_vm1, %v651_v61  ;;  %v638_v1 = vadd.f32 %v923_v54, %v590_v62  ;;  %v534_v3 = vadd.f32 %v511_v63, %v50_v60 }
  0xfd   :  { %v568_v4 = vld [vmem:[#allocation2 + $0x50] sm:$0xff]  ;;  %v518_v7 = vpop.f32.mrf.mxu2 }
  0xfe   :  { %v654_v8 = vpack.c.bf16 %v638_v1, %v638_v1  ;;  %v588_v9 = vadd.f32 %v1209_v42, %v568_v4  ;;  %550 = vst.msk [vmem:[#allocation2 + $0x58] sm:$0xff] %vm22_vm0, %v534_v3  ;;  %v519_v10 = vadd.f32 %v518_v7, %v470_v0 }
 0x100   :  { %671 = vst.msk [vmem:[%s1343_s4 + $0x30] sm:$0xf] %vm658_vm1, %v654_v8  ;;  %v636_v38 = vadd.f32 %v919_v2, %v588_v9  ;;  %v537_v12 = vadd.f32 %v519_v10, %v53_v6 }
 0x101   :  { %v571_v14 = vld [vmem:[#allocation2 + $0x68] sm:$0xff] }
 0x102   :  { %v652_v15 = vpack.c.bf16 %v636_v38, %v636_v38  ;;  %v591_v16 = vadd.f32 %v1209_v42, %v571_v14  ;;  %553 = vst.msk [vmem:[#allocation2 + $0x70] sm:$0xff] %vm22_vm0, %v537_v12 }
 0x104   :  { %669 = vst.msk [vmem:[%s1343_s4 + $0x28] sm:$0xf] %vm658_vm1, %v652_v15  ;;  %v639_v18 = vadd.f32 %v924_v11, %v591_v16 }
 0x105   :  { %v569_v21 = vld [vmem:[#allocation2 + $0x58] sm:$0xff]  ;;  %v520_v24 = vpop.f32.mrf.mxu2 }
 0x106   :  { %v655_v25 = vpack.c.bf16 %v639_v18, %v639_v18  ;;  %v589_v26 = vadd.f32 %v1209_v42, %v569_v21  ;;  %v521_v27 = vadd.f32 %v520_v24, %v472_v17 }
 0x108   :  { %672 = vst.msk [vmem:[%s1343_s4 + $0x34] sm:$0xf] %vm658_vm1, %v655_v25  ;;  %v637_v55 = vadd.f32 %v920_v19, %v589_v26  ;;  %v538_v29 = vadd.f32 %v521_v27, %v54_v23 }
 0x109   :  { %v572_v30 = vld [vmem:[#allocation2 + $0x70] sm:$0xff] }
 0x10a   :  { %v653_v31 = vpack.c.bf16 %v637_v55, %v637_v55  ;;  %v592_v32 = vadd.f32 %v1209_v42, %v572_v30  ;;  %554 = vst.msk [vmem:[#allocation2 + $0x78] sm:$0xff] %vm22_vm0, %v538_v29 }
 0x10c   :  { %670 = vst.msk [vmem:[%s1343_s4 + $0x2c] sm:$0xf] %vm658_vm1, %v653_v31  ;;  %v640_v33 = vadd.f32 %v927_v28, %v592_v32 }
 0x10e   :  { %v656_v34 = vpack.c.bf16 %v640_v33, %v640_v33 }
 0x110   :  { %673 = vst.msk [vmem:[%s1343_s4 + $0x38] sm:$0xf] %vm658_vm1, %v656_v34 }
 0x111   :  { %v573_v5 = vld [vmem:[#allocation2 + $0x78] sm:$0xff] }
 0x112   :  { %v593_v36 = vadd.f32 %v1209_v42, %v573_v5 }
 0x114   :  { %v641_v37 = vadd.f32 %v928_v35, %v593_v36 }
 0x116   :  { %v657_v39 = vpack.c.bf16 %v641_v37, %v641_v37 }
 0x118   :  { %674 = vst.msk [vmem:[%s1343_s4 + $0x3c] sm:$0xf] %vm658_vm1, %v657_v39 }

// kernel: _lambda_.27
= control target key start
LH: loop header
LB: loop body
LE: loop exit
PB: predicated region body
PF: predicated region fallthrough
CT: control target
= control target key end

     0   :  { %vm18_vm0 = vcmask 261120   ;;  %v308_v22 = vmov 0.0   ;;  %vm209_vm1 = vcmask 257024   ;;  %s402_s1 = inlined_call_operand.vmem [shape: bf16[256,32], index: 1, kind: input, shape index: {}]   ;;  %s403_s0 = inlined_call_operand.vmem [shape: bf16[16,256], index: 0, kind: input, shape index: {}]   ;;  %s404_s2 = inlined_call_operand.vmem [shape: f32[1,32], index: 2, kind: input, shape index: {}]   ;;  %s405_s3 = inlined_call_operand.vmem [shape: bf16[16,32], index: 3, kind: output, shape index: {}]  }
   0x1   :  { %v297_v0 = vld [vmem:[%s402_s1 + $0x38] sm:$0xff]  ;;  %v296_v2 = vld [vmem:[%s402_s1 + $0x30] sm:$0xff]  ;;  %v295_v4 = vld [vmem:[%s402_s1 + $0x28] sm:$0xff]  ;;  %19 = vst.msk [vmem:[#allocation2] sm:$0xff] %vm18_vm0, %v308_v22 }
   0x2   :  { %v305_v1 = vld [vmem:[%s402_s1 + $0x78] sm:$0xff]  ;;  %163 = vmatpush.bf16.msra.mxu0 %v297_v0  ;;  %v304_v3 = vld [vmem:[%s402_s1 + $0x70] sm:$0xff]  ;;  %v303_v5 = vld [vmem:[%s402_s1 + $0x68] sm:$0xff]  ;;  %20 = vst.msk [vmem:[#allocation2 + $0x8] sm:$0xff] %vm18_vm0, %v308_v22 }
   0x3   :  { %177 = vmatpush.bf16.msra.mxu1 %v305_v1  ;;  %v294_v6 = vld [vmem:[%s402_s1 + $0x20] sm:$0xff]  ;;  %v293_v8 = vld [vmem:[%s402_s1 + $0x18] sm:$0xff]  ;;  %v292_v10 = vld [vmem:[%s402_s1 + $0x10] sm:$0xff] }
   0x4   :  { %v302_v7 = vld [vmem:[%s402_s1 + $0x60] sm:$0xff]  ;;  %v301_v9 = vld [vmem:[%s402_s1 + $0x58] sm:$0xff]  ;;  %v300_v11 = vld [vmem:[%s402_s1 + $0x50] sm:$0xff] }
   0x5   :  { %v291_v12 = vld [vmem:[%s402_s1 + $0x8] sm:$0xff]  ;;  %v290_v14 = vld [vmem:[%s402_s1] sm:$0xff] }
   0x6   :  { %164 = vmatpush.bf16.msra.mxu0 %v296_v2  ;;  %v299_v13 = vld [vmem:[%s402_s1 + $0x48] sm:$0xff]  ;;  %v298_v15 = vld [vmem:[%s402_s1 + $0x40] sm:$0xff] }
   0x7   :  { %178 = vmatpush.bf16.msra.mxu1 %v304_v3  ;;  %v218_v16 = vld [vmem:[%s403_s0] sm:$0xf]  ;;  %v289_v17 = vld [vmem:[%s403_s0 + $0x4] sm:$0xf0]  ;;  %v288_v18 = vld [vmem:[%s403_s0 + $0x4] sm:$0xf] }
   0x8   :  { %v220_v19 = vld [vmem:[%s403_s0 + $0x8] sm:$0xf0]  ;;  %v219_v20 = vor.u32 %v289_v17, %v218_v16  ;;  %v21_v24 = vld [vmem:[#allocation2] sm:$0xff] }
   0x9   :  { %v223_v21 = vor.u32 %v288_v18, %v220_v19  ;;  %v22_v29 = vld [vmem:[#allocation2 + $0x8] sm:$0xff]  ;;  %v307_v31 = vld [vmem:[%s404_s2] ss:$0 sm:$0xff] }
   0xa   :  { %165 = vmatpush.bf16.msra.mxu0 %v295_v4 }
   0xb   :  { %179 = vmatpush.bf16.msra.mxu1 %v303_v5 }
   0xe   :  { %166 = vmatpush.bf16.msra.mxu0 %v294_v6 }
   0xf   :  { %180 = vmatpush.bf16.msra.mxu1 %v302_v7 }
  0x12   :  { %167 = vmatpush.bf16.msra.mxu0 %v293_v8 }
  0x13   :  { %181 = vmatpush.bf16.msra.mxu1 %v301_v9 }
  0x16   :  { %168 = vmatpush.bf16.msra.mxu0 %v292_v10 }
  0x17   :  { %182 = vmatpush.bf16.msra.mxu1 %v300_v11 }
  0x1a   :  { %169 = vmatpush.bf16.msra.mxu0 %v291_v12 }
  0x1b   :  { %183 = vmatpush.bf16.msra.mxu1 %v299_v13 }
  0x1e   :  { %170 = vmatpush.bf16.msra.mxu0 %v290_v14 }
  0x1f   :  { %184 = vmatpush.bf16.msra.mxu1 %v298_v15 }
  0x21   :  { %171 = vmatmul.bf16.vlgmr.msra.gmra.mxu0 %v219_v20 }
  0x22   :  { %185 = vmatmul.bf16.vlgmr.msra.gmra.mxu1 %v223_v21 }
  0x9e   :  { %v172_v23 = vpop.f32.mrf.mxu0 }
  0x9f   :  { %v186_v25 = vpop.f32.mrf.mxu1 }
  0xa0   :  { %v187_v26 = vadd.f32 %v186_v25, %v172_v23 }
  0xa2   :  { %v191_v27 = vadd.f32 %v187_v26, %v21_v24 }
  0xa4   :  { %194 = vst.msk [vmem:[#allocation2] sm:$0xff] %vm18_vm0, %v191_v27 }
  0xa6   :  { %v174_v28 = vpop.f32.mrf.mxu0 }
  0xa7   :  { %v188_v30 = vpop.f32.mrf.mxu1 }
  0xa8   :  { %v189_v32 = vadd.f32 %v188_v30, %v174_v28 }
  0xaa   :  { %v192_v33 = vadd.f32 %v189_v32, %v22_v29 }
  0xab   :  { %v199_v34 = vld [vmem:[#allocation2] sm:$0xff] }
  0xac   :  { %v205_v35 = vadd.f32 %v307_v31, %v199_v34  ;;  %195 = vst.msk [vmem:[#allocation2 + $0x8] sm:$0xff] %vm18_vm0, %v192_v33 }
  0xae   :  { %v207_v36 = vpack.c.bf16 %v205_v35, %v205_v35 }
  0xb0   :  { %210 = vst.msk [vmem:[%s405_s3] sm:$0xf] %vm209_vm1, %v207_v36 }
  0xb3   :  { %v200_v37 = vld [vmem:[#allocation2 + $0x8] sm:$0xff] }
  0xb4   :  { %v206_v38 = vadd.f32 %v307_v31, %v200_v37 }
  0xb6   :  { %v208_v39 = vpack.c.bf16 %v206_v38, %v206_v38 }
  0xb8   :  { %211 = vst.msk [vmem:[%s405_s3 + $0x4] sm:$0xf] %vm209_vm1, %v208_v39 }

// kernel: _lambda_.28
= control target key start
LH: loop header
LB: loop body
LE: loop exit
PB: predicated region body
PF: predicated region fallthrough
CT: control target
= control target key end

     0   :  { %vm25_vm0 = vcmask 261120   ;;  %v250_v5 = vmov 32.0   ;;  %s327_s0 = inlined_call_operand.vmem [shape: bf16[16,32], index: 0, kind: input, shape index: {}]   ;;  %s328_s1 = inlined_call_operand.vmem [shape: f32[1,32], index: 1, kind: input, shape index: {}]   ;;  %s329_s2 = inlined_call_operand.vmem [shape: f32[1,32], index: 2, kind: input, shape index: {}]   ;;  %s330_s4 = inlined_call_operand.vmem [shape: f32[1,96], index: 4, kind: input, shape index: {}]   ;;  %s331_s3 = inlined_call_operand.vmem [shape: bf16[32,96], index: 3, kind: input, shape index: {}]   ;;  %s332_s5 = inlined_call_operand.vmem [shape: bf16[16,96], index: 5, kind: output, shape index: {}]  }
   0x1   :  { %v228_v0 = vld [vmem:[%s327_s0] sm:$0xff]   ;;  %236 = vrcp.f32 %v250_v5  ;;  %v226_v24 = vld [vmem:[%s331_s3 + $0x8] sm:$0xff] }
   0x2   :  { %v229_v1 = vunpack.c.l.bf16 %v228_v0  ;;  %v230_v3 = vunpack.c.h.bf16 %v228_v0  ;;  %199 = vmatpush.bf16.msra.mxu0 %v226_v24  ;;  %v225_v26 = vld [vmem:[%s331_s3] sm:$0xff] }
   0x3   :  { %v233_v38 = vld [vmem:[%s328_s1] ss:$0 sm:$0xff] }
   0x4   :  { %v26_v2 = vsel %vm25_vm0, %v229_v1, 0.0  ;;  %v29_v4 = vsel %vm25_vm0, %v230_v3, 0.0  ;;  %v234_v42 = vld [vmem:[%s329_s2] ss:$0 sm:$0xff] }
   0x5   :  { %27 = vadd.xlane.f32.xlu0 %v26_v2 }
   0x6   :  { %200 = vmatpush.bf16.msra.mxu0 %v225_v26 }
   0x7   :  { %v237_v6 = vpop.eup %236 }
   0x8   :  { %v33_v7 = vmul.f32 32.0, %v237_v6  ;;  %vm37_vm1 = vweird.f32 %v237_v6 }
   0xa   :  { %v34_v8 = vsub.f32 1.0, %v33_v7 }
   0xc   :  { %v35_v9 = vmul.f32 %v237_v6, %v34_v8 }
   0xd   :  { %30 = vadd.xlane.f32.xlu0 %v29_v4 }
   0xe   :  { %v36_v10 = vadd.f32 %v237_v6, %v35_v9 }
  0x10   :  { %v38_v11 = vsel %vm37_vm1, %v237_v6, %v36_v10 }
  0x78   :  { %v28_v12 = vpop.xlane.xlu0 %27 }
  0x79   :  { %v39_v13 = vmul.f32 %v38_v11, %v28_v12 }
  0x7b   :  { %v41_v14 = vsub.f32 %v229_v1, %v39_v13 }
  0x7d   :  { %v43_v15 = vmul.f32 %v41_v14, %v41_v14 }
  0x7f   :  { %v45_v16 = vsel %vm25_vm0, %v43_v15, 0.0 }
  0x80   :  { %46 = vadd.xlane.f32.xlu1 %v45_v16  ;;  %v31_v17 = vpop.xlane.xlu0 %30 }
  0x81   :  { %v40_v18 = vmul.f32 %v38_v11, %v31_v17 }
  0x83   :  { %v42_v19 = vsub.f32 %v230_v3, %v40_v18 }
  0x85   :  { %v44_v20 = vmul.f32 %v42_v19, %v42_v19 }
  0x87   :  { %v48_v21 = vsel %vm25_vm0, %v44_v20, 0.0 }
  0x88   :  { %49 = vadd.xlane.f32.xlu1 %v48_v21 }
  0xf3   :  { %v47_v22 = vpop.xlane.xlu1 %46 }
  0xf4   :  { %v51_v23 = vmul.f32 %v47_v22, %v38_v11 }
  0xf6   :  { %v53_v25 = vadd.f32 1e-05, %v51_v23 }
  0xf8   :  { %238 = vrsqrt.f32 %v53_v25  ;;  %vm61_vm3 = vweird.f32 %v53_v25 }
  0xfb   :  { %v50_v27 = vpop.xlane.xlu1 %49 }
  0xfc   :  { %v52_v28 = vmul.f32 %v50_v27, %v38_v11 }
  0xfe   :  { %v239_v29 = vpop.eup %238  ;;  %v54_v30 = vadd.f32 1e-05, %v52_v28 }
  0xff   :  { %v56_v31 = vmul.f32 %v239_v29, %v53_v25  ;;  %vm62_vm2 = vweird.f32 %v239_v29 }
 0x100   :  { %240 = vrsqrt.f32 %v54_v30  ;;  %vm63_vm4 = vmor %vm61_vm3, %vm62_vm2  ;;  %vm71_vm6 = vweird.f32 %v54_v30  ;;  %vm209_vm3 = vcmask 781312  }
 0x101   :  { %v57_v32 = vmul.f32 %v239_v29, %v56_v31 }
 0x103   :  { %v58_v33 = vmul.f32 0.5, %v57_v32 }
 0x105   :  { %v59_v34 = vsub.f32 1.5, %v58_v33 }
 0x106   :  { %v241_v35 = vpop.eup %240 }
 0x107   :  { %v60_v36 = vmul.f32 %v239_v29, %v59_v34  ;;  %v66_v37 = vmul.f32 %v241_v35, %v54_v30  ;;  %vm72_vm5 = vweird.f32 %v241_v35 }
 0x108   :  { %vm73_vm7 = vmor %vm71_vm6, %vm72_vm5 }
 0x109   :  { %v64_v39 = vsel %vm63_vm4, %v239_v29, %v60_v36  ;;  %v67_v40 = vmul.f32 %v241_v35, %v66_v37 }
 0x10a   :  { %v75_v41 = vmul.f32 %v64_v39, %v41_v14 }
 0x10b   :  { %v68_v43 = vmul.f32 0.5, %v67_v40 }
 0x10c   :  { %v81_v44 = vmul.f32 %v233_v38, %v75_v41 }
 0x10d   :  { %v69_v45 = vsub.f32 1.5, %v68_v43 }
 0x10e   :  { %v301_v46 = vadd.f32 %v234_v42, %v81_v44  ;;  %v251_v44 = vmov -1.0  }
 0x10f   :  { %v70_v47 = vmul.f32 %v241_v35, %v69_v45 }
 0x110   :  { %v304_v48 = vmul.f32 0.70710677, %v301_v46 }
 0x111   :  { %v74_v49 = vsel %vm73_vm7, %v241_v35, %v70_v47 }
 0x112   :  { %v76_v50 = vmul.f32 %v74_v49, %v42_v19  ;;  %v97_v51 = vand.u32 2147483647, %v304_v48  ;;  %vm93_vm1 = vcmp.ge.f32.partialorder %v304_v48, 0.0 }
 0x113   :  { %v95_v45 = vsel %vm93_vm1, 1.0, %v251_v44 }
 0x114   :  { %v82_v52 = vmul.f32 %v233_v38, %v76_v50  ;;  %v99_v53 = vmul.f32 0.3275911, %v97_v51  ;;  %v151_v8 = vsub.f32 0.0, %v97_v51 }
 0x116   :  { %v307_v54 = vadd.f32 %v234_v42, %v82_v52  ;;  %v101_v55 = vadd.f32 1.0, %v99_v53  ;;  %v153_v15 = vmul.f32 %v151_v8, %v97_v51 }
 0x118   :  { %v310_v56 = vmul.f32 0.70710677, %v307_v54  ;;  %242 = vrcp.f32 %v101_v55  ;;  %v114_v63 = vand.u32 2147483648, %v101_v55  ;;  %v112_v1 = vand.u32 2147483647, %v101_v55 }
 0x119   :  { %vm108_vm9 = vweird.f32 %v101_v55  ;;  %v155_v23 = vmul.f32 1.442695, %v153_v15 }
 0x11a   :  { %v98_v57 = vand.u32 2147483647, %v310_v56  ;;  %v115_v4 = vor.u32 1.1754944e-38, %v114_v63  ;;  %vm113_vm11 = vcmp.eq.f32.partialorder %v112_v1, 8.507059e+37  ;;  %vm94_vm2 = vcmp.ge.f32.partialorder %v310_v56, 0.0 }
 0x11b   :  { %v96_v51 = vsel %vm94_vm2, 1.0, %v251_v44  ;;  %v235_v56 = vld [vmem:[%s330_s4] ss:$0 sm:$0xff] }
 0x11c   :  { %v100_v58 = vmul.f32 0.3275911, %v98_v57  ;;  %v152_v22 = vsub.f32 0.0, %v98_v57 }
 0x11e   :  { %v243_v59 = vpop.eup %242  ;;  %v102_v60 = vadd.f32 1.0, %v100_v58  ;;  %v154_v28 = vmul.f32 %v152_v22, %v98_v57  ;;  %v90_v57 = vmul.f32 0.5, %v307_v54 }
 0x11f   :  { %v104_v61 = vmul.f32 %v243_v59, %v101_v55  ;;  %vm109_vm8 = vweird.f32 %v243_v59  ;;  %v89_v55 = vmul.f32 0.5, %v301_v46 }
 0x120   :  { %244 = vrcp.f32 %v102_v60  ;;  %vm110_vm10 = vmor %vm108_vm9, %vm109_vm8  ;;  %v129_v11 = vand.u32 2147483648, %v102_v60  ;;  %v127_v13 = vand.u32 2147483647, %v102_v60  ;;  %vm123_vm13 = vweird.f32 %v102_v60 }
 0x121   :  { %v105_v62 = vsub.f32 1.0, %v104_v61  ;;  %246 = vpow2.f32 %v155_v23  ;;  %v157_v33 = vmul.f32 1.442695, %v154_v28 }
 0x122   :  { %v130_v18 = vor.u32 1.1754944e-38, %v129_v11  ;;  %vm128_vm15 = vcmp.eq.f32.partialorder %v127_v13, 8.507059e+37 }
 0x123   :  { %v106_v0 = vmul.f32 %v243_v59, %v105_v62  ;;  %248 = vpow2.f32 %v157_v33 }
 0x125   :  { %v107_v2 = vadd.f32 %v243_v59, %v106_v0 }
 0x126   :  { %v245_v3 = vpop.eup %244 }
 0x127   :  { %v111_v5 = vsel %vm110_vm10, %v243_v59, %v107_v2  ;;  %v119_v6 = vmul.f32 %v245_v3, %v102_v60  ;;  %vm124_vm12 = vweird.f32 %v245_v3  ;;  %v247_v36 = vpop.eup %246 }
 0x128   :  { %v116_v7 = vsel %vm113_vm11, %v115_v4, %v111_v5  ;;  %vm125_vm14 = vmor %vm123_vm13, %vm124_vm12 }
 0x129   :  { %v120_v9 = vsub.f32 1.0, %v119_v6  ;;  %v133_v10 = vmul.f32 1.0614054, %v116_v7  ;;  %v249_v43 = vpop.eup %248 }
 0x12b   :  { %v121_v12 = vmul.f32 %v245_v3, %v120_v9  ;;  %v135_v14 = vadd.f32 -1.4531521, %v133_v10 }
 0x12d   :  { %v122_v16 = vadd.f32 %v245_v3, %v121_v12  ;;  %v137_v17 = vmul.f32 %v135_v14, %v116_v7 }
 0x12f   :  { %v126_v19 = vsel %vm125_vm14, %v245_v3, %v122_v16  ;;  %v139_v20 = vadd.f32 1.4214138, %v137_v17 }
 0x130   :  { %v131_v21 = vsel %vm128_vm15, %v130_v18, %v126_v19 }
 0x131   :  { %v134_v24 = vmul.f32 1.0614054, %v131_v21  ;;  %v141_v25 = vmul.f32 %v139_v20, %v116_v7 }
 0x133   :  { %v136_v26 = vadd.f32 -1.4531521, %v134_v24  ;;  %v143_v27 = vadd.f32 -0.28449672, %v141_v25 }
 0x135   :  { %v138_v29 = vmul.f32 %v136_v26, %v131_v21  ;;  %v145_v30 = vmul.f32 %v143_v27, %v116_v7 }
 0x137   :  { %v140_v31 = vadd.f32 1.4214138, %v138_v29  ;;  %v147_v32 = vadd.f32 0.2548296, %v145_v30 }
 0x139   :  { %v142_v34 = vmul.f32 %v140_v31, %v131_v21  ;;  %v149_v35 = vmul.f32 %v147_v32, %v116_v7 }
 0x13b   :  { %v144_v37 = vadd.f32 -0.28449672, %v142_v34  ;;  %v159_v38 = vmul.f32 %v247_v36, %v149_v35 }
 0x13d   :  { %v146_v39 = vmul.f32 %v144_v37, %v131_v21  ;;  %v161_v41 = vsub.f32 1.0, %v159_v38 }
 0x13f   :  { %v148_v40 = vadd.f32 0.2548296, %v146_v39  ;;  %v163_v49 = vmul.f32 %v161_v41, %v95_v45 }
 0x141   :  { %v150_v42 = vmul.f32 %v148_v40, %v131_v21  ;;  %v165_v53 = vadd.f32 1.0, %v163_v49 }
 0x143   :  { %v160_v47 = vmul.f32 %v249_v43, %v150_v42  ;;  %v167_v48 = vmul.f32 %v165_v53, %v89_v55 }
 0x145   :  { %v162_v50 = vsub.f32 1.0, %v160_v47 }
 0x147   :  { %v164_v52 = vmul.f32 %v162_v50, %v96_v51 }
 0x149   :  { %v166_v58 = vadd.f32 1.0, %v164_v52 }
 0x14b   :  { %v168_v59 = vmul.f32 %v166_v58, %v90_v57 }
 0x14d   :  { %v169_v60 = vpack.c.bf16 %v168_v59, %v167_v48 }
 0x14f   :  { %224 = vmatmul.msk.bf16.vlgmr.msra.gmra.mxu0 %vm25_vm0, %v169_v60 }
 0x1cc   :  { %v202_v61 = vpop.f32.mrf.mxu0 }
 0x1cd   :  { %v203_v62 = vadd.f32 %v235_v56, %v202_v61 }
 0x1cf   :  { %v207_v63 = vpack.c.bf16 %v203_v62, %v203_v62 }
 0x1d1   :  { %210 = vst.msk [vmem:[%s332_s5] sm:$0xf] %vm209_vm3, %v207_v63 }
 0x1d4   :  { %v204_v46 = vpop.f32.mrf.mxu0 }
 0x1d5   :  { %v205_v54 = vadd.f32 %v235_v56, %v204_v46 }
 0x1d7   :  { %v208_v0 = vpack.c.bf16 %v205_v54, %v205_v54 }
 0x1d9   :  { %211 = vst.msk [vmem:[%s332_s5 + $0x4] sm:$0xf] %vm209_vm3, %v208_v0 }

// kernel: _lambda_.35
= control target key start
LH: loop header
LB: loop body
LE: loop exit
PB: predicated region body
PF: predicated region fallthrough
CT: control target
= control target key end

     0   :  { %vm19_vm0 = vcmask 236544   ;;  %v105_v1 = vmov 0.0   ;;  %vm47_vm1 = vcmask 261120   ;;  %s150_s1 = inlined_call_operand.vmem [shape: bf16[32,29], index: 1, kind: input, shape index: {}]   ;;  %s151_s2 = inlined_call_operand.vmem [shape: f32[1,29], index: 2, kind: input, shape index: {}]   ;;  %s152_s0 = inlined_call_operand.vmem [shape: bf16[16,32], index: 0, kind: input, shape index: {}]   ;;  %s153_s3 = inlined_call_operand.vmem [shape: f32[16,29], index: 3, kind: output, shape index: {}]  }
   0x1   :  { %v102_v0 = vld [vmem:[%s150_s1 + $0x8] sm:$0xff]  ;;  %20 = vst.msk [vmem:[#allocation2] sm:$0xff] %vm19_vm0, %v105_v1  ;;  %v101_v2 = vld [vmem:[%s150_s1] sm:$0xff] }
   0x2   :  { %21 = vst.msk [vmem:[#allocation2 + $0x8] sm:$0xff] %vm19_vm0, %v105_v1  ;;  %57 = vmatpush.bf16.msra.mxu0 %v102_v0  ;;  %v100_v3 = vld [vmem:[%s152_s0] sm:$0xff] }
   0x3   :  { %v104_v8 = vld [vmem:[%s151_s2] ss:$0 sm:$0xff] }
   0x6   :  { %58 = vmatpush.bf16.msra.mxu0 %v101_v2 }
   0x8   :  { %v22_v4 = vld [vmem:[#allocation2] sm:$0xff] }
   0x9   :  { %99 = vmatmul.msk.bf16.vlgmr.msra.gmra.mxu0 %vm47_vm1, %v100_v3  ;;  %v23_v7 = vld [vmem:[#allocation2 + $0x8] sm:$0xff] }
  0x86   :  { %v60_v5 = vpop.f32.mrf.mxu0 }
  0x87   :  { %v65_v6 = vadd.f32 %v60_v5, %v22_v4 }
  0x89   :  { %68 = vst.msk [vmem:[#allocation2] sm:$0xff] %vm19_vm0, %v65_v6 }
  0x8e   :  { %v62_v9 = vpop.f32.mrf.mxu0 }
  0x8f   :  { %v66_v10 = vadd.f32 %v62_v9, %v23_v7 }
  0x90   :  { %v73_v11 = vld [vmem:[#allocation2] sm:$0xff] }
  0x91   :  { %v79_v12 = vadd.f32 %v104_v8, %v73_v11  ;;  %69 = vst.msk [vmem:[#allocation2 + $0x8] sm:$0xff] %vm19_vm0, %v66_v10 }
  0x93   :  { %81 = vst.msk [vmem:[%s153_s3] sm:$0xff] %vm19_vm0, %v79_v12 }
  0x98   :  { %v74_v13 = vld [vmem:[#allocation2 + $0x8] sm:$0xff] }
  0x99   :  { %v80_v14 = vadd.f32 %v104_v8, %v74_v13 }
  0x9b   :  { %82 = vst.msk [vmem:[%s153_s3 + $0x8] sm:$0xff] %vm19_vm0, %v80_v14 }

// kernel: _lambda_.34
= control target key start
LH: loop header
LB: loop body
LE: loop exit
PB: predicated region body
PF: predicated region fallthrough
CT: control target
= control target key end

     0   :  { %vm19_vm0 = vcmask 261120   ;;  %v223_v1 = vmov 0.0   ;;  %vm63_vm1 = vcmask 523264   ;;  %vm179_vm11 = vcmask 257024   ;;  %s289_s1 = inlined_call_operand.vmem [shape: bf16[64,32], index: 1, kind: input, shape index: {}]   ;;  %s290_s2 = inlined_call_operand.vmem [shape: f32[1,32], index: 2, kind: input, shape index: {}]   ;;  %s291_s0 = inlined_call_operand.vmem [shape: bf16[16,64], index: 0, kind: input, shape index: {}]   ;;  %s292_s3 = inlined_call_operand.vmem [shape: bf16[16,32], index: 3, kind: output, shape index: {}]  }
   0x1   :  { %v211_v0 = vld [vmem:[%s289_s1 + $0x18] sm:$0xff]  ;;  %20 = vst.msk [vmem:[#allocation2] sm:$0xff] %vm19_vm0, %v223_v1  ;;  %v210_v2 = vld [vmem:[%s289_s1 + $0x10] sm:$0xff]  ;;  %v209_v3 = vld [vmem:[%s289_s1 + $0x8] sm:$0xff] }
   0x2   :  { %21 = vst.msk [vmem:[#allocation2 + $0x8] sm:$0xff] %vm19_vm0, %v223_v1  ;;  %71 = vmatpush.bf16.msra.mxu0 %v211_v0  ;;  %v208_v4 = vld [vmem:[%s289_s1] sm:$0xff] }
   0x3   :  { %v207_v5 = vld [vmem:[%s291_s0] sm:$0xff] }
   0x4   :  { %v214_v10 = vld [vmem:[%s290_s2] ss:$0 sm:$0xff] }
   0x6   :  { %72 = vmatpush.bf16.msra.mxu0 %v210_v2 }
   0x8   :  { %v22_v6 = vld [vmem:[#allocation2] sm:$0xff] }
   0x9   :  { %v23_v9 = vld [vmem:[#allocation2 + $0x8] sm:$0xff] }
   0xa   :  { %73 = vmatpush.bf16.msra.mxu0 %v209_v3 }
   0xe   :  { %74 = vmatpush.bf16.msra.mxu0 %v208_v4 }
  0x11   :  { %206 = vmatmul.msk.bf16.vlgmr.msra.gmra.mxu0 %vm63_vm1, %v207_v5  ;;  %v224_v5 = vmov -1.0  }
  0x8e   :  { %v76_v7 = vpop.f32.mrf.mxu0 }
  0x8f   :  { %v81_v8 = vadd.f32 %v76_v7, %v22_v6 }
  0x91   :  { %84 = vst.msk [vmem:[#allocation2] sm:$0xff] %vm19_vm0, %v81_v8 }
  0x96   :  { %v78_v11 = vpop.f32.mrf.mxu0 }
  0x97   :  { %v82_v12 = vadd.f32 %v78_v11, %v23_v9 }
  0x98   :  { %v89_v13 = vld [vmem:[#allocation2] sm:$0xff] }
  0x99   :  { %v266_v14 = vadd.f32 %v214_v10, %v89_v13  ;;  %85 = vst.msk [vmem:[#allocation2 + $0x8] sm:$0xff] %vm19_vm0, %v82_v12 }
  0x9b   :  { %v270_v15 = vmul.f32 0.70710677, %v266_v14 }
  0x9d   :  { %v105_v16 = vand.u32 2147483647, %v270_v15  ;;  %vm101_vm10 = vcmp.ge.f32.partialorder %v270_v15, 0.0 }
  0x9e   :  { %v103_v6 = vsel %vm101_vm10, 1.0, %v224_v5 }
  0x9f   :  { %v107_v17 = vmul.f32 0.3275911, %v105_v16  ;;  %v159_v36 = vsub.f32 0.0, %v105_v16 }
  0xa0   :  { %v90_v18 = vld [vmem:[#allocation2 + $0x8] sm:$0xff] }
  0xa1   :  { %v109_v19 = vadd.f32 1.0, %v107_v17  ;;  %v273_v20 = vadd.f32 %v214_v10, %v90_v18  ;;  %v161_v42 = vmul.f32 %v159_v36, %v105_v16  ;;  %v97_v10 = vmul.f32 0.5, %v266_v14 }
  0xa3   :  { %215 = vrcp.f32 %v109_v19  ;;  %v276_v21 = vmul.f32 0.70710677, %v273_v20  ;;  %v122_v28 = vand.u32 2147483648, %v109_v19  ;;  %v120_v30 = vand.u32 2147483647, %v109_v19 }
  0xa4   :  { %vm116_vm3 = vweird.f32 %v109_v19  ;;  %v163_v49 = vmul.f32 1.442695, %v161_v42 }
  0xa5   :  { %v106_v22 = vand.u32 2147483647, %v276_v21  ;;  %v123_v32 = vor.u32 1.1754944e-38, %v122_v28  ;;  %vm121_vm5 = vcmp.eq.f32.partialorder %v120_v30, 8.507059e+37  ;;  %vm102_vm12 = vcmp.ge.f32.partialorder %v276_v21, 0.0 }
  0xa7   :  { %v108_v23 = vmul.f32 0.3275911, %v106_v22  ;;  %v160_v53 = vsub.f32 0.0, %v106_v22 }
  0xa9   :  { %v216_v24 = vpop.eup %215  ;;  %v110_v26 = vadd.f32 1.0, %v108_v23  ;;  %v162_v58 = vmul.f32 %v160_v53, %v106_v22  ;;  %v98_v23 = vmul.f32 0.5, %v273_v20 }
  0xaa   :  { %v112_v25 = vmul.f32 %v216_v24, %v109_v19  ;;  %vm117_vm2 = vweird.f32 %v216_v24  ;;  %v104_v19 = vsel %vm102_vm12, 1.0, %v224_v5 }
  0xab   :  { %217 = vrcp.f32 %v110_v26  ;;  %vm118_vm4 = vmor %vm116_vm3, %vm117_vm2  ;;  %v137_v41 = vand.u32 2147483648, %v110_v26  ;;  %v135_v44 = vand.u32 2147483647, %v110_v26  ;;  %vm131_vm7 = vweird.f32 %v110_v26 }
  0xac   :  { %v113_v27 = vsub.f32 1.0, %v112_v25  ;;  %219 = vpow2.f32 %v163_v49  ;;  %v165_v63 = vmul.f32 1.442695, %v162_v58 }
  0xad   :  { %v138_v48 = vor.u32 1.1754944e-38, %v137_v41  ;;  %vm136_vm9 = vcmp.eq.f32.partialorder %v135_v44, 8.507059e+37 }
  0xae   :  { %v114_v29 = vmul.f32 %v216_v24, %v113_v27  ;;  %221 = vpow2.f32 %v165_v63 }
  0xb0   :  { %v115_v31 = vadd.f32 %v216_v24, %v114_v29 }
  0xb1   :  { %v218_v33 = vpop.eup %217 }
  0xb2   :  { %v119_v34 = vsel %vm118_vm4, %v216_v24, %v115_v31  ;;  %v127_v37 = vmul.f32 %v218_v33, %v110_v26  ;;  %vm132_vm6 = vweird.f32 %v218_v33  ;;  %v220_v0 = vpop.eup %219 }
  0xb3   :  { %v124_v35 = vsel %vm121_vm5, %v123_v32, %v119_v34  ;;  %vm133_vm8 = vmor %vm131_vm7, %vm132_vm6 }
  0xb4   :  { %v141_v38 = vmul.f32 1.0614054, %v124_v35  ;;  %v128_v39 = vsub.f32 1.0, %v127_v37  ;;  %v222_v13 = vpop.eup %221 }
  0xb6   :  { %v143_v40 = vadd.f32 -1.4531521, %v141_v38  ;;  %v129_v43 = vmul.f32 %v218_v33, %v128_v39 }
  0xb8   :  { %v145_v45 = vmul.f32 %v143_v40, %v124_v35  ;;  %v130_v46 = vadd.f32 %v218_v33, %v129_v43 }
  0xba   :  { %v147_v47 = vadd.f32 1.4214138, %v145_v45  ;;  %v134_v50 = vsel %vm133_vm8, %v218_v33, %v130_v46 }
  0xbb   :  { %v139_v52 = vsel %vm136_vm9, %v138_v48, %v134_v50 }
  0xbc   :  { %v149_v51 = vmul.f32 %v147_v47, %v124_v35  ;;  %v142_v54 = vmul.f32 1.0614054, %v139_v52 }
  0xbe   :  { %v151_v55 = vadd.f32 -0.28449672, %v149_v51  ;;  %v144_v56 = vadd.f32 -1.4531521, %v142_v54 }
  0xc0   :  { %v153_v57 = vmul.f32 %v151_v55, %v124_v35  ;;  %v146_v59 = vmul.f32 %v144_v56, %v139_v52 }
  0xc2   :  { %v155_v60 = vadd.f32 0.2548296, %v153_v57  ;;  %v148_v61 = vadd.f32 1.4214138, %v146_v59 }
  0xc4   :  { %v157_v62 = vmul.f32 %v155_v60, %v124_v35  ;;  %v150_v1 = vmul.f32 %v148_v61, %v139_v52 }
  0xc6   :  { %v167_v2 = vmul.f32 %v220_v0, %v157_v62  ;;  %v152_v3 = vadd.f32 -0.28449672, %v150_v1 }
  0xc8   :  { %v169_v4 = vsub.f32 1.0, %v167_v2  ;;  %v154_v7 = vmul.f32 %v152_v3, %v139_v52 }
  0xca   :  { %v171_v8 = vmul.f32 %v169_v4, %v103_v6  ;;  %v156_v9 = vadd.f32 0.2548296, %v154_v7 }
  0xcc   :  { %v173_v11 = vadd.f32 1.0, %v171_v8  ;;  %v158_v12 = vmul.f32 %v156_v9, %v139_v52 }
  0xce   :  { %v175_v16 = vmul.f32 %v173_v11, %v97_v10  ;;  %v168_v17 = vmul.f32 %v222_v13, %v158_v12 }
  0xd0   :  { %v177_v15 = vpack.c.bf16 %v175_v16, %v175_v16  ;;  %v170_v18 = vsub.f32 1.0, %v168_v17 }
  0xd2   :  { %180 = vst.msk [vmem:[%s292_s3] sm:$0xf] %vm179_vm11, %v177_v15  ;;  %v172_v22 = vmul.f32 %v170_v18, %v104_v19 }
  0xd4   :  { %v174_v24 = vadd.f32 1.0, %v172_v22 }
  0xd6   :  { %v176_v14 = vmul.f32 %v174_v24, %v98_v23 }
  0xd8   :  { %v178_v25 = vpack.c.bf16 %v176_v14, %v176_v14 }
  0xda   :  { %181 = vst.msk [vmem:[%s292_s3 + $0x4] sm:$0xf] %vm179_vm11, %v178_v25 }

// kernel: _lambda_.31
= control target key start
LH: loop header
LB: loop body
LE: loop exit
PB: predicated region body
PF: predicated region fallthrough
CT: control target
= control target key end

     0   :  { %vm25_vm0 = vcmask 523264   ;;  %v276_v5 = vmov 64.0   ;;  %s359_s0 = inlined_call_operand.vmem [shape: bf16[16,64], index: 0, kind: input, shape index: {}]   ;;  %s360_s1 = inlined_call_operand.vmem [shape: f32[1,64], index: 1, kind: input, shape index: {}]   ;;  %s361_s2 = inlined_call_operand.vmem [shape: f32[1,64], index: 2, kind: input, shape index: {}]   ;;  %s362_s4 = inlined_call_operand.vmem [shape: f32[1,96], index: 4, kind: input, shape index: {}]   ;;  %s363_s3 = inlined_call_operand.vmem [shape: bf16[64,96], index: 3, kind: input, shape index: {}]   ;;  %s364_s5 = inlined_call_operand.vmem [shape: bf16[16,96], index: 5, kind: output, shape index: {}]  }
   0x1   :  { %v254_v0 = vld [vmem:[%s359_s0] sm:$0xff]   ;;  %262 = vrcp.f32 %v276_v5  ;;  %v252_v24 = vld [vmem:[%s363_s3 + $0x18] sm:$0xff]  ;;  %v251_v26 = vld [vmem:[%s363_s3 + $0x10] sm:$0xff] }
   0x2   :  { %v255_v1 = vunpack.c.l.bf16 %v254_v0  ;;  %v256_v3 = vunpack.c.h.bf16 %v254_v0  ;;  %213 = vmatpush.bf16.msra.mxu0 %v252_v24  ;;  %v250_v27 = vld [vmem:[%s363_s3 + $0x8] sm:$0xff]  ;;  %v249_v32 = vld [vmem:[%s363_s3] sm:$0xff] }
   0x3   :  { %v259_v40 = vld [vmem:[%s360_s1] ss:$0 sm:$0xff] }
   0x4   :  { %v26_v2 = vsel %vm25_vm0, %v255_v1, 0.0  ;;  %v29_v4 = vsel %vm25_vm0, %v256_v3, 0.0  ;;  %v260_v44 = vld [vmem:[%s361_s2] ss:$0 sm:$0xff] }
   0x5   :  { %27 = vadd.xlane.f32.xlu0 %v26_v2 }
   0x6   :  { %214 = vmatpush.bf16.msra.mxu0 %v251_v26 }
   0x7   :  { %v263_v6 = vpop.eup %262 }
   0x8   :  { %v33_v7 = vmul.f32 64.0, %v263_v6  ;;  %vm37_vm1 = vweird.f32 %v263_v6 }
   0xa   :  { %v34_v8 = vsub.f32 1.0, %v33_v7  ;;  %215 = vmatpush.bf16.msra.mxu0 %v250_v27 }
   0xc   :  { %v35_v9 = vmul.f32 %v263_v6, %v34_v8 }
   0xd   :  { %30 = vadd.xlane.f32.xlu0 %v29_v4 }
   0xe   :  { %v36_v10 = vadd.f32 %v263_v6, %v35_v9  ;;  %216 = vmatpush.bf16.msra.mxu0 %v249_v32 }
  0x10   :  { %v38_v11 = vsel %vm37_vm1, %v263_v6, %v36_v10 }
  0x78   :  { %v28_v12 = vpop.xlane.xlu0 %27 }
  0x79   :  { %v39_v13 = vmul.f32 %v38_v11, %v28_v12 }
  0x7b   :  { %v41_v14 = vsub.f32 %v255_v1, %v39_v13 }
  0x7d   :  { %v43_v15 = vmul.f32 %v41_v14, %v41_v14 }
  0x7f   :  { %v45_v16 = vsel %vm25_vm0, %v43_v15, 0.0 }
  0x80   :  { %46 = vadd.xlane.f32.xlu1 %v45_v16  ;;  %v31_v17 = vpop.xlane.xlu0 %30 }
  0x81   :  { %v40_v18 = vmul.f32 %v38_v11, %v31_v17 }
  0x83   :  { %v42_v19 = vsub.f32 %v256_v3, %v40_v18 }
  0x85   :  { %v44_v20 = vmul.f32 %v42_v19, %v42_v19 }
  0x87   :  { %v48_v21 = vsel %vm25_vm0, %v44_v20, 0.0 }
  0x88   :  { %49 = vadd.xlane.f32.xlu1 %v48_v21 }
  0xf3   :  { %v47_v22 = vpop.xlane.xlu1 %46 }
  0xf4   :  { %v51_v23 = vmul.f32 %v47_v22, %v38_v11 }
  0xf6   :  { %v53_v25 = vadd.f32 1e-05, %v51_v23 }
  0xf8   :  { %264 = vrsqrt.f32 %v53_v25  ;;  %vm61_vm3 = vweird.f32 %v53_v25 }
  0xfb   :  { %v50_v28 = vpop.xlane.xlu1 %49 }
  0xfc   :  { %v52_v29 = vmul.f32 %v50_v28, %v38_v11 }
  0xfe   :  { %v265_v30 = vpop.eup %264  ;;  %v54_v31 = vadd.f32 1e-05, %v52_v29 }
  0xff   :  { %v56_v33 = vmul.f32 %v265_v30, %v53_v25  ;;  %vm62_vm2 = vweird.f32 %v265_v30 }
 0x100   :  { %266 = vrsqrt.f32 %v54_v31  ;;  %vm63_vm4 = vmor %vm61_vm3, %vm62_vm2  ;;  %vm71_vm6 = vweird.f32 %v54_v31  ;;  %vm225_vm3 = vcmask 781312  }
 0x101   :  { %v57_v34 = vmul.f32 %v265_v30, %v56_v33 }
 0x103   :  { %v58_v35 = vmul.f32 0.5, %v57_v34 }
 0x105   :  { %v59_v36 = vsub.f32 1.5, %v58_v35 }
 0x106   :  { %v267_v37 = vpop.eup %266 }
 0x107   :  { %v60_v38 = vmul.f32 %v265_v30, %v59_v36  ;;  %v66_v39 = vmul.f32 %v267_v37, %v54_v31  ;;  %vm72_vm5 = vweird.f32 %v267_v37 }
 0x108   :  { %vm73_vm7 = vmor %vm71_vm6, %vm72_vm5 }
 0x109   :  { %v64_v41 = vsel %vm63_vm4, %v265_v30, %v60_v38  ;;  %v67_v42 = vmul.f32 %v267_v37, %v66_v39 }
 0x10a   :  { %v75_v43 = vmul.f32 %v64_v41, %v41_v14 }
 0x10b   :  { %v68_v45 = vmul.f32 0.5, %v67_v42 }
 0x10c   :  { %v81_v46 = vmul.f32 %v259_v40, %v75_v43 }
 0x10d   :  { %v69_v47 = vsub.f32 1.5, %v68_v45 }
 0x10e   :  { %v333_v48 = vadd.f32 %v260_v44, %v81_v46  ;;  %v277_v46 = vmov -1.0  }
 0x10f   :  { %v70_v49 = vmul.f32 %v267_v37, %v69_v47 }
 0x110   :  { %v336_v50 = vmul.f32 0.70710677, %v333_v48 }
 0x111   :  { %v74_v51 = vsel %vm73_vm7, %v267_v37, %v70_v49 }
 0x112   :  { %v76_v52 = vmul.f32 %v74_v51, %v42_v19  ;;  %v97_v53 = vand.u32 2147483647, %v336_v50  ;;  %vm93_vm1 = vcmp.ge.f32.partialorder %v336_v50, 0.0 }
 0x113   :  { %v95_v47 = vsel %vm93_vm1, 1.0, %v277_v46 }
 0x114   :  { %v82_v54 = vmul.f32 %v259_v40, %v76_v52  ;;  %v99_v55 = vmul.f32 0.3275911, %v97_v53  ;;  %v151_v10 = vsub.f32 0.0, %v97_v53 }
 0x116   :  { %v339_v56 = vadd.f32 %v260_v44, %v82_v54  ;;  %v101_v57 = vadd.f32 1.0, %v99_v55  ;;  %v153_v17 = vmul.f32 %v151_v10, %v97_v53 }
 0x118   :  { %v342_v58 = vmul.f32 0.70710677, %v339_v56  ;;  %268 = vrcp.f32 %v101_v57  ;;  %v114_v1 = vand.u32 2147483648, %v101_v57  ;;  %v112_v3 = vand.u32 2147483647, %v101_v57 }
 0x119   :  { %vm108_vm9 = vweird.f32 %v101_v57  ;;  %v155_v25 = vmul.f32 1.442695, %v153_v17 }
 0x11a   :  { %v98_v59 = vand.u32 2147483647, %v342_v58  ;;  %v115_v6 = vor.u32 1.1754944e-38, %v114_v1  ;;  %vm113_vm11 = vcmp.eq.f32.partialorder %v112_v3, 8.507059e+37  ;;  %vm94_vm2 = vcmp.ge.f32.partialorder %v342_v58, 0.0 }
 0x11b   :  { %v96_v53 = vsel %vm94_vm2, 1.0, %v277_v46  ;;  %v261_v58 = vld [vmem:[%s362_s4] ss:$0 sm:$0xff] }
 0x11c   :  { %v100_v60 = vmul.f32 0.3275911, %v98_v59  ;;  %v152_v24 = vsub.f32 0.0, %v98_v59 }
 0x11e   :  { %v269_v61 = vpop.eup %268  ;;  %v102_v62 = vadd.f32 1.0, %v100_v60  ;;  %v154_v30 = vmul.f32 %v152_v24, %v98_v59  ;;  %v90_v59 = vmul.f32 0.5, %v339_v56 }
 0x11f   :  { %v104_v63 = vmul.f32 %v269_v61, %v101_v57  ;;  %vm109_vm8 = vweird.f32 %v269_v61  ;;  %v89_v57 = vmul.f32 0.5, %v333_v48 }
 0x120   :  { %270 = vrcp.f32 %v102_v62  ;;  %vm110_vm10 = vmor %vm108_vm9, %vm109_vm8  ;;  %v129_v13 = vand.u32 2147483648, %v102_v62  ;;  %v127_v15 = vand.u32 2147483647, %v102_v62  ;;  %vm123_vm13 = vweird.f32 %v102_v62 }
 0x121   :  { %v105_v0 = vsub.f32 1.0, %v104_v63  ;;  %272 = vpow2.f32 %v155_v25  ;;  %v157_v35 = vmul.f32 1.442695, %v154_v30 }
 0x122   :  { %v130_v20 = vor.u32 1.1754944e-38, %v129_v13  ;;  %vm128_vm15 = vcmp.eq.f32.partialorder %v127_v15, 8.507059e+37 }
 0x123   :  { %v106_v2 = vmul.f32 %v269_v61, %v105_v0  ;;  %274 = vpow2.f32 %v157_v35 }
 0x125   :  { %v107_v4 = vadd.f32 %v269_v61, %v106_v2 }
 0x126   :  { %v271_v5 = vpop.eup %270 }
 0x127   :  { %v111_v7 = vsel %vm110_vm10, %v269_v61, %v107_v4  ;;  %v119_v8 = vmul.f32 %v271_v5, %v102_v62  ;;  %vm124_vm12 = vweird.f32 %v271_v5  ;;  %v273_v38 = vpop.eup %272 }
 0x128   :  { %v116_v9 = vsel %vm113_vm11, %v115_v6, %v111_v7  ;;  %vm125_vm14 = vmor %vm123_vm13, %vm124_vm12 }
 0x129   :  { %v120_v11 = vsub.f32 1.0, %v119_v8  ;;  %v133_v12 = vmul.f32 1.0614054, %v116_v9  ;;  %v275_v45 = vpop.eup %274 }
 0x12b   :  { %v121_v14 = vmul.f32 %v271_v5, %v120_v11  ;;  %v135_v16 = vadd.f32 -1.4531521, %v133_v12 }
 0x12d   :  { %v122_v18 = vadd.f32 %v271_v5, %v121_v14  ;;  %v137_v19 = vmul.f32 %v135_v16, %v116_v9 }
 0x12f   :  { %v126_v21 = vsel %vm125_vm14, %v271_v5, %v122_v18  ;;  %v139_v22 = vadd.f32 1.4214138, %v137_v19 }
 0x130   :  { %v131_v23 = vsel %vm128_vm15, %v130_v20, %v126_v21 }
 0x131   :  { %v134_v26 = vmul.f32 1.0614054, %v131_v23  ;;  %v141_v27 = vmul.f32 %v139_v22, %v116_v9 }
 0x133   :  { %v136_v28 = vadd.f32 -1.4531521, %v134_v26  ;;  %v143_v29 = vadd.f32 -0.28449672, %v141_v27 }
 0x135   :  { %v138_v31 = vmul.f32 %v136_v28, %v131_v23  ;;  %v145_v32 = vmul.f32 %v143_v29, %v116_v9 }
 0x137   :  { %v140_v33 = vadd.f32 1.4214138, %v138_v31  ;;  %v147_v34 = vadd.f32 0.2548296, %v145_v32 }
 0x139   :  { %v142_v36 = vmul.f32 %v140_v33, %v131_v23  ;;  %v149_v37 = vmul.f32 %v147_v34, %v116_v9 }
 0x13b   :  { %v144_v39 = vadd.f32 -0.28449672, %v142_v36  ;;  %v159_v40 = vmul.f32 %v273_v38, %v149_v37 }
 0x13d   :  { %v146_v41 = vmul.f32 %v144_v39, %v131_v23  ;;  %v161_v43 = vsub.f32 1.0, %v159_v40 }
 0x13f   :  { %v148_v42 = vadd.f32 0.2548296, %v146_v41  ;;  %v163_v51 = vmul.f32 %v161_v43, %v95_v47 }
 0x141   :  { %v150_v44 = vmul.f32 %v148_v42, %v131_v23  ;;  %v165_v55 = vadd.f32 1.0, %v163_v51 }
 0x143   :  { %v160_v49 = vmul.f32 %v275_v45, %v150_v44  ;;  %v167_v50 = vmul.f32 %v165_v55, %v89_v57 }
 0x145   :  { %v162_v52 = vsub.f32 1.0, %v160_v49 }
 0x147   :  { %v164_v54 = vmul.f32 %v162_v52, %v96_v53 }
 0x149   :  { %v166_v60 = vadd.f32 1.0, %v164_v54 }
 0x14b   :  { %v168_v61 = vmul.f32 %v166_v60, %v90_v59 }
 0x14d   :  { %v169_v62 = vpack.c.bf16 %v168_v61, %v167_v50 }
 0x14f   :  { %248 = vmatmul.msk.bf16.vlgmr.msra.gmra.mxu0 %vm25_vm0, %v169_v62 }
 0x1cc   :  { %v218_v63 = vpop.f32.mrf.mxu0 }
 0x1cd   :  { %v219_v0 = vadd.f32 %v261_v58, %v218_v63 }
 0x1cf   :  { %v223_v1 = vpack.c.bf16 %v219_v0, %v219_v0 }
 0x1d1   :  { %226 = vst.msk [vmem:[%s364_s5] sm:$0xf] %vm225_vm3, %v223_v1 }
 0x1d4   :  { %v220_v48 = vpop.f32.mrf.mxu0 }
 0x1d5   :  { %v221_v56 = vadd.f32 %v261_v58, %v220_v48 }
 0x1d7   :  { %v224_v2 = vpack.c.bf16 %v221_v56, %v221_v56 }
 0x1d9   :  { %227 = vst.msk [vmem:[%s364_s5 + $0x4] sm:$0xf] %vm225_vm3, %v224_v2 }

// kernel: _lambda_.30
= control target key start
LH: loop header
LB: loop body
LE: loop exit
PB: predicated region body
PF: predicated region fallthrough
CT: control target
= control target key end

     0   :  { %vm61_vm0 = vcmask 254976   ;;  %v2124_v2 = vmov 0.0   ;;  %vm87_vm1 = vcmask 261120   ;;  %s2125_s11 = smov 64   ;;  %s2126_s18 = smov 32   ;;  %s2719_s2 = inlined_call_operand.vmem [shape: bf16[32,96], index: 2, kind: input, shape index: {}]   ;;  %s2720_s3 = inlined_call_operand.vmem [shape: bf16[32,96], index: 3, kind: input, shape index: {}]   ;;  %s2721_s4 = inlined_call_operand.vmem [shape: f32[1,96], index: 4, kind: input, shape index: {}]   ;;  %s2722_s5 = inlined_call_operand.vmem [shape: f32[1,96], index: 5, kind: input, shape index: {}]   ;;  %s2723_s0 = inlined_call_operand.vmem [shape: bf16[8,2,96], index: 0, kind: input, shape index: {}]   ;;  %s2724_s1 = inlined_call_operand.vmem [shape: bf16[8,2,96], index: 1, kind: input, shape index: {}]   ;;  %s2725_s6 = inlined_call_operand.vmem [shape: bf16[8,2,32], index: 6, kind: output, shape index: {0}]   ;;  %s2726_s7 = inlined_call_operand.vmem [shape: bf16[8,2,32], index: 7, kind: output, shape index: {1}]  }
   0x1   :  { %v1977_v0 = vld [vmem:[%s2719_s2 + $0x8] sm:$0xff]  ;;  %62 = vst.msk [vmem:[#allocation2] sm:$0x3] %vm61_vm0, %v2124_v2  ;;  %v1976_v3 = vld [vmem:[%s2719_s2] sm:$0xff]  ;;  %s2127_s19 = smov 96  }
   0x2   :  { %v1979_v1 = vld [vmem:[%s2720_s3 + $0x8] sm:$0xff]  ;;  %63 = vst.msk [vmem:[#allocation3] sm:$0x3] %vm61_vm0, %v2124_v2  ;;  %97 = vmatpush.bf16.msra.mxu0 %v1977_v0  ;;  %v1978_v4 = vld [vmem:[%s2720_s3] sm:$0xff] }
   0x3   :  { %134 = vmatpush.bf16.msra.mxu1 %v1979_v1  ;;  %v2012_v9 = vld [vmem:[%s2721_s4] ss:$0 sm:$0xff]  ;;  %v1806_v20 = vld [vmem:[%s2724_s1 + $0x7] sm:$0x1] }
   0x4   :  { %v2013_v13 = vld [vmem:[%s2722_s5] ss:$0 sm:$0xff]  ;;  %v145_v22 = vunpack.c.l.bf16 %v1806_v20 }
   0x5   :  { %v141_v17 = vld [vmem:[%s2723_s0] sm:$0x1] }
   0x6   :  { %98 = vmatpush.bf16.msra.mxu0 %v1976_v3  ;;  %v142_v18 = vunpack.c.l.bf16 %v141_v17 }
   0x7   :  { %135 = vmatpush.bf16.msra.mxu1 %v1978_v4 }
   0x8   :  { %v2182_v5 = vld [vmem:[#allocation2] sm:$0x3] }
   0x9   :  { %v66_v6 = vpack.c.bf16 %v2182_v5, %v2182_v5  ;;  %v2186_v7 = vld [vmem:[#allocation3] sm:$0x3] }
   0xa   :  { %v104_v8 = vpack.c.bf16 %v2186_v7, %v2186_v7 }
   0xb   :  { %1796 = vmatmul.msk.bf16.vlgmr.msra.gmra.mxu0 %vm87_vm1, %v66_v6 }
   0xc   :  { %1805 = vmatmul.msk.bf16.vlgmr.msra.gmra.mxu1 %vm87_vm1, %v104_v8 }
  0x88   :  { %v100_v10 = vpop.f32.mrf.mxu0 }
  0x89   :  { %v101_v11 = vadd.f32 %v2012_v9, %v100_v10  ;;  %v137_v12 = vpop.f32.mrf.mxu1  ;;  %v1981_v9 = vld [vmem:[%s2719_s2 + $0x8] sm:$0xff]  ;;  %v1980_v10 = vld [vmem:[%s2719_s2] sm:$0xff] }
  0x8a   :  { %v138_v15 = vadd.f32 %v2013_v13, %v137_v12  ;;  %312 = vmatpush.bf16.msra.mxu2 %v1981_v9 }
  0x8b   :  { %167 = vrot.lane.b32.xlu0 %v101_v11, %s2125_s11  ;;  %v146_v19 = vadd.f32 %v142_v18, %v101_v11 }
  0x8c   :  { %v189_v23 = vadd.f32 %v145_v22, %v138_v15 }
  0x8d   :  { %v1807_v21 = vmul.f32 -1.442695, %v146_v19  ;;  %v2014_v19 = vld [vmem:[%s2721_s4] ss:$0 sm:$0xff] }
  0x8e   :  { %v1808_v24 = vmul.f32 -1.442695, %v189_v23  ;;  %313 = vmatpush.bf16.msra.mxu2 %v1980_v10  ;;  %v2015_v23 = vld [vmem:[%s2722_s5] ss:$0 sm:$0xff] }
  0x8f   :  { %2028 = vpow2.f32 %v1807_v21 }
  0x90   :  { %v102_v14 = vpop.f32.mrf.mxu0  ;;  %2030 = vpow2.f32 %v1808_v24 }
  0x91   :  { %v139_v16 = vpop.f32.mrf.mxu1  ;;  %v1983_v14 = vld [vmem:[%s2720_s3 + $0x8] sm:$0xff] }
  0x92   :  { %349 = vmatpush.bf16.msra.mxu3 %v1983_v14 }
  0x93   :  { %210 = vrot.lane.b32.xlu0 %v138_v15, %s2125_s11  ;;  %v1982_v15 = vld [vmem:[%s2720_s3] sm:$0xff] }
  0x95   :  { %v2029_v25 = vpop.eup %2028 }
  0x96   :  { %v150_v26 = vadd.f32 1.0, %v2029_v25  ;;  %v2031_v27 = vpop.eup %2030  ;;  %350 = vmatpush.bf16.msra.mxu3 %v1982_v15 }
  0x97   :  { %v193_v28 = vadd.f32 1.0, %v2031_v27  ;;  %v1828_v27 = vld [vmem:[%s2723_s0 + $0x1] sm:$0x1] }
  0x98   :  { %2032 = vrcp.f32 %v150_v26  ;;  %v162_v37 = vand.u32 2147483648, %v150_v26  ;;  %vm156_vm3 = vweird.f32 %v150_v26  ;;  %v160_v38 = vand.u32 2147483647, %v150_v26 }
  0x99   :  { %2034 = vrcp.f32 %v193_v28  ;;  %vm199_vm6 = vweird.f32 %v193_v28  ;;  %v205_v46 = vand.u32 2147483648, %v193_v28  ;;  %v203_v47 = vand.u32 2147483647, %v193_v28 }
  0x9a   :  { %v163_v41 = vor.u32 1.1754944e-38, %v162_v37  ;;  %vm161_vm5 = vcmp.eq.f32.partialorder %v160_v38, 8.507059e+37 }
  0x9b   :  { %v206_v49 = vor.u32 1.1754944e-38, %v205_v46  ;;  %vm204_vm9 = vcmp.eq.f32.partialorder %v203_v47, 8.507059e+37 }
  0x9e   :  { %v2033_v29 = vpop.eup %2032 }
  0x9f   :  { %v152_v30 = vmul.f32 %v2033_v29, %v150_v26  ;;  %v2035_v32 = vpop.eup %2034  ;;  %vm157_vm2 = vweird.f32 %v2033_v29 }
  0xa0   :  { %v195_v34 = vmul.f32 %v2035_v32, %v193_v28  ;;  %vm158_vm4 = vmor %vm156_vm3, %vm157_vm2  ;;  %vm200_vm7 = vweird.f32 %v2035_v32  ;;  %v358_v28 = vunpack.c.l.bf16 %v1828_v27  ;;  %v1986_v27 = vld [vmem:[%s2720_s3] sm:$0xff] }
  0xa1   :  { %v153_v31 = vsub.f32 1.0, %v152_v30  ;;  %vm201_vm8 = vmor %vm199_vm6, %vm200_vm7 }
  0xa2   :  { %v196_v36 = vsub.f32 1.0, %v195_v34 }
  0xa3   :  { %v154_v33 = vmul.f32 %v2033_v29, %v153_v31 }
  0xa4   :  { %v197_v40 = vmul.f32 %v2035_v32, %v196_v36 }
  0xa5   :  { %v155_v35 = vadd.f32 %v2033_v29, %v154_v33  ;;  %v1829_v33 = vld [vmem:[%s2724_s1 + $0x6] sm:$0x1] }
  0xa6   :  { %v198_v45 = vadd.f32 %v2035_v32, %v197_v40  ;;  %v361_v34 = vunpack.c.l.bf16 %v1829_v33 }
  0xa7   :  { %v159_v39 = vsel %vm158_vm4, %v2033_v29, %v155_v35 }
  0xa8   :  { %v164_v43 = vsel %vm161_vm5, %v163_v41, %v159_v39  ;;  %v202_v48 = vsel %vm201_vm8, %v2035_v32, %v198_v45 }
  0xa9   :  { %v207_v51 = vsel %vm204_vm9, %v206_v49, %v202_v48  ;;  %v177_v60 = vsub.f32 1.0, %v164_v43 }
  0xaa   :  { %v220_v3 = vsub.f32 1.0, %v207_v51 }
  0xfd   :  { %v168_v42 = vpop.permute.xlu0 %167 }
  0xfe   :  { %v170_v44 = vmul.f32 %v168_v42, %v164_v43 }
 0x100   :  { %172 = vrot.lane.b32.xlu1 %v170_v44, %s2125_s11 }
 0x105   :  { %v211_v50 = vpop.permute.xlu0 %210 }
 0x106   :  { %v213_v52 = vmul.f32 %v211_v50, %v207_v51 }
 0x108   :  { %215 = vrot.lane.b32.xlu1 %v213_v52, %s2125_s11 }
 0x110   :  { %227 = vrot.lane.b32.xlu1 %v2186_v7, %s2126_s18 }
 0x172   :  { %v173_v53 = vpop.permute.xlu1 %172 }
 0x173   :  { %v175_v54 = vadd.f32 %v173_v53, %v142_v18 }
 0x175   :  { %2036 = vtanh.f32 %v175_v54 }
 0x17a   :  { %v216_v55 = vpop.permute.xlu1 %215 }
 0x17b   :  { %v2037_v56 = vpop.eup %2036  ;;  %v218_v57 = vadd.f32 %v216_v55, %v145_v22 }
 0x17c   :  { %179 = vrot.lane.b32.xlu2 %v2037_v56, %s2127_s19 }
 0x17d   :  { %2038 = vtanh.f32 %v218_v57 }
 0x182   :  { %v228_v2 = vpop.permute.xlu1 %227 }
 0x183   :  { %v2039_v58 = vpop.eup %2038  ;;  %v230_v6 = vmul.f32 %v228_v2, %v207_v51 }
 0x184   :  { %184 = vrot.lane.b32.xlu2 %v2182_v5, %s2126_s18  ;;  %222 = vrot.lane.b32.xlu0 %v2039_v58, %s2127_s19 }
 0x1d6   :  { %v180_v59 = vpop.permute.xlu2 %179 }
 0x1d7   :  { %v182_v62 = vmul.f32 %v180_v59, %v177_v60 }
 0x1de   :  { %v185_v61 = vpop.permute.xlu2 %184 }
 0x1df   :  { %v187_v63 = vmul.f32 %v185_v61, %v164_v43 }
 0x1e1   :  { %v2214_v0 = vadd.f32 %v187_v63, %v182_v62 }
 0x1e3   :  { %241 = vst [vmem:[#allocation1] ss:$4 sm:$0xff] %v2214_v0 }
 0x1ea   :  { %v242_v1 = vld.sshfl [vmem:[#allocation1] sm:$0xff pattern:$0x73625140] }
 0x1eb   :  { %243 = vrot.lane.b32.xlu2 %v242_v1, %s2127_s19 }
 0x1f6   :  { %v223_v4 = vpop.permute.xlu0 %222 }
 0x1f7   :  { %v225_v7 = vmul.f32 %v223_v4, %v220_v3 }
 0x1f9   :  { %v2218_v5 = vadd.f32 %v230_v6, %v225_v7 }
 0x1fb   :  { %249 = vst [vmem:[#allocation1] ss:$4 sm:$0xff] %v2218_v5 }
 0x202   :  { %v250_v8 = vld.sshfl [vmem:[#allocation1] sm:$0xff pattern:$0x73625140] }
 0x203   :  { %251 = vrot.lane.b32.xlu0 %v250_v8, %s2127_s19 }
 0x245   :  { %v244_v11 = vpop.permute.xlu2 %243 }
 0x246   :  { %247 = vst.msk [vmem:[#allocation2] sm:$0x3] %vm61_vm0, %v244_v11 }
 0x24d   :  { %v280_v12 = vld [vmem:[#allocation2] sm:$0x3] }
 0x24e   :  { %v282_v13 = vpack.c.bf16 %v280_v12, %v280_v12 }
 0x250   :  { %1818 = vmatmul.msk.bf16.vlgmr.msra.gmra.mxu2 %vm87_vm1, %v282_v13 }
 0x275   :  { %v252_v16 = vpop.permute.xlu0 %251 }
 0x276   :  { %254 = vst.msk [vmem:[#allocation3] sm:$0x3] %vm61_vm0, %v252_v16 }
 0x27d   :  { %v2237_v17 = vld [vmem:[#allocation3] sm:$0x3] }
 0x27e   :  { %v319_v18 = vpack.c.bf16 %v2237_v17, %v2237_v17 }
 0x280   :  { %1827 = vmatmul.msk.bf16.vlgmr.msra.gmra.mxu3 %vm87_vm1, %v319_v18 }
 0x2d3   :  { %v315_v20 = vpop.f32.mrf.mxu2 }
 0x2d4   :  { %v316_v21 = vadd.f32 %v2014_v19, %v315_v20 }
 0x2d6   :  { %383 = vrot.lane.b32.xlu1 %v316_v21, %s2125_s11  ;;  %v362_v29 = vadd.f32 %v358_v28, %v316_v21  ;;  %v1985_v21 = vld [vmem:[%s2719_s2 + $0x8] sm:$0xff] }
 0x2d7   :  { %524 = vmatpush.bf16.msrb.mxu0 %v1985_v21 }
 0x2d8   :  { %v1830_v30 = vmul.f32 -1.442695, %v362_v29 }
 0x2da   :  { %2040 = vpow2.f32 %v1830_v30 }
 0x2db   :  { %v317_v22 = vpop.f32.mrf.mxu2 }
 0x2dc   :  { %v1984_v22 = vld [vmem:[%s2719_s2] sm:$0xff] }
 0x2dd   :  { %525 = vmatpush.bf16.msrb.mxu0 %v1984_v22 }
 0x2e0   :  { %v2041_v31 = vpop.eup %2040 }
 0x2e1   :  { %v366_v32 = vadd.f32 1.0, %v2041_v31  ;;  %v2016_v31 = vld [vmem:[%s2721_s4] ss:$0 sm:$0xff] }
 0x2e3   :  { %2042 = vrcp.f32 %v366_v32  ;;  %v378_v44 = vand.u32 2147483648, %v366_v32  ;;  %vm372_vm11 = vweird.f32 %v366_v32  ;;  %v376_v45 = vand.u32 2147483647, %v366_v32 }
 0x2e5   :  { %v379_v47 = vor.u32 1.1754944e-38, %v378_v44  ;;  %vm377_vm13 = vcmp.eq.f32.partialorder %v376_v45, 8.507059e+37 }
 0x2e9   :  { %v2043_v36 = vpop.eup %2042 }
 0x2ea   :  { %v368_v38 = vmul.f32 %v2043_v36, %v366_v32  ;;  %vm373_vm10 = vweird.f32 %v2043_v36 }
 0x2eb   :  { %vm374_vm12 = vmor %vm372_vm11, %vm373_vm10 }
 0x2ec   :  { %v369_v39 = vsub.f32 1.0, %v368_v38  ;;  %v2017_v38 = vld [vmem:[%s2722_s5] ss:$0 sm:$0xff] }
 0x2ee   :  { %v370_v41 = vmul.f32 %v2043_v36, %v369_v39 }
 0x2f0   :  { %v371_v43 = vadd.f32 %v2043_v36, %v370_v41 }
 0x2f2   :  { %v375_v46 = vsel %vm374_vm12, %v2043_v36, %v371_v43 }
 0x2f3   :  { %v380_v48 = vsel %vm377_vm13, %v379_v47, %v375_v46 }
 0x2f4   :  { %v393_v8 = vsub.f32 1.0, %v380_v48 }
 0x303   :  { %v352_v24 = vpop.f32.mrf.mxu3 }
 0x304   :  { %v353_v25 = vadd.f32 %v2015_v23, %v352_v24  ;;  %v1987_v23 = vld [vmem:[%s2720_s3 + $0x8] sm:$0xff] }
 0x305   :  { %561 = vmatpush.bf16.msrb.mxu1 %v1987_v23 }
 0x306   :  { %426 = vrot.lane.b32.xlu2 %v353_v25, %s2125_s11  ;;  %v405_v35 = vadd.f32 %v361_v34, %v353_v25 }
 0x308   :  { %v1831_v37 = vmul.f32 -1.442695, %v405_v35  ;;  %v1852_v35 = vld [vmem:[%s2723_s0 + $0x2] sm:$0x1] }
 0x309   :  { %562 = vmatpush.bf16.msrb.mxu1 %v1986_v27  ;;  %v570_v36 = vunpack.c.l.bf16 %v1852_v35  ;;  %v1991_v27 = vld [vmem:[%s2720_s3 + $0x8] sm:$0xff] }
 0x30a   :  { %2044 = vpow2.f32 %v1831_v37  ;;  %773 = vmatpush.bf16.msrb.mxu3 %v1991_v27 }
 0x30b   :  { %v354_v26 = vpop.f32.mrf.mxu3 }
 0x310   :  { %v2045_v40 = vpop.eup %2044 }
 0x311   :  { %v409_v42 = vadd.f32 1.0, %v2045_v40 }
 0x313   :  { %2046 = vrcp.f32 %v409_v42  ;;  %v421_v56 = vand.u32 2147483648, %v409_v42  ;;  %vm415_vm15 = vweird.f32 %v409_v42  ;;  %v419_v57 = vand.u32 2147483647, %v409_v42 }
 0x315   :  { %v422_v59 = vor.u32 1.1754944e-38, %v421_v56  ;;  %vm420_vm3 = vcmp.eq.f32.partialorder %v419_v57, 8.507059e+37  ;;  %v1853_v57 = vld [vmem:[%s2724_s1 + $0x5] sm:$0x1] }
 0x319   :  { %v2047_v51 = vpop.eup %2046 }
 0x31a   :  { %v411_v52 = vmul.f32 %v2047_v51, %v409_v42  ;;  %vm416_vm14 = vweird.f32 %v2047_v51 }
 0x31b   :  { %vm417_vm2 = vmor %vm415_vm15, %vm416_vm14 }
 0x31c   :  { %v412_v53 = vsub.f32 1.0, %v411_v52 }
 0x31e   :  { %v413_v54 = vmul.f32 %v2047_v51, %v412_v53 }
 0x320   :  { %v414_v55 = vadd.f32 %v2047_v51, %v413_v54 }
 0x322   :  { %v418_v58 = vsel %vm417_vm2, %v2047_v51, %v414_v55 }
 0x323   :  { %v423_v61 = vsel %vm420_vm3, %v422_v59, %v418_v58  ;;  %v573_v58 = vunpack.c.l.bf16 %v1853_v57 }
 0x324   :  { %v436_v15 = vsub.f32 1.0, %v423_v61 }
 0x348   :  { %v384_v49 = vpop.permute.xlu1 %383 }
 0x349   :  { %v386_v50 = vmul.f32 %v384_v49, %v380_v48 }
 0x34b   :  { %388 = vrot.lane.b32.xlu0 %v386_v50, %s2125_s11 }
 0x353   :  { %400 = vrot.lane.b32.xlu0 %v280_v12, %s2126_s18 }
 0x360   :  { %v427_v60 = vpop.permute.xlu2 %426 }
 0x361   :  { %v429_v62 = vmul.f32 %v427_v60, %v423_v61 }
 0x363   :  { %431 = vrot.lane.b32.xlu1 %v429_v62, %s2125_s11 }
 0x3bd   :  { %v389_v63 = vpop.permute.xlu0 %388 }
 0x3be   :  { %v391_v1 = vadd.f32 %v389_v63, %v358_v28 }
 0x3c0   :  { %2048 = vtanh.f32 %v391_v1 }
 0x3c5   :  { %v401_v7 = vpop.permute.xlu0 %400 }
 0x3c6   :  { %v2049_v2 = vpop.eup %2048  ;;  %v403_v10 = vmul.f32 %v401_v7, %v380_v48 }
 0x3c7   :  { %395 = vrot.lane.b32.xlu2 %v2049_v2, %s2127_s19 }
 0x3cf   :  { %443 = vrot.lane.b32.xlu2 %v2237_v17, %s2126_s18 }
 0x3d5   :  { %v432_v3 = vpop.permute.xlu1 %431 }
 0x3d6   :  { %v434_v4 = vadd.f32 %v432_v3, %v361_v34 }
 0x3d8   :  { %2050 = vtanh.f32 %v434_v4 }
 0x3de   :  { %v2051_v6 = vpop.eup %2050 }
 0x3df   :  { %438 = vrot.lane.b32.xlu1 %v2051_v6, %s2127_s19 }
 0x421   :  { %v396_v9 = vpop.permute.xlu2 %395 }
 0x422   :  { %v398_v11 = vmul.f32 %v396_v9, %v393_v8 }
 0x424   :  { %v2263_v12 = vadd.f32 %v403_v10, %v398_v11 }
 0x426   :  { %455 = vst [vmem:[#allocation1] ss:$4 sm:$0xff] %v2263_v12 }
 0x429   :  { %v444_v14 = vpop.permute.xlu2 %443 }
 0x42a   :  { %v446_v17 = vmul.f32 %v444_v14, %v423_v61 }
 0x42d   :  { %v456_v13 = vld.sshfl [vmem:[#allocation1] sm:$0xff pattern:$0x73625140] }
 0x42e   :  { %457 = vrot.lane.b32.xlu0 %v456_v13, %s2127_s19 }
 0x451   :  { %v439_v16 = vpop.permute.xlu1 %438 }
 0x452   :  { %v441_v18 = vmul.f32 %v439_v16, %v436_v15 }
 0x454   :  { %v2267_v19 = vadd.f32 %v446_v17, %v441_v18 }
 0x456   :  { %462 = vst [vmem:[#allocation1] ss:$4 sm:$0xff] %v2267_v19 }
 0x45d   :  { %v463_v20 = vld.sshfl [vmem:[#allocation1] sm:$0xff pattern:$0x73625140] }
 0x45e   :  { %464 = vrot.lane.b32.xlu1 %v463_v20, %s2127_s19 }
 0x4a0   :  { %v458_v24 = vpop.permute.xlu0 %457 }
 0x4a1   :  { %460 = vst.msk [vmem:[#allocation2] sm:$0x3] %vm61_vm0, %v458_v24 }
 0x4a8   :  { %v492_v25 = vld [vmem:[#allocation2] sm:$0x3] }
 0x4a9   :  { %v494_v26 = vpack.c.bf16 %v492_v25, %v492_v25 }
 0x4ab   :  { %1842 = vmatmul.msk.bf16.vlgmr.msrb.gmra.mxu0 %vm87_vm1, %v494_v26 }
 0x4d0   :  { %v465_v28 = vpop.permute.xlu1 %464 }
 0x4d1   :  { %467 = vst.msk [vmem:[#allocation3] sm:$0x3] %vm61_vm0, %v465_v28 }
 0x4d8   :  { %v2286_v29 = vld [vmem:[#allocation3] sm:$0x3] }
 0x4d9   :  { %v531_v30 = vpack.c.bf16 %v2286_v29, %v2286_v29 }
 0x4db   :  { %1851 = vmatmul.msk.bf16.vlgmr.msrb.gmra.mxu1 %vm87_vm1, %v531_v30 }
 0x528   :  { %v527_v32 = vpop.f32.mrf.mxu0 }
 0x529   :  { %v528_v33 = vadd.f32 %v2016_v31, %v527_v32 }
 0x52b   :  { %595 = vrot.lane.b32.xlu2 %v528_v33, %s2125_s11  ;;  %v574_v37 = vadd.f32 %v570_v36, %v528_v33 }
 0x52d   :  { %v1854_v39 = vmul.f32 -1.442695, %v574_v37  ;;  %v1989_v37 = vld [vmem:[%s2719_s2 + $0x8] sm:$0xff] }
 0x52e   :  { %736 = vmatpush.bf16.msrb.mxu2 %v1989_v37 }
 0x52f   :  { %2052 = vpow2.f32 %v1854_v39 }
 0x530   :  { %v529_v34 = vpop.f32.mrf.mxu0 }
 0x535   :  { %v2053_v43 = vpop.eup %2052 }
 0x536   :  { %v578_v44 = vadd.f32 1.0, %v2053_v43 }
 0x538   :  { %2054 = vrcp.f32 %v578_v44  ;;  %v590_v50 = vand.u32 2147483648, %v578_v44  ;;  %vm584_vm5 = vweird.f32 %v578_v44  ;;  %v588_v51 = vand.u32 2147483647, %v578_v44 }
 0x53a   :  { %v591_v53 = vor.u32 1.1754944e-38, %v590_v50  ;;  %vm589_vm7 = vcmp.eq.f32.partialorder %v588_v51, 8.507059e+37 }
 0x53e   :  { %v2055_v45 = vpop.eup %2054 }
 0x53f   :  { %v580_v46 = vmul.f32 %v2055_v45, %v578_v44  ;;  %vm585_vm4 = vweird.f32 %v2055_v45 }
 0x540   :  { %vm586_vm6 = vmor %vm584_vm5, %vm585_vm4 }
 0x541   :  { %v581_v47 = vsub.f32 1.0, %v580_v46  ;;  %v2019_v46 = vld [vmem:[%s2722_s5] ss:$0 sm:$0xff] }
 0x543   :  { %v582_v48 = vmul.f32 %v2055_v45, %v581_v47 }
 0x545   :  { %v583_v49 = vadd.f32 %v2055_v45, %v582_v48 }
 0x547   :  { %v587_v52 = vsel %vm586_vm6, %v2055_v45, %v583_v49  ;;  %v2018_v45 = vld [vmem:[%s2721_s4] ss:$0 sm:$0xff] }
 0x548   :  { %v592_v55 = vsel %vm589_vm7, %v591_v53, %v587_v52  ;;  %v1876_v53 = vld [vmem:[%s2723_s0 + $0x3] sm:$0x1] }
 0x549   :  { %v605_v22 = vsub.f32 1.0, %v592_v55 }
 0x558   :  { %v564_v40 = vpop.f32.mrf.mxu1 }
 0x559   :  { %v565_v41 = vadd.f32 %v2017_v38, %v564_v40  ;;  %v1988_v38 = vld [vmem:[%s2719_s2] sm:$0xff] }
 0x55a   :  { %737 = vmatpush.bf16.msrb.mxu2 %v1988_v38 }
 0x55b   :  { %638 = vrot.lane.b32.xlu0 %v565_v41, %s2125_s11  ;;  %v617_v59 = vadd.f32 %v573_v58, %v565_v41 }
 0x55d   :  { %v1855_v60 = vmul.f32 -1.442695, %v617_v59 }
 0x55f   :  { %2056 = vpow2.f32 %v1855_v60 }
 0x560   :  { %v566_v42 = vpop.f32.mrf.mxu1 }
 0x565   :  { %v2057_v61 = vpop.eup %2056 }
 0x566   :  { %v621_v62 = vadd.f32 1.0, %v2057_v61 }
 0x568   :  { %2058 = vrcp.f32 %v621_v62  ;;  %v633_v6 = vand.u32 2147483648, %v621_v62  ;;  %vm627_vm9 = vweird.f32 %v621_v62  ;;  %v631_v7 = vand.u32 2147483647, %v621_v62 }
 0x56a   :  { %v634_v9 = vor.u32 1.1754944e-38, %v633_v6  ;;  %vm632_vm11 = vcmp.eq.f32.partialorder %v631_v7, 8.507059e+37 }
 0x56e   :  { %v2059_v63 = vpop.eup %2058 }
 0x56f   :  { %v623_v1 = vmul.f32 %v2059_v63, %v621_v62  ;;  %vm628_vm8 = vweird.f32 %v2059_v63 }
 0x570   :  { %vm629_vm10 = vmor %vm627_vm9, %vm628_vm8 }
 0x571   :  { %v624_v2 = vsub.f32 1.0, %v623_v1 }
 0x573   :  { %v625_v3 = vmul.f32 %v2059_v63, %v624_v2 }
 0x575   :  { %v626_v4 = vadd.f32 %v2059_v63, %v625_v3 }
 0x577   :  { %v630_v8 = vsel %vm629_vm10, %v2059_v63, %v626_v4 }
 0x578   :  { %v635_v11 = vsel %vm632_vm11, %v634_v9, %v630_v8 }
 0x579   :  { %v648_v30 = vsub.f32 1.0, %v635_v11 }
 0x585   :  { %v596_v54 = vpop.permute.xlu2 %595 }
 0x586   :  { %v598_v56 = vmul.f32 %v596_v54, %v592_v55  ;;  %v1877_v54 = vld [vmem:[%s2724_s1 + $0x4] sm:$0x1] }
 0x588   :  { %600 = vrot.lane.b32.xlu1 %v598_v56, %s2125_s11  ;;  %v785_v56 = vunpack.c.l.bf16 %v1877_v54 }
 0x590   :  { %612 = vrot.lane.b32.xlu1 %v492_v25, %s2126_s18 }
 0x5cd   :  { %v639_v10 = vpop.permute.xlu0 %638 }
 0x5ce   :  { %v641_v13 = vmul.f32 %v639_v10, %v635_v11 }
 0x5d0   :  { %643 = vrot.lane.b32.xlu2 %v641_v13, %s2125_s11 }
 0x5fa   :  { %v601_v14 = vpop.permute.xlu1 %600 }
 0x5fb   :  { %v603_v15 = vadd.f32 %v601_v14, %v570_v36  ;;  %v1990_v36 = vld [vmem:[%s2720_s3] sm:$0xff] }
 0x5fc   :  { %774 = vmatpush.bf16.msrb.mxu3 %v1990_v36 }
 0x5fd   :  { %2060 = vtanh.f32 %v603_v15 }
 0x602   :  { %v613_v21 = vpop.permute.xlu1 %612 }
 0x603   :  { %v2061_v16 = vpop.eup %2060  ;;  %v615_v24 = vmul.f32 %v613_v21, %v592_v55  ;;  %v782_v55 = vunpack.c.l.bf16 %v1876_v53  ;;  %v1995_v53 = vld [vmem:[%s2720_s3 + $0x8] sm:$0xff] }
 0x604   :  { %607 = vrot.lane.b32.xlu0 %v2061_v16, %s2127_s19  ;;  %985 = vmatpush.bf16.msra.mxu1 %v1995_v53 }
 0x60c   :  { %655 = vrot.lane.b32.xlu0 %v2286_v29, %s2126_s18 }
 0x62a   :  { %v644_v17 = vpop.permute.xlu2 %643 }
 0x62b   :  { %v646_v18 = vadd.f32 %v644_v17, %v573_v58 }
 0x62d   :  { %2062 = vtanh.f32 %v646_v18 }
 0x633   :  { %v2063_v20 = vpop.eup %2062 }
 0x634   :  { %650 = vrot.lane.b32.xlu2 %v2063_v20, %s2127_s19 }
 0x676   :  { %v608_v23 = vpop.permute.xlu0 %607 }
 0x677   :  { %v610_v25 = vmul.f32 %v608_v23, %v605_v22 }
 0x679   :  { %v2312_v26 = vadd.f32 %v615_v24, %v610_v25 }
 0x67b   :  { %667 = vst [vmem:[#allocation1] ss:$4 sm:$0xff] %v2312_v26 }
 0x67e   :  { %v656_v29 = vpop.permute.xlu0 %655 }
 0x67f   :  { %v658_v32 = vmul.f32 %v656_v29, %v635_v11 }
 0x682   :  { %v668_v28 = vld.sshfl [vmem:[#allocation1] sm:$0xff pattern:$0x73625140] }
 0x683   :  { %669 = vrot.lane.b32.xlu1 %v668_v28, %s2127_s19 }
 0x68e   :  { %v651_v31 = vpop.permute.xlu2 %650 }
 0x68f   :  { %v653_v33 = vmul.f32 %v651_v31, %v648_v30 }
 0x691   :  { %v2319_v34 = vadd.f32 %v658_v32, %v653_v33 }
 0x693   :  { %674 = vst [vmem:[#allocation1] ss:$4 sm:$0xff] %v2319_v34 }
 0x69a   :  { %v675_v35 = vld.sshfl [vmem:[#allocation1] sm:$0xff pattern:$0x73625140] }
 0x69b   :  { %676 = vrot.lane.b32.xlu2 %v675_v35, %s2127_s19 }
 0x6f5   :  { %v670_v39 = vpop.permute.xlu1 %669  ;;  %v677_v40 = vpop.permute.xlu2 %676 }
 0x6f6   :  { %672 = vst.msk [vmem:[#allocation2] sm:$0x3] %vm61_vm0, %v670_v39 }
 0x6f7   :  { %679 = vst.msk [vmem:[#allocation3] sm:$0x3] %vm61_vm0, %v677_v40 }
 0x6fd   :  { %v2334_v41 = vld [vmem:[#allocation2] sm:$0x3] }
 0x6fe   :  { %v706_v42 = vpack.c.bf16 %v2334_v41, %v2334_v41  ;;  %v2338_v43 = vld [vmem:[#allocation3] sm:$0x3] }
 0x6ff   :  { %v743_v44 = vpack.c.bf16 %v2338_v43, %v2338_v43 }
 0x700   :  { %1866 = vmatmul.msk.bf16.vlgmr.msrb.gmra.mxu2 %vm87_vm1, %v706_v42 }
 0x701   :  { %1875 = vmatmul.msk.bf16.vlgmr.msrb.gmra.mxu3 %vm87_vm1, %v743_v44 }
 0x783   :  { %v739_v47 = vpop.f32.mrf.mxu2 }
 0x784   :  { %v740_v48 = vadd.f32 %v2018_v45, %v739_v47  ;;  %v776_v49 = vpop.f32.mrf.mxu3 }
 0x785   :  { %v777_v50 = vadd.f32 %v2019_v46, %v776_v49 }
 0x786   :  { %807 = vrot.lane.b32.xlu0 %v740_v48, %s2125_s11  ;;  %v786_v57 = vadd.f32 %v782_v55, %v740_v48 }
 0x787   :  { %850 = vrot.lane.b32.xlu1 %v777_v50, %s2125_s11  ;;  %v829_v58 = vadd.f32 %v785_v56, %v777_v50 }
 0x788   :  { %v1878_v59 = vmul.f32 -1.442695, %v786_v57  ;;  %v1994_v57 = vld [vmem:[%s2720_s3] sm:$0xff] }
 0x789   :  { %v1879_v60 = vmul.f32 -1.442695, %v829_v58  ;;  %986 = vmatpush.bf16.msra.mxu1 %v1994_v57 }
 0x78a   :  { %2064 = vpow2.f32 %v1878_v59 }
 0x78b   :  { %v741_v51 = vpop.f32.mrf.mxu2  ;;  %2066 = vpow2.f32 %v1879_v60 }
 0x78c   :  { %v778_v52 = vpop.f32.mrf.mxu3  ;;  %v1993_v51 = vld [vmem:[%s2719_s2 + $0x8] sm:$0xff] }
 0x78d   :  { %948 = vmatpush.bf16.msra.mxu0 %v1993_v51  ;;  %v1992_v52 = vld [vmem:[%s2719_s2] sm:$0xff] }
 0x790   :  { %v2065_v61 = vpop.eup %2064 }
 0x791   :  { %v2067_v62 = vpop.eup %2066  ;;  %v790_v63 = vadd.f32 1.0, %v2065_v61  ;;  %949 = vmatpush.bf16.msra.mxu0 %v1992_v52  ;;  %v2020_v61 = vld [vmem:[%s2721_s4] ss:$0 sm:$0xff] }
 0x792   :  { %v833_v1 = vadd.f32 1.0, %v2067_v62 }
 0x793   :  { %2068 = vrcp.f32 %v790_v63  ;;  %v802_v13 = vand.u32 2147483648, %v790_v63  ;;  %vm796_vm14 = vweird.f32 %v790_v63  ;;  %v800_v15 = vand.u32 2147483647, %v790_v63 }
 0x794   :  { %2070 = vrcp.f32 %v833_v1  ;;  %v845_v16 = vand.u32 2147483648, %v833_v1  ;;  %vm839_vm2 = vweird.f32 %v833_v1  ;;  %v843_v17 = vand.u32 2147483647, %v833_v1 }
 0x795   :  { %v803_v20 = vor.u32 1.1754944e-38, %v802_v13  ;;  %vm801_vm4 = vcmp.eq.f32.partialorder %v800_v15, 8.507059e+37 }
 0x796   :  { %v846_v22 = vor.u32 1.1754944e-38, %v845_v16  ;;  %vm844_vm5 = vcmp.eq.f32.partialorder %v843_v17, 8.507059e+37 }
 0x799   :  { %v2069_v2 = vpop.eup %2068 }
 0x79a   :  { %v2071_v3 = vpop.eup %2070  ;;  %v792_v4 = vmul.f32 %v2069_v2, %v790_v63  ;;  %vm797_vm12 = vweird.f32 %v2069_v2 }
 0x79b   :  { %v835_v6 = vmul.f32 %v2071_v3, %v833_v1  ;;  %vm840_vm13 = vweird.f32 %v2071_v3  ;;  %vm798_vm15 = vmor %vm796_vm14, %vm797_vm12 }
 0x79c   :  { %v793_v7 = vsub.f32 1.0, %v792_v4  ;;  %vm841_vm3 = vmor %vm839_vm2, %vm840_vm13 }
 0x79d   :  { %v836_v8 = vsub.f32 1.0, %v835_v6 }
 0x79e   :  { %v794_v9 = vmul.f32 %v2069_v2, %v793_v7  ;;  %v1900_v7 = vld [vmem:[%s2723_s0 + $0x4] sm:$0x1] }
 0x79f   :  { %v837_v10 = vmul.f32 %v2071_v3, %v836_v8  ;;  %v994_v8 = vunpack.c.l.bf16 %v1900_v7  ;;  %v1997_v7 = vld [vmem:[%s2719_s2 + $0x8] sm:$0xff] }
 0x7a0   :  { %v795_v11 = vadd.f32 %v2069_v2, %v794_v9  ;;  %1160 = vmatpush.bf16.msra.mxu2 %v1997_v7 }
 0x7a1   :  { %v838_v14 = vadd.f32 %v2071_v3, %v837_v10 }
 0x7a2   :  { %v799_v18 = vsel %vm798_vm15, %v2069_v2, %v795_v11  ;;  %v2021_v2 = vld [vmem:[%s2722_s5] ss:$0 sm:$0xff] }
 0x7a3   :  { %v842_v21 = vsel %vm841_vm3, %v2071_v3, %v838_v14  ;;  %v804_v24 = vsel %vm801_vm4, %v803_v20, %v799_v18  ;;  %v1901_v14 = vld [vmem:[%s2724_s1 + $0x3] sm:$0x1] }
 0x7a4   :  { %v847_v28 = vsel %vm844_vm5, %v846_v22, %v842_v21  ;;  %v817_v38 = vsub.f32 1.0, %v804_v24  ;;  %v997_v15 = vunpack.c.l.bf16 %v1901_v14  ;;  %v1998_v14 = vld [vmem:[%s2720_s3] sm:$0xff] }
 0x7f8   :  { %v808_v23 = vpop.permute.xlu0 %807 }
 0x7f9   :  { %v810_v25 = vmul.f32 %v808_v23, %v804_v24  ;;  %v851_v27 = vpop.permute.xlu1 %850 }
 0x7fa   :  { %v853_v29 = vmul.f32 %v851_v27, %v847_v28 }
 0x7fb   :  { %812 = vrot.lane.b32.xlu2 %v810_v25, %s2125_s11 }
 0x7fc   :  { %855 = vrot.lane.b32.xlu0 %v853_v29, %s2125_s11 }
 0x803   :  { %824 = vrot.lane.b32.xlu2 %v2334_v41, %s2126_s18 }
 0x855   :  { %v813_v30 = vpop.permute.xlu2 %812 }
 0x856   :  { %v815_v31 = vadd.f32 %v813_v30, %v782_v55 }
 0x858   :  { %2072 = vtanh.f32 %v815_v31 }
 0x85d   :  { %v825_v37 = vpop.permute.xlu2 %824 }
 0x85e   :  { %v2073_v32 = vpop.eup %2072  ;;  %v827_v40 = vmul.f32 %v825_v37, %v804_v24 }
 0x85f   :  { %819 = vrot.lane.b32.xlu1 %v2073_v32, %s2127_s19 }
 0x867   :  { %867 = vrot.lane.b32.xlu1 %v2338_v43, %s2126_s18  ;;  %v860_v43 = vsub.f32 1.0, %v847_v28 }
 0x86e   :  { %v856_v33 = vpop.permute.xlu0 %855 }
 0x86f   :  { %v858_v35 = vadd.f32 %v856_v33, %v785_v56 }
 0x871   :  { %2074 = vtanh.f32 %v858_v35 }
 0x877   :  { %v2075_v36 = vpop.eup %2074 }
 0x878   :  { %862 = vrot.lane.b32.xlu0 %v2075_v36, %s2127_s19 }
 0x8d1   :  { %v820_v39 = vpop.permute.xlu1 %819 }
 0x8d2   :  { %v822_v41 = vmul.f32 %v820_v39, %v817_v38 }
 0x8d4   :  { %v2366_v42 = vadd.f32 %v827_v40, %v822_v41 }
 0x8d6   :  { %879 = vst [vmem:[#allocation1] ss:$4 sm:$0xff] %v2366_v42 }
 0x8d9   :  { %v868_v45 = vpop.permute.xlu1 %867 }
 0x8da   :  { %v870_v47 = vmul.f32 %v868_v45, %v847_v28 }
 0x8dd   :  { %v880_v44 = vld.sshfl [vmem:[#allocation1] sm:$0xff pattern:$0x73625140] }
 0x8de   :  { %881 = vrot.lane.b32.xlu2 %v880_v44, %s2127_s19 }
 0x8ea   :  { %v863_v46 = vpop.permute.xlu0 %862 }
 0x8eb   :  { %v865_v48 = vmul.f32 %v863_v46, %v860_v43 }
 0x8ed   :  { %v2370_v49 = vadd.f32 %v870_v47, %v865_v48 }
 0x8ef   :  { %886 = vst [vmem:[#allocation1] ss:$4 sm:$0xff] %v2370_v49 }
 0x8f6   :  { %v887_v50 = vld.sshfl [vmem:[#allocation1] sm:$0xff pattern:$0x73625140] }
 0x8f7   :  { %888 = vrot.lane.b32.xlu0 %v887_v50, %s2127_s19 }
 0x938   :  { %v882_v54 = vpop.permute.xlu2 %881 }
 0x939   :  { %884 = vst.msk [vmem:[#allocation2] sm:$0x3] %vm61_vm0, %v882_v54 }
 0x940   :  { %v916_v55 = vld [vmem:[#allocation2] sm:$0x3] }
 0x941   :  { %v918_v56 = vpack.c.bf16 %v916_v55, %v916_v55 }
 0x943   :  { %1890 = vmatmul.msk.bf16.vlgmr.msra.gmra.mxu0 %vm87_vm1, %v918_v56 }
 0x969   :  { %v889_v58 = vpop.permute.xlu0 %888 }
 0x96a   :  { %891 = vst.msk [vmem:[#allocation3] sm:$0x3] %vm61_vm0, %v889_v58 }
 0x971   :  { %v2389_v59 = vld [vmem:[#allocation3] sm:$0x3] }
 0x972   :  { %v955_v60 = vpack.c.bf16 %v2389_v59, %v2389_v59 }
 0x974   :  { %1899 = vmatmul.msk.bf16.vlgmr.msra.gmra.mxu1 %vm87_vm1, %v955_v60 }
 0x9c0   :  { %v951_v62 = vpop.f32.mrf.mxu0 }
 0x9c1   :  { %v952_v63 = vadd.f32 %v2020_v61, %v951_v62 }
 0x9c3   :  { %1019 = vrot.lane.b32.xlu1 %v952_v63, %s2125_s11  ;;  %v998_v9 = vadd.f32 %v994_v8, %v952_v63 }
 0x9c5   :  { %v1902_v10 = vmul.f32 -1.442695, %v998_v9  ;;  %v1999_v9 = vld [vmem:[%s2720_s3 + $0x8] sm:$0xff] }
 0x9c6   :  { %1197 = vmatpush.bf16.msra.mxu3 %v1999_v9 }
 0x9c7   :  { %2076 = vpow2.f32 %v1902_v10 }
 0x9c8   :  { %v953_v1 = vpop.f32.mrf.mxu0 }
 0x9ca   :  { %1198 = vmatpush.bf16.msra.mxu3 %v1998_v14 }
 0x9cd   :  { %v2077_v11 = vpop.eup %2076 }
 0x9ce   :  { %v1002_v13 = vadd.f32 1.0, %v2077_v11 }
 0x9d0   :  { %2078 = vrcp.f32 %v1002_v13  ;;  %v1014_v27 = vand.u32 2147483648, %v1002_v13  ;;  %vm1008_vm7 = vweird.f32 %v1002_v13  ;;  %v1012_v28 = vand.u32 2147483647, %v1002_v13 }
 0x9d2   :  { %v1015_v30 = vor.u32 1.1754944e-38, %v1014_v27  ;;  %vm1013_vm9 = vcmp.eq.f32.partialorder %v1012_v28, 8.507059e+37  ;;  %v2023_v27 = vld [vmem:[%s2722_s5] ss:$0 sm:$0xff] }
 0x9d6   :  { %v2079_v17 = vpop.eup %2078 }
 0x9d7   :  { %v1004_v20 = vmul.f32 %v2079_v17, %v1002_v13  ;;  %vm1009_vm6 = vweird.f32 %v2079_v17 }
 0x9d8   :  { %vm1010_vm8 = vmor %vm1008_vm7, %vm1009_vm6 }
 0x9d9   :  { %v1005_v21 = vsub.f32 1.0, %v1004_v20 }
 0x9db   :  { %v1006_v22 = vmul.f32 %v2079_v17, %v1005_v21 }
 0x9dd   :  { %v1007_v25 = vadd.f32 %v2079_v17, %v1006_v22 }
 0x9df   :  { %v1011_v29 = vsel %vm1010_vm8, %v2079_v17, %v1007_v25 }
 0x9e0   :  { %v1016_v32 = vsel %vm1013_vm9, %v1015_v30, %v1011_v29 }
 0x9e1   :  { %v1029_v56 = vsub.f32 1.0, %v1016_v32 }
 0x9f1   :  { %v988_v3 = vpop.f32.mrf.mxu1 }
 0x9f2   :  { %v989_v4 = vadd.f32 %v2021_v2, %v988_v3 }
 0x9f4   :  { %1062 = vrot.lane.b32.xlu2 %v989_v4, %s2125_s11  ;;  %v1041_v16 = vadd.f32 %v997_v15, %v989_v4 }
 0x9f6   :  { %v1903_v18 = vmul.f32 -1.442695, %v1041_v16 }
 0x9f8   :  { %2080 = vpow2.f32 %v1903_v18  ;;  %v2022_v18 = vld [vmem:[%s2721_s4] ss:$0 sm:$0xff] }
 0x9f9   :  { %v990_v6 = vpop.f32.mrf.mxu1 }
 0x9fe   :  { %v2081_v23 = vpop.eup %2080 }
 0x9ff   :  { %v1045_v24 = vadd.f32 1.0, %v2081_v23  ;;  %v1924_v23 = vld [vmem:[%s2723_s0 + $0x5] sm:$0x1] }
 0xa01   :  { %2082 = vrcp.f32 %v1045_v24  ;;  %v1057_v40 = vand.u32 2147483648, %v1045_v24  ;;  %vm1051_vm11 = vweird.f32 %v1045_v24  ;;  %v1055_v41 = vand.u32 2147483647, %v1045_v24 }
 0xa03   :  { %v1058_v45 = vor.u32 1.1754944e-38, %v1057_v40  ;;  %vm1056_vm13 = vcmp.eq.f32.partialorder %v1055_v41, 8.507059e+37 }
 0xa07   :  { %v2083_v35 = vpop.eup %2082 }
 0xa08   :  { %v1047_v36 = vmul.f32 %v2083_v35, %v1045_v24  ;;  %vm1052_vm10 = vweird.f32 %v2083_v35  ;;  %v1206_v24 = vunpack.c.l.bf16 %v1924_v23 }
 0xa09   :  { %vm1053_vm12 = vmor %vm1051_vm11, %vm1052_vm10 }
 0xa0a   :  { %v1048_v37 = vsub.f32 1.0, %v1047_v36 }
 0xa0c   :  { %v1049_v38 = vmul.f32 %v2083_v35, %v1048_v37 }
 0xa0e   :  { %v1050_v39 = vadd.f32 %v2083_v35, %v1049_v38 }
 0xa10   :  { %v1054_v44 = vsel %vm1053_vm12, %v2083_v35, %v1050_v39 }
 0xa11   :  { %v1059_v46 = vsel %vm1056_vm13, %v1058_v45, %v1054_v44 }
 0xa35   :  { %v1020_v31 = vpop.permute.xlu1 %1019 }
 0xa36   :  { %v1022_v33 = vmul.f32 %v1020_v31, %v1016_v32 }
 0xa38   :  { %1024 = vrot.lane.b32.xlu0 %v1022_v33, %s2125_s11 }
 0xa40   :  { %1036 = vrot.lane.b32.xlu0 %v916_v55, %s2126_s18 }
 0xa4e   :  { %v1063_v43 = vpop.permute.xlu2 %1062 }
 0xa4f   :  { %v1065_v47 = vmul.f32 %v1063_v43, %v1059_v46 }
 0xa51   :  { %1067 = vrot.lane.b32.xlu1 %v1065_v47, %s2125_s11 }
 0xaaa   :  { %v1025_v48 = vpop.permute.xlu0 %1024 }
 0xaab   :  { %v1027_v50 = vadd.f32 %v1025_v48, %v994_v8  ;;  %v1996_v8 = vld [vmem:[%s2719_s2] sm:$0xff] }
 0xaac   :  { %1161 = vmatpush.bf16.msra.mxu2 %v1996_v8  ;;  %v1925_v48 = vld [vmem:[%s2724_s1 + $0x2] sm:$0x1] }
 0xaad   :  { %2084 = vtanh.f32 %v1027_v50  ;;  %v1209_v50 = vunpack.c.l.bf16 %v1925_v48 }
 0xab2   :  { %v1037_v55 = vpop.permute.xlu0 %1036 }
 0xab3   :  { %v2085_v51 = vpop.eup %2084  ;;  %v1039_v58 = vmul.f32 %v1037_v55, %v1016_v32 }
 0xab4   :  { %1031 = vrot.lane.b32.xlu2 %v2085_v51, %s2127_s19 }
 0xabc   :  { %1079 = vrot.lane.b32.xlu2 %v2389_v59, %s2126_s18  ;;  %v1072_v59 = vsub.f32 1.0, %v1059_v46 }
 0xac3   :  { %v1068_v52 = vpop.permute.xlu1 %1067 }
 0xac4   :  { %v1070_v53 = vadd.f32 %v1068_v52, %v997_v15 }
 0xac6   :  { %2086 = vtanh.f32 %v1070_v53 }
 0xacc   :  { %v2087_v54 = vpop.eup %2086 }
 0xacd   :  { %1074 = vrot.lane.b32.xlu1 %v2087_v54, %s2127_s19 }
 0xb0e   :  { %v1032_v57 = vpop.permute.xlu2 %1031 }
 0xb0f   :  { %v1034_v60 = vmul.f32 %v1032_v57, %v1029_v56 }
 0xb11   :  { %v2415_v61 = vadd.f32 %v1039_v58, %v1034_v60 }
 0xb13   :  { %1091 = vst [vmem:[#allocation1] ss:$4 sm:$0xff] %v2415_v61 }
 0xb16   :  { %v1080_v63 = vpop.permute.xlu2 %1079 }
 0xb17   :  { %v1082_v2 = vmul.f32 %v1080_v63, %v1059_v46 }
 0xb1a   :  { %v1092_v62 = vld.sshfl [vmem:[#allocation1] sm:$0xff pattern:$0x73625140] }
 0xb1b   :  { %1093 = vrot.lane.b32.xlu0 %v1092_v62, %s2127_s19 }
 0xb3f   :  { %v1075_v1 = vpop.permute.xlu1 %1074 }
 0xb40   :  { %v1077_v3 = vmul.f32 %v1075_v1, %v1072_v59 }
 0xb42   :  { %v2419_v4 = vadd.f32 %v1082_v2, %v1077_v3 }
 0xb44   :  { %1098 = vst [vmem:[#allocation1] ss:$4 sm:$0xff] %v2419_v4 }
 0xb4b   :  { %v1099_v6 = vld.sshfl [vmem:[#allocation1] sm:$0xff pattern:$0x73625140] }
 0xb4c   :  { %1100 = vrot.lane.b32.xlu1 %v1099_v6, %s2127_s19 }
 0xb8d   :  { %v1094_v10 = vpop.permute.xlu0 %1093 }
 0xb8e   :  { %1096 = vst.msk [vmem:[#allocation2] sm:$0x3] %vm61_vm0, %v1094_v10 }
 0xb95   :  { %v1128_v11 = vld [vmem:[#allocation2] sm:$0x3] }
 0xb96   :  { %v1130_v13 = vpack.c.bf16 %v1128_v11, %v1128_v11 }
 0xb98   :  { %1914 = vmatmul.msk.bf16.vlgmr.msra.gmra.mxu2 %vm87_vm1, %v1130_v13 }
 0xbbe   :  { %v1101_v15 = vpop.permute.xlu1 %1100 }
 0xbbf   :  { %1103 = vst.msk [vmem:[#allocation3] sm:$0x3] %vm61_vm0, %v1101_v15 }
 0xbc6   :  { %v2438_v16 = vld [vmem:[#allocation3] sm:$0x3] }
 0xbc7   :  { %v1167_v17 = vpack.c.bf16 %v2438_v16, %v2438_v16 }
 0xbc9   :  { %1923 = vmatmul.msk.bf16.vlgmr.msra.gmra.mxu3 %vm87_vm1, %v1167_v17 }
 0xc1b   :  { %v1163_v20 = vpop.f32.mrf.mxu2 }
 0xc1c   :  { %v1164_v21 = vadd.f32 %v2022_v18, %v1163_v20 }
 0xc1e   :  { %1231 = vrot.lane.b32.xlu2 %v1164_v21, %s2125_s11  ;;  %v1210_v25 = vadd.f32 %v1206_v24, %v1164_v21 }
 0xc20   :  { %v1926_v28 = vmul.f32 -1.442695, %v1210_v25 }
 0xc22   :  { %2088 = vpow2.f32 %v1926_v28 }
 0xc23   :  { %v1165_v22 = vpop.f32.mrf.mxu2 }
 0xc24   :  { %v2003_v22 = vld [vmem:[%s2720_s3 + $0x8] sm:$0xff] }
 0xc25   :  { %1409 = vmatpush.bf16.msrb.mxu1 %v2003_v22 }
 0xc28   :  { %v2089_v32 = vpop.eup %2088 }
 0xc29   :  { %v1214_v33 = vadd.f32 1.0, %v2089_v32  ;;  %v2001_v32 = vld [vmem:[%s2719_s2 + $0x8] sm:$0xff] }
 0xc2a   :  { %1372 = vmatpush.bf16.msrb.mxu0 %v2001_v32 }
 0xc2b   :  { %2090 = vrcp.f32 %v1214_v33  ;;  %v1226_v40 = vand.u32 2147483648, %v1214_v33  ;;  %vm1220_vm15 = vweird.f32 %v1214_v33  ;;  %v1224_v41 = vand.u32 2147483647, %v1214_v33 }
 0xc2d   :  { %v1227_v45 = vor.u32 1.1754944e-38, %v1226_v40  ;;  %vm1225_vm3 = vcmp.eq.f32.partialorder %v1224_v41, 8.507059e+37  ;;  %v2024_v41 = vld [vmem:[%s2721_s4] ss:$0 sm:$0xff] }
 0xc31   :  { %v2091_v35 = vpop.eup %2090 }
 0xc32   :  { %v1216_v36 = vmul.f32 %v2091_v35, %v1214_v33  ;;  %vm1221_vm14 = vweird.f32 %v2091_v35  ;;  %v2000_v33 = vld [vmem:[%s2719_s2] sm:$0xff] }
 0xc33   :  { %vm1222_vm2 = vmor %vm1220_vm15, %vm1221_vm14  ;;  %1373 = vmatpush.bf16.msrb.mxu0 %v2000_v33 }
 0xc34   :  { %v1217_v37 = vsub.f32 1.0, %v1216_v36 }
 0xc36   :  { %v1218_v38 = vmul.f32 %v2091_v35, %v1217_v37 }
 0xc38   :  { %v1219_v39 = vadd.f32 %v2091_v35, %v1218_v38 }
 0xc3a   :  { %v1223_v44 = vsel %vm1222_vm2, %v2091_v35, %v1219_v39 }
 0xc3b   :  { %v1228_v46 = vsel %vm1225_vm3, %v1227_v45, %v1223_v44  ;;  %v2025_v44 = vld [vmem:[%s2722_s5] ss:$0 sm:$0xff] }
 0xc3c   :  { %v1241_v15 = vsub.f32 1.0, %v1228_v46 }
 0xc4c   :  { %v1200_v29 = vpop.f32.mrf.mxu3 }
 0xc4d   :  { %v1201_v30 = vadd.f32 %v2023_v27, %v1200_v29 }
 0xc4f   :  { %1274 = vrot.lane.b32.xlu0 %v1201_v30, %s2125_s11  ;;  %v1253_v51 = vadd.f32 %v1209_v50, %v1201_v30 }
 0xc51   :  { %v1927_v52 = vmul.f32 -1.442695, %v1253_v51  ;;  %v1948_v51 = vld [vmem:[%s2723_s0 + $0x6] sm:$0x1] }
 0xc53   :  { %2092 = vpow2.f32 %v1927_v52  ;;  %v1949_v52 = vld [vmem:[%s2724_s1 + $0x1] sm:$0x1] }
 0xc54   :  { %v1202_v31 = vpop.f32.mrf.mxu3 }
 0xc55   :  { %v2002_v31 = vld [vmem:[%s2720_s3] sm:$0xff] }
 0xc56   :  { %1410 = vmatpush.bf16.msrb.mxu1 %v2002_v31 }
 0xc59   :  { %v2093_v53 = vpop.eup %2092 }
 0xc5a   :  { %v1257_v54 = vadd.f32 1.0, %v2093_v53  ;;  %v1418_v53 = vunpack.c.l.bf16 %v1948_v51 }
 0xc5c   :  { %2094 = vrcp.f32 %v1257_v54  ;;  %v1269_v62 = vand.u32 2147483648, %v1257_v54  ;;  %vm1263_vm5 = vweird.f32 %v1257_v54  ;;  %v1267_v63 = vand.u32 2147483647, %v1257_v54 }
 0xc5e   :  { %v1270_v1 = vor.u32 1.1754944e-38, %v1269_v62  ;;  %vm1268_vm7 = vcmp.eq.f32.partialorder %v1267_v63, 8.507059e+37 }
 0xc62   :  { %v2095_v55 = vpop.eup %2094 }
 0xc63   :  { %v1259_v56 = vmul.f32 %v2095_v55, %v1257_v54  ;;  %vm1264_vm4 = vweird.f32 %v2095_v55  ;;  %v1421_v54 = vunpack.c.l.bf16 %v1949_v52 }
 0xc64   :  { %vm1265_vm6 = vmor %vm1263_vm5, %vm1264_vm4  ;;  %vm258_vm5 = vcmask 1040384  }
 0xc65   :  { %v1260_v57 = vsub.f32 1.0, %v1259_v56 }
 0xc67   :  { %v1261_v58 = vmul.f32 %v2095_v55, %v1260_v57 }
 0xc69   :  { %v1262_v60 = vadd.f32 %v2095_v55, %v1261_v58 }
 0xc6b   :  { %v1266_v59 = vsel %vm1265_vm6, %v2095_v55, %v1262_v60 }
 0xc6c   :  { %v1271_v3 = vsel %vm1268_vm7, %v1270_v1, %v1266_v59 }
 0xc78   :  { %v1232_v43 = vpop.permute.xlu2 %1231 }
 0xc79   :  { %v1234_v47 = vmul.f32 %v1232_v43, %v1228_v46 }
 0xc7b   :  { %1236 = vrot.lane.b32.xlu1 %v1234_v47, %s2125_s11 }
 0xc83   :  { %1248 = vrot.lane.b32.xlu1 %v1128_v11, %s2126_s18 }
 0xcc1   :  { %v1275_v2 = vpop.permute.xlu0 %1274 }
 0xcc2   :  { %v1277_v6 = vmul.f32 %v1275_v2, %v1271_v3 }
 0xcc4   :  { %1279 = vrot.lane.b32.xlu2 %v1277_v6, %s2125_s11 }
 0xced   :  { %v1237_v7 = vpop.permute.xlu1 %1236 }
 0xcee   :  { %v1239_v8 = vadd.f32 %v1237_v7, %v1206_v24  ;;  %v1284_v24 = vsub.f32 1.0, %v1271_v3 }
 0xcf0   :  { %2096 = vtanh.f32 %v1239_v8 }
 0xcf5   :  { %v1249_v14 = vpop.permute.xlu1 %1248 }
 0xcf6   :  { %v2097_v9 = vpop.eup %2096  ;;  %v1251_v18 = vmul.f32 %v1249_v14, %v1228_v46 }
 0xcf7   :  { %1243 = vrot.lane.b32.xlu0 %v2097_v9, %s2127_s19 }
 0xcff   :  { %1291 = vrot.lane.b32.xlu0 %v2438_v16, %s2126_s18 }
 0xd1e   :  { %v1280_v10 = vpop.permute.xlu2 %1279 }
 0xd1f   :  { %v1282_v11 = vadd.f32 %v1280_v10, %v1209_v50 }
 0xd21   :  { %2098 = vtanh.f32 %v1282_v11 }
 0xd27   :  { %v2099_v13 = vpop.eup %2098 }
 0xd28   :  { %1286 = vrot.lane.b32.xlu2 %v2099_v13, %s2127_s19 }
 0xd69   :  { %v1244_v17 = vpop.permute.xlu0 %1243 }
 0xd6a   :  { %v1246_v20 = vmul.f32 %v1244_v17, %v1241_v15 }
 0xd6c   :  { %v2464_v21 = vadd.f32 %v1251_v18, %v1246_v20 }
 0xd6e   :  { %1303 = vst [vmem:[#allocation1] ss:$4 sm:$0xff] %v2464_v21 }
 0xd71   :  { %v1292_v23 = vpop.permute.xlu0 %1291 }
 0xd72   :  { %v1294_v27 = vmul.f32 %v1292_v23, %v1271_v3 }
 0xd75   :  { %v1304_v16 = vld.sshfl [vmem:[#allocation1] sm:$0xff pattern:$0x73625140] }
 0xd76   :  { %1305 = vrot.lane.b32.xlu1 %v1304_v16, %s2127_s19 }
 0xd82   :  { %v1287_v25 = vpop.permute.xlu2 %1286 }
 0xd83   :  { %v1289_v28 = vmul.f32 %v1287_v25, %v1284_v24 }
 0xd85   :  { %v2471_v29 = vadd.f32 %v1294_v27, %v1289_v28 }
 0xd87   :  { %1310 = vst [vmem:[#allocation1] ss:$4 sm:$0xff] %v2471_v29 }
 0xd8e   :  { %v1311_v30 = vld.sshfl [vmem:[#allocation1] sm:$0xff pattern:$0x73625140] }
 0xd8f   :  { %1312 = vrot.lane.b32.xlu2 %v1311_v30, %s2127_s19 }
 0xde8   :  { %v1306_v35 = vpop.permute.xlu1 %1305 }
 0xde9   :  { %1308 = vst.msk [vmem:[#allocation2] sm:$0x3] %vm61_vm0, %v1306_v35  ;;  %v1313_v36 = vpop.permute.xlu2 %1312 }
 0xdea   :  { %1315 = vst.msk [vmem:[#allocation3] sm:$0x3] %vm61_vm0, %v1313_v36 }
 0xdf0   :  { %v2486_v37 = vld [vmem:[#allocation2] sm:$0x3] }
 0xdf1   :  { %v1342_v38 = vpack.c.bf16 %v2486_v37, %v2486_v37  ;;  %v2490_v39 = vld [vmem:[#allocation3] sm:$0x3] }
 0xdf2   :  { %v1379_v40 = vpack.c.bf16 %v2490_v39, %v2490_v39 }
 0xdf3   :  { %1938 = vmatmul.msk.bf16.vlgmr.msrb.gmra.mxu0 %vm87_vm1, %v1342_v38 }
 0xdf4   :  { %1947 = vmatmul.msk.bf16.vlgmr.msrb.gmra.mxu1 %vm87_vm1, %v1379_v40 }
 0xe70   :  { %v1375_v45 = vpop.f32.mrf.mxu0 }
 0xe71   :  { %v1376_v43 = vadd.f32 %v2024_v41, %v1375_v45  ;;  %v1412_v46 = vpop.f32.mrf.mxu1 }
 0xe72   :  { %v1413_v47 = vadd.f32 %v2025_v44, %v1412_v46 }
 0xe73   :  { %1443 = vrot.lane.b32.xlu0 %v1376_v43, %s2125_s11  ;;  %v1422_v55 = vadd.f32 %v1418_v53, %v1376_v43 }
 0xe74   :  { %1486 = vrot.lane.b32.xlu1 %v1413_v47, %s2125_s11  ;;  %v1465_v56 = vadd.f32 %v1421_v54, %v1413_v47 }
 0xe75   :  { %v1950_v57 = vmul.f32 -1.442695, %v1422_v55  ;;  %v2005_v55 = vld [vmem:[%s2719_s2 + $0x8] sm:$0xff] }
 0xe76   :  { %v1951_v58 = vmul.f32 -1.442695, %v1465_v56  ;;  %1584 = vmatpush.bf16.msrb.mxu2 %v2005_v55  ;;  %v2004_v56 = vld [vmem:[%s2719_s2] sm:$0xff] }
 0xe77   :  { %2100 = vpow2.f32 %v1950_v57  ;;  %v2007_v57 = vld [vmem:[%s2720_s3 + $0x8] sm:$0xff] }
 0xe78   :  { %v1377_v48 = vpop.f32.mrf.mxu0  ;;  %2102 = vpow2.f32 %v1951_v58  ;;  %1621 = vmatpush.bf16.msrb.mxu3 %v2007_v57 }
 0xe79   :  { %v1414_v50 = vpop.f32.mrf.mxu1 }
 0xe7a   :  { %1585 = vmatpush.bf16.msrb.mxu2 %v2004_v56 }
 0xe7d   :  { %v2101_v60 = vpop.eup %2100 }
 0xe7e   :  { %v2103_v62 = vpop.eup %2102  ;;  %v1426_v63 = vadd.f32 1.0, %v2101_v60 }
 0xe7f   :  { %v1469_v59 = vadd.f32 1.0, %v2103_v62 }
 0xe80   :  { %2104 = vrcp.f32 %v1426_v63  ;;  %v1438_v13 = vand.u32 2147483648, %v1426_v63  ;;  %vm1432_vm10 = vweird.f32 %v1426_v63  ;;  %v1436_v15 = vand.u32 2147483647, %v1426_v63 }
 0xe81   :  { %2106 = vrcp.f32 %v1469_v59  ;;  %v1481_v17 = vand.u32 2147483648, %v1469_v59  ;;  %vm1475_vm12 = vweird.f32 %v1469_v59  ;;  %v1479_v18 = vand.u32 2147483647, %v1469_v59 }
 0xe82   :  { %v1439_v22 = vor.u32 1.1754944e-38, %v1438_v13  ;;  %vm1437_vm14 = vcmp.eq.f32.partialorder %v1436_v15, 8.507059e+37 }
 0xe83   :  { %v1482_v23 = vor.u32 1.1754944e-38, %v1481_v17  ;;  %vm1480_vm15 = vcmp.eq.f32.partialorder %v1479_v18, 8.507059e+37 }
 0xe86   :  { %v2105_v1 = vpop.eup %2104 }
 0xe87   :  { %v2107_v2 = vpop.eup %2106  ;;  %v1428_v3 = vmul.f32 %v2105_v1, %v1426_v63  ;;  %vm1433_vm8 = vweird.f32 %v2105_v1  ;;  %v2006_v63 = vld [vmem:[%s2720_s3] sm:$0xff] }
 0xe88   :  { %v1471_v6 = vmul.f32 %v2107_v2, %v1469_v59  ;;  %vm1476_vm9 = vweird.f32 %v2107_v2  ;;  %vm1434_vm11 = vmor %vm1432_vm10, %vm1433_vm8  ;;  %1622 = vmatpush.bf16.msrb.mxu3 %v2006_v63  ;;  %vm266_vm10 = vcmask 253952  }
 0xe89   :  { %v1429_v7 = vsub.f32 1.0, %v1428_v3  ;;  %vm1477_vm13 = vmor %vm1475_vm12, %vm1476_vm9  ;;  %v2026_v3 = vld [vmem:[%s2721_s4] ss:$0 sm:$0xff] }
 0xe8a   :  { %v1472_v8 = vsub.f32 1.0, %v1471_v6 }
 0xe8b   :  { %v1430_v9 = vmul.f32 %v2105_v1, %v1429_v7 }
 0xe8c   :  { %v1473_v10 = vmul.f32 %v2107_v2, %v1472_v8 }
 0xe8d   :  { %v1431_v11 = vadd.f32 %v2105_v1, %v1430_v9  ;;  %v2027_v9 = vld [vmem:[%s2722_s5] ss:$0 sm:$0xff] }
 0xe8e   :  { %v1474_v14 = vadd.f32 %v2107_v2, %v1473_v10 }
 0xe8f   :  { %v1435_v20 = vsel %vm1434_vm11, %v2105_v1, %v1431_v11 }
 0xe90   :  { %v1478_v16 = vsel %vm1477_vm13, %v2107_v2, %v1474_v14  ;;  %v1440_v25 = vsel %vm1437_vm14, %v1439_v22, %v1435_v20  ;;  %v2557_v14 = vld [vmem:[%s2723_s0 + $0x7] sm:$0x1] }
 0xe91   :  { %v1483_v30 = vsel %vm1480_vm15, %v1482_v23, %v1478_v16  ;;  %v1453_v44 = vsub.f32 1.0, %v1440_v25  ;;  %v1630_v15 = vunpack.c.l.bf16 %v2557_v14  ;;  %v2565_v16 = vld [vmem:[%s2724_s1] sm:$0x1] }
 0xe92   :  { %v1632_v23 = vunpack.c.l.bf16 %v2565_v16  ;;  %v268_v16 = vpack.c.bf16 %v2218_v5, %v2218_v5  ;;  %v680_v5 = vpack.c.bf16 %v2312_v26, %v2312_v26 }
 0xee5   :  { %v1444_v24 = vpop.permute.xlu0 %1443 }
 0xee6   :  { %v1446_v27 = vmul.f32 %v1444_v24, %v1440_v25  ;;  %v1487_v28 = vpop.permute.xlu1 %1486 }
 0xee7   :  { %v1489_v31 = vmul.f32 %v1487_v28, %v1483_v30 }
 0xee8   :  { %1448 = vrot.lane.b32.xlu2 %v1446_v27, %s2125_s11 }
 0xee9   :  { %1491 = vrot.lane.b32.xlu0 %v1489_v31, %s2125_s11 }
 0xef0   :  { %1460 = vrot.lane.b32.xlu2 %v2486_v37, %s2126_s18 }
 0xf42   :  { %v1449_v32 = vpop.permute.xlu2 %1448 }
 0xf43   :  { %v1451_v33 = vadd.f32 %v1449_v32, %v1418_v53 }
 0xf45   :  { %2108 = vtanh.f32 %v1451_v33 }
 0xf4a   :  { %v1461_v41 = vpop.permute.xlu2 %1460 }
 0xf4b   :  { %v2109_v35 = vpop.eup %2108  ;;  %v1463_v43 = vmul.f32 %v1461_v41, %v1440_v25 }
 0xf4c   :  { %1455 = vrot.lane.b32.xlu1 %v2109_v35, %s2127_s19 }
 0xf54   :  { %1503 = vrot.lane.b32.xlu1 %v2490_v39, %s2126_s18  ;;  %v1496_v39 = vsub.f32 1.0, %v1483_v30 }
 0xf5b   :  { %v1492_v36 = vpop.permute.xlu0 %1491 }
 0xf5c   :  { %v1494_v38 = vadd.f32 %v1492_v36, %v1421_v54 }
 0xf5e   :  { %2110 = vtanh.f32 %v1494_v38 }
 0xf64   :  { %v2111_v40 = vpop.eup %2110 }
 0xf65   :  { %1498 = vrot.lane.b32.xlu0 %v2111_v40, %s2127_s19 }
 0xfbe   :  { %v1456_v45 = vpop.permute.xlu1 %1455 }
 0xfbf   :  { %v1458_v37 = vmul.f32 %v1456_v45, %v1453_v44 }
 0xfc1   :  { %v2518_v46 = vadd.f32 %v1463_v43, %v1458_v37 }
 0xfc3   :  { %1515 = vst [vmem:[#allocation1] ss:$4 sm:$0xff] %v2518_v46 }
 0xfc6   :  { %v1504_v48 = vpop.permute.xlu1 %1503 }
 0xfc7   :  { %v1506_v51 = vmul.f32 %v1504_v48, %v1483_v30  ;;  %v255_v48 = vpack.c.bf16 %v2214_v0, %v2214_v0 }
 0xfca   :  { %v1516_v47 = vld.sshfl [vmem:[#allocation1] sm:$0xff pattern:$0x73625140] }
 0xfcb   :  { %1517 = vrot.lane.b32.xlu2 %v1516_v47, %s2127_s19 }
 0xfd7   :  { %v1499_v50 = vpop.permute.xlu0 %1498 }
 0xfd8   :  { %v1501_v52 = vmul.f32 %v1499_v50, %v1496_v39  ;;  %v257_v50 = vrot.slane %v255_v48, 3 }
 0xfda   :  { %v2522_v53 = vadd.f32 %v1506_v51, %v1501_v52  ;;  %v480_v52 = vpack.c.bf16 %v2267_v19, %v2267_v19  ;;  %v892_v19 = vpack.c.bf16 %v2366_v42, %v2366_v42  ;;  %v1528_v42 = vpack.c.bf16 %v2518_v46, %v2518_v46 }
 0xfdc   :  { %1522 = vst [vmem:[#allocation1] ss:$4 sm:$0xff] %v2522_v53 }
 0xfe3   :  { %v1523_v54 = vld.sshfl [vmem:[#allocation1] sm:$0xff pattern:$0x73625140] }
 0xfe4   :  { %1524 = vrot.lane.b32.xlu0 %v1523_v54, %s2127_s19  ;;  %v261_v54 = vsel %vm258_vm5, %v255_v48, %v257_v50  ;;  %v1540_v48 = vpack.c.bf16 %v2522_v53, %v2522_v53 }
0x1025   :  { %v1518_v58 = vpop.permute.xlu2 %1517 }
0x1026   :  { %1520 = vst.msk [vmem:[#allocation2] sm:$0x3] %vm61_vm0, %v1518_v58  ;;  %v482_v58 = vrot.slane %v480_v52, 3 }
0x102d   :  { %v1552_v60 = vld [vmem:[#allocation2] sm:$0x3] }
0x102e   :  { %v1554_v62 = vpack.c.bf16 %v1552_v60, %v1552_v60 }
0x1030   :  { %1962 = vmatmul.msk.bf16.vlgmr.msrb.gmra.mxu2 %vm87_vm1, %v1554_v62 }
0x1056   :  { %v1525_v59 = vpop.permute.xlu0 %1524 }
0x1057   :  { %1527 = vst.msk [vmem:[#allocation3] sm:$0x3] %vm61_vm0, %v1525_v59 }
0x105e   :  { %v2541_v1 = vld [vmem:[#allocation3] sm:$0x3] }
0x105f   :  { %v1591_v2 = vpack.c.bf16 %v2541_v1, %v2541_v1 }
0x1061   :  { %1971 = vmatmul.msk.bf16.vlgmr.msrb.gmra.mxu3 %vm87_vm1, %v1591_v2  ;;  %v485_v2 = vsel %vm258_vm5, %v480_v52, %v482_v58 }
0x10b3   :  { %v1587_v6 = vpop.f32.mrf.mxu2 }
0x10b4   :  { %v1588_v7 = vadd.f32 %v2026_v3, %v1587_v6  ;;  %v894_v3 = vrot.slane %v892_v19, 3  ;;  %v1116_v6 = vpack.c.bf16 %v2419_v4, %v2419_v4 }
0x10b6   :  { %1654 = vrot.lane.b32.xlu1 %v1588_v7, %s2125_s11  ;;  %v1633_v17 = vadd.f32 %v1630_v15, %v1588_v7  ;;  %v897_v7 = vsel %vm258_vm5, %v892_v19, %v894_v3 }
0x10b8   :  { %v1973_v18 = vmul.f32 -1.442695, %v1633_v17 }
0x10ba   :  { %2112 = vpow2.f32 %v1973_v18 }
0x10bb   :  { %v1589_v8 = vpop.f32.mrf.mxu2 }
0x10bc   :  { %v1118_v8 = vrot.slane %v1116_v6, 3 }
0x10c0   :  { %v2113_v20 = vpop.eup %2112 }
0x10c1   :  { %v1637_v22 = vadd.f32 1.0, %v2113_v20  ;;  %v468_v20 = vpack.c.bf16 %v2263_v12, %v2263_v12 }
0x10c3   :  { %2114 = vrcp.f32 %v1637_v22  ;;  %v1649_v36 = vand.u32 2147483648, %v1637_v22  ;;  %vm1643_vm2 = vweird.f32 %v1637_v22  ;;  %v1647_v38 = vand.u32 2147483647, %v1637_v22 }
0x10c4   :  { %v470_v14 = vrot.slane %v468_v20, 3 }
0x10c5   :  { %v1650_v41 = vor.u32 1.1754944e-38, %v1649_v36  ;;  %vm1648_vm4 = vcmp.eq.f32.partialorder %v1647_v38, 8.507059e+37  ;;  %v682_v38 = vrot.slane %v680_v5, 3 }
0x10c6   :  { %v473_v12 = vsel %vm258_vm5, %v468_v20, %v470_v14 }
0x10c7   :  { %v685_v26 = vsel %vm258_vm5, %v680_v5, %v682_v38 }
0x10c9   :  { %v2115_v25 = vpop.eup %2114 }
0x10ca   :  { %v1639_v28 = vmul.f32 %v2115_v25, %v1637_v22  ;;  %vm1644_vm1 = vweird.f32 %v2115_v25  ;;  %v692_v22 = vpack.c.bf16 %v2319_v34, %v2319_v34 }
0x10cb   :  { %vm1645_vm3 = vmor %vm1643_vm2, %vm1644_vm1 }
0x10cc   :  { %v1640_v30 = vsub.f32 1.0, %v1639_v28  ;;  %v1104_v28 = vpack.c.bf16 %v2415_v61, %v2415_v61  ;;  %v1328_v61 = vpack.c.bf16 %v2471_v29, %v2471_v29 }
0x10ce   :  { %v1641_v31 = vmul.f32 %v2115_v25, %v1640_v30  ;;  %v1330_v36 = vrot.slane %v1328_v61, 3 }
0x10d0   :  { %v1642_v35 = vadd.f32 %v2115_v25, %v1641_v31  ;;  %v270_v31 = vrot.slane %v268_v16, 3  ;;  %v1333_v29 = vsel %vm258_vm5, %v1328_v61, %v1330_v36 }
0x10d2   :  { %v1646_v40 = vsel %vm1645_vm3, %v2115_v25, %v1642_v35  ;;  %v273_v35 = vsel %vm258_vm5, %v268_v16, %v270_v31 }
0x10d3   :  { %v2570_v45 = vsel %vm1648_vm4, %v1650_v41, %v1646_v40  ;;  %v904_v41 = vpack.c.bf16 %v2370_v49, %v2370_v49 }
0x10e4   :  { %v1624_v10 = vpop.f32.mrf.mxu3 }
0x10e5   :  { %v1625_v11 = vadd.f32 %v2027_v9, %v1624_v10  ;;  %v1121_v9 = vsel %vm258_vm5, %v1116_v6, %v1118_v8  ;;  %v1530_v10 = vrot.slane %v1528_v42, 3 }
0x10e7   :  { %1697 = vrot.lane.b32.xlu2 %v1625_v11, %s2125_s11  ;;  %v1676_v24 = vadd.f32 %v1632_v23, %v1625_v11  ;;  %v1533_v11 = vsel %vm258_vm5, %v1528_v42, %v1530_v10 }
0x10e9   :  { %v1974_v27 = vmul.f32 -1.442695, %v1676_v24 }
0x10eb   :  { %2116 = vpow2.f32 %v1974_v27 }
0x10ec   :  { %v1626_v13 = vpop.f32.mrf.mxu3 }
0x10f1   :  { %v2117_v32 = vpop.eup %2116 }
0x10f2   :  { %v1680_v33 = vadd.f32 1.0, %v2117_v32 }
0x10f4   :  { %2118 = vrcp.f32 %v1680_v33  ;;  %v1692_v56 = vand.u32 2147483648, %v1680_v33  ;;  %vm1686_vm7 = vweird.f32 %v1680_v33  ;;  %v1690_v57 = vand.u32 2147483647, %v1680_v33 }
0x10f6   :  { %v1693_v62 = vor.u32 1.1754944e-38, %v1692_v56  ;;  %vm1691_vm9 = vcmp.eq.f32.partialorder %v1690_v57, 8.507059e+37 }
0x10fa   :  { %v2119_v37 = vpop.eup %2118 }
0x10fb   :  { %v1682_v47 = vmul.f32 %v2119_v37, %v1680_v33  ;;  %vm1687_vm6 = vweird.f32 %v2119_v37 }
0x10fc   :  { %vm1688_vm8 = vmor %vm1686_vm7, %vm1687_vm6 }
0x10fd   :  { %v1683_v39 = vsub.f32 1.0, %v1682_v47 }
0x10ff   :  { %v1684_v51 = vmul.f32 %v2119_v37, %v1683_v39  ;;  %v1542_v39 = vrot.slane %v1540_v48, 3 }
0x1101   :  { %v1685_v55 = vadd.f32 %v2119_v37, %v1684_v51  ;;  %v1545_v50 = vsel %vm258_vm5, %v1540_v48, %v1542_v39  ;;  %v1664_v51 = vsub.f32 1.0, %v2570_v45 }
0x1103   :  { %v1689_v0 = vsel %vm1688_vm8, %v2119_v37, %v1685_v55 }
0x1104   :  { %v2581_v63 = vsel %vm1691_vm9, %v1693_v62, %v1689_v0 }
0x1128   :  { %v1655_v44 = vpop.permute.xlu1 %1654 }
0x1129   :  { %v1657_v43 = vmul.f32 %v1655_v44, %v2570_v45  ;;  %v906_v44 = vrot.slane %v904_v41, 3 }
0x112b   :  { %1659 = vrot.lane.b32.xlu0 %v1657_v43, %s2125_s11  ;;  %v1316_v43 = vpack.c.bf16 %v2464_v21, %v2464_v21  ;;  %v909_v37 = vsel %vm258_vm5, %v904_v41, %v906_v44 }
0x112d   :  { %v1318_v47 = vrot.slane %v1316_v43, 3 }
0x112f   :  { %v1321_v49 = vsel %vm258_vm5, %v1316_v43, %v1318_v47 }
0x1133   :  { %1671 = vrot.lane.b32.xlu0 %v1552_v60, %s2126_s18 }
0x113b   :  { %263 = vrot.lane.b32.xlu0 %v261_v54, %s2127_s19 }
0x1141   :  { %v1698_v60 = vpop.permute.xlu2 %1697 }
0x1142   :  { %v1700_v59 = vmul.f32 %v1698_v60, %v2581_v63 }
0x1143   :  { %487 = vrot.lane.b32.xlu0 %v485_v2, %s2127_s19 }
0x1144   :  { %1702 = vrot.lane.b32.xlu1 %v1700_v59, %s2125_s11  ;;  %v1707_v59 = vsub.f32 1.0, %v2581_v63 }
0x114b   :  { %899 = vrot.lane.b32.xlu0 %v897_v7, %s2127_s19 }
0x1153   :  { %1123 = vrot.lane.b32.xlu0 %v1121_v9, %s2127_s19 }
0x115b   :  { %1535 = vrot.lane.b32.xlu0 %v1533_v11, %s2127_s19 }
0x119d   :  { %v1660_v13 = vpop.permute.xlu0 %1659 }
0x119e   :  { %v1662_v4 = vadd.f32 %v1660_v13, %v1630_v15 }
0x11a0   :  { %2120 = vtanh.f32 %v1662_v4 }
0x11a5   :  { %v1672_v17 = vpop.permute.xlu0 %1671 }
0x11a6   :  { %v2121_v18 = vpop.eup %2120  ;;  %v1674_v52 = vmul.f32 %v1672_v17, %v2570_v45 }
0x11a7   :  { %1666 = vrot.lane.b32.xlu2 %v2121_v18, %s2127_s19 }
0x11ad   :  { %v264_v46 = vpop.permute.xlu0 %263 }
0x11ae   :  { %267 = vst.msk [vmem:[%s2725_s6] sm:$0x1] %vm266_vm10, %v264_v46 }
0x11af   :  { %1714 = vrot.lane.b32.xlu2 %v2541_v1, %s2126_s18  ;;  %v694_v1 = vrot.slane %v692_v22, 3 }
0x11b1   :  { %v697_v34 = vsel %vm258_vm5, %v692_v22, %v694_v1 }
0x11b5   :  { %v488_v15 = vpop.permute.xlu0 %487 }
0x11b6   :  { %v1703_v24 = vpop.permute.xlu1 %1702  ;;  %1833 = vst.msk [vmem:[%s2726_s7 + $0x6] sm:$0x1] %vm266_vm10, %v488_v15 }
0x11b7   :  { %v1705_v25 = vadd.f32 %v1703_v24, %v1632_v23  ;;  %475 = vrot.lane.b32.xlu2 %v473_v12, %s2127_s19  ;;  %v1106_v23 = vrot.slane %v1104_v28, 3 }
0x11b9   :  { %2122 = vtanh.f32 %v1705_v25  ;;  %v1109_v33 = vsel %vm258_vm5, %v1104_v28, %v1106_v23 }
0x11bd   :  { %v900_v27 = vpop.permute.xlu0 %899 }
0x11be   :  { %1880 = vst.msk [vmem:[%s2725_s6 + $0x3] sm:$0x1] %vm266_vm10, %v900_v27 }
0x11bf   :  { %v2123_v30 = vpop.eup %2122  ;;  %699 = vrot.lane.b32.xlu2 %v697_v34, %s2127_s19 }
0x11c0   :  { %1709 = vrot.lane.b32.xlu1 %v2123_v30, %s2127_s19 }
0x11c5   :  { %v1124_v32 = vpop.permute.xlu0 %1123 }
0x11c6   :  { %1905 = vst.msk [vmem:[%s2726_s7 + $0x3] sm:$0x1] %vm266_vm10, %v1124_v32 }
0x11c7   :  { %1111 = vrot.lane.b32.xlu2 %v1109_v33, %s2127_s19 }
0x11c8   :  { %275 = vrot.lane.b32.xlu1 %v273_v35, %s2127_s19 }
0x11cd   :  { %v1536_v40 = vpop.permute.xlu0 %1535 }
0x11ce   :  { %1952 = vst.msk [vmem:[%s2725_s6 + $0x6] sm:$0x1] %vm266_vm10, %v1536_v40 }
0x11cf   :  { %1335 = vrot.lane.b32.xlu2 %v1333_v29, %s2127_s19 }
0x11d0   :  { %687 = vrot.lane.b32.xlu1 %v685_v26, %s2127_s19 }
0x11d8   :  { %911 = vrot.lane.b32.xlu1 %v909_v37, %s2127_s19 }
0x11e0   :  { %1323 = vrot.lane.b32.xlu1 %v1321_v49, %s2127_s19 }
0x11e8   :  { %1547 = vrot.lane.b32.xlu1 %v1545_v50, %s2127_s19 }
0x1201   :  { %v1667_v21 = vpop.permute.xlu2 %1666 }
0x1202   :  { %v1669_v54 = vmul.f32 %v1667_v21, %v1664_v51 }
0x1204   :  { %v1675_v55 = vadd.f32 %v1674_v52, %v1669_v54 }
0x1206   :  { %v1738_v56 = vpack.c.bf16 %v1675_v55, %v1675_v55  ;;  %1725 = vst [vmem:[#allocation1] ss:$4 sm:$0xff] %v1675_v55 }
0x1208   :  { %v1740_v57 = vrot.slane %v1738_v56, 3 }
0x1209   :  { %v1715_v53 = vpop.permute.xlu2 %1714 }
0x120a   :  { %v1743_v0 = vsel %vm258_vm5, %v1738_v56, %v1740_v57  ;;  %v1717_v3 = vmul.f32 %v1715_v53, %v2581_v63 }
0x120b   :  { %1745 = vrot.lane.b32.xlu1 %v1743_v0, %s2127_s19 }
0x120d   :  { %v1726_v58 = vld.sshfl [vmem:[#allocation1] sm:$0xff pattern:$0x73625140] }
0x120e   :  { %1727 = vrot.lane.b32.xlu2 %v1726_v58, %s2127_s19 }
0x1211   :  { %v476_v62 = vpop.permute.xlu2 %475 }
0x1212   :  { %1832 = vst.msk [vmem:[%s2725_s6 + $0x1] sm:$0x1] %vm266_vm10, %v476_v62 }
0x1219   :  { %v700_v45 = vpop.permute.xlu2 %699 }
0x121a   :  { %1857 = vst.msk [vmem:[%s2726_s7 + $0x5] sm:$0x1] %vm266_vm10, %v700_v45 }
0x1221   :  { %v1112_v60 = vpop.permute.xlu2 %1111 }
0x1222   :  { %1904 = vst.msk [vmem:[%s2725_s6 + $0x4] sm:$0x1] %vm266_vm10, %v1112_v60 }
0x1229   :  { %v1336_v19 = vpop.permute.xlu2 %1335 }
0x122a   :  { %1929 = vst.msk [vmem:[%s2726_s7 + $0x2] sm:$0x1] %vm266_vm10, %v1336_v19 }
0x1232   :  { %v1710_v2 = vpop.permute.xlu1 %1709 }
0x1233   :  { %v1712_v6 = vmul.f32 %v1710_v2, %v1707_v59 }
0x1235   :  { %v1718_v7 = vadd.f32 %v1717_v3, %v1712_v6 }
0x1237   :  { %v1750_v8 = vpack.c.bf16 %v1718_v7, %v1718_v7  ;;  %1732 = vst [vmem:[#allocation1] ss:$4 sm:$0xff] %v1718_v7 }
0x1239   :  { %v1752_v42 = vrot.slane %v1750_v8, 3 }
0x123a   :  { %v276_v9 = vpop.permute.xlu1 %275 }
0x123b   :  { %1809 = vst.msk [vmem:[%s2726_s7 + $0x7] sm:$0x1] %vm266_vm10, %v276_v9  ;;  %v1755_v10 = vsel %vm258_vm5, %v1750_v8, %v1752_v42 }
0x123c   :  { %1757 = vrot.lane.b32.xlu2 %v1755_v10, %s2127_s19 }
0x123e   :  { %v1733_v11 = vld.sshfl [vmem:[#allocation1] sm:$0xff pattern:$0x73625140] }
0x123f   :  { %1734 = vrot.lane.b32.xlu0 %v1733_v11, %s2127_s19 }
0x1242   :  { %v688_v13 = vpop.permute.xlu1 %687 }
0x1243   :  { %1856 = vst.msk [vmem:[%s2725_s6 + $0x2] sm:$0x1] %vm266_vm10, %v688_v13 }
0x124a   :  { %v912_v63 = vpop.permute.xlu1 %911 }
0x124b   :  { %1881 = vst.msk [vmem:[%s2726_s7 + $0x4] sm:$0x1] %vm266_vm10, %v912_v63 }
0x1252   :  { %v1324_v4 = vpop.permute.xlu1 %1323 }
0x1253   :  { %1928 = vst.msk [vmem:[%s2725_s6 + $0x5] sm:$0x1] %vm266_vm10, %v1324_v4 }
0x125a   :  { %v1548_v17 = vpop.permute.xlu1 %1547 }
0x125b   :  { %1953 = vst.msk [vmem:[%s2726_s7 + $0x1] sm:$0x1] %vm266_vm10, %v1548_v17 }
0x1268   :  { %v1728_v18 = vpop.permute.xlu2 %1727 }
0x1269   :  { %1730 = vst.msk [vmem:[#allocation2] sm:$0x3] %vm61_vm0, %v1728_v18 }
0x127d   :  { %v1746_v46 = vpop.permute.xlu1 %1745 }
0x127e   :  { %1975 = vst.msk [vmem:[%s2725_s6 + $0x7] sm:$0x1] %vm266_vm10, %v1746_v46 }
0x1296   :  { %v1758_v20 = vpop.permute.xlu2 %1757 }
0x1297   :  { %1760 = vst.msk [vmem:[%s2726_s7] sm:$0x1] %vm266_vm10, %v1758_v20 }
0x12b1   :  { %v1735_v14 = vpop.permute.xlu0 %1734 }
0x12b2   :  { %1737 = vst.msk [vmem:[#allocation3] sm:$0x3] %vm61_vm0, %v1735_v14 }

</bundles_post_ra>
